<compile_context>
chip_gen: v5e
topology: v5e:2x2
jax: 0.10.0
libtpu: 0.0.40
codegen_flags: <defaults>
</compile_context>

<pallas_src>
import jax
import jax.numpy as jnp
from jax.experimental import pallas as pl
from jax.experimental.pallas import tpu as pltpu

LEAKY_SLOPE = 0.01          # F.leaky_relu default negative_slope
C1, C2, C3 = 128, 128, 256  # conv out-channels (conv1: 64 padded to 128)
K1 = 16                     # conv1 im2col contraction (9 taps zero-padded to 16)
NC_PAD = 128                # fc3 out lanes padded to 128
NEG = -1e30                 # bias for padded logits -> softmax weight exactly 0


def _leaky(x):
    return jnp.where(x >= 0, x, LEAKY_SLOPE * x)


def _pool2x2(y):
    # (NB, H, W, C) -> (NB, H//2, W//2, C); channel (lane) dim untouched.
    nb, h, w, c = y.shape
    a = jnp.max(y.reshape(nb, h // 2, 2, w, c), axis=2)
    return jnp.max(a.reshape(nb, h // 2, w // 2, 2, c), axis=3)


def _conv3x3(xp_ref, w_ref, b_ref):
    # xp_ref: VMEM scratch (NB, H+2, W+2, Cin) f32 with zero border.
    # w_ref:  (9, Cin, Cout) bf16 (taps in ky*3+kx order).  b_ref: (1, Cout) f32.
    xp = xp_ref[...].astype(jnp.bfloat16)          # cast ONCE, not per tap
    nb, hp, wp, cin = xp.shape
    h, w = hp - 2, wp - 2
    cout = w_ref.shape[-1]
    acc = jnp.zeros((nb * h * w, cout), jnp.float32)
    for t in range(9):                             # static unroll over 9 taps
        ky, kx = divmod(t, 3)
        patch = xp[:, ky:ky + h, kx:kx + w, :].reshape(nb * h * w, cin)
        acc = acc + jnp.dot(patch, w_ref[t], preferred_element_type=jnp.float32)
    return _leaky(acc + b_ref[...]).reshape(nb, h, w, cout)


def make_net_kernel(nb, img):
    h1, h2, h3, h4 = img, img // 2, img // 4, img // 8

    def kernel(xc_ref, w1c_ref, b1c_ref, w2c_ref, b2c_ref, w3c_ref, b3c_ref,
               wf1_ref, bf1_ref, wf2_ref, bf2_ref, wf3_ref, bf3_ref,
               o_ref, pad2_ref, pad3_ref):
        # ---- conv1: Cin=1 -> im2col matmul, M = NB*H*W, K = 16, N = 128 ----
        xc = xc_ref[...].reshape(nb * h1 * h1, K1)                 # bf16
        a1 = jnp.dot(xc, w1c_ref[...], preferred_element_type=jnp.float32)
        y1 = _leaky(a1 + b1c_ref[...]).reshape(nb, h1, h1, C1)
        p1 = _pool2x2(y1)                                          # (NB,h2,h2,C1)

        # ---- conv2 (spatial zero-pad via VMEM scratch, activations on-chip) --
        pad2_ref[...] = jnp.zeros(pad2_ref.shape, pad2_ref.dtype)
        pad2_ref[:, 1:1 + h2, 1:1 + h2, :] = p1
        p2 = _pool2x2(_conv3x3(pad2_ref, w2c_ref, b2c_ref))        # (NB,h3,h3,C2)

        # ---- conv3 -----------------------------------------------------------
        pad3_ref[...] = jnp.zeros(pad3_ref.shape, pad3_ref.dtype)
        pad3_ref[:, 1:1 + h3, 1:1 + h3, :] = p2
        p3 = _pool2x2(_conv3x3(pad3_ref, w3c_ref, b3c_ref))        # (NB,h4,h4,C3)

        # ---- fc1: accumulate over spatial positions (no flatten/transpose;
        #      weights pre-permuted host-side from NCHW-flatten order) --------
        p3b = p3.astype(jnp.bfloat16)                              # cast once
        acc = jnp.zeros((nb, 512), jnp.float32)
        for i in range(h4 * h4):
            hh, ww = divmod(i, h4)
            acc = acc + jnp.dot(p3b[:, hh, ww, :], wf1_ref[i],
                                preferred_element_type=jnp.float32)
        f = _leaky(acc + bf1_ref[...])

        # ---- fc2 -> fc3 (lane-padded) -> softmax -----------------------------
        f = _leaky(jnp.dot(f.astype(jnp.bfloat16), wf2_ref[...],
                           preferred_element_type=jnp.float32) + bf2_ref[...])
        logits = jnp.dot(f.astype(jnp.bfloat16), wf3_ref[...],
                         preferred_element_type=jnp.float32) + bf3_ref[...]
        m = jnp.max(logits, axis=1, keepdims=True)
        e = jnp.exp(logits - m)                    # padded cols: exp(-1e30) == 0
        probs = e / jnp.sum(e, axis=1, keepdims=True)
        o_ref[0] = probs                           # lane-dense (nb, 128) store

    return kernel


def net_forward(x_nchw, params, *, nc):
    n, cin, img, img_w = x_nchw.shape
    assert cin == 1 and img == img_w and img % 8 == 0 and nc <= NC_PAD

    (w1c, b1c, w2c, b2c, w3c, b3c) = params["conv"]
    (wf1, bf1, wf2, bf2, wf3, bf3) = params["fc"]

    # conv1 im2col in the (tiny) XLA wrapper: 9 shifted views of the zero-padded
    # image stacked as the contraction dim, padded 9 -> 16, cast to bf16.
    xp = jnp.pad(x_nchw[:, 0], ((0, 0), (1, 1), (1, 1)))
    cols = jnp.stack([xp[:, ky:ky + img, kx:kx + img]
                      for ky in range(3) for kx in range(3)], axis=-1)
    x_cols = jnp.pad(cols.reshape(n, img * img, 9),
                     ((0, 0), (0, 0), (0, K1 - 9))).astype(jnp.bfloat16)

    g = 2 if n % 2 == 0 else 1      # 2 parallel batch chunks for dual-TC chips
    nb = n // g
    h2, h3 = img // 2, img // 4

    out = pl.pallas_call(
        make_net_kernel(nb, img),
        out_shape=jax.ShapeDtypeStruct((g, nb, NC_PAD), jnp.float32),
        grid=(g,),
        in_specs=[
            pl.BlockSpec((nb, img * img, K1), lambda i: (i, 0, 0)),
            pl.BlockSpec((K1, C1), lambda i: (0, 0)),
            pl.BlockSpec((1, C1), lambda i: (0, 0)),
            pl.BlockSpec((9, C1, C2), lambda i: (0, 0, 0)),
            pl.BlockSpec((1, C2), lambda i: (0, 0)),
            pl.BlockSpec((9, C2, C3), lambda i: (0, 0, 0)),
            pl.BlockSpec((1, C3), lambda i: (0, 0)),
            pl.BlockSpec(wf1.shape, lambda i: (0, 0, 0)),
            pl.BlockSpec((1, 512), lambda i: (0, 0)),
            pl.BlockSpec((512, 256), lambda i: (0, 0)),
            pl.BlockSpec((1, 256), lambda i: (0, 0)),
            pl.BlockSpec((256, NC_PAD), lambda i: (0, 0)),
            pl.BlockSpec((1, NC_PAD), lambda i: (0, 0)),
        ],
        out_specs=pl.BlockSpec((1, nb, NC_PAD), lambda i: (i, 0, 0)),
        scratch_shapes=[
            pltpu.VMEM((nb, h2 + 2, h2 + 2, C1), jnp.float32),  # padded conv2 in
            pltpu.VMEM((nb, h3 + 2, h3 + 2, C2), jnp.float32),  # padded conv3 in
        ],
        compiler_params=pltpu.CompilerParams(
            dimension_semantics=("parallel",)),
    )(x_cols, w1c, b1c, w2c, b2c, w3c, b3c, wf1, bf1, wf2, bf2, wf3, bf3)
    return out.reshape(n, NC_PAD)[:, :nc]


def init_params(key, nc, img_size):
    ks = jax.random.split(key, 12)
    s = img_size // 8                 # spatial size after 3 maxpools
    lin = 256 * s * s                 # == Net.linearized

    def conv_w(k, cin, cout, cin_pad, cout_pad):
        # torch layout (cout, cin, 3, 3)  ->  (ky*3+kx, cin, cout), channel-padded.
        w = jax.random.normal(k, (9, cin, cout), jnp.float32) * 0.05
        w = jnp.pad(w, ((0, 0), (0, cin_pad - cin), (0, cout_pad - cout)))
        return w.astype(jnp.bfloat16)

    def bias(k, cout, cout_pad):
        b = jax.random.normal(k, (1, cout), jnp.float32) * 0.05
        return jnp.pad(b, ((0, 0), (0, cout_pad - cout)))

    # conv1: Cin=1 as im2col taps (9 -> 16 rows), Cout 64 -> 128 (zero pad).
    w1 = jax.random.normal(ks[0], (9, 64), jnp.float32) * 0.05
    w1c = jnp.pad(w1, ((0, K1 - 9), (0, C1 - 64))).astype(jnp.bfloat16)
    b1c = bias(ks[1], 64, C1)

    w2c = conv_w(ks[2], 64, 128, C1, C2)     # rows for padded conv1 chans are 0
    b2c = bias(ks[3], 128, C2)
    w3c = conv_w(ks[4], 128, 256, C2, C3)
    b3c = bias(ks[5], 256, C3)

    def fc_w(k, din, dout):
        return jax.random.normal(k, (din, dout), jnp.float32) / jnp.sqrt(din)

    # fc1: rows generated in torch NCHW-flatten order (c*s*s + h*s + w), then
    # re-blocked to (spatial position h*s+w, channel, out) for the kernel.
    w1_t = fc_w(ks[6], lin, 512)
    wf1 = (w1_t.reshape(256, s, s, 512).transpose(1, 2, 0, 3)
           .reshape(s * s, 256, 512)).astype(jnp.bfloat16)
    bf1 = jax.random.normal(ks[7], (1, 512), jnp.float32) * 0.05

    wf2 = fc_w(ks[8], 512, 256).astype(jnp.bfloat16)
    bf2 = jax.random.normal(ks[9], (1, 256), jnp.float32) * 0.05

    # fc3: lane-pad outputs nc -> 128; padded logits get -1e30 bias.
    w3 = fc_w(ks[10], 256, nc)
    wf3 = jnp.pad(w3, ((0, 0), (0, NC_PAD - nc))).astype(jnp.bfloat16)
    b3 = jax.random.normal(ks[11], (1, nc), jnp.float32) * 0.05
    bf3 = jnp.pad(b3, ((0, 0), (0, NC_PAD - nc)), constant_values=NEG)

    return {"conv": (w1c, b1c, w2c, b2c, w3c, b3c),
            "fc": (wf1, bf1, wf2, bf2, wf3, bf3)}


if __name__ == "__main__":
    NC = 10
    IMG = 16      # small img_size, divisible by 8 (three 2x2 maxpools)
    BATCH = 2

    key = jax.random.PRNGKey(0)
    k_param, k_x = jax.random.split(key)
    params = init_params(k_param, NC, IMG)
    x = jax.random.normal(k_x, (BATCH, 1, IMG, IMG), jnp.float32)  # NCHW input

    fwd = jax.jit(net_forward, static_argnames=("nc",))
    out = fwd(x, params, nc=NC)
    out = jax.block_until_ready(out)

    assert out.shape == (BATCH, NC)
    # softmax rows must sum to 1 (padded logits contribute exactly 0 probability)
    assert jnp.allclose(jnp.sum(out, axis=1), 1.0, atol=1e-4)
    print("KERNEL_OK")
</pallas_src>

<mosaic_0001>
module attributes {stable_mosaic.version = 11 : i64} {
  func.func @kernel(%arg0: i32, %arg1: memref<1x256x16xbf16, #tpu.memory_space<vmem>>, %arg2: memref<16x128xbf16, #tpu.memory_space<vmem>>, %arg3: memref<1x128xf32, #tpu.memory_space<vmem>>, %arg4: memref<9x128x128xbf16, #tpu.memory_space<vmem>>, %arg5: memref<1x128xf32, #tpu.memory_space<vmem>>, %arg6: memref<9x128x256xbf16, #tpu.memory_space<vmem>>, %arg7: memref<1x256xf32, #tpu.memory_space<vmem>>, %arg8: memref<4x256x512xbf16, #tpu.memory_space<vmem>>, %arg9: memref<1x512xf32, #tpu.memory_space<vmem>>, %arg10: memref<512x256xbf16, #tpu.memory_space<vmem>>, %arg11: memref<1x256xf32, #tpu.memory_space<vmem>>, %arg12: memref<256x128xbf16, #tpu.memory_space<vmem>>, %arg13: memref<1x128xf32, #tpu.memory_space<vmem>>, %arg14: memref<1x1x128xf32, #tpu.memory_space<vmem>>, %arg15: memref<1x10x10x128xf32, #tpu.memory_space<vmem>>, %arg16: memref<1x6x6x128xf32, #tpu.memory_space<vmem>>) attributes {dimension_semantics = [#tpu.dimension_semantics<parallel>], iteration_bounds = array<i64: 2>, scalar_prefetch = 0 : i64, scratch_operands = 2 : i64, tpu.core_type = #tpu.core_type<tc>, window_params = [{transform_indices = @transform_0, window_bounds = array<i64: 1, 256, 16>}, {pipeline_mode = #tpu.pipeline_mode<synchronous>, transform_indices = @transform_1, window_bounds = array<i64: 16, 128>}, {pipeline_mode = #tpu.pipeline_mode<synchronous>, transform_indices = @transform_2, window_bounds = array<i64: 1, 128>}, {pipeline_mode = #tpu.pipeline_mode<synchronous>, transform_indices = @transform_3, window_bounds = array<i64: 9, 128, 128>}, {pipeline_mode = #tpu.pipeline_mode<synchronous>, transform_indices = @transform_4, window_bounds = array<i64: 1, 128>}, {pipeline_mode = #tpu.pipeline_mode<synchronous>, transform_indices = @transform_5, window_bounds = array<i64: 9, 128, 256>}, {pipeline_mode = #tpu.pipeline_mode<synchronous>, transform_indices = @transform_6, window_bounds = array<i64: 1, 256>}, {pipeline_mode = #tpu.pipeline_mode<synchronous>, transform_indices = @transform_7, window_bounds = array<i64: 4, 256, 512>}, {pipeline_mode = #tpu.pipeline_mode<synchronous>, transform_indices = @transform_8, window_bounds = array<i64: 1, 512>}, {pipeline_mode = #tpu.pipeline_mode<synchronous>, transform_indices = @transform_9, window_bounds = array<i64: 512, 256>}, {pipeline_mode = #tpu.pipeline_mode<synchronous>, transform_indices = @transform_10, window_bounds = array<i64: 1, 256>}, {pipeline_mode = #tpu.pipeline_mode<synchronous>, transform_indices = @transform_11, window_bounds = array<i64: 256, 128>}, {pipeline_mode = #tpu.pipeline_mode<synchronous>, transform_indices = @transform_12, window_bounds = array<i64: 1, 128>}, {transform_indices = @transform_13, window_bounds = array<i64: 1, 1, 128>}]} {
    %c0 = arith.constant 0 : index
    %c0_0 = arith.constant 0 : index
    %c0_1 = arith.constant 0 : index
    %0 = vector.load %arg1[%c0, %c0_0, %c0_1] : memref<1x256x16xbf16, #tpu.memory_space<vmem>>, vector<1x256x16xbf16>
    %1 = vector.shape_cast %0 : vector<1x256x16xbf16> to vector<256x16xbf16>
    %c0_2 = arith.constant 0 : index
    %c0_3 = arith.constant 0 : index
    %2 = vector.load %arg2[%c0_2, %c0_3] : memref<16x128xbf16, #tpu.memory_space<vmem>>, vector<16x128xbf16>
    %cst = arith.constant dense<0.000000e+00> : vector<256x128xf32>
    %3 = tpu.matmul %1, %2, %cst {dimension_numbers = #tpu.dot_dimension_numbers<[1], [0], [0], [1], [0, 0, 1, 1], [], []>} : vector<256x16xbf16>, vector<16x128xbf16>, vector<256x128xf32> -> vector<256x128xf32>
    %c0_4 = arith.constant 0 : index
    %c0_5 = arith.constant 0 : index
    %4 = vector.load %arg3[%c0_4, %c0_5] : memref<1x128xf32, #tpu.memory_space<vmem>>, vector<1x128xf32>
    %5 = vector.broadcast %4 : vector<1x128xf32> to vector<256x128xf32>
    %6 = arith.addf %3, %5 : vector<256x128xf32>
    %cst_6 = arith.constant 0.000000e+00 : f32
    %7 = vector.broadcast %cst_6 : f32 to vector<256x128xf32>
    %8 = arith.cmpf oge, %6, %7 : vector<256x128xf32>
    %cst_7 = arith.constant 0.00999999977 : f32
    %9 = vector.broadcast %cst_7 : f32 to vector<256x128xf32>
    %10 = arith.mulf %9, %6 : vector<256x128xf32>
    %11 = arith.select %8, %6, %10 : vector<256x128xi1>, vector<256x128xf32>
    %12 = vector.shape_cast %11 : vector<256x128xf32> to vector<1x16x16x128xf32>
    %13 = vector.shape_cast %12 : vector<1x16x16x128xf32> to vector<1x8x2x16x128xf32>
    %cst_8 = arith.constant dense<0xFF800000> : vector<1x8x16x128xf32>
    %14 = vector.multi_reduction <maximumf>, %13, %cst_8 [2] : vector<1x8x2x16x128xf32> to vector<1x8x16x128xf32>
    %15 = vector.shape_cast %14 : vector<1x8x16x128xf32> to vector<1x8x8x2x128xf32>
    %cst_9 = arith.constant dense<0xFF800000> : vector<1x8x8x128xf32>
    %16 = vector.multi_reduction <maximumf>, %15, %cst_9 [3] : vector<1x8x8x2x128xf32> to vector<1x8x8x128xf32>
    %cst_10 = arith.constant 0.000000e+00 : f32
    %17 = vector.broadcast %cst_10 : f32 to vector<1x10x10x128xf32>
    %c0_11 = arith.constant 0 : index
    %c0_12 = arith.constant 0 : index
    %c0_13 = arith.constant 0 : index
    %c0_14 = arith.constant 0 : index
    %18 = vector.load %arg15[%c0_11, %c0_12, %c0_13, %c0_14] : memref<1x10x10x128xf32, #tpu.memory_space<vmem>>, vector<1x10x10x128xf32>
    tpu.vector_store %arg15[%c0_11, %c0_12, %c0_13, %c0_14], %17 {strides = array<i32>} : memref<1x10x10x128xf32, #tpu.memory_space<vmem>>, vector<1x10x10x128xf32>,
    %c0_15 = arith.constant 0 : index
    %c1 = arith.constant 1 : index
    %c1_16 = arith.constant 1 : index
    %c0_17 = arith.constant 0 : index
    %19 = vector.load %arg15[%c0_15, %c1, %c1_16, %c0_17] : memref<1x10x10x128xf32, #tpu.memory_space<vmem>>, vector<1x8x8x128xf32>
    tpu.vector_store %arg15[%c0_15, %c1, %c1_16, %c0_17], %16 {strides = array<i32>} : memref<1x10x10x128xf32, #tpu.memory_space<vmem>>, vector<1x8x8x128xf32>,
    %c0_18 = arith.constant 0 : index
    %c0_19 = arith.constant 0 : index
    %c0_20 = arith.constant 0 : index
    %c0_21 = arith.constant 0 : index
    %20 = vector.load %arg15[%c0_18, %c0_19, %c0_20, %c0_21] : memref<1x10x10x128xf32, #tpu.memory_space<vmem>>, vector<1x10x10x128xf32>
    %21 = arith.truncf %20 : vector<1x10x10x128xf32> to vector<1x10x10x128xbf16>
    %cst_22 = arith.constant 0.000000e+00 : f32
    %22 = vector.broadcast %cst_22 : f32 to vector<64x128xf32>
    %23 = vector.extract_strided_slice %21 {offsets = [0, 0, 0, 0], sizes = [1, 8, 8, 128], strides = [1, 1, 1, 1]} : vector<1x10x10x128xbf16> to vector<1x8x8x128xbf16>
    %24 = vector.shape_cast %23 : vector<1x8x8x128xbf16> to vector<64x128xbf16>
    %c0_23 = arith.constant 0 : index
    %c0_24 = arith.constant 0 : index
    %c0_25 = arith.constant 0 : index
    %25 = vector.load %arg4[%c0_23, %c0_24, %c0_25] : memref<9x128x128xbf16, #tpu.memory_space<vmem>>, vector<1x128x128xbf16>
    %26 = vector.shape_cast %25 : vector<1x128x128xbf16> to vector<128x128xbf16>
    %cst_26 = arith.constant dense<0.000000e+00> : vector<64x128xf32>
    %27 = tpu.matmul %24, %26, %cst_26 {dimension_numbers = #tpu.dot_dimension_numbers<[1], [0], [0], [1], [0, 0, 1, 1], [], []>} : vector<64x128xbf16>, vector<128x128xbf16>, vector<64x128xf32> -> vector<64x128xf32>
    %28 = arith.addf %22, %27 : vector<64x128xf32>
    %29 = vector.extract_strided_slice %21 {offsets = [0, 0, 1, 0], sizes = [1, 8, 8, 128], strides = [1, 1, 1, 1]} : vector<1x10x10x128xbf16> to vector<1x8x8x128xbf16>
    %30 = vector.shape_cast %29 : vector<1x8x8x128xbf16> to vector<64x128xbf16>
    %c1_27 = arith.constant 1 : index
    %c0_28 = arith.constant 0 : index
    %c0_29 = arith.constant 0 : index
    %31 = vector.load %arg4[%c1_27, %c0_28, %c0_29] : memref<9x128x128xbf16, #tpu.memory_space<vmem>>, vector<1x128x128xbf16>
    %32 = vector.shape_cast %31 : vector<1x128x128xbf16> to vector<128x128xbf16>
    %cst_30 = arith.constant dense<0.000000e+00> : vector<64x128xf32>
    %33 = tpu.matmul %30, %32, %cst_30 {dimension_numbers = #tpu.dot_dimension_numbers<[1], [0], [0], [1], [0, 0, 1, 1], [], []>} : vector<64x128xbf16>, vector<128x128xbf16>, vector<64x128xf32> -> vector<64x128xf32>
    %34 = arith.addf %28, %33 : vector<64x128xf32>
    %35 = vector.extract_strided_slice %21 {offsets = [0, 0, 2, 0], sizes = [1, 8, 8, 128], strides = [1, 1, 1, 1]} : vector<1x10x10x128xbf16> to vector<1x8x8x128xbf16>
    %36 = vector.shape_cast %35 : vector<1x8x8x128xbf16> to vector<64x128xbf16>
    %c2 = arith.constant 2 : index
    %c0_31 = arith.constant 0 : index
    %c0_32 = arith.constant 0 : index
    %37 = vector.load %arg4[%c2, %c0_31, %c0_32] : memref<9x128x128xbf16, #tpu.memory_space<vmem>>, vector<1x128x128xbf16>
    %38 = vector.shape_cast %37 : vector<1x128x128xbf16> to vector<128x128xbf16>
    %cst_33 = arith.constant dense<0.000000e+00> : vector<64x128xf32>
    %39 = tpu.matmul %36, %38, %cst_33 {dimension_numbers = #tpu.dot_dimension_numbers<[1], [0], [0], [1], [0, 0, 1, 1], [], []>} : vector<64x128xbf16>, vector<128x128xbf16>, vector<64x128xf32> -> vector<64x128xf32>
    %40 = arith.addf %34, %39 : vector<64x128xf32>
    %41 = vector.extract_strided_slice %21 {offsets = [0, 1, 0, 0], sizes = [1, 8, 8, 128], strides = [1, 1, 1, 1]} : vector<1x10x10x128xbf16> to vector<1x8x8x128xbf16>
    %42 = vector.shape_cast %41 : vector<1x8x8x128xbf16> to vector<64x128xbf16>
    %c3 = arith.constant 3 : index
    %c0_34 = arith.constant 0 : index
    %c0_35 = arith.constant 0 : index
    %43 = vector.load %arg4[%c3, %c0_34, %c0_35] : memref<9x128x128xbf16, #tpu.memory_space<vmem>>, vector<1x128x128xbf16>
    %44 = vector.shape_cast %43 : vector<1x128x128xbf16> to vector<128x128xbf16>
    %cst_36 = arith.constant dense<0.000000e+00> : vector<64x128xf32>
    %45 = tpu.matmul %42, %44, %cst_36 {dimension_numbers = #tpu.dot_dimension_numbers<[1], [0], [0], [1], [0, 0, 1, 1], [], []>} : vector<64x128xbf16>, vector<128x128xbf16>, vector<64x128xf32> -> vector<64x128xf32>
    %46 = arith.addf %40, %45 : vector<64x128xf32>
    %47 = vector.extract_strided_slice %21 {offsets = [0, 1, 1, 0], sizes = [1, 8, 8, 128], strides = [1, 1, 1, 1]} : vector<1x10x10x128xbf16> to vector<1x8x8x128xbf16>
    %48 = vector.shape_cast %47 : vector<1x8x8x128xbf16> to vector<64x128xbf16>
    %c4 = arith.constant 4 : index
    %c0_37 = arith.constant 0 : index
    %c0_38 = arith.constant 0 : index
    %49 = vector.load %arg4[%c4, %c0_37, %c0_38] : memref<9x128x128xbf16, #tpu.memory_space<vmem>>, vector<1x128x128xbf16>
    %50 = vector.shape_cast %49 : vector<1x128x128xbf16> to vector<128x128xbf16>
    %cst_39 = arith.constant dense<0.000000e+00> : vector<64x128xf32>
    %51 = tpu.matmul %48, %50, %cst_39 {dimension_numbers = #tpu.dot_dimension_numbers<[1], [0], [0], [1], [0, 0, 1, 1], [], []>} : vector<64x128xbf16>, vector<128x128xbf16>, vector<64x128xf32> -> vector<64x128xf32>
    %52 = arith.addf %46, %51 : vector<64x128xf32>
    %53 = vector.extract_strided_slice %21 {offsets = [0, 1, 2, 0], sizes = [1, 8, 8, 128], strides = [1, 1, 1, 1]} : vector<1x10x10x128xbf16> to vector<1x8x8x128xbf16>
    %54 = vector.shape_cast %53 : vector<1x8x8x128xbf16> to vector<64x128xbf16>
    %c5 = arith.constant 5 : index
    %c0_40 = arith.constant 0 : index
    %c0_41 = arith.constant 0 : index
    %55 = vector.load %arg4[%c5, %c0_40, %c0_41] : memref<9x128x128xbf16, #tpu.memory_space<vmem>>, vector<1x128x128xbf16>
    %56 = vector.shape_cast %55 : vector<1x128x128xbf16> to vector<128x128xbf16>
    %cst_42 = arith.constant dense<0.000000e+00> : vector<64x128xf32>
    %57 = tpu.matmul %54, %56, %cst_42 {dimension_numbers = #tpu.dot_dimension_numbers<[1], [0], [0], [1], [0, 0, 1, 1], [], []>} : vector<64x128xbf16>, vector<128x128xbf16>, vector<64x128xf32> -> vector<64x128xf32>
    %58 = arith.addf %52, %57 : vector<64x128xf32>
    %59 = vector.extract_strided_slice %21 {offsets = [0, 2, 0, 0], sizes = [1, 8, 8, 128], strides = [1, 1, 1, 1]} : vector<1x10x10x128xbf16> to vector<1x8x8x128xbf16>
    %60 = vector.shape_cast %59 : vector<1x8x8x128xbf16> to vector<64x128xbf16>
    %c6 = arith.constant 6 : index
    %c0_43 = arith.constant 0 : index
    %c0_44 = arith.constant 0 : index
    %61 = vector.load %arg4[%c6, %c0_43, %c0_44] : memref<9x128x128xbf16, #tpu.memory_space<vmem>>, vector<1x128x128xbf16>
    %62 = vector.shape_cast %61 : vector<1x128x128xbf16> to vector<128x128xbf16>
    %cst_45 = arith.constant dense<0.000000e+00> : vector<64x128xf32>
    %63 = tpu.matmul %60, %62, %cst_45 {dimension_numbers = #tpu.dot_dimension_numbers<[1], [0], [0], [1], [0, 0, 1, 1], [], []>} : vector<64x128xbf16>, vector<128x128xbf16>, vector<64x128xf32> -> vector<64x128xf32>
    %64 = arith.addf %58, %63 : vector<64x128xf32>
    %65 = vector.extract_strided_slice %21 {offsets = [0, 2, 1, 0], sizes = [1, 8, 8, 128], strides = [1, 1, 1, 1]} : vector<1x10x10x128xbf16> to vector<1x8x8x128xbf16>
    %66 = vector.shape_cast %65 : vector<1x8x8x128xbf16> to vector<64x128xbf16>
    %c7 = arith.constant 7 : index
    %c0_46 = arith.constant 0 : index
    %c0_47 = arith.constant 0 : index
    %67 = vector.load %arg4[%c7, %c0_46, %c0_47] : memref<9x128x128xbf16, #tpu.memory_space<vmem>>, vector<1x128x128xbf16>
    %68 = vector.shape_cast %67 : vector<1x128x128xbf16> to vector<128x128xbf16>
    %cst_48 = arith.constant dense<0.000000e+00> : vector<64x128xf32>
    %69 = tpu.matmul %66, %68, %cst_48 {dimension_numbers = #tpu.dot_dimension_numbers<[1], [0], [0], [1], [0, 0, 1, 1], [], []>} : vector<64x128xbf16>, vector<128x128xbf16>, vector<64x128xf32> -> vector<64x128xf32>
    %70 = arith.addf %64, %69 : vector<64x128xf32>
    %71 = vector.extract_strided_slice %21 {offsets = [0, 2, 2, 0], sizes = [1, 8, 8, 128], strides = [1, 1, 1, 1]} : vector<1x10x10x128xbf16> to vector<1x8x8x128xbf16>
    %72 = vector.shape_cast %71 : vector<1x8x8x128xbf16> to vector<64x128xbf16>
    %c8 = arith.constant 8 : index
    %c0_49 = arith.constant 0 : index
    %c0_50 = arith.constant 0 : index
    %73 = vector.load %arg4[%c8, %c0_49, %c0_50] : memref<9x128x128xbf16, #tpu.memory_space<vmem>>, vector<1x128x128xbf16>
    %74 = vector.shape_cast %73 : vector<1x128x128xbf16> to vector<128x128xbf16>
    %cst_51 = arith.constant dense<0.000000e+00> : vector<64x128xf32>
    %75 = tpu.matmul %72, %74, %cst_51 {dimension_numbers = #tpu.dot_dimension_numbers<[1], [0], [0], [1], [0, 0, 1, 1], [], []>} : vector<64x128xbf16>, vector<128x128xbf16>, vector<64x128xf32> -> vector<64x128xf32>
    %76 = arith.addf %70, %75 : vector<64x128xf32>
    %c0_52 = arith.constant 0 : index
    %c0_53 = arith.constant 0 : index
    %77 = vector.load %arg5[%c0_52, %c0_53] : memref<1x128xf32, #tpu.memory_space<vmem>>, vector<1x128xf32>
    %78 = vector.broadcast %77 : vector<1x128xf32> to vector<64x128xf32>
    %79 = arith.addf %76, %78 : vector<64x128xf32>
    %cst_54 = arith.constant 0.000000e+00 : f32
    %80 = vector.broadcast %cst_54 : f32 to vector<64x128xf32>
    %81 = arith.cmpf oge, %79, %80 : vector<64x128xf32>
    %cst_55 = arith.constant 0.00999999977 : f32
    %82 = vector.broadcast %cst_55 : f32 to vector<64x128xf32>
    %83 = arith.mulf %82, %79 : vector<64x128xf32>
    %84 = arith.select %81, %79, %83 : vector<64x128xi1>, vector<64x128xf32>
    %85 = vector.shape_cast %84 : vector<64x128xf32> to vector<1x8x8x128xf32>
    %86 = vector.shape_cast %85 : vector<1x8x8x128xf32> to vector<1x4x2x8x128xf32>
    %cst_56 = arith.constant dense<0xFF800000> : vector<1x4x8x128xf32>
    %87 = vector.multi_reduction <maximumf>, %86, %cst_56 [2] : vector<1x4x2x8x128xf32> to vector<1x4x8x128xf32>
    %88 = vector.shape_cast %87 : vector<1x4x8x128xf32> to vector<1x4x4x2x128xf32>
    %cst_57 = arith.constant dense<0xFF800000> : vector<1x4x4x128xf32>
    %89 = vector.multi_reduction <maximumf>, %88, %cst_57 [3] : vector<1x4x4x2x128xf32> to vector<1x4x4x128xf32>
    %cst_58 = arith.constant 0.000000e+00 : f32
    %90 = vector.broadcast %cst_58 : f32 to vector<1x6x6x128xf32>
    %c0_59 = arith.constant 0 : index
    %c0_60 = arith.constant 0 : index
    %c0_61 = arith.constant 0 : index
    %c0_62 = arith.constant 0 : index
    %91 = vector.load %arg16[%c0_59, %c0_60, %c0_61, %c0_62] : memref<1x6x6x128xf32, #tpu.memory_space<vmem>>, vector<1x6x6x128xf32>
    tpu.vector_store %arg16[%c0_59, %c0_60, %c0_61, %c0_62], %90 {strides = array<i32>} : memref<1x6x6x128xf32, #tpu.memory_space<vmem>>, vector<1x6x6x128xf32>,
    %c0_63 = arith.constant 0 : index
    %c1_64 = arith.constant 1 : index
    %c1_65 = arith.constant 1 : index
    %c0_66 = arith.constant 0 : index
    %92 = vector.load %arg16[%c0_63, %c1_64, %c1_65, %c0_66] : memref<1x6x6x128xf32, #tpu.memory_space<vmem>>, vector<1x4x4x128xf32>
    tpu.vector_store %arg16[%c0_63, %c1_64, %c1_65, %c0_66], %89 {strides = array<i32>} : memref<1x6x6x128xf32, #tpu.memory_space<vmem>>, vector<1x4x4x128xf32>,
    %c0_67 = arith.constant 0 : index
    %c0_68 = arith.constant 0 : index
    %c0_69 = arith.constant 0 : index
    %c0_70 = arith.constant 0 : index
    %93 = vector.load %arg16[%c0_67, %c0_68, %c0_69, %c0_70] : memref<1x6x6x128xf32, #tpu.memory_space<vmem>>, vector<1x6x6x128xf32>
    %94 = arith.truncf %93 : vector<1x6x6x128xf32> to vector<1x6x6x128xbf16>
    %cst_71 = arith.constant 0.000000e+00 : f32
    %95 = vector.broadcast %cst_71 : f32 to vector<16x256xf32>
    %96 = vector.extract_strided_slice %94 {offsets = [0, 0, 0, 0], sizes = [1, 4, 4, 128], strides = [1, 1, 1, 1]} : vector<1x6x6x128xbf16> to vector<1x4x4x128xbf16>
    %97 = vector.shape_cast %96 : vector<1x4x4x128xbf16> to vector<16x128xbf16>
    %c0_72 = arith.constant 0 : index
    %c0_73 = arith.constant 0 : index
    %c0_74 = arith.constant 0 : index
    %98 = vector.load %arg6[%c0_72, %c0_73, %c0_74] : memref<9x128x256xbf16, #tpu.memory_space<vmem>>, vector<1x128x256xbf16>
    %99 = vector.shape_cast %98 : vector<1x128x256xbf16> to vector<128x256xbf16>
    %cst_75 = arith.constant dense<0.000000e+00> : vector<16x256xf32>
    %100 = tpu.matmul %97, %99, %cst_75 {dimension_numbers = #tpu.dot_dimension_numbers<[1], [0], [0], [1], [0, 0, 1, 1], [], []>} : vector<16x128xbf16>, vector<128x256xbf16>, vector<16x256xf32> -> vector<16x256xf32>
    %101 = arith.addf %95, %100 : vector<16x256xf32>
    %102 = vector.extract_strided_slice %94 {offsets = [0, 0, 1, 0], sizes = [1, 4, 4, 128], strides = [1, 1, 1, 1]} : vector<1x6x6x128xbf16> to vector<1x4x4x128xbf16>
    %103 = vector.shape_cast %102 : vector<1x4x4x128xbf16> to vector<16x128xbf16>
    %c1_76 = arith.constant 1 : index
    %c0_77 = arith.constant 0 : index
    %c0_78 = arith.constant 0 : index
    %104 = vector.load %arg6[%c1_76, %c0_77, %c0_78] : memref<9x128x256xbf16, #tpu.memory_space<vmem>>, vector<1x128x256xbf16>
    %105 = vector.shape_cast %104 : vector<1x128x256xbf16> to vector<128x256xbf16>
    %cst_79 = arith.constant dense<0.000000e+00> : vector<16x256xf32>
    %106 = tpu.matmul %103, %105, %cst_79 {dimension_numbers = #tpu.dot_dimension_numbers<[1], [0], [0], [1], [0, 0, 1, 1], [], []>} : vector<16x128xbf16>, vector<128x256xbf16>, vector<16x256xf32> -> vector<16x256xf32>
    %107 = arith.addf %101, %106 : vector<16x256xf32>
    %108 = vector.extract_strided_slice %94 {offsets = [0, 0, 2, 0], sizes = [1, 4, 4, 128], strides = [1, 1, 1, 1]} : vector<1x6x6x128xbf16> to vector<1x4x4x128xbf16>
    %109 = vector.shape_cast %108 : vector<1x4x4x128xbf16> to vector<16x128xbf16>
    %c2_80 = arith.constant 2 : index
    %c0_81 = arith.constant 0 : index
    %c0_82 = arith.constant 0 : index
    %110 = vector.load %arg6[%c2_80, %c0_81, %c0_82] : memref<9x128x256xbf16, #tpu.memory_space<vmem>>, vector<1x128x256xbf16>
    %111 = vector.shape_cast %110 : vector<1x128x256xbf16> to vector<128x256xbf16>
    %cst_83 = arith.constant dense<0.000000e+00> : vector<16x256xf32>
    %112 = tpu.matmul %109, %111, %cst_83 {dimension_numbers = #tpu.dot_dimension_numbers<[1], [0], [0], [1], [0, 0, 1, 1], [], []>} : vector<16x128xbf16>, vector<128x256xbf16>, vector<16x256xf32> -> vector<16x256xf32>
    %113 = arith.addf %107, %112 : vector<16x256xf32>
    %114 = vector.extract_strided_slice %94 {offsets = [0, 1, 0, 0], sizes = [1, 4, 4, 128], strides = [1, 1, 1, 1]} : vector<1x6x6x128xbf16> to vector<1x4x4x128xbf16>
    %115 = vector.shape_cast %114 : vector<1x4x4x128xbf16> to vector<16x128xbf16>
    %c3_84 = arith.constant 3 : index
    %c0_85 = arith.constant 0 : index
    %c0_86 = arith.constant 0 : index
    %116 = vector.load %arg6[%c3_84, %c0_85, %c0_86] : memref<9x128x256xbf16, #tpu.memory_space<vmem>>, vector<1x128x256xbf16>
    %117 = vector.shape_cast %116 : vector<1x128x256xbf16> to vector<128x256xbf16>
    %cst_87 = arith.constant dense<0.000000e+00> : vector<16x256xf32>
    %118 = tpu.matmul %115, %117, %cst_87 {dimension_numbers = #tpu.dot_dimension_numbers<[1], [0], [0], [1], [0, 0, 1, 1], [], []>} : vector<16x128xbf16>, vector<128x256xbf16>, vector<16x256xf32> -> vector<16x256xf32>
    %119 = arith.addf %113, %118 : vector<16x256xf32>
    %120 = vector.extract_strided_slice %94 {offsets = [0, 1, 1, 0], sizes = [1, 4, 4, 128], strides = [1, 1, 1, 1]} : vector<1x6x6x128xbf16> to vector<1x4x4x128xbf16>
    %121 = vector.shape_cast %120 : vector<1x4x4x128xbf16> to vector<16x128xbf16>
    %c4_88 = arith.constant 4 : index
    %c0_89 = arith.constant 0 : index
    %c0_90 = arith.constant 0 : index
    %122 = vector.load %arg6[%c4_88, %c0_89, %c0_90] : memref<9x128x256xbf16, #tpu.memory_space<vmem>>, vector<1x128x256xbf16>
    %123 = vector.shape_cast %122 : vector<1x128x256xbf16> to vector<128x256xbf16>
    %cst_91 = arith.constant dense<0.000000e+00> : vector<16x256xf32>
    %124 = tpu.matmul %121, %123, %cst_91 {dimension_numbers = #tpu.dot_dimension_numbers<[1], [0], [0], [1], [0, 0, 1, 1], [], []>} : vector<16x128xbf16>, vector<128x256xbf16>, vector<16x256xf32> -> vector<16x256xf32>
    %125 = arith.addf %119, %124 : vector<16x256xf32>
    %126 = vector.extract_strided_slice %94 {offsets = [0, 1, 2, 0], sizes = [1, 4, 4, 128], strides = [1, 1, 1, 1]} : vector<1x6x6x128xbf16> to vector<1x4x4x128xbf16>
    %127 = vector.shape_cast %126 : vector<1x4x4x128xbf16> to vector<16x128xbf16>
    %c5_92 = arith.constant 5 : index
    %c0_93 = arith.constant 0 : index
    %c0_94 = arith.constant 0 : index
    %128 = vector.load %arg6[%c5_92, %c0_93, %c0_94] : memref<9x128x256xbf16, #tpu.memory_space<vmem>>, vector<1x128x256xbf16>
    %129 = vector.shape_cast %128 : vector<1x128x256xbf16> to vector<128x256xbf16>
    %cst_95 = arith.constant dense<0.000000e+00> : vector<16x256xf32>
    %130 = tpu.matmul %127, %129, %cst_95 {dimension_numbers = #tpu.dot_dimension_numbers<[1], [0], [0], [1], [0, 0, 1, 1], [], []>} : vector<16x128xbf16>, vector<128x256xbf16>, vector<16x256xf32> -> vector<16x256xf32>
    %131 = arith.addf %125, %130 : vector<16x256xf32>
    %132 = vector.extract_strided_slice %94 {offsets = [0, 2, 0, 0], sizes = [1, 4, 4, 128], strides = [1, 1, 1, 1]} : vector<1x6x6x128xbf16> to vector<1x4x4x128xbf16>
    %133 = vector.shape_cast %132 : vector<1x4x4x128xbf16> to vector<16x128xbf16>
    %c6_96 = arith.constant 6 : index
    %c0_97 = arith.constant 0 : index
    %c0_98 = arith.constant 0 : index
    %134 = vector.load %arg6[%c6_96, %c0_97, %c0_98] : memref<9x128x256xbf16, #tpu.memory_space<vmem>>, vector<1x128x256xbf16>
    %135 = vector.shape_cast %134 : vector<1x128x256xbf16> to vector<128x256xbf16>
    %cst_99 = arith.constant dense<0.000000e+00> : vector<16x256xf32>
    %136 = tpu.matmul %133, %135, %cst_99 {dimension_numbers = #tpu.dot_dimension_numbers<[1], [0], [0], [1], [0, 0, 1, 1], [], []>} : vector<16x128xbf16>, vector<128x256xbf16>, vector<16x256xf32> -> vector<16x256xf32>
    %137 = arith.addf %131, %136 : vector<16x256xf32>
    %138 = vector.extract_strided_slice %94 {offsets = [0, 2, 1, 0], sizes = [1, 4, 4, 128], strides = [1, 1, 1, 1]} : vector<1x6x6x128xbf16> to vector<1x4x4x128xbf16>
    %139 = vector.shape_cast %138 : vector<1x4x4x128xbf16> to vector<16x128xbf16>
    %c7_100 = arith.constant 7 : index
    %c0_101 = arith.constant 0 : index
    %c0_102 = arith.constant 0 : index
    %140 = vector.load %arg6[%c7_100, %c0_101, %c0_102] : memref<9x128x256xbf16, #tpu.memory_space<vmem>>, vector<1x128x256xbf16>
    %141 = vector.shape_cast %140 : vector<1x128x256xbf16> to vector<128x256xbf16>
    %cst_103 = arith.constant dense<0.000000e+00> : vector<16x256xf32>
    %142 = tpu.matmul %139, %141, %cst_103 {dimension_numbers = #tpu.dot_dimension_numbers<[1], [0], [0], [1], [0, 0, 1, 1], [], []>} : vector<16x128xbf16>, vector<128x256xbf16>, vector<16x256xf32> -> vector<16x256xf32>
    %143 = arith.addf %137, %142 : vector<16x256xf32>
    %144 = vector.extract_strided_slice %94 {offsets = [0, 2, 2, 0], sizes = [1, 4, 4, 128], strides = [1, 1, 1, 1]} : vector<1x6x6x128xbf16> to vector<1x4x4x128xbf16>
    %145 = vector.shape_cast %144 : vector<1x4x4x128xbf16> to vector<16x128xbf16>
    %c8_104 = arith.constant 8 : index
    %c0_105 = arith.constant 0 : index
    %c0_106 = arith.constant 0 : index
    %146 = vector.load %arg6[%c8_104, %c0_105, %c0_106] : memref<9x128x256xbf16, #tpu.memory_space<vmem>>, vector<1x128x256xbf16>
    %147 = vector.shape_cast %146 : vector<1x128x256xbf16> to vector<128x256xbf16>
    %cst_107 = arith.constant dense<0.000000e+00> : vector<16x256xf32>
    %148 = tpu.matmul %145, %147, %cst_107 {dimension_numbers = #tpu.dot_dimension_numbers<[1], [0], [0], [1], [0, 0, 1, 1], [], []>} : vector<16x128xbf16>, vector<128x256xbf16>, vector<16x256xf32> -> vector<16x256xf32>
    %149 = arith.addf %143, %148 : vector<16x256xf32>
    %c0_108 = arith.constant 0 : index
    %c0_109 = arith.constant 0 : index
    %150 = vector.load %arg7[%c0_108, %c0_109] : memref<1x256xf32, #tpu.memory_space<vmem>>, vector<1x256xf32>
    %151 = vector.broadcast %150 : vector<1x256xf32> to vector<16x256xf32>
    %152 = arith.addf %149, %151 : vector<16x256xf32>
    %cst_110 = arith.constant 0.000000e+00 : f32
    %153 = vector.broadcast %cst_110 : f32 to vector<16x256xf32>
    %154 = arith.cmpf oge, %152, %153 : vector<16x256xf32>
    %cst_111 = arith.constant 0.00999999977 : f32
    %155 = vector.broadcast %cst_111 : f32 to vector<16x256xf32>
    %156 = arith.mulf %155, %152 : vector<16x256xf32>
    %157 = arith.select %154, %152, %156 : vector<16x256xi1>, vector<16x256xf32>
    %158 = vector.shape_cast %157 : vector<16x256xf32> to vector<1x4x4x256xf32>
    %159 = vector.shape_cast %158 : vector<1x4x4x256xf32> to vector<1x2x2x4x256xf32>
    %cst_112 = arith.constant dense<0xFF800000> : vector<1x2x4x256xf32>
    %160 = vector.multi_reduction <maximumf>, %159, %cst_112 [2] : vector<1x2x2x4x256xf32> to vector<1x2x4x256xf32>
    %161 = vector.shape_cast %160 : vector<1x2x4x256xf32> to vector<1x2x2x2x256xf32>
    %cst_113 = arith.constant dense<0xFF800000> : vector<1x2x2x256xf32>
    %162 = vector.multi_reduction <maximumf>, %161, %cst_113 [3] : vector<1x2x2x2x256xf32> to vector<1x2x2x256xf32>
    %163 = arith.truncf %162 : vector<1x2x2x256xf32> to vector<1x2x2x256xbf16>
    %cst_114 = arith.constant 0.000000e+00 : f32
    %164 = vector.broadcast %cst_114 : f32 to vector<1x512xf32>
    %165 = vector.extract_strided_slice %163 {offsets = [0, 0, 0, 0], sizes = [1, 1, 1, 256], strides = [1, 1, 1, 1]} : vector<1x2x2x256xbf16> to vector<1x1x1x256xbf16>
    %166 = vector.shape_cast %165 : vector<1x1x1x256xbf16> to vector<1x256xbf16>
    %c0_115 = arith.constant 0 : index
    %c0_116 = arith.constant 0 : index
    %c0_117 = arith.constant 0 : index
    %167 = vector.load %arg8[%c0_115, %c0_116, %c0_117] : memref<4x256x512xbf16, #tpu.memory_space<vmem>>, vector<1x256x512xbf16>
    %168 = vector.shape_cast %167 : vector<1x256x512xbf16> to vector<256x512xbf16>
    %cst_118 = arith.constant dense<0.000000e+00> : vector<1x512xf32>
    %169 = tpu.matmul %166, %168, %cst_118 {dimension_numbers = #tpu.dot_dimension_numbers<[1], [0], [0], [1], [0, 0, 1, 1], [], []>} : vector<1x256xbf16>, vector<256x512xbf16>, vector<1x512xf32> -> vector<1x512xf32>
    %170 = arith.addf %164, %169 : vector<1x512xf32>
    %171 = vector.extract_strided_slice %163 {offsets = [0, 0, 1, 0], sizes = [1, 1, 1, 256], strides = [1, 1, 1, 1]} : vector<1x2x2x256xbf16> to vector<1x1x1x256xbf16>
    %172 = vector.shape_cast %171 : vector<1x1x1x256xbf16> to vector<1x256xbf16>
    %c1_119 = arith.constant 1 : index
    %c0_120 = arith.constant 0 : index
    %c0_121 = arith.constant 0 : index
    %173 = vector.load %arg8[%c1_119, %c0_120, %c0_121] : memref<4x256x512xbf16, #tpu.memory_space<vmem>>, vector<1x256x512xbf16>
    %174 = vector.shape_cast %173 : vector<1x256x512xbf16> to vector<256x512xbf16>
    %cst_122 = arith.constant dense<0.000000e+00> : vector<1x512xf32>
    %175 = tpu.matmul %172, %174, %cst_122 {dimension_numbers = #tpu.dot_dimension_numbers<[1], [0], [0], [1], [0, 0, 1, 1], [], []>} : vector<1x256xbf16>, vector<256x512xbf16>, vector<1x512xf32> -> vector<1x512xf32>
    %176 = arith.addf %170, %175 : vector<1x512xf32>
    %177 = vector.extract_strided_slice %163 {offsets = [0, 1, 0, 0], sizes = [1, 1, 1, 256], strides = [1, 1, 1, 1]} : vector<1x2x2x256xbf16> to vector<1x1x1x256xbf16>
    %178 = vector.shape_cast %177 : vector<1x1x1x256xbf16> to vector<1x256xbf16>
    %c2_123 = arith.constant 2 : index
    %c0_124 = arith.constant 0 : index
    %c0_125 = arith.constant 0 : index
    %179 = vector.load %arg8[%c2_123, %c0_124, %c0_125] : memref<4x256x512xbf16, #tpu.memory_space<vmem>>, vector<1x256x512xbf16>
    %180 = vector.shape_cast %179 : vector<1x256x512xbf16> to vector<256x512xbf16>
    %cst_126 = arith.constant dense<0.000000e+00> : vector<1x512xf32>
    %181 = tpu.matmul %178, %180, %cst_126 {dimension_numbers = #tpu.dot_dimension_numbers<[1], [0], [0], [1], [0, 0, 1, 1], [], []>} : vector<1x256xbf16>, vector<256x512xbf16>, vector<1x512xf32> -> vector<1x512xf32>
    %182 = arith.addf %176, %181 : vector<1x512xf32>
    %183 = vector.extract_strided_slice %163 {offsets = [0, 1, 1, 0], sizes = [1, 1, 1, 256], strides = [1, 1, 1, 1]} : vector<1x2x2x256xbf16> to vector<1x1x1x256xbf16>
    %184 = vector.shape_cast %183 : vector<1x1x1x256xbf16> to vector<1x256xbf16>
    %c3_127 = arith.constant 3 : index
    %c0_128 = arith.constant 0 : index
    %c0_129 = arith.constant 0 : index
    %185 = vector.load %arg8[%c3_127, %c0_128, %c0_129] : memref<4x256x512xbf16, #tpu.memory_space<vmem>>, vector<1x256x512xbf16>
    %186 = vector.shape_cast %185 : vector<1x256x512xbf16> to vector<256x512xbf16>
    %cst_130 = arith.constant dense<0.000000e+00> : vector<1x512xf32>
    %187 = tpu.matmul %184, %186, %cst_130 {dimension_numbers = #tpu.dot_dimension_numbers<[1], [0], [0], [1], [0, 0, 1, 1], [], []>} : vector<1x256xbf16>, vector<256x512xbf16>, vector<1x512xf32> -> vector<1x512xf32>
    %188 = arith.addf %182, %187 : vector<1x512xf32>
    %c0_131 = arith.constant 0 : index
    %c0_132 = arith.constant 0 : index
    %189 = vector.load %arg9[%c0_131, %c0_132] : memref<1x512xf32, #tpu.memory_space<vmem>>, vector<1x512xf32>
    %190 = arith.addf %188, %189 : vector<1x512xf32>
    %cst_133 = arith.constant 0.000000e+00 : f32
    %191 = vector.broadcast %cst_133 : f32 to vector<1x512xf32>
    %192 = arith.cmpf oge, %190, %191 : vector<1x512xf32>
    %cst_134 = arith.constant 0.00999999977 : f32
    %193 = vector.broadcast %cst_134 : f32 to vector<1x512xf32>
    %194 = arith.mulf %193, %190 : vector<1x512xf32>
    %195 = arith.select %192, %190, %194 : vector<1x512xi1>, vector<1x512xf32>
    %196 = arith.truncf %195 : vector<1x512xf32> to vector<1x512xbf16>
    %c0_135 = arith.constant 0 : index
    %c0_136 = arith.constant 0 : index
    %197 = vector.load %arg10[%c0_135, %c0_136] : memref<512x256xbf16, #tpu.memory_space<vmem>>, vector<512x256xbf16>
    %cst_137 = arith.constant dense<0.000000e+00> : vector<1x256xf32>
    %198 = tpu.matmul %196, %197, %cst_137 {dimension_numbers = #tpu.dot_dimension_numbers<[1], [0], [0], [1], [0, 0, 1, 1], [], []>} : vector<1x512xbf16>, vector<512x256xbf16>, vector<1x256xf32> -> vector<1x256xf32>
    %c0_138 = arith.constant 0 : index
    %c0_139 = arith.constant 0 : index
    %199 = vector.load %arg11[%c0_138, %c0_139] : memref<1x256xf32, #tpu.memory_space<vmem>>, vector<1x256xf32>
    %200 = arith.addf %198, %199 : vector<1x256xf32>
    %cst_140 = arith.constant 0.000000e+00 : f32
    %201 = vector.broadcast %cst_140 : f32 to vector<1x256xf32>
    %202 = arith.cmpf oge, %200, %201 : vector<1x256xf32>
    %cst_141 = arith.constant 0.00999999977 : f32
    %203 = vector.broadcast %cst_141 : f32 to vector<1x256xf32>
    %204 = arith.mulf %203, %200 : vector<1x256xf32>
    %205 = arith.select %202, %200, %204 : vector<1x256xi1>, vector<1x256xf32>
    %206 = arith.truncf %205 : vector<1x256xf32> to vector<1x256xbf16>
    %c0_142 = arith.constant 0 : index
    %c0_143 = arith.constant 0 : index
    %207 = vector.load %arg12[%c0_142, %c0_143] : memref<256x128xbf16, #tpu.memory_space<vmem>>, vector<256x128xbf16>
    %cst_144 = arith.constant dense<0.000000e+00> : vector<1x128xf32>
    %208 = tpu.matmul %206, %207, %cst_144 {dimension_numbers = #tpu.dot_dimension_numbers<[1], [0], [0], [1], [0, 0, 1, 1], [], []>} : vector<1x256xbf16>, vector<256x128xbf16>, vector<1x128xf32> -> vector<1x128xf32>
    %c0_145 = arith.constant 0 : index
    %c0_146 = arith.constant 0 : index
    %209 = vector.load %arg13[%c0_145, %c0_146] : memref<1x128xf32, #tpu.memory_space<vmem>>, vector<1x128xf32>
    %210 = arith.addf %208, %209 : vector<1x128xf32>
    %cst_147 = arith.constant dense<0xFF800000> : vector<1xf32>
    %211 = vector.multi_reduction <maximumf>, %210, %cst_147 [1] : vector<1x128xf32> to vector<1xf32>
    %212 = vector.shape_cast %211 : vector<1xf32> to vector<1x1xf32>
    %213 = vector.broadcast %212 : vector<1x1xf32> to vector<1x128xf32>
    %214 = arith.subf %210, %213 : vector<1x128xf32>
    %215 = math.exp %214 : vector<1x128xf32>
    %cst_148 = arith.constant dense<0.000000e+00> : vector<1xf32>
    %216 = vector.multi_reduction <add>, %215, %cst_148 [1] : vector<1x128xf32> to vector<1xf32>
    %217 = vector.shape_cast %216 : vector<1xf32> to vector<1x1xf32>
    %218 = vector.broadcast %217 : vector<1x1xf32> to vector<1x128xf32>
    %219 = arith.divf %215, %218 : vector<1x128xf32>
    %c0_149 = arith.constant 0 : index
    %c0_150 = arith.constant 0 : index
    %c0_151 = arith.constant 0 : index
    %220 = vector.load %arg14[%c0_149, %c0_150, %c0_151] : memref<1x1x128xf32, #tpu.memory_space<vmem>>, vector<1x1x128xf32>
    %221 = vector.shape_cast %220 : vector<1x1x128xf32> to vector<1x128xf32>
    %222 = vector.shape_cast %219 : vector<1x128xf32> to vector<1x1x128xf32>
    tpu.vector_store %arg14[%c0_149, %c0_150, %c0_151], %222 {strides = array<i32>} : memref<1x1x128xf32, #tpu.memory_space<vmem>>, vector<1x1x128xf32>,
    return
  }
  func.func @transform_0(%arg0: i32) -> (i32, i32, i32) {
    %c0_i32 = arith.constant 0 : i32
    %c0_i32_0 = arith.constant 0 : i32
    %c0_i32_1 = arith.constant 0 : i32
    return %arg0, %c0_i32, %c0_i32_0 : i32, i32, i32
  }
  func.func @transform_1(%arg0: i32) -> (i32, i32) {
    %c0_i32 = arith.constant 0 : i32
    %c0_i32_0 = arith.constant 0 : i32
    %c0_i32_1 = arith.constant 0 : i32
    return %c0_i32, %c0_i32_0 : i32, i32
  }
  func.func @transform_2(%arg0: i32) -> (i32, i32) {
    %c0_i32 = arith.constant 0 : i32
    %c0_i32_0 = arith.constant 0 : i32
    %c0_i32_1 = arith.constant 0 : i32
    return %c0_i32, %c0_i32_0 : i32, i32
  }
  func.func @transform_3(%arg0: i32) -> (i32, i32, i32) {
    %c0_i32 = arith.constant 0 : i32
    %c0_i32_0 = arith.constant 0 : i32
    %c0_i32_1 = arith.constant 0 : i32
    %c0_i32_2 = arith.constant 0 : i32
    return %c0_i32, %c0_i32_0, %c0_i32_1 : i32, i32, i32
  }
  func.func @transform_4(%arg0: i32) -> (i32, i32) {
    %c0_i32 = arith.constant 0 : i32
    %c0_i32_0 = arith.constant 0 : i32
    %c0_i32_1 = arith.constant 0 : i32
    return %c0_i32, %c0_i32_0 : i32, i32
  }
  func.func @transform_5(%arg0: i32) -> (i32, i32, i32) {
    %c0_i32 = arith.constant 0 : i32
    %c0_i32_0 = arith.constant 0 : i32
    %c0_i32_1 = arith.constant 0 : i32
    %c0_i32_2 = arith.constant 0 : i32
    return %c0_i32, %c0_i32_0, %c0_i32_1 : i32, i32, i32
  }
  func.func @transform_6(%arg0: i32) -> (i32, i32) {
    %c0_i32 = arith.constant 0 : i32
    %c0_i32_0 = arith.constant 0 : i32
    %c0_i32_1 = arith.constant 0 : i32
    return %c0_i32, %c0_i32_0 : i32, i32
  }
  func.func @transform_7(%arg0: i32) -> (i32, i32, i32) {
    %c0_i32 = arith.constant 0 : i32
    %c0_i32_0 = arith.constant 0 : i32
    %c0_i32_1 = arith.constant 0 : i32
    %c0_i32_2 = arith.constant 0 : i32
    return %c0_i32, %c0_i32_0, %c0_i32_1 : i32, i32, i32
  }
  func.func @transform_8(%arg0: i32) -> (i32, i32) {
    %c0_i32 = arith.constant 0 : i32
    %c0_i32_0 = arith.constant 0 : i32
    %c0_i32_1 = arith.constant 0 : i32
    return %c0_i32, %c0_i32_0 : i32, i32
  }
  func.func @transform_9(%arg0: i32) -> (i32, i32) {
    %c0_i32 = arith.constant 0 : i32
    %c0_i32_0 = arith.constant 0 : i32
    %c0_i32_1 = arith.constant 0 : i32
    return %c0_i32, %c0_i32_0 : i32, i32
  }
  func.func @transform_10(%arg0: i32) -> (i32, i32) {
    %c0_i32 = arith.constant 0 : i32
    %c0_i32_0 = arith.constant 0 : i32
    %c0_i32_1 = arith.constant 0 : i32
    return %c0_i32, %c0_i32_0 : i32, i32
  }
  func.func @transform_11(%arg0: i32) -> (i32, i32) {
    %c0_i32 = arith.constant 0 : i32
    %c0_i32_0 = arith.constant 0 : i32
    %c0_i32_1 = arith.constant 0 : i32
    return %c0_i32, %c0_i32_0 : i32, i32
  }
  func.func @transform_12(%arg0: i32) -> (i32, i32) {
    %c0_i32 = arith.constant 0 : i32
    %c0_i32_0 = arith.constant 0 : i32
    %c0_i32_1 = arith.constant 0 : i32
    return %c0_i32, %c0_i32_0 : i32, i32
  }
  func.func @transform_13(%arg0: i32) -> (i32, i32, i32) {
    %c0_i32 = arith.constant 0 : i32
    %c0_i32_0 = arith.constant 0 : i32
    %c0_i32_1 = arith.constant 0 : i32
    return %arg0, %c0_i32, %c0_i32_0 : i32, i32, i32
  }
}

</mosaic_0001>

<bundles_post_ra>
// kernel: net_forward.1
= control target key start
LH: loop header
LB: loop body
LE: loop exit
PB: predicated region body
PF: predicated region fallthrough
CT: control target
= control target key end

     0   :  { %s12899_s0 = inlined_call_operand.vmem [shape: bf16[2,256,16], index: 0, kind: input, shape index: {}]   ;;  %s12900_s1 = inlined_call_operand.vmem [shape: bf16[16,128], index: 1, kind: input, shape index: {}]   ;;  %s12901_s2 = inlined_call_operand.vmem [shape: f32[1,128], index: 2, kind: input, shape index: {}]   ;;  %s12902_s3 = inlined_call_operand.hbm [shape: bf16[9,128,128], index: 3, kind: input, shape index: {}]   ;;  %s12903_s4 = inlined_call_operand.vmem [shape: f32[1,128], index: 4, kind: input, shape index: {}]   ;;  %s12904_s5 = inlined_call_operand.vmem [shape: bf16[9,128,256], index: 5, kind: input, shape index: {}]   ;;  %s12905_s6 = inlined_call_operand.vmem [shape: f32[1,256], index: 6, kind: input, shape index: {}]   ;;  %s12906_s7 = inlined_call_operand.hbm [shape: bf16[4,256,512], index: 7, kind: input, shape index: {}]   ;;  %s12907_s8 = inlined_call_operand.vmem [shape: f32[1,512], index: 8, kind: input, shape index: {}]   ;;  %s12908_s9 = inlined_call_operand.hbm [shape: bf16[512,256], index: 9, kind: input, shape index: {}]   ;;  %s12909_s10 = inlined_call_operand.vmem [shape: f32[1,256], index: 10, kind: input, shape index: {}]   ;;  %s12910_s11 = inlined_call_operand.vmem [shape: bf16[256,128], index: 11, kind: input, shape index: {}]   ;;  %s12911_s12 = inlined_call_operand.vmem [shape: f32[1,128], index: 12, kind: input, shape index: {}]   ;;  %s12912_s13 = inlined_call_operand.hbm [shape: f32[2,1,128], index: 13, kind: output, shape index: {}]  }
   0x1   :  { %12927 = sst [smem:[#allocation21_spill]] %s12902_s3 }
   0x2   :  { %12928 = sst [smem:[#allocation22_spill]] %s12906_s7 }
   0x3   :  { %12929 = sst [smem:[#allocation23_spill]] %s12912_s13 }
   0x4   :  { %18 = vsyncpa [#allocation5], 0 }
   0x5   :  { %19 = vsyncpa [#allocation8], 0 }
   0x6   :  { %20 = vsyncpa [#allocation6], 0 }
   0x7   :  { %22 = vsyncpa [#allocation6 + $0x1], 0  ;;  %s10746_s25 = smov 0   ;;  %s10748_s26 = smov 0  }
   0x8   :  { %s10750_s27 = smov 0   ;;  %s10752_s28 = smov 0  }
   0x9 LB: > { %12930 = sst [smem:[#allocation14_spill]] %s10650_s25  ;;  %s10767_s29 = sadd.s32 4294967295, %s10662_s28   ;;  %s10662_s28 = sphi %s10752_s28, %s12980_s28   ;;  %s10658_s27 = sphi %s10750_s27, %s12982_s27   ;;  %s10654_s26 = sphi %s10748_s26, %s12984_s26   ;;  %s10650_s25 = sphi %s10746_s25, %s12983_s25  }
   0xa   : > { %12931 = sst [smem:[#allocation15_spill]] %s10658_s27  ;;  %s7397_s30 = sadd.s32 4294967294, %s10662_s28  }
   0xb   : > { %12932 = sst [smem:[#allocation16_spill]] %s10662_s28  ;;  %s10771_s14 = sadd.s32 1, %s10662_s28  }
   0xc   : > { %12933 = sst [smem:[#allocation17_spill]] %s10771_s14  ;;  %s313_s15 = sadd.s32 1, %s10658_s27 }
   0xd   : > { %s310_s16 = ssub.s32 %s10662_s28, %s10771_s14  ;;  %p323_p0 = scmp.ne.s32.totalorder %s10658_s27, %s10654_s26 }
   0xe   : > { %p311_p1 = scmp.eq.s32.totalorder %s310_s16, 0  ;;  %p324_p2 = scmp.eq.s32.totalorder %s10767_s29, 1 }
   0xf   : > { %p329_p3 = scmp.ne.s32.totalorder %s10654_s26, %s10650_s25  ;;  %p330_p4 = scmp.eq.s32.totalorder %s7397_s30, 1 }
  0x10   : > { %s10782_s17 = scalar_select %p311_p1, %s10658_s27, %s313_s15  }
  0x11   : > { %p10784_p5 = por %p324_p2, %p323_p0  ;;  %p10788_p6 = por %p330_p4, %p329_p3 }
  0x12   : > { %12934 = sst [smem:[#allocation18_spill]] %s10782_s17  ;;  %p7398_p7 = scmp.ge.s32.totalorder %s10662_s28, 1 }
  0x13   : > { %s12935_s18 = scalar_select %p10784_p5, 1, 0 }
  0x14   : > { %s12937_s19 = scalar_select %p10788_p6, 1, 0 }
  0x15   : > { %12936 = sst [smem:[#allocation19_spill]] %s12935_s18  ;;  %p337_p8 = scmp.lt.s32.totalorder %s10662_s28, 3 }
  0x16   : > { %12938 = sst [smem:[#allocation20_spill]] %s12937_s19  ;;  %p10445_p9 = scmp.eq.s32.totalorder %s10767_s29, 0 }
  0x17   : > { %p10795_p10 = pnand %p7398_p7, %p337_p8  ;;  %s12940_s7 = sld [smem:[#allocation22_spill]] }
  0x18   : > { %s10664_s24 = smov [#allocation7]   ;;  %s12942_s3 = sld [smem:[#allocation21_spill]] }
  0x19   : > { %p10431_p11 = pneg %p10795_p10  ;;  %s379_s30 = sshll.u32 %s10664_s24, 4  ;;  %s380_s30 = int_to_ptr.vmem [resolvable:$true] %s379_s30 }
  0x1a   : > { %s10665_s21 = smov 256   ;;  %s10666_s22 = smov 16  }
  0x1b   : > { %p10806_p12 = pnand %p10445_p9, %p10431_p11  ;;  %s10668_s14 = smov 64  }
  0x1c   : > { %s10669_s19 = smov 4   ;;  %s394_s17 = sshll.u32 %s12908_s9, 4  ;;  %s395_s17 = int_to_ptr.hbm [resolvable:$true] %s394_s17 }
  0x1d   : > { %s377_s23 = sshll.u32 %s12940_s7, 4  ;;  %s10667_s7 = smov [#allocation4]   ;;  %s378_s23 = int_to_ptr.hbm [resolvable:$true] %s377_s23 }
  0x1e   : > { %s354_s27 = sshll.u32 %s12942_s3, 4  ;;  %s356_s24 = sshll.u32 %s10667_s7, 4  ;;  %s355_s27 = int_to_ptr.hbm [resolvable:$true] %s354_s27  ;;  %s357_s24 = int_to_ptr.vmem [resolvable:$true] %s356_s24 }
  0x1f   : > { %10437 = dma.hbm_to_vmem [thread:$0]  (!%p10806_p12), %s378_s23, 32768, %s380_s30, [#allocation8], %s10665_s21, %s10665_s21, %s10666_s22  }
  0x20   : > { %10434 = dma.hbm_to_vmem [thread:$0]  (!%p10806_p12), %s355_s27, 9216, %s357_s24, [#allocation5], %s10668_s14, %s10668_s14, %s10669_s19  }
  0x21   : > { %s10670_s16 = smov [#allocation9]   ;;  %s10671_s18 = smov 128  }
  0x22   : > { %s396_s3 = sshll.u32 %s10670_s16, 4  ;;  %s10672_s13 = smov 8   ;;  %s397_s3 = int_to_ptr.vmem [resolvable:$true] %s396_s3 }
  0x23   : > { %10440 = dma.hbm_to_vmem [thread:$0]  (!%p10806_p12), %s395_s17, 8192, %s397_s3, [#allocation8], %s10671_s18, %s10671_s18, %s10672_s13  }
  0x24   : > { %429 = sbr.rel (%p10795_p10) target bundleno = 1932 (0x78c), region = 72 }
  0x29   : > { %10637 = dma.done.wait (%p10445_p9), [#allocation5], 9216  }
  0x2a   : > { %10639 = vsyncadd (%p10445_p9), [#allocation5], 4294958080 }
  0x2b   : > { %10641 = dma.done.wait (%p10445_p9), [#allocation8], 40960  }
  0x2c   : > { %10643 = vsyncadd (%p10445_p9), [#allocation8], 4294926336  ;;  %p483_p13 = scmp.lt.s32.totalorder %s10767_s29, 1  ;;  %v9864_v0 = vld [vmem:[%s12900_s1] sm:$0xff]  ;;  %vm613_vm0 = vcmask 130048   ;;  %v9872_v13 = vld [vmem:[#allocation4 + $0x38] sm:$0xff] }
  0x2d   : > { %669 = vmatpush.bf16.msra.mxu0 %v9864_v0  ;;  %v10863_v12 = vld [vmem:[%s12901_s2] ss:$0 sm:$0xff]  ;;  %1941 = vmatpush.bf16.msra.mxu2 %v9872_v13  ;;  %v9888_v15 = vld [vmem:[#allocation4 + $0xb8] sm:$0xff]  ;;  %v9871_v17 = vld [vmem:[#allocation4 + $0x30] sm:$0xff]  ;;  %v10673_v21 = vmov 0.0   ;;  %vm975_vm3 = vcmask 1041408  }
  0x2e   : > { %s484_s7 = scalar_select %p483_p13, %s10767_s29, 1  ;;  %2094 = vmatpush.bf16.msra.mxu3 %v9888_v15  ;;  %1426 = vst [vmem:[#allocation2 + $0x10] sm:$0xff] %v10673_v21  ;;  %v9887_v22 = vld [vmem:[#allocation4 + $0xb0] sm:$0xff]  ;;  %v9870_v24 = vld [vmem:[#allocation4 + $0x28] sm:$0xff]  ;;  %v9880_v28 = vld [vmem:[#allocation4 + $0x78] sm:$0xff]  ;;  %vm12923_vm5 = vcmask 1043458  }
  0x2f   : > { %1427 = vst [vmem:[#allocation2 + $0x18] sm:$0x3] %v10673_v21  ;;  %v9886_v30 = vld [vmem:[#allocation4 + $0xa8] sm:$0xff]  ;;  %v9869_v31 = vld [vmem:[#allocation4 + $0x20] sm:$0xff]  ;;  %1840 = vmatpush.bf16.msra.mxu1 %v9880_v28  ;;  %v9879_v32 = vld [vmem:[#allocation4 + $0x70] sm:$0xff]  ;;  %vm1508_vm6 = vcmask 1041409  }
  0x30   : > { %s9847_s3 = sshll.u32 %s484_s7, 7  ;;  %2999 = vst [vmem:[#allocation3] sm:$0x3f] %v10673_v21  ;;  %v9885_v49 = vld [vmem:[#allocation4 + $0xa0] sm:$0xff]  ;;  %v9868_v52 = vld [vmem:[#allocation4 + $0x18] sm:$0xff]  ;;  %vm1510_vm8 = vcmask 1042434  }
  0x31   : > { %s10837_s27 = scalar_lea.vmem %s12899_s0, %s9847_s3  ;;  %1942 = vmatpush.bf16.msra.mxu2 %v9871_v17  ;;  %1424 = vst [vmem:[#allocation2] sm:$0xff] %v10673_v21  ;;  %vm3103_vm9 = vsmask.f32 1280  ;;  %v9878_v57 = vld [vmem:[#allocation4 + $0x68] sm:$0xff]  ;;  %vm3104_vm10 = vsmask.f32 3336 }
  0x32   : > { %v9848_v1 = vld [vmem:[%s10837_s27] sm:$0xff]  ;;  %v9849_v2 = vld [vmem:[%s10837_s27 + $0x8] sm:$0xff]  ;;  %v9850_v3 = vld [vmem:[%s10837_s27 + $0x10] sm:$0xff]  ;;  %2095 = vmatpush.bf16.msra.mxu3 %v9887_v22  ;;  %1425 = vst [vmem:[#allocation2 + $0x8] sm:$0x3] %v10673_v21  ;;  %vm1514_vm11 = vcmask 1044484  }
  0x33   : > { %7477 = vmatmul.msk.bf16.vlgmr.msra.gmra.mxu0 %vm613_vm0, %v9848_v1  ;;  %v9851_v4 = vld [vmem:[%s10837_s27 + $0x18] sm:$0xff]  ;;  %v9852_v5 = vld [vmem:[%s10837_s27 + $0x20] sm:$0xff]  ;;  %v9853_v6 = vld [vmem:[%s10837_s27 + $0x28] sm:$0xff]  ;;  %1428 = vst [vmem:[#allocation2 + $0x20] sm:$0xff] %v10673_v21  ;;  %1841 = vmatpush.bf16.msra.mxu1 %v9879_v32  ;;  %vm3106_vm12 = vsmask.f32 5392 }
  0x34   : > { %v9854_v7 = vld [vmem:[%s10837_s27 + $0x30] sm:$0xff]  ;;  %v9855_v8 = vld [vmem:[%s10837_s27 + $0x38] sm:$0xff]  ;;  %v9856_v9 = vld [vmem:[%s10837_s27 + $0x40] sm:$0xff]  ;;  %1429 = vst [vmem:[#allocation2 + $0x28] sm:$0x3] %v10673_v21  ;;  %vm12922_vm13 = vcmask 1040384  }
  0x35   : > { %v9857_v16 = vld [vmem:[%s10837_s27 + $0x48] sm:$0xff]  ;;  %1943 = vmatpush.bf16.msra.mxu2 %v9870_v24  ;;  %1430 = vst [vmem:[#allocation2 + $0x30] sm:$0xff] %v10673_v21  ;;  %v9884_v61 = vld [vmem:[#allocation4 + $0x98] sm:$0xff]  ;;  %vm12924_vm14 = vcmask 1046534   ;;  %vm3108_vm15 = vsmask.f32 7448 }
  0x36   : > { %2096 = vmatpush.bf16.msra.mxu3 %v9886_v30  ;;  %1432 = vst [vmem:[#allocation2 + $0x40] sm:$0xff] %v10673_v21  ;;  %v9883_v22 = vld [vmem:[#allocation4 + $0x90] sm:$0xff]  ;;  %v9876_v32 = vld [vmem:[#allocation4 + $0x58] sm:$0xff]  ;;  %s481_s16 = sand.u32 1, %s10654_s26   ;;  %s12975_s13 = sld [smem:[#allocation23_spill]] }
  0x37   : > { %v3042_v44 = vld [vmem:[#allocation3] sm:$0x3f]  ;;  %1431 = vst [vmem:[#allocation2 + $0x38] sm:$0x3] %v10673_v21  ;;  %1842 = vmatpush.bf16.msra.mxu1 %v9878_v57  ;;  %s482_s28 = scalar_lea.vmem [#allocation10], %s481_s16  ;;  %s7299_s19 = scalar_lea.sflag [#allocation6], %s481_s16 }
  0x38   : > { %v10885_v51 = vpack.c.bf16 %v3042_v44, %v3042_v44  ;;  %1433 = vst [vmem:[#allocation2 + $0x48] sm:$0x3] %v10673_v21  ;;  %s7309_s14 = sshll.u32 %s482_s28, 4  ;;  %s7310_s14 = int_to_ptr.vmem [resolvable:$true] %s7309_s14 }
  0x39   : > { %1944 = vmatpush.bf16.msra.mxu2 %v9869_v31  ;;  %1434 = vst [vmem:[#allocation2 + $0x50] sm:$0xff] %v10673_v21 }
  0x3a   : > { %2097 = vmatpush.bf16.msra.mxu3 %v9885_v49  ;;  %v3074_v60 = vrot.slane %v10885_v51, 2  ;;  %1435 = vst [vmem:[#allocation2 + $0x58] sm:$0x3] %v10673_v21 }
  0x3b   : > { %1436 = vst [vmem:[#allocation2 + $0x60] sm:$0xff] %v10673_v21 }
  0x3c   : > { %1437 = vst [vmem:[#allocation2 + $0x68] sm:$0x3] %v10673_v21  ;;  %s7307_s25 = scalar_lea.hbm %s12975_s13, %s10767_s29  ;;  %s10612_s15 = scalar_lea.hbm %s12975_s13, 2 }
  0x3d   : > { %1945 = vmatpush.bf16.msra.mxu2 %v9868_v52  ;;  %1438 = vst [vmem:[#allocation2 + $0x70] sm:$0xff] %v10673_v21  ;;  %s7311_s18 = sshll.u32 %s7307_s25, 4  ;;  %s7312_s18 = int_to_ptr.hbm [resolvable:$true] %s7311_s18 }
  0x3e   : > { %2098 = vmatpush.bf16.msra.mxu3 %v9884_v61  ;;  %1439 = vst [vmem:[#allocation2 + $0x78] sm:$0x3] %v10673_v21  ;;  %v9881_v61 = vld [vmem:[#allocation4 + $0x80] sm:$0xff]  ;;  %s10606_s20 = sshra.s32 %s7312_s18, 4  ;;  %s10607_s20 = int_to_ptr.hbm [resolvable:$true] %s10606_s20 }
  0x3f   : > { %1440 = vst [vmem:[#allocation2 + $0x80] sm:$0xff] %v10673_v21  ;;  %s10608_s23 = scalar_lea.hbm %s10607_s20, 1  ;;  %p10613_p3 = scmp.lt.s32.totalorder %s10607_s20, %s12975_s13 }
  0x40   : > { %1441 = vst [vmem:[#allocation2 + $0x88] sm:$0x3] %v10673_v21  ;;  %p10609_p0 = scmp.ne.s32.totalorder %s10607_s20, %s10608_s23  ;;  %p10614_p4 = scmp.lt.s32.totalorder %s10612_s15, %s10608_s23 }
  0x41   : > { %1443 = vst [vmem:[#allocation2 + $0x98] sm:$0x3] %v10673_v21 }
  0x42   : > { %2099 = vmatpush.bf16.msra.mxu3 %v9883_v22  ;;  %3000 = vst [vmem:[#allocation3 + $0x8] sm:$0x3f] %v10673_v21  ;;  %v9859_v22 = vld [vmem:[%s10837_s27 + $0x58] sm:$0xff]  ;;  %p10610_p1 = pnand %p10609_p0, %p10784_p5  ;;  %p10615_p7 = por %p10614_p4, %p10613_p3 }
  0x43   : > { %7478 = vmatmul.msk.bf16.gmra.mxu0 %vm613_vm0, %v9849_v2  ;;  %v9858_v2 = vld [vmem:[%s10837_s27 + $0x50] sm:$0xff]  ;;  %3001 = vst [vmem:[#allocation3 + $0x10] sm:$0x3f] %v10673_v21 }
  0x44   : > { %3002 = vst [vmem:[#allocation3 + $0x18] sm:$0x3f] %v10673_v21  ;;  %p10611_p2 = pneg %p10610_p1 }
  0x45   : > { %3003 = vst [vmem:[#allocation3 + $0x20] sm:$0x3f] %v10673_v21 }
  0x46   : > { %3004 = vst [vmem:[#allocation3 + $0x28] sm:$0x3f] %v10673_v21  ;;  %p10616_p8 = pnand %p10615_p7, %p10611_p2 }
  0x53   : > { %7479 = vmatmul.msk.bf16.gmra.mxu0 %vm613_vm0, %v9850_v3  ;;  %v9867_v3 = vld [vmem:[#allocation4 + $0x10] sm:$0xff] }
  0x54   : > { %1946 = vmatpush.bf16.msra.mxu2 %v9867_v3 }
  0x63   : > { %7480 = vmatmul.msk.bf16.gmra.mxu0 %vm613_vm0, %v9851_v4 }
  0x73   : > { %7481 = vmatmul.msk.bf16.gmra.mxu0 %vm613_vm0, %v9852_v5  ;;  %v10896_v5 = vsel %vm975_vm3, %v10885_v51, %v3074_v60 }
  0x83   : > { %7482 = vmatmul.msk.bf16.gmra.mxu0 %vm613_vm0, %v9853_v6 }
  0x93   : > { %7483 = vmatmul.msk.bf16.gmra.mxu0 %vm613_vm0, %v9854_v7  ;;  %v9877_v7 = vld [vmem:[#allocation4 + $0x60] sm:$0xff] }
  0x94   : > { %1843 = vmatpush.bf16.msra.mxu1 %v9877_v7 }
  0x98   : > { %1844 = vmatpush.bf16.msra.mxu1 %v9876_v32 }
  0xa3   : > { %7484 = vmatmul.msk.bf16.gmra.mxu0 %vm613_vm0, %v9855_v8 }
  0xb0   : > { %v671_v10 = vpop.f32.mrf.mxu0 }
  0xb1   : > { %v672_v14 = vadd.f32 %v10863_v12, %v671_v10 }
  0xb3   : > { %7485 = vmatmul.msk.bf16.gmra.mxu0 %vm613_vm0, %v9856_v9  ;;  %v783_v19 = vmul.f32 0.01, %v672_v14  ;;  %vm751_vm1 = vcmp.ge.f32.partialorder %v672_v14, 0.0 }
  0xb5   : > { %v815_v25 = vsel %vm751_vm1, %v672_v14, %v783_v19  ;;  %vm1512_vm1 = vcmask 1043459  }
  0xb8   : > { %v673_v11 = vpop.f32.mrf.mxu0 }
  0xb9   : > { %v674_v26 = vadd.f32 %v10863_v12, %v673_v11 }
  0xbb   : > { %vm752_vm4 = vcmp.ge.f32.partialorder %v674_v26, 0.0  ;;  %v784_v38 = vmul.f32 0.01, %v674_v26 }
  0xbd   : > { %v816_v58 = vsel %vm752_vm4, %v674_v26, %v784_v38  ;;  %v9882_v38 = vld [vmem:[#allocation4 + $0x88] sm:$0xff]  ;;  %vm10925_vm4 = vmor %vm3103_vm9, %vm3104_vm10 }
  0xbe   : > { %2100 = vmatpush.bf16.msra.mxu3 %v9882_v38  ;;  %vm10943_vm9 = vmor %vm10925_vm4, %vm3106_vm12  ;;  %vm1516_vm12 = vcmask 1045509   ;;  %vm1520_vm4 = vcmask 1047559  }
  0xc0   : > { %v676_v18 = vpop.f32.mrf.mxu0 }
  0xc1   : > { %v677_v20 = vadd.f32 %v10863_v12, %v676_v18 }
  0xc2   : > { %2101 = vmatpush.bf16.msra.mxu3 %v9881_v61 }
  0xc3   : > { %vm753_vm2 = vcmp.ge.f32.partialorder %v677_v20, 0.0  ;;  %v785_v23 = vmul.f32 0.01, %v677_v20  ;;  %7486 = vmatmul.msk.bf16.gmra.mxu0 %vm613_vm0, %v9857_v16 }
  0xc5   : > { %v817_v27 = vsel %vm753_vm2, %v677_v20, %v785_v23  ;;  %v3082_v20 = vsel %vm12923_vm5, %v10885_v51, %v3074_v60  ;;  %v9866_v23 = vld [vmem:[#allocation4 + $0x8] sm:$0xff]  ;;  %vm10914_vm2 = vmor %vm12922_vm13, %vm1510_vm8  ;;  %vm1978_vm13 = vcmask 1042432   ;;  %vm1979_vm5 = vcmask 1046532  }
  0xc6   : > { %v847_v29 = vmax.f32 %v815_v25, %v817_v27  ;;  %1947 = vmatpush.bf16.msra.mxu2 %v9866_v23  ;;  %v1589_v23 = vld [vmem:[#allocation2 + $0x8] sm:$0x3] }
  0xc8   : > { %v879_v33 = vrot.slane %v847_v29, 2  ;;  %v880_v34 = vrot.slane %v847_v29, 4  ;;  %v881_v35 = vrot.slane %v847_v29, 6  ;;  %v976_v36 = vsel %vm975_vm3, %v847_v29, -inf  ;;  %v678_v37 = vpop.f32.mrf.mxu0 }
  0xc9   : > { %v977_v39 = vrot.slane %v976_v36, 4  ;;  %v679_v40 = vadd.f32 %v10863_v12, %v678_v37 }
  0xca   : > { %v983_v41 = vsel %vm975_vm3, %v879_v33, -inf  ;;  %v990_v42 = vsel %vm975_vm3, %v880_v34, -inf  ;;  %v997_v43 = vsel %vm975_vm3, %v881_v35, -inf }
  0xcb   : > { %v978_v45 = vmax.f32 %v976_v36, %v977_v39  ;;  %v984_v46 = vrot.slane %v983_v41, 4  ;;  %v991_v47 = vrot.slane %v990_v42, 4  ;;  %v998_v48 = vrot.slane %v997_v43, 4 }
  0xcc   : > { %vm754_vm7 = vcmp.ge.f32.partialorder %v679_v40, 0.0  ;;  %v786_v50 = vmul.f32 0.01, %v679_v40  ;;  %v3084_v36 = vrot.slane %v3082_v20, 2 }
  0xcd   : > { %v979_v53 = vrot.slane %v978_v45, 2  ;;  %v985_v54 = vmax.f32 %v983_v41, %v984_v46  ;;  %v992_v55 = vmax.f32 %v990_v42, %v991_v47  ;;  %v999_v56 = vmax.f32 %v997_v43, %v998_v48  ;;  %v9865_v43 = vld [vmem:[#allocation4] sm:$0xff] }
  0xce   : > { %v818_v59 = vsel %vm754_vm7, %v679_v40, %v786_v50  ;;  %v3110_v41 = vshrl.u32 %v10896_v5, 16  ;;  %v3113_v42 = vshll.u32 %v10896_v5, 16  ;;  %v9875_v50 = vld [vmem:[#allocation4 + $0x50] sm:$0xff]  ;;  %vm10934_vm7 = vmor %vm10914_vm2, %vm1514_vm11  ;;  %v3119_v60 = vshll.u32 %v3084_v36, 16  ;;  %1948 = vmatpush.bf16.msra.mxu2 %v9865_v43 }
  0xcf   : > { %v980_v62 = vmax.f32 %v978_v45, %v979_v53  ;;  %v986_v63 = vrot.slane %v985_v54, 2  ;;  %v993_v0 = vrot.slane %v992_v55, 2  ;;  %v1000_v1 = vrot.slane %v999_v56, 2  ;;  %1845 = vmatpush.bf16.msra.mxu1 %v9875_v50  ;;  %vm10952_vm10 = vmor %vm10934_vm7, %vm12924_vm14 }
  0xd0   : > { %v848_v4 = vmax.f32 %v816_v58, %v818_v59  ;;  %v10899_v6 = vpop.f32.mrf.mxu0  ;;  %vm10965_vm2 = vmor %vm10943_vm9, %vm3108_vm15 }
  0xd1   : > { %v981_v8 = vrot.slane %v980_v62, 1  ;;  %v987_v9 = vmax.f32 %v985_v54, %v986_v63  ;;  %v994_v10 = vmax.f32 %v992_v55, %v993_v0  ;;  %v1001_v11 = vmax.f32 %v999_v56, %v1000_v1 }
  0xd2   : > { %v882_v13 = vrot.slane %v848_v4, 2  ;;  %v883_v14 = vrot.slane %v848_v4, 4  ;;  %v884_v15 = vrot.slane %v848_v4, 6  ;;  %v1004_v16 = vsel %vm975_vm3, %v848_v4, -inf }
  0xd3   : > { %v988_v17 = vrot.slane %v987_v9, 1  ;;  %v995_v18 = vrot.slane %v994_v10, 1  ;;  %v1002_v19 = vrot.slane %v1001_v11, 1  ;;  %7487 = vmatmul.msk.bf16.gmra.mxu0 %vm613_vm0, %v9858_v2  ;;  %v1005_v24 = vrot.slane %v1004_v16, 4 }
  0xd4   : > { %v1011_v25 = vsel %vm975_vm3, %v882_v13, -inf  ;;  %v1018_v26 = vsel %vm975_vm3, %v883_v14, -inf  ;;  %v1025_v27 = vsel %vm975_vm3, %v884_v15, -inf  ;;  %v982_v28 = vmax.f32 %v980_v62, %v981_v8 }
  0xd5   : > { %v989_v29 = vmax.f32 %v987_v9, %v988_v17  ;;  %v996_v30 = vmax.f32 %v994_v10, %v995_v18  ;;  %v1012_v31 = vrot.slane %v1011_v25, 4  ;;  %v1006_v33 = vmax.f32 %v1004_v16, %v1005_v24  ;;  %v9874_v10 = vld [vmem:[#allocation4 + $0x48] sm:$0xff] }
  0xd6   : > { %v1019_v34 = vrot.slane %v1018_v26, 4  ;;  %v1026_v35 = vrot.slane %v1025_v27, 4  ;;  %v1003_v44 = vmax.f32 %v1001_v11, %v1002_v19  ;;  %v3112_v54 = vrot.slane %v3110_v41, 6  ;;  %1846 = vmatpush.bf16.msra.mxu1 %v9874_v10  ;;  %v10049_v9 = vld [vmem:[%s12904_s5 + $0x384] sm:$0xf] }
  0xd7   : > { %v1509_v39 = vsel %vm1508_vm6, %v989_v29, %v982_v28  ;;  %v1013_v40 = vmax.f32 %v1011_v25, %v1012_v31  ;;  %v1007_v45 = vrot.slane %v1006_v33, 2  ;;  %v3115_v55 = vrot.slane %v3113_v42, 7 }
  0xd8   : > { %v1020_v46 = vmax.f32 %v1018_v26, %v1019_v34  ;;  %v1027_v47 = vmax.f32 %v1025_v27, %v1026_v35  ;;  %v683_v49 = vpop.f32.mrf.mxu0  ;;  %v1511_v52 = vsel %vm1510_vm8, %v996_v30, %v1509_v39  ;;  %v7935_v1 = vrot.slane %v10896_v5, 9  ;;  %v9873_v27 = vld [vmem:[#allocation4 + $0x40] sm:$0xff] }
  0xd9   : > { %v1014_v53 = vrot.slane %v1013_v40, 2  ;;  %v1008_v57 = vmax.f32 %v1006_v33, %v1007_v45  ;;  %v3116_v0 = vor.u32 %v3115_v55, %v3112_v54  ;;  %v3430_v2 = vrot.slane %v3084_v36, 7 }
  0xda   : > { %v1021_v58 = vrot.slane %v1020_v46, 2  ;;  %v1028_v59 = vrot.slane %v1027_v47, 2  ;;  %v3121_v8 = vrot.slane %v3119_v60, 7  ;;  %v682_v21 = vadd.f32 %v10863_v12, %v10899_v6  ;;  %1847 = vmatpush.bf16.msra.mxu1 %v9873_v27 }
  0xdb   : > { %v1015_v62 = vmax.f32 %v1013_v40, %v1014_v53  ;;  %v1009_v3 = vrot.slane %v1008_v57, 1  ;;  %v3117_v13 = vrot.slane %v3116_v0, 2  ;;  %v10958_v5 = vsel %vm10952_vm10, %v7935_v1, %v3430_v2 }
  0xdc   : > { %v1022_v4 = vmax.f32 %v1020_v46, %v1021_v58  ;;  %v1029_v7 = vmax.f32 %v1027_v47, %v1028_v59  ;;  %v1513_v18 = vsel %vm1512_vm1, %v1003_v44, %v1511_v52  ;;  %v684_v6 = vadd.f32 %v10863_v12, %v683_v49 }
  0xdd   : > { %v1016_v11 = vrot.slane %v1015_v62, 1  ;;  %v1010_v14 = vmax.f32 %v1008_v57, %v1009_v3  ;;  %v3122_v20 = vsel %vm10965_vm2, %v3117_v13, %v3121_v8  ;;  %v787_v30 = vmul.f32 0.01, %v682_v21 }
  0xde   : > { %v1023_v15 = vrot.slane %v1022_v4, 1  ;;  %v1030_v16 = vrot.slane %v1029_v7, 1  ;;  %3180 = vst [vmem:[#allocation1] ss:$4 sm:$0xff] %v3122_v20  ;;  %vm755_vm15 = vcmp.ge.f32.partialorder %v682_v21, 0.0  ;;  %v10978_v33 = vpack.c.bf16 %v1589_v23, %v1589_v23 }
  0xdf   : > { %v1017_v19 = vmax.f32 %v1015_v62, %v1016_v11  ;;  %v1515_v25 = vsel %vm1514_vm11, %v1010_v14, %v1513_v18  ;;  %v788_v35 = vmul.f32 0.01, %v684_v6  ;;  %vm756_vm9 = vcmp.ge.f32.partialorder %v684_v6, 0.0 }
  0xe0   : > { %v1024_v24 = vmax.f32 %v1022_v4, %v1023_v15  ;;  %v686_v26 = vpop.f32.mrf.mxu0  ;;  %v1031_v28 = vmax.f32 %v1029_v7, %v1030_v16  ;;  %v819_v37 = vsel %vm755_vm15, %v682_v21, %v787_v30  ;;  %v10674_v40 = vmov 0.0|0.0   ;;  %v9860_v16 = vld [vmem:[%s10837_s27 + $0x60] sm:$0xff] }
  0xe1   : > { %v1517_v29 = vsel %vm1516_vm12, %v1017_v19, %v1515_v25  ;;  %v687_v31 = vadd.f32 %v10863_v12, %v686_v26  ;;  %v7557_v41 = vrot.slane %v10674_v40, 9  ;;  %v1983_v42 = vrot.slane %v10978_v33, 5 }
  0xe2   : > { %v1519_v32 = vsel %vm12924_vm14, %v1024_v24, %v1517_v29  ;;  %v820_v43 = vsel %vm756_vm9, %v684_v6, %v788_v35  ;;  %vm10983_vm14 = vmor %vm1978_vm13, %vm1979_vm5  ;;  %v1877_v53 = vunpack.c.l.b16 %v10674_v40  ;;  %v1657_v24 = vshll.u32 %v10978_v33, 16 }
  0xe3   : > { %v1521_v34 = vsel %vm1520_vm4, %v1031_v28, %v1519_v32  ;;  %vm757_vm7 = vcmp.ge.f32.partialorder %v687_v31, 0.0  ;;  %v789_v36 = vmul.f32 0.01, %v687_v31  ;;  %7488 = vmatmul.msk.bf16.gmra.mxu0 %vm613_vm0, %v9859_v22  ;;  %v10994_v57 = vsel %vm10983_vm14, %v7557_v41, %v1983_v42 }
  0xe4   : > { %1580 = vst [vmem:[#allocation2 + $0x11] sm:$0xff] %v1521_v34  ;;  %v10675_v22 = vmov 0   ;;  %vm1644_vm13 = vsmask.f32 3328  ;;  %vm1645_vm15 = vsmask.f32 7440 }
  0xe5   : > { %v821_v38 = vsel %vm757_vm7, %v687_v31, %v789_v36  ;;  %v1650_v23 = vrot.slane %v10675_v22, 4  ;;  %v1653_v33 = vrot.slane %v10675_v22, 5  ;;  %vm11026_vm7 = vmor %vm1644_vm13, %vm1645_vm15  ;;  %vm12959_vm9 = vcmask 1046534  }
  0xe6   : > { %v849_v39 = vmax.f32 %v819_v37, %v821_v38 }
  0xe8   : > { %v885_v45 = vrot.slane %v849_v39, 2  ;;  %v886_v46 = vrot.slane %v849_v39, 4  ;;  %v887_v47 = vrot.slane %v849_v39, 6  ;;  %v1032_v48 = vsel %vm975_vm3, %v849_v39, -inf  ;;  %v688_v49 = vpop.f32.mrf.mxu0 }
  0xe9   : > { %v1033_v50 = vrot.slane %v1032_v48, 4  ;;  %v689_v52 = vadd.f32 %v10863_v12, %v688_v49 }
  0xea   : > { %v1039_v54 = vsel %vm975_vm3, %v885_v45, -inf  ;;  %v1046_v55 = vsel %vm975_vm3, %v886_v46, -inf  ;;  %v1053_v56 = vsel %vm975_vm3, %v887_v47, -inf  ;;  %v2030_v45 = vunpack.c.l.b16 %v10994_v57 }
  0xeb   : > { %v1034_v58 = vmax.f32 %v1032_v48, %v1033_v50  ;;  %v1040_v59 = vrot.slane %v1039_v54, 4  ;;  %v1047_v60 = vrot.slane %v1046_v55, 4  ;;  %v1054_v61 = vrot.slane %v1053_v56, 4  ;;  %v1590_v62 = vld [vmem:[#allocation2 + $0x10] sm:$0xff]  ;;  %v1591_v63 = vld [vmem:[#allocation2 + $0x18] sm:$0x3] }
  0xec   : > { %vm758_vm5 = vcmp.ge.f32.partialorder %v689_v52, 0.0  ;;  %v790_v0 = vmul.f32 0.01, %v689_v52  ;;  %v10996_v1 = vpack.c.bf16 %v1590_v62, %v1590_v62  ;;  %v10998_v2 = vpack.c.bf16 %v1591_v63, %v1591_v63 }
  0xed   : > { %v1035_v3 = vrot.slane %v1034_v58, 2  ;;  %v1041_v4 = vmax.f32 %v1039_v54, %v1040_v59  ;;  %v1048_v7 = vmax.f32 %v1046_v55, %v1047_v60  ;;  %v1055_v8 = vmax.f32 %v1053_v56, %v1054_v61 }
  0xee   : > { %v822_v10 = vsel %vm758_vm5, %v689_v52, %v790_v0  ;;  %v1878_v11 = vunpack.c.l.b16 %v10996_v1  ;;  %v7558_v13 = vrot.slane %v10996_v1, 9  ;;  %v1987_v18 = vrot.slane %v10998_v2, 5 }
  0xef   : > { %v1036_v21 = vmax.f32 %v1034_v58, %v1035_v3  ;;  %v1042_v14 = vrot.slane %v1041_v4, 2  ;;  %v1049_v15 = vrot.slane %v1048_v7, 2  ;;  %v850_v19 = vmax.f32 %v820_v43, %v822_v10 }
  0xf0   : > { %v691_v20 = vpop.f32.mrf.mxu0  ;;  %v1885_v6 = vpack.c.b16 %v1878_v11, %v1877_v53  ;;  %v1056_v28 = vrot.slane %v1055_v8, 2  ;;  %v11011_v36 = vsel %vm10983_vm14, %v7558_v13, %v1987_v18  ;;  %v1654_v54 = vor.u32 %v1653_v33, %v1650_v23 }
  0xf1   : > { %v1037_v25 = vrot.slane %v1036_v21, 1  ;;  %v1043_v26 = vmax.f32 %v1041_v4, %v1042_v14  ;;  %v1050_v27 = vmax.f32 %v1048_v7, %v1049_v15  ;;  %v888_v29 = vrot.slane %v850_v19, 2 }
  0xf2   : > { %v889_v30 = vrot.slane %v850_v19, 4  ;;  %v890_v31 = vrot.slane %v850_v19, 6  ;;  %v1060_v32 = vsel %vm975_vm3, %v850_v19, -inf  ;;  %1949 = vmatmul.bf16.vlgmr.msra.gmra.mxu2 %v1885_v6  ;;  %v1057_v42 = vmax.f32 %v1055_v8, %v1056_v28 }
  0xf3   : > { %v1044_v34 = vrot.slane %v1043_v26, 1  ;;  %v1051_v35 = vrot.slane %v1050_v27, 1  ;;  %7489 = vmatmul.msk.bf16.gmra.mxu0 %vm613_vm0, %v9860_v16  ;;  %v1061_v37 = vrot.slane %v1060_v32, 4  ;;  %v1067_v38 = vsel %vm975_vm3, %v888_v29, -inf }
  0xf4   : > { %v1074_v39 = vsel %vm975_vm3, %v889_v30, -inf  ;;  %v1081_v40 = vsel %vm975_vm3, %v890_v31, -inf  ;;  %v1068_v43 = vrot.slane %v1067_v38, 4  ;;  %v1038_v46 = vmax.f32 %v1036_v21, %v1037_v25  ;;  %v9861_v30 = vld [vmem:[%s10837_s27 + $0x68] sm:$0xff] }
  0xf5   : > { %v1045_v41 = vmax.f32 %v1043_v26, %v1044_v34  ;;  %v1062_v47 = vmax.f32 %v1060_v32, %v1061_v37  ;;  %v1075_v48 = vrot.slane %v1074_v39, 4  ;;  %v1082_v49 = vrot.slane %v1081_v40, 4 }
  0xf6   : > { %v1052_v50 = vmax.f32 %v1050_v27, %v1051_v35  ;;  %v1069_v52 = vmax.f32 %v1067_v38, %v1068_v43  ;;  %v2031_v53 = vunpack.c.l.b16 %v11011_v36  ;;  %v1058_v61 = vrot.slane %v1057_v42, 1 }
  0xf7   : > { %v1522_v55 = vsel %vm1508_vm6, %v1045_v41, %v1038_v46  ;;  %v1063_v56 = vrot.slane %v1062_v47, 2  ;;  %v1076_v58 = vmax.f32 %v1074_v39, %v1075_v48  ;;  %v1083_v59 = vmax.f32 %v1081_v40, %v1082_v49 }
  0xf8   : > { %v693_v60 = vpop.f32.mrf.mxu0  ;;  %v1070_v62 = vrot.slane %v1069_v52, 2  ;;  %v1659_v63 = vrot.slane %v1657_v24, 5  ;;  %v2038_v4 = vpack.c.b16 %v2031_v53, %v2030_v45  ;;  %v1523_v7 = vsel %vm1510_vm8, %v1052_v50, %v1522_v55 }
  0xf9   : > { %v1064_v57 = vmax.f32 %v1062_v47, %v1063_v56  ;;  %v1077_v0 = vrot.slane %v1076_v58, 2  ;;  %v1084_v3 = vrot.slane %v1083_v59, 2  ;;  %v692_v10 = vadd.f32 %v10863_v12, %v691_v20 }
  0xfa   : > { %v1071_v8 = vmax.f32 %v1069_v52, %v1070_v62  ;;  %v1655_v13 = vrot.slane %v1654_v54, 4  ;;  %2102 = vmatmul.bf16.vlgmr.msra.gmra.mxu3 %v2038_v4  ;;  %v1662_v16 = vshrl.u32 %v10996_v1, 16  ;;  %v1059_v18 = vmax.f32 %v1057_v42, %v1058_v61 }
  0xfb   : > { %v1065_v21 = vrot.slane %v1064_v57, 1  ;;  %v1078_v14 = vmax.f32 %v1076_v58, %v1077_v0  ;;  %v1085_v15 = vmax.f32 %v1083_v59, %v1084_v3  ;;  %v1665_v22 = vshll.u32 %v10996_v1, 16 }
  0xfc   : > { %v1072_v19 = vrot.slane %v1071_v8, 1  ;;  %v1664_v25 = vrot.slane %v1662_v16, 4  ;;  %v1524_v26 = vsel %vm1512_vm1, %v1059_v18, %v1523_v7  ;;  %v1671_v29 = vshll.u32 %v10998_v2, 16 }
  0xfd   : > { %v1066_v23 = vmax.f32 %v1064_v57, %v1065_v21  ;;  %v1079_v20 = vrot.slane %v1078_v14, 1  ;;  %v1086_v24 = vrot.slane %v1085_v15, 1  ;;  %v1667_v28 = vrot.slane %v1665_v22, 5 }
  0xfe   : > { %v1073_v27 = vmax.f32 %v1071_v8, %v1072_v19  ;;  %v791_v34 = vmul.f32 0.01, %v692_v10  ;;  %v1660_v35 = vsel %vm11026_vm7, %v1655_v13, %v1659_v63  ;;  %vm759_vm5 = vcmp.ge.f32.partialorder %v692_v10, 0.0 }
  0xff   : > { %v1080_v31 = vmax.f32 %v1078_v14, %v1079_v20  ;;  %v1525_v32 = vsel %vm1514_vm11, %v1066_v23, %v1524_v26  ;;  %v1087_v37 = vmax.f32 %v1085_v15, %v1086_v24  ;;  %v1668_v39 = vor.u32 %v1667_v28, %v1664_v25 }
 0x100   : > { %v696_v33 = vpop.f32.mrf.mxu0  ;;  %v1526_v38 = vsel %vm1516_vm12, %v1073_v27, %v1525_v32  ;;  %v1673_v42 = vrot.slane %v1671_v29, 5  ;;  %v1776_v46 = vunpack.c.l.b16 %v1660_v35  ;;  %v823_v47 = vsel %vm759_vm5, %v692_v10, %v791_v34  ;;  %v9862_v29 = vld [vmem:[%s10837_s27 + $0x70] sm:$0xff] }
 0x101   : > { %v697_v40 = vadd.f32 %v10863_v12, %v696_v33  ;;  %v1527_v41 = vsel %vm12959_vm9, %v1080_v31, %v1526_v38  ;;  %v1669_v43 = vrot.slane %v1668_v39, 4  ;;  %v694_v48 = vadd.f32 %v10863_v12, %v693_v60 }
 0x102   : > { %v1528_v2 = vsel %vm1520_vm4, %v1087_v37, %v1527_v41 }
 0x103   : > { %vm761_vm13 = vcmp.ge.f32.partialorder %v697_v40, 0.0  ;;  %v793_v45 = vmul.f32 0.01, %v697_v40  ;;  %7490 = vmatmul.msk.bf16.gmra.mxu0 %vm613_vm0, %v9861_v30  ;;  %1581 = vst [vmem:[#allocation2 + $0x21] sm:$0xff] %v1528_v2  ;;  %v1674_v49 = vsel %vm11026_vm7, %v1669_v43, %v1673_v42  ;;  %vm760_vm15 = vcmp.ge.f32.partialorder %v694_v48, 0.0 }
 0x104   : > { %v11045_v52 = vunpack.c.l.b16 %v1674_v49  ;;  %v792_v62 = vmul.f32 0.01, %v694_v48 }
 0x105   : > { %v825_v50 = vsel %vm761_vm13, %v697_v40, %v793_v45  ;;  %vm12960_vm13 = vcmask 1046534  }
 0x106   : > { %v851_v54 = vmax.f32 %v823_v47, %v825_v50  ;;  %v1784_v55 = vpack.c.b16 %v11045_v52, %v1776_v46  ;;  %v824_v23 = vsel %vm760_vm15, %v694_v48, %v792_v62 }
 0x108   : > { %v891_v56 = vrot.slane %v851_v54, 2  ;;  %v892_v58 = vrot.slane %v851_v54, 4  ;;  %v893_v59 = vrot.slane %v851_v54, 6  ;;  %v698_v61 = vpop.f32.mrf.mxu0  ;;  %v1088_v63 = vsel %vm975_vm3, %v851_v54, -inf  ;;  %1848 = vmatmul.bf16.vlgmr.msra.gmra.mxu1 %v1784_v55 }
 0x109   : > { %v699_v57 = vadd.f32 %v10863_v12, %v698_v61  ;;  %v1089_v60 = vrot.slane %v1088_v63, 4 }
 0x10a   : > { %v1095_v0 = vsel %vm975_vm3, %v891_v56, -inf  ;;  %v1102_v3 = vsel %vm975_vm3, %v892_v58, -inf  ;;  %v1109_v4 = vsel %vm975_vm3, %v893_v59, -inf  ;;  %v1592_v13 = vld [vmem:[#allocation2 + $0x20] sm:$0xff]  ;;  %v1593_v22 = vld [vmem:[#allocation2 + $0x28] sm:$0x3] }
 0x10b   : > { %v1096_v7 = vrot.slane %v1095_v0, 4  ;;  %v1103_v8 = vrot.slane %v1102_v3, 4  ;;  %v1110_v10 = vrot.slane %v1109_v4, 4  ;;  %vm762_vm9 = vcmp.ge.f32.partialorder %v699_v57, 0.0 }
 0x10c   : > { %v1090_v21 = vmax.f32 %v1088_v63, %v1089_v60  ;;  %v794_v14 = vmul.f32 0.01, %v699_v57  ;;  %v11053_v19 = vpack.c.bf16 %v1592_v13, %v1592_v13  ;;  %v1613_v32 = vpack.c.bf16 %v1593_v22, %v1593_v22 }
 0x10d   : > { %v1097_v15 = vmax.f32 %v1095_v0, %v1096_v7  ;;  %v1104_v16 = vmax.f32 %v1102_v3, %v1103_v8  ;;  %v1111_v18 = vmax.f32 %v1109_v4, %v1110_v10 }
 0x10e   : > { %v1091_v20 = vrot.slane %v1090_v21, 2  ;;  %v826_v24 = vsel %vm762_vm9, %v699_v57, %v794_v14  ;;  %v7559_v37 = vrot.slane %v11053_v19, 9  ;;  %v1991_v49 = vrot.slane %v1613_v32, 5 }
 0x10f   : > { %v1098_v25 = vrot.slane %v1097_v15, 2  ;;  %v1105_v26 = vrot.slane %v1104_v16, 2  ;;  %v1112_v27 = vrot.slane %v1111_v18, 2  ;;  %v852_v28 = vmax.f32 %v824_v23, %v826_v24 }
 0x110   : > { %v1092_v30 = vmax.f32 %v1090_v21, %v1091_v20  ;;  %v701_v31 = vpop.f32.mrf.mxu0  ;;  %v1676_v56 = vshrl.u32 %v11053_v19, 16  ;;  %v1679_v0 = vshll.u32 %v11053_v19, 16  ;;  %v11068_v10 = vsel %vm10983_vm14, %v7559_v37, %v1991_v49 }
 0x111   : > { %v1099_v34 = vmax.f32 %v1097_v15, %v1098_v25  ;;  %v1106_v35 = vmax.f32 %v1104_v16, %v1105_v26  ;;  %v894_v33 = vrot.slane %v852_v28, 2  ;;  %v895_v39 = vrot.slane %v852_v28, 4 }
 0x112   : > { %v1093_v38 = vrot.slane %v1092_v30, 1  ;;  %v896_v40 = vrot.slane %v852_v28, 6  ;;  %v1116_v41 = vsel %vm975_vm3, %v852_v28, -inf  ;;  %v1113_v43 = vmax.f32 %v1111_v18, %v1112_v27 }
 0x113   : > { %v1100_v42 = vrot.slane %v1099_v34, 1  ;;  %v1107_v2 = vrot.slane %v1106_v35, 1  ;;  %v1117_v45 = vrot.slane %v1116_v41, 4  ;;  %7491 = vmatmul.msk.bf16.gmra.mxu0 %vm613_vm0, %v9862_v29  ;;  %v1123_v46 = vsel %vm975_vm3, %v894_v33, -inf }
 0x114   : > { %v1130_v47 = vsel %vm975_vm3, %v895_v39, -inf  ;;  %v1137_v48 = vsel %vm975_vm3, %v896_v40, -inf  ;;  %v1094_v50 = vmax.f32 %v1092_v30, %v1093_v38  ;;  %v1124_v59 = vrot.slane %v1123_v46, 4 }
 0x115   : > { %v1101_v54 = vmax.f32 %v1099_v34, %v1100_v42  ;;  %v1118_v55 = vmax.f32 %v1116_v41, %v1117_v45  ;;  %v1108_v58 = vmax.f32 %v1106_v35, %v1107_v2  ;;  %v1131_v61 = vrot.slane %v1130_v47, 4  ;;  %v9863_v42 = vld [vmem:[%s10837_s27 + $0x78] sm:$0xff] }
 0x116   : > { %v1138_v62 = vrot.slane %v1137_v48, 4  ;;  %v1114_v63 = vrot.slane %v1113_v43, 1  ;;  %v1125_v3 = vmax.f32 %v1123_v46, %v1124_v59  ;;  %v1879_v21 = vunpack.c.l.b16 %v11053_v19 }
 0x117   : > { %v1529_v57 = vsel %vm1508_vm6, %v1101_v54, %v1094_v50  ;;  %v1119_v60 = vrot.slane %v1118_v55, 2  ;;  %v1132_v4 = vmax.f32 %v1130_v47, %v1131_v61  ;;  %v1678_v14 = vrot.slane %v1676_v56, 4 }
 0x118   : > { %v1139_v7 = vmax.f32 %v1137_v48, %v1138_v62  ;;  %v703_v8 = vpop.f32.mrf.mxu0  ;;  %v1530_v15 = vsel %vm1510_vm8, %v1108_v58, %v1529_v57  ;;  %v1126_v16 = vrot.slane %v1125_v3, 2  ;;  %v1115_v23 = vmax.f32 %v1113_v43, %v1114_v63 }
 0x119   : > { %v1120_v13 = vmax.f32 %v1118_v55, %v1119_v60  ;;  %v1133_v18 = vrot.slane %v1132_v4, 2  ;;  %v2032_v24 = vunpack.c.l.b16 %v11068_v10  ;;  %v1681_v25 = vrot.slane %v1679_v0, 5 }
 0x11a   : > { %v1140_v22 = vrot.slane %v1139_v7, 2  ;;  %v1127_v26 = vmax.f32 %v1125_v3, %v1126_v16  ;;  %v702_v29 = vadd.f32 %v10863_v12, %v701_v31  ;;  %v1531_v30 = vsel %vm1512_vm1, %v1115_v23, %v1530_v15 }
 0x11b   : > { %v1121_v20 = vrot.slane %v1120_v13, 1  ;;  %v1134_v27 = vmax.f32 %v1132_v4, %v1133_v18  ;;  %v1682_v35 = vor.u32 %v1681_v25, %v1678_v14  ;;  %v1685_v33 = vshll.u32 %v1613_v32, 16 }
 0x11c   : > { %v1141_v28 = vmax.f32 %v1139_v7, %v1140_v22  ;;  %v1128_v37 = vrot.slane %v1127_v26, 1  ;;  %v11079_v40 = vpack.c.b16 %v2032_v24, %v2031_v53  ;;  %v11087_v32 = vpack.c.b16 %v1879_v21, %v1878_v11 }
 0x11d   : > { %v1122_v34 = vmax.f32 %v1120_v13, %v1121_v20  ;;  %v1135_v38 = vrot.slane %v1134_v27, 1  ;;  %v1683_v2 = vrot.slane %v1682_v35, 4  ;;  %v1687_v43 = vrot.slane %v1685_v33, 5 }
 0x11e   : > { %v1142_v39 = vrot.slane %v1141_v28, 1  ;;  %v1129_v31 = vmax.f32 %v1127_v26, %v1128_v37  ;;  %v795_v47 = vmul.f32 0.01, %v702_v29  ;;  %vm763_vm5 = vcmp.ge.f32.partialorder %v702_v29, 0.0 }
 0x11f   : > { %v1532_v41 = vsel %vm1514_vm11, %v1122_v34, %v1531_v30  ;;  %v1136_v45 = vmax.f32 %v1134_v27, %v1135_v38  ;;  %v1688_v53 = vsel %vm11026_vm7, %v1683_v2, %v1687_v43  ;;  %v704_v58 = vadd.f32 %v10863_v12, %v703_v8 }
 0x120   : > { %v706_v46 = vpop.f32.mrf.mxu0  ;;  %v1143_v48 = vmax.f32 %v1141_v28, %v1142_v39  ;;  %v1533_v49 = vsel %vm1516_vm12, %v1129_v31, %v1532_v41  ;;  %v11093_v50 = vunpack.c.l.b16 %v1688_v53  ;;  %v827_v56 = vsel %vm763_vm5, %v702_v29, %v795_v47  ;;  %vm12961_vm5 = vmmov %vm12960_vm13 }
 0x121   : > { %v707_v36 = vadd.f32 %v10863_v12, %v706_v46  ;;  %v1534_v54 = vsel %vm12960_vm13, %v1136_v45, %v1533_v49  ;;  %vm764_vm9 = vcmp.ge.f32.partialorder %v704_v58, 0.0  ;;  %v796_v7 = vmul.f32 0.01, %v704_v58 }
 0x122   : > { %v1535_v11 = vsel %vm1520_vm4, %v1143_v48, %v1534_v54  ;;  %v2275_v55 = vpack.c.b16 %v11093_v50, %v11045_v52  ;;  %v9935_v52 = vld [vmem:[#allocation4 + $0x230] sm:$0xff] }
 0x123   : > { %vm765_vm15 = vcmp.ge.f32.partialorder %v707_v36, 0.0  ;;  %v797_v1 = vmul.f32 0.01, %v707_v36  ;;  %7492 = vmatmul.msk.bf16.gmra.mxu0 %vm613_vm0, %v9863_v42  ;;  %1582 = vst [vmem:[#allocation2 + $0x31] sm:$0xff] %v1535_v11 }
 0x125   : > { %v829_v59 = vsel %vm765_vm15, %v707_v36, %v797_v1 }
 0x126   : > { %v853_v61 = vmax.f32 %v827_v56, %v829_v59 }
 0x128   : > { %v897_v62 = vrot.slane %v853_v61, 2  ;;  %v898_v63 = vrot.slane %v853_v61, 4  ;;  %v899_v57 = vrot.slane %v853_v61, 6  ;;  %v1144_v60 = vsel %vm975_vm3, %v853_v61, -inf  ;;  %v708_v0 = vpop.f32.mrf.mxu0 }
 0x129   : > { %v1145_v3 = vrot.slane %v1144_v60, 4  ;;  %v709_v4 = vadd.f32 %v10863_v12, %v708_v0  ;;  %v828_v12 = vsel %vm764_vm9, %v704_v58, %v796_v7 }
 0x12a   : > { %v1151_v13 = vsel %vm975_vm3, %v897_v62, -inf  ;;  %v1158_v14 = vsel %vm975_vm3, %v898_v63, -inf  ;;  %v1165_v15 = vsel %vm975_vm3, %v899_v57, -inf  ;;  %v1594_v20 = vld [vmem:[#allocation2 + $0x30] sm:$0xff]  ;;  %v1595_v25 = vld [vmem:[#allocation2 + $0x38] sm:$0x3] }
 0x12b   : > { %v1146_v8 = vmax.f32 %v1144_v60, %v1145_v3  ;;  %v1152_v16 = vrot.slane %v1151_v13, 4  ;;  %v1159_v18 = vrot.slane %v1158_v14, 4  ;;  %v1166_v22 = vrot.slane %v1165_v15, 4 }
 0x12c   : > { %vm766_vm0 = vcmp.ge.f32.partialorder %v709_v4, 0.0  ;;  %v798_v23 = vmul.f32 0.01, %v709_v4  ;;  %v11107_v34 = vpack.c.bf16 %v1594_v20, %v1594_v20  ;;  %v11109_v38 = vpack.c.bf16 %v1595_v25, %v1595_v25 }
 0x12d   : > { %v1147_v26 = vrot.slane %v1146_v8, 2  ;;  %v1153_v27 = vmax.f32 %v1151_v13, %v1152_v16  ;;  %v1160_v28 = vmax.f32 %v1158_v14, %v1159_v18  ;;  %v1167_v29 = vmax.f32 %v1165_v15, %v1166_v22 }
 0x12e   : > { %v830_v30 = vsel %vm766_vm0, %v709_v4, %v798_v23  ;;  %v1880_v45 = vunpack.c.l.b16 %v11107_v34  ;;  %v7560_v54 = vrot.slane %v11107_v34, 9  ;;  %v1995_v1 = vrot.slane %v11109_v38, 5 }
 0x12f   : > { %v1148_v35 = vmax.f32 %v1146_v8, %v1147_v26  ;;  %v1154_v33 = vrot.slane %v1153_v27, 2  ;;  %v1161_v37 = vrot.slane %v1160_v28, 2  ;;  %v1168_v39 = vrot.slane %v1167_v29, 2 }
 0x130   : > { %v854_v41 = vmax.f32 %v828_v12, %v830_v30  ;;  %v711_v42 = vpop.f32.mrf.mxu0  ;;  %v11122_v13 = vpack.c.b16 %v1880_v45, %v1879_v21  ;;  %v11126_v14 = vsel %vm10983_vm14, %v7560_v54, %v1995_v1  ;;  %v1693_v10 = vshll.u32 %v11107_v34, 16 }
 0x131   : > { %v1149_v2 = vrot.slane %v1148_v35, 1  ;;  %v1155_v43 = vmax.f32 %v1153_v27, %v1154_v33  ;;  %v1162_v31 = vmax.f32 %v1160_v28, %v1161_v37  ;;  %v1169_v62 = vmax.f32 %v1167_v29, %v1168_v39 }
 0x132   : > { %v900_v46 = vrot.slane %v854_v41, 2  ;;  %v901_v47 = vrot.slane %v854_v41, 4  ;;  %v902_v36 = vrot.slane %v854_v41, 6  ;;  %v1172_v53 = vsel %vm975_vm3, %v854_v41, -inf  ;;  %1954 = vmatmul.bf16.gmra.mxu2 %v11122_v13  ;;  %v11142_v41 = vld [vmem:[%s12901_s2] ss:$0 sm:$0xff] }
 0x133   : > { %v1156_v48 = vrot.slane %v1155_v43, 1  ;;  %v1163_v49 = vrot.slane %v1162_v31, 1  ;;  %v1173_v11 = vrot.slane %v1172_v53, 4  ;;  %v1150_v57 = vmax.f32 %v1148_v35, %v1149_v2 }
 0x134   : > { %v1179_v56 = vsel %vm975_vm3, %v900_v46, -inf  ;;  %v1186_v58 = vsel %vm975_vm3, %v901_v47, -inf  ;;  %v1193_v59 = vsel %vm975_vm3, %v902_v36, -inf  ;;  %v1170_v23 = vrot.slane %v1169_v62, 1 }
 0x135   : > { %v1157_v61 = vmax.f32 %v1155_v43, %v1156_v48  ;;  %v1180_v63 = vrot.slane %v1179_v56, 4  ;;  %v1174_v60 = vmax.f32 %v1172_v53, %v1173_v11  ;;  %v1187_v0 = vrot.slane %v1186_v58, 4 }
 0x136   : > { %v1194_v3 = vrot.slane %v1193_v59, 4  ;;  %v1164_v4 = vmax.f32 %v1162_v31, %v1163_v49  ;;  %v2033_v21 = vunpack.c.l.b16 %v11126_v14  ;;  %v1690_v29 = vshrl.u32 %v11107_v34, 16 }
 0x137   : > { %v1181_v7 = vmax.f32 %v1179_v56, %v1180_v63  ;;  %v1536_v15 = vsel %vm1508_vm6, %v1157_v61, %v1150_v57  ;;  %v1175_v8 = vrot.slane %v1174_v60, 2  ;;  %v1188_v16 = vmax.f32 %v1186_v58, %v1187_v0 }
 0x138   : > { %v1195_v18 = vmax.f32 %v1193_v59, %v1194_v3  ;;  %v713_v22 = vpop.f32.mrf.mxu0  ;;  %v1537_v27 = vsel %vm1510_vm8, %v1164_v4, %v1536_v15  ;;  %v11137_v33 = vpack.c.b16 %v2033_v21, %v2032_v24  ;;  %v1171_v37 = vmax.f32 %v1169_v62, %v1170_v23 }
 0x139   : > { %v1182_v20 = vrot.slane %v1181_v7, 2  ;;  %v1176_v25 = vmax.f32 %v1174_v60, %v1175_v8  ;;  %v1189_v19 = vrot.slane %v1188_v16, 2  ;;  %v712_v2 = vadd.f32 %v11142_v41, %v711_v42 }
 0x13a   : > { %v1196_v26 = vrot.slane %v1195_v18, 2  ;;  %v1692_v43 = vrot.slane %v1690_v29, 4  ;;  %2107 = vmatmul.bf16.gmra.mxu3 %v11137_v33  ;;  %v1538_v24 = vsel %vm1512_vm1, %v1171_v37, %v1537_v27  ;;  %v1695_v49 = vrot.slane %v1693_v10, 5 }
 0x13b   : > { %v1183_v28 = vmax.f32 %v1181_v7, %v1182_v20  ;;  %v1177_v12 = vrot.slane %v1176_v25, 1  ;;  %v1190_v30 = vmax.f32 %v1188_v16, %v1189_v19  ;;  %v1699_v54 = vshll.u32 %v11109_v38, 16 }
 0x13c   : > { %v1197_v35 = vmax.f32 %v1195_v18, %v1196_v26  ;;  %v799_v56 = vmul.f32 0.01, %v712_v2  ;;  %vm767_vm13 = vcmp.ge.f32.partialorder %v712_v2, 0.0  ;;  %v1696_v61 = vor.u32 %v1695_v49, %v1692_v43 }
 0x13d   : > { %v1184_v39 = vrot.slane %v1183_v28, 1  ;;  %v1178_v31 = vmax.f32 %v1176_v25, %v1177_v12  ;;  %v1191_v46 = vrot.slane %v1190_v30, 1  ;;  %v1701_v60 = vrot.slane %v1699_v54, 5 }
 0x13e   : > { %v1198_v47 = vrot.slane %v1197_v35, 1  ;;  %v1697_v57 = vrot.slane %v1696_v61, 4  ;;  %v831_v0 = vsel %vm767_vm13, %v712_v2, %v799_v56  ;;  %v714_v38 = vadd.f32 %v11142_v41, %v713_v22 }
 0x13f   : > { %v1185_v36 = vmax.f32 %v1183_v28, %v1184_v39  ;;  %v1192_v53 = vmax.f32 %v1190_v30, %v1191_v46  ;;  %v1539_v48 = vsel %vm1514_vm11, %v1178_v31, %v1538_v24 }
 0x140   : > { %v716_v1 = vpop.f32.mrf.mxu0  ;;  %v1199_v11 = vmax.f32 %v1197_v35, %v1198_v47  ;;  %v1702_v4 = vsel %vm11026_vm7, %v1697_v57, %v1701_v60  ;;  %vm768_vm9 = vcmp.ge.f32.partialorder %v714_v38, 0.0  ;;  %v800_v26 = vmul.f32 0.01, %v714_v38 }
 0x141   : > { %v1540_v42 = vsel %vm1516_vm12, %v1185_v36, %v1539_v48  ;;  %v717_v58 = vadd.f32 %v11142_v41, %v716_v1  ;;  %v11157_v15 = vunpack.c.l.b16 %v1702_v4 }
 0x142   : > { %v1541_v59 = vsel %vm12961_vm5, %v1192_v53, %v1540_v42  ;;  %v832_v53 = vsel %vm768_vm9, %v714_v38, %v800_v26 }
 0x143   : > { %v1542_v62 = vsel %vm1520_vm4, %v1199_v11, %v1541_v59  ;;  %vm769_vm15 = vcmp.ge.f32.partialorder %v717_v58, 0.0  ;;  %v801_v63 = vmul.f32 0.01, %v717_v58  ;;  %v11162_v25 = vpack.c.b16 %v11157_v15, %v11093_v50 }
 0x144   : > { %1583 = vst [vmem:[#allocation2 + $0x41] sm:$0xff] %v1542_v62 }
 0x145   : > { %v833_v3 = vsel %vm769_vm15, %v717_v58, %v801_v63  ;;  %1853 = vmatmul.bf16.gmra.mxu1 %v11162_v25 }
 0x146   : > { %v855_v7 = vmax.f32 %v831_v0, %v833_v3 }
 0x148   : > { %v903_v8 = vrot.slane %v855_v7, 2  ;;  %v904_v16 = vrot.slane %v855_v7, 4  ;;  %v905_v18 = vrot.slane %v855_v7, 6  ;;  %v1200_v23 = vsel %vm975_vm3, %v855_v7, -inf  ;;  %v718_v20 = vpop.f32.mrf.mxu0 }
 0x149   : > { %v1201_v19 = vrot.slane %v1200_v23, 4  ;;  %v719_v22 = vadd.f32 %v11142_v41, %v718_v20 }
 0x14a   : > { %v1207_v27 = vsel %vm975_vm3, %v903_v8, -inf  ;;  %v1214_v28 = vsel %vm975_vm3, %v904_v16, -inf  ;;  %v1221_v29 = vsel %vm975_vm3, %v905_v18, -inf }
 0x14b   : > { %v1202_v12 = vmax.f32 %v1200_v23, %v1201_v19  ;;  %v1208_v30 = vrot.slane %v1207_v27, 4  ;;  %v1215_v35 = vrot.slane %v1214_v28, 4  ;;  %v1222_v37 = vrot.slane %v1221_v29, 4  ;;  %v1596_v39 = vld [vmem:[#allocation2 + $0x40] sm:$0xff]  ;;  %v1597_v2 = vld [vmem:[#allocation2 + $0x48] sm:$0x3] }
 0x14c   : > { %vm770_vm0 = vcmp.ge.f32.partialorder %v719_v22, 0.0  ;;  %v802_v43 = vmul.f32 0.01, %v719_v22  ;;  %v11169_v31 = vpack.c.bf16 %v1596_v39, %v1596_v39  ;;  %v11171_v46 = vpack.c.bf16 %v1597_v2, %v1597_v2 }
 0x14d   : > { %v1203_v47 = vrot.slane %v1202_v12, 2  ;;  %v1209_v10 = vmax.f32 %v1207_v27, %v1208_v30  ;;  %v1216_v24 = vmax.f32 %v1214_v28, %v1215_v35  ;;  %v1223_v36 = vmax.f32 %v1221_v29, %v1222_v37 }
 0x14e   : > { %v834_v48 = vsel %vm770_vm0, %v719_v22, %v802_v43  ;;  %v7561_v49 = vrot.slane %v11169_v31, 9  ;;  %v1999_v54 = vrot.slane %v11171_v46, 5  ;;  %v1704_v27 = vshrl.u32 %v11169_v31, 16 }
 0x14f   : > { %v1204_v1 = vmax.f32 %v1202_v12, %v1203_v47  ;;  %v1210_v11 = vrot.slane %v1209_v10, 2  ;;  %v1217_v42 = vrot.slane %v1216_v24, 2  ;;  %v1224_v56 = vrot.slane %v1223_v36, 2 }
 0x150   : > { %v856_v58 = vmax.f32 %v832_v53, %v834_v48  ;;  %v721_v59 = vpop.f32.mrf.mxu0  ;;  %v11179_v8 = vsel %vm10983_vm14, %v7561_v49, %v1999_v54  ;;  %v1707_v2 = vshll.u32 %v11169_v31, 16  ;;  %v1881_v53 = vunpack.c.l.b16 %v11169_v31 }
 0x151   : > { %v1205_v61 = vrot.slane %v1204_v1, 1  ;;  %v1211_v62 = vmax.f32 %v1209_v10, %v1210_v11  ;;  %v1218_v63 = vmax.f32 %v1216_v24, %v1217_v42  ;;  %v1225_v7 = vmax.f32 %v1223_v36, %v1224_v56 }
 0x152   : > { %v906_v57 = vrot.slane %v856_v58, 2  ;;  %v907_v60 = vrot.slane %v856_v58, 4  ;;  %v908_v0 = vrot.slane %v856_v58, 6  ;;  %v1228_v3 = vsel %vm975_vm3, %v856_v58, -inf }
 0x153   : > { %v1212_v38 = vrot.slane %v1211_v62, 1  ;;  %v1219_v4 = vrot.slane %v1218_v63, 1  ;;  %v1229_v16 = vrot.slane %v1228_v3, 4  ;;  %v1206_v19 = vmax.f32 %v1204_v1, %v1205_v61 }
 0x154   : > { %v1235_v18 = vsel %vm975_vm3, %v906_v57, -inf  ;;  %v1242_v23 = vsel %vm975_vm3, %v907_v60, -inf  ;;  %v1249_v20 = vsel %vm975_vm3, %v908_v0, -inf  ;;  %v1226_v35 = vrot.slane %v1225_v7, 1 }
 0x155   : > { %v1213_v22 = vmax.f32 %v1211_v62, %v1212_v38  ;;  %v1236_v26 = vrot.slane %v1235_v18, 4  ;;  %v1220_v28 = vmax.f32 %v1218_v63, %v1219_v4  ;;  %v1230_v29 = vmax.f32 %v1228_v3, %v1229_v16 }
 0x156   : > { %v1243_v12 = vrot.slane %v1242_v23, 4  ;;  %v1250_v30 = vrot.slane %v1249_v20, 4  ;;  %v2034_v48 = vunpack.c.l.b16 %v11179_v8  ;;  %v1706_v49 = vrot.slane %v1704_v27, 4 }
 0x157   : > { %v1543_v37 = vsel %vm1508_vm6, %v1213_v22, %v1206_v19  ;;  %v1237_v39 = vmax.f32 %v1235_v18, %v1236_v26  ;;  %v1231_v43 = vrot.slane %v1230_v29, 2  ;;  %v1227_v56 = vmax.f32 %v1225_v7, %v1226_v35 }
 0x158   : > { %v1244_v47 = vmax.f32 %v1242_v23, %v1243_v12  ;;  %v1251_v10 = vmax.f32 %v1249_v20, %v1250_v30  ;;  %v723_v24 = vpop.f32.mrf.mxu0  ;;  %v1544_v54 = vsel %vm1510_vm8, %v1220_v28, %v1543_v37  ;;  %v1709_v61 = vrot.slane %v1707_v2, 5 }
 0x159   : > { %v1238_v36 = vrot.slane %v1237_v39, 2  ;;  %v1232_v1 = vmax.f32 %v1230_v29, %v1231_v43  ;;  %v1713_v62 = vshll.u32 %v11171_v46, 16  ;;  %v722_v0 = vadd.f32 %v11142_v41, %v721_v59 }
 0x15a   : > { %v1245_v11 = vrot.slane %v1244_v47, 2  ;;  %v1252_v42 = vrot.slane %v1251_v10, 2  ;;  %v1545_v3 = vsel %vm1512_vm1, %v1227_v56, %v1544_v54  ;;  %v1710_v4 = vor.u32 %v1709_v61, %v1706_v49 }
 0x15b   : > { %v1239_v58 = vmax.f32 %v1237_v39, %v1238_v36  ;;  %v1233_v63 = vrot.slane %v1232_v1, 1  ;;  %v11197_v7 = vpack.c.b16 %v2034_v48, %v2033_v21  ;;  %v1715_v19 = vrot.slane %v1713_v62, 5 }
 0x15c   : > { %v1246_v57 = vmax.f32 %v1244_v47, %v1245_v11  ;;  %v1253_v60 = vmax.f32 %v1251_v10, %v1252_v42  ;;  %v1711_v46 = vrot.slane %v1710_v4, 4  ;;  %v11203_v59 = vpack.c.b16 %v1881_v53, %v1880_v45 }
 0x15d   : > { %v1240_v38 = vrot.slane %v1239_v58, 1  ;;  %v1234_v16 = vmax.f32 %v1232_v1, %v1233_v63  ;;  %v803_v27 = vmul.f32 0.01, %v722_v0  ;;  %vm771_vm13 = vcmp.ge.f32.partialorder %v722_v0, 0.0 }
 0x15e   : > { %v1247_v18 = vrot.slane %v1246_v57, 1  ;;  %v1254_v23 = vrot.slane %v1253_v60, 1  ;;  %v1716_v12 = vsel %vm11026_vm7, %v1711_v46, %v1715_v19  ;;  %v724_v2 = vadd.f32 %v11142_v41, %v723_v24 }
 0x15f   : > { %v1241_v20 = vmax.f32 %v1239_v58, %v1240_v38  ;;  %v1546_v26 = vsel %vm1514_vm11, %v1234_v16, %v1545_v3  ;;  %v11211_v34 = vunpack.c.l.b16 %v1716_v12  ;;  %v835_v39 = vsel %vm771_vm13, %v722_v0, %v803_v27 }
 0x160   : > { %v1248_v22 = vmax.f32 %v1246_v57, %v1247_v18  ;;  %v726_v28 = vpop.f32.mrf.mxu0  ;;  %v1255_v29 = vmax.f32 %v1253_v60, %v1254_v23  ;;  %vm772_vm9 = vcmp.ge.f32.partialorder %v724_v2, 0.0  ;;  %v804_v56 = vmul.f32 0.01, %v724_v2 }
 0x161   : > { %v1547_v14 = vsel %vm1516_vm12, %v1241_v20, %v1546_v26  ;;  %v727_v21 = vadd.f32 %v11142_v41, %v726_v28  ;;  %v2276_v37 = vpack.c.b16 %v11211_v34, %v11157_v15  ;;  %v9924_v15 = vld [vmem:[#allocation4 + $0x1d8] sm:$0xff] }
 0x162   : > { %v1548_v30 = vsel %vm12961_vm5, %v1248_v22, %v1547_v14  ;;  %v836_v19 = vsel %vm772_vm9, %v724_v2, %v804_v56 }
 0x163   : > { %v1549_v45 = vsel %vm1520_vm4, %v1255_v29, %v1548_v30  ;;  %vm773_vm15 = vcmp.ge.f32.partialorder %v727_v21, 0.0  ;;  %v805_v35 = vmul.f32 0.01, %v727_v21 }
 0x164   : > { %1584 = vst [vmem:[#allocation2 + $0x51] sm:$0xff] %v1549_v45 }
 0x165   : > { %v837_v43 = vsel %vm773_vm15, %v727_v21, %v805_v35 }
 0x166   : > { %v857_v47 = vmax.f32 %v835_v39, %v837_v43 }
 0x168   : > { %v909_v10 = vrot.slane %v857_v47, 2  ;;  %v910_v36 = vrot.slane %v857_v47, 4  ;;  %v911_v49 = vrot.slane %v857_v47, 6  ;;  %v1256_v54 = vsel %vm975_vm3, %v857_v47, -inf  ;;  %v728_v1 = vpop.f32.mrf.mxu0 }
 0x169   : > { %v1257_v11 = vrot.slane %v1256_v54, 4  ;;  %v729_v42 = vadd.f32 %v11142_v41, %v728_v1 }
 0x16a   : > { %v1263_v58 = vsel %vm975_vm3, %v909_v10, -inf  ;;  %v1270_v61 = vsel %vm975_vm3, %v910_v36, -inf  ;;  %v1277_v62 = vsel %vm975_vm3, %v911_v49, -inf }
 0x16b   : > { %v1258_v24 = vmax.f32 %v1256_v54, %v1257_v11  ;;  %v1264_v63 = vrot.slane %v1263_v58, 4  ;;  %v1271_v57 = vrot.slane %v1270_v61, 4  ;;  %v1278_v60 = vrot.slane %v1277_v62, 4  ;;  %v1598_v0 = vld [vmem:[#allocation2 + $0x50] sm:$0xff]  ;;  %v1599_v3 = vld [vmem:[#allocation2 + $0x58] sm:$0x3] }
 0x16c   : > { %vm774_vm0 = vcmp.ge.f32.partialorder %v729_v42, 0.0  ;;  %v806_v38 = vmul.f32 0.01, %v729_v42  ;;  %v11222_v4 = vpack.c.bf16 %v1598_v0, %v1598_v0  ;;  %v11224_v16 = vpack.c.bf16 %v1599_v3, %v1599_v3 }
 0x16d   : > { %v1259_v18 = vrot.slane %v1258_v24, 2  ;;  %v1265_v23 = vmax.f32 %v1263_v58, %v1264_v63  ;;  %v1272_v20 = vmax.f32 %v1270_v61, %v1271_v57  ;;  %v1279_v46 = vmax.f32 %v1277_v62, %v1278_v60 }
 0x16e   : > { %v838_v22 = vsel %vm774_vm0, %v729_v42, %v806_v38  ;;  %v1882_v26 = vunpack.c.l.b16 %v11222_v4  ;;  %v7562_v27 = vrot.slane %v11222_v4, 9  ;;  %v2003_v21 = vrot.slane %v11224_v16, 5 }
 0x16f   : > { %v1260_v28 = vmax.f32 %v1258_v24, %v1259_v18  ;;  %v1266_v29 = vrot.slane %v1265_v23, 2  ;;  %v1273_v14 = vrot.slane %v1272_v20, 2  ;;  %v858_v12 = vmax.f32 %v836_v19, %v838_v22 }
 0x170   : > { %v731_v30 = vpop.f32.mrf.mxu0  ;;  %v11234_v45 = vpack.c.b16 %v1882_v26, %v1881_v53  ;;  %v1280_v43 = vrot.slane %v1279_v46, 2  ;;  %v11240_v31 = vsel %vm10983_vm14, %v7562_v27, %v2003_v21  ;;  %v1718_v18 = vshrl.u32 %v11222_v4, 16 }
 0x171   : > { %v1261_v35 = vrot.slane %v1260_v28, 1  ;;  %v1267_v39 = vmax.f32 %v1265_v23, %v1266_v29  ;;  %v1274_v2 = vmax.f32 %v1272_v20, %v1273_v14  ;;  %v912_v47 = vrot.slane %v858_v12, 2 }
 0x172   : > { %v913_v10 = vrot.slane %v858_v12, 4  ;;  %v914_v36 = vrot.slane %v858_v12, 6  ;;  %v1284_v49 = vsel %vm975_vm3, %v858_v12, -inf  ;;  %1959 = vmatmul.bf16.gmra.mxu2 %v11234_v45  ;;  %v1281_v61 = vmax.f32 %v1279_v46, %v1280_v43 }
 0x173   : > { %v1268_v54 = vrot.slane %v1267_v39, 1  ;;  %v1275_v1 = vrot.slane %v1274_v2, 1  ;;  %v1285_v11 = vrot.slane %v1284_v49, 4  ;;  %v1291_v53 = vsel %vm975_vm3, %v912_v47, -inf }
 0x174   : > { %v1298_v42 = vsel %vm975_vm3, %v913_v10, -inf  ;;  %v1305_v56 = vsel %vm975_vm3, %v914_v36, -inf  ;;  %v1292_v62 = vrot.slane %v1291_v53, 4  ;;  %v1262_v24 = vmax.f32 %v1260_v28, %v1261_v35 }
 0x175   : > { %v1269_v58 = vmax.f32 %v1267_v39, %v1268_v54  ;;  %v1286_v63 = vmax.f32 %v1284_v49, %v1285_v11  ;;  %v1299_v57 = vrot.slane %v1298_v42, 4  ;;  %v1306_v60 = vrot.slane %v1305_v56, 4 }
 0x176   : > { %v1276_v0 = vmax.f32 %v1274_v2, %v1275_v1  ;;  %v1293_v3 = vmax.f32 %v1291_v53, %v1292_v62  ;;  %v12926_v38 = vunpack.c.l.b16 %v11240_v31  ;;  %v1282_v29 = vrot.slane %v1281_v61, 1 }
 0x177   : > { %v1550_v23 = vsel %vm1508_vm6, %v1269_v58, %v1262_v24  ;;  %v1287_v20 = vrot.slane %v1286_v63, 2  ;;  %v1300_v19 = vmax.f32 %v1298_v42, %v1299_v57  ;;  %v1307_v22 = vmax.f32 %v1305_v56, %v1306_v60 }
 0x178   : > { %v733_v27 = vpop.f32.mrf.mxu0  ;;  %v1294_v14 = vrot.slane %v1293_v3, 2  ;;  %v732_v46 = vadd.f32 %v11142_v41, %v731_v30  ;;  %v11253_v35 = vpack.c.b16 %v12926_v38, %v2034_v48  ;;  %v1551_v39 = vsel %vm1510_vm8, %v1276_v0, %v1550_v23 }
 0x179   : > { %v1288_v28 = vmax.f32 %v1286_v63, %v1287_v20  ;;  %v1301_v21 = vrot.slane %v1300_v19, 2  ;;  %v1308_v12 = vrot.slane %v1307_v22, 2  ;;  %v1720_v43 = vrot.slane %v1718_v18, 4 }
 0x17a   : > { %v1295_v2 = vmax.f32 %v1293_v3, %v1294_v14  ;;  %v1721_v47 = vshll.u32 %v11222_v4, 16  ;;  %2112 = vmatmul.bf16.gmra.mxu3 %v11253_v35  ;;  %v1727_v30 = vshll.u32 %v11224_v16, 16  ;;  %v1283_v54 = vmax.f32 %v1281_v61, %v1282_v29 }
 0x17b   : > { %v1289_v10 = vrot.slane %v1288_v28, 1  ;;  %v1302_v36 = vmax.f32 %v1300_v19, %v1301_v21  ;;  %v1309_v49 = vmax.f32 %v1307_v22, %v1308_v12  ;;  %v807_v63 = vmul.f32 0.01, %v732_v46 }
 0x17c   : > { %v1296_v1 = vrot.slane %v1295_v2, 1  ;;  %v1723_v8 = vrot.slane %v1721_v47, 5  ;;  %v1552_v42 = vsel %vm1512_vm1, %v1283_v54, %v1551_v39  ;;  %v1729_v57 = vrot.slane %v1727_v30, 5  ;;  %v1950_v39 = vpop.f32.mrf.mxu2 }
 0x17d   : > { %v1290_v11 = vmax.f32 %v1288_v28, %v1289_v10  ;;  %v1303_v53 = vrot.slane %v1302_v36, 1  ;;  %v1310_v48 = vrot.slane %v1309_v49, 1  ;;  %vm775_vm13 = vcmp.ge.f32.partialorder %v732_v46, 0.0  ;;  %v2103_v30 = vpop.f32.mrf.mxu3 }
 0x17e   : > { %v1297_v56 = vmax.f32 %v1295_v2, %v1296_v1  ;;  %v1724_v58 = vor.u32 %v1723_v8, %v1720_v43  ;;  %v839_v29 = vsel %vm775_vm13, %v732_v46, %v807_v63  ;;  %v734_v14 = vadd.f32 %v11142_v41, %v733_v27 }
 0x17f   : > { %v1304_v62 = vmax.f32 %v1302_v36, %v1303_v53  ;;  %v1553_v24 = vsel %vm1514_vm11, %v1290_v11, %v1552_v42  ;;  %v1311_v0 = vmax.f32 %v1309_v49, %v1310_v48  ;;  %vm12962_vm13 = vcmask 1046534  }
 0x180   : > { %v736_v60 = vpop.f32.mrf.mxu0  ;;  %v1554_v3 = vsel %vm1516_vm12, %v1297_v56, %v1553_v24  ;;  %v1725_v16 = vrot.slane %v1724_v58, 4  ;;  %vm776_vm9 = vcmp.ge.f32.partialorder %v734_v14, 0.0  ;;  %v808_v46 = vmul.f32 0.01, %v734_v14 }
 0x181   : > { %v737_v61 = vadd.f32 %v11142_v41, %v736_v60  ;;  %v1555_v18 = vsel %vm12961_vm5, %v1304_v62, %v1554_v3 }
 0x182   : > { %v1556_v23 = vsel %vm1520_vm4, %v1311_v0, %v1555_v18  ;;  %v1730_v20 = vsel %vm11026_vm7, %v1725_v16, %v1729_v57  ;;  %v840_v60 = vsel %vm776_vm9, %v734_v14, %v808_v46 }
 0x183   : > { %vm777_vm15 = vcmp.ge.f32.partialorder %v737_v61, 0.0  ;;  %v809_v19 = vmul.f32 0.01, %v737_v61  ;;  %1585 = vst [vmem:[#allocation2 + $0x61] sm:$0xff] %v1556_v23  ;;  %v11267_v22 = vunpack.c.l.b16 %v1730_v20 }
 0x185   : > { %v841_v28 = vsel %vm777_vm15, %v737_v61, %v809_v19  ;;  %v11272_v21 = vpack.c.b16 %v11267_v22, %v11211_v34  ;;  %v1849_v2 = vpop.f32.mrf.mxu1  ;;  %v9918_v34 = vld [vmem:[#allocation4 + $0x1a8] sm:$0xff] }
 0x186   : > { %v859_v12 = vmax.f32 %v839_v29, %v841_v28  ;;  %v1951_v43 = vadd.f32 %v1950_v39, %v1849_v2 }
 0x187   : > { %1858 = vmatmul.bf16.gmra.mxu1 %v11272_v21 }
 0x188   : > { %v915_v47 = vrot.slane %v859_v12, 2  ;;  %v916_v10 = vrot.slane %v859_v12, 4  ;;  %v917_v36 = vrot.slane %v859_v12, 6  ;;  %v738_v49 = vpop.f32.mrf.mxu0  ;;  %v1312_v27 = vsel %vm975_vm3, %v859_v12, -inf }
 0x189   : > { %v739_v54 = vadd.f32 %v11142_v41, %v738_v49  ;;  %v11277_v1 = vadd.f32 %v2103_v30, %v1951_v43  ;;  %v1313_v8 = vrot.slane %v1312_v27, 4 }
 0x18a   : > { %v1319_v11 = vsel %vm975_vm3, %v915_v47, -inf  ;;  %v1326_v53 = vsel %vm975_vm3, %v916_v10, -inf  ;;  %v1333_v56 = vsel %vm975_vm3, %v917_v36, -inf  ;;  %v9904_v47 = vld [vmem:[#allocation4 + $0x138] sm:$0xff] }
 0x18b   : > { %v1320_v48 = vrot.slane %v1319_v11, 4  ;;  %v1327_v42 = vrot.slane %v1326_v53, 4  ;;  %vm778_vm0 = vcmp.ge.f32.partialorder %v739_v54, 0.0  ;;  %v1314_v58 = vmax.f32 %v1312_v27, %v1313_v8  ;;  %2331 = vmatpush.bf16.msrb.mxu2 %v9904_v47 }
 0x18c   : > { %v1334_v62 = vrot.slane %v1333_v56, 4  ;;  %v810_v24 = vmul.f32 0.01, %v739_v54 }
 0x18d   : > { %v1321_v63 = vmax.f32 %v1319_v11, %v1320_v48  ;;  %v1328_v57 = vmax.f32 %v1326_v53, %v1327_v42  ;;  %v1315_v0 = vrot.slane %v1314_v58, 2  ;;  %v9912_v42 = vld [vmem:[#allocation4 + $0x178] sm:$0xff] }
 0x18e   : > { %v1335_v3 = vmax.f32 %v1333_v56, %v1334_v62  ;;  %v842_v16 = vsel %vm778_vm0, %v739_v54, %v810_v24  ;;  %v1600_v54 = vld [vmem:[#allocation2 + $0x60] sm:$0xff]  ;;  %2447 = vmatpush.bf16.msrb.mxu3 %v9912_v42  ;;  %v9910_v42 = vld [vmem:[#allocation4 + $0x168] sm:$0xff] }
 0x18f   : > { %v1322_v61 = vrot.slane %v1321_v63, 2  ;;  %v1329_v18 = vrot.slane %v1328_v57, 2  ;;  %v860_v23 = vmax.f32 %v840_v60, %v842_v16  ;;  %v1316_v20 = vmax.f32 %v1314_v58, %v1315_v0  ;;  %v9903_v24 = vld [vmem:[#allocation4 + $0x130] sm:$0xff] }
 0x190   : > { %v1336_v19 = vrot.slane %v1335_v3, 2  ;;  %v741_v29 = vpop.f32.mrf.mxu0  ;;  %v11287_v60 = vpack.c.bf16 %v1600_v54, %v1600_v54  ;;  %2332 = vmatpush.bf16.msrb.mxu2 %v9903_v24 }
 0x191   : > { %v1323_v28 = vmax.f32 %v1321_v63, %v1322_v61  ;;  %v1330_v12 = vmax.f32 %v1328_v57, %v1329_v18  ;;  %v918_v39 = vrot.slane %v860_v23, 2  ;;  %v919_v2 = vrot.slane %v860_v23, 4 }
 0x192   : > { %v920_v43 = vrot.slane %v860_v23, 6  ;;  %v1317_v10 = vrot.slane %v1316_v20, 1  ;;  %v1340_v49 = vsel %vm975_vm3, %v860_v23, -inf  ;;  %v1337_v11 = vmax.f32 %v1335_v3, %v1336_v19  ;;  %v1601_v3 = vld [vmem:[#allocation2 + $0x68] sm:$0x3] }
 0x193   : > { %v1324_v36 = vrot.slane %v1323_v28, 1  ;;  %v1347_v14 = vsel %vm975_vm3, %v918_v39, -inf  ;;  %v1331_v30 = vrot.slane %v1330_v12, 1  ;;  %v1341_v46 = vrot.slane %v1340_v49, 4 }
 0x194   : > { %v1348_v27 = vrot.slane %v1347_v14, 4  ;;  %v1354_v53 = vsel %vm975_vm3, %v919_v2, -inf  ;;  %v1361_v48 = vsel %vm975_vm3, %v920_v43, -inf  ;;  %v1318_v63 = vmax.f32 %v1316_v20, %v1317_v10  ;;  %v9911_v2 = vld [vmem:[#allocation4 + $0x170] sm:$0xff]  ;;  %v9902_v20 = vld [vmem:[#allocation4 + $0x128] sm:$0xff] }
 0x195   : > { %v1325_v8 = vmax.f32 %v1323_v28, %v1324_v36  ;;  %v1342_v56 = vmax.f32 %v1340_v49, %v1341_v46  ;;  %v1355_v62 = vrot.slane %v1354_v53, 4  ;;  %v1362_v57 = vrot.slane %v1361_v48, 4  ;;  %2448 = vmatpush.bf16.msrb.mxu3 %v9911_v2  ;;  %2333 = vmatpush.bf16.msrb.mxu2 %v9902_v20  ;;  %v9900_v20 = vld [vmem:[#allocation4 + $0x118] sm:$0xff] }
 0x196   : > { %v1349_v58 = vmax.f32 %v1347_v14, %v1348_v27  ;;  %v1332_v0 = vmax.f32 %v1330_v12, %v1331_v30  ;;  %v1338_v19 = vrot.slane %v1337_v11, 1  ;;  %v742_v49 = vadd.f32 %v11142_v41, %v741_v29  ;;  %v9896_v12 = vld [vmem:[#allocation4 + $0xf8] sm:$0xff]  ;;  %v9901_v29 = vld [vmem:[#allocation4 + $0x120] sm:$0xff] }
 0x197   : > { %v1343_v16 = vrot.slane %v1342_v56, 2  ;;  %v1356_v18 = vmax.f32 %v1354_v53, %v1355_v62  ;;  %v1557_v28 = vsel %vm1508_vm6, %v1325_v8, %v1318_v63  ;;  %v1363_v39 = vmax.f32 %v1361_v48, %v1362_v57  ;;  %2206 = vmatpush.bf16.msrb.mxu1 %v9896_v12 }
 0x198   : > { %v1350_v61 = vrot.slane %v1349_v58, 2  ;;  %v743_v23 = vpop.f32.mrf.mxu0  ;;  %v1883_v14 = vunpack.c.l.b16 %v11287_v60  ;;  %v11292_v30 = vpack.c.bf16 %v1601_v3, %v1601_v3  ;;  %v1558_v46 = vsel %vm1510_vm8, %v1332_v0, %v1557_v28  ;;  %v9895_v0 = vld [vmem:[#allocation4 + $0xf0] sm:$0xff] }
 0x199   : > { %v1344_v43 = vmax.f32 %v1342_v56, %v1343_v16  ;;  %v1357_v36 = vrot.slane %v1356_v18, 2  ;;  %v1364_v10 = vrot.slane %v1363_v39, 2  ;;  %v1339_v53 = vmax.f32 %v1337_v11, %v1338_v19  ;;  %2449 = vmatpush.bf16.msrb.mxu3 %v9910_v42  ;;  %2334 = vmatpush.bf16.msrb.mxu2 %v9901_v29  ;;  %v9893_v29 = vld [vmem:[#allocation4 + $0xe0] sm:$0xff] }
 0x19a   : > { %v1351_v47 = vmax.f32 %v1349_v58, %v1350_v61  ;;  %v7563_v24 = vrot.slane %v11287_v60, 9  ;;  %v811_v16 = vmul.f32 0.01, %v742_v49  ;;  %v2007_v61 = vrot.slane %v11292_v30, 5 }
 0x19b   : > { %v1345_v27 = vrot.slane %v1344_v43, 1  ;;  %v1358_v8 = vmax.f32 %v1356_v18, %v1357_v36  ;;  %v1365_v48 = vmax.f32 %v1363_v39, %v1364_v10  ;;  %v1559_v63 = vsel %vm1512_vm1, %v1339_v53, %v1558_v46  ;;  %2207 = vmatpush.bf16.msrb.mxu1 %v9895_v0 }
 0x19c   : > { %v1352_v54 = vrot.slane %v1351_v47, 1  ;;  %vm779_vm5 = vcmp.ge.f32.partialorder %v742_v49, 0.0  ;;  %v11303_v19 = vpack.c.b16 %v1883_v14, %v1882_v26  ;;  %v744_v2 = vadd.f32 %v11142_v41, %v743_v23 }
 0x19d   : > { %v1346_v56 = vmax.f32 %v1344_v43, %v1345_v27  ;;  %v1359_v62 = vrot.slane %v1358_v8, 1  ;;  %v1366_v57 = vrot.slane %v1365_v48, 1  ;;  %v1732_v10 = vshrl.u32 %v11287_v60, 16  ;;  %v9894_v27 = vld [vmem:[#allocation4 + $0xe8] sm:$0xff]  ;;  %2335 = vmatpush.bf16.msrb.mxu2 %v9900_v20 }
 0x19e   : > { %v1353_v58 = vmax.f32 %v1351_v47, %v1352_v54  ;;  %v9909_v47 = vld [vmem:[#allocation4 + $0x160] sm:$0xff]  ;;  %v1735_v4 = vshll.u32 %v11287_v60, 16  ;;  %v843_v26 = vsel %vm779_vm5, %v742_v49, %v811_v16  ;;  %v11314_v23 = vsel %vm10983_vm14, %v7563_v24, %v2007_v61  ;;  %v9908_v54 = vld [vmem:[#allocation4 + $0x158] sm:$0xff]  ;;  %vm12963_vm5 = vmmov %vm12962_vm13 }
 0x19f   : > { %v1360_v18 = vmax.f32 %v1358_v8, %v1359_v62  ;;  %v1560_v11 = vsel %vm1514_vm11, %v1346_v56, %v1559_v63  ;;  %v1367_v28 = vmax.f32 %v1365_v48, %v1366_v57  ;;  %2450 = vmatpush.bf16.msrb.mxu3 %v9909_v47  ;;  %v9899_v8 = vld [vmem:[#allocation4 + $0x110] sm:$0xff]  ;;  %v812_v53 = vmul.f32 0.01, %v744_v2  ;;  %2208 = vmatpush.bf16.msrb.mxu1 %v9894_v27 }
 0x1a0   : > { %v746_v3 = vpop.f32.mrf.mxu0  ;;  %v1561_v39 = vsel %vm1516_vm12, %v1353_v58, %v1560_v11  ;;  %v1741_v42 = vshll.u32 %v11292_v30, 16  ;;  %vm780_vm9 = vcmp.ge.f32.partialorder %v744_v2, 0.0  ;;  %v11317_v49 = vrot.slane %v1732_v10, 4  ;;  %v9907_v11 = vld [vmem:[#allocation4 + $0x150] sm:$0xff] }
 0x1a1   : > { %v747_v43 = vadd.f32 %v11142_v41, %v746_v3  ;;  %v1562_v36 = vsel %vm12962_vm13, %v1360_v18, %v1561_v39  ;;  %v11319_v58 = vrot.slane %v1735_v4, 5  ;;  %v2036_v62 = vunpack.c.l.b16 %v11314_v23  ;;  %2336 = vmatpush.bf16.msrb.mxu2 %v9899_v8  ;;  %v9906_v8 = vld [vmem:[#allocation4 + $0x148] sm:$0xff] }
 0x1a2   : > { %v1563_v12 = vsel %vm1520_vm4, %v1367_v28, %v1562_v36  ;;  %v844_v61 = vsel %vm780_vm9, %v744_v2, %v812_v53  ;;  %v11324_v3 = vrot.slane %v1741_v42, 5  ;;  %v9898_v36 = vld [vmem:[#allocation4 + $0x108] sm:$0xff]  ;;  %v9897_v53 = vld [vmem:[#allocation4 + $0x100] sm:$0xff] }
 0x1a3   : > { %vm781_vm15 = vcmp.ge.f32.partialorder %v747_v43, 0.0  ;;  %v813_v46 = vmul.f32 0.01, %v747_v43  ;;  %1586 = vst [vmem:[#allocation2 + $0x71] sm:$0xff] %v1563_v12  ;;  %2451 = vmatpush.bf16.msrb.mxu3 %v9908_v54  ;;  %2209 = vmatpush.bf16.msrb.mxu1 %v9893_v29  ;;  %v1738_v47 = vor.u32 %v11319_v58, %v11317_v49  ;;  %v9892_v54 = vld [vmem:[#allocation4 + $0xd8] sm:$0xff] }
 0x1a5   : > { %v845_v48 = vsel %vm781_vm15, %v747_v43, %v813_v46  ;;  %2337 = vmatpush.bf16.msrb.mxu2 %v9898_v36  ;;  %vm12966_vm15 = vcmask 1043458  }
 0x1a6   : > { %v861_v56 = vmax.f32 %v843_v26, %v845_v48  ;;  %vm12967_vm9 = vmmov %vm12966_vm15 }
 0x1a7   : > { %2452 = vmatpush.bf16.msrb.mxu3 %v9907_v11  ;;  %2210 = vmatpush.bf16.msrb.mxu1 %v9892_v54  ;;  %v9891_v11 = vld [vmem:[#allocation4 + $0xd0] sm:$0xff] }
 0x1a8   : > { %v921_v63 = vrot.slane %v861_v56, 2  ;;  %v922_v24 = vrot.slane %v861_v56, 4  ;;  %v923_v57 = vrot.slane %v861_v56, 6  ;;  %v1368_v16 = vsel %vm975_vm3, %v861_v56, -inf  ;;  %v748_v0 = vpop.f32.mrf.mxu0 }
 0x1a9   : > { %v1369_v18 = vrot.slane %v1368_v16, 4  ;;  %v749_v30 = vadd.f32 %v11142_v41, %v748_v0  ;;  %2338 = vmatpush.bf16.msrb.mxu2 %v9897_v53 }
 0x1aa   : > { %v1375_v28 = vsel %vm975_vm3, %v921_v63, -inf  ;;  %v1382_v39 = vsel %vm975_vm3, %v922_v24, -inf  ;;  %v1389_v43 = vsel %vm975_vm3, %v923_v57, -inf  ;;  %v1602_v12 = vld [vmem:[#allocation2 + $0x70] sm:$0xff]  ;;  %v1603_v41 = vld [vmem:[#allocation2 + $0x78] sm:$0x3] }
 0x1ab   : > { %v1370_v20 = vmax.f32 %v1368_v16, %v1369_v18  ;;  %v1376_v10 = vrot.slane %v1375_v28, 4  ;;  %v1383_v2 = vrot.slane %v1382_v39, 4  ;;  %v1390_v4 = vrot.slane %v1389_v43, 4  ;;  %2453 = vmatpush.bf16.msrb.mxu3 %v9906_v8  ;;  %2211 = vmatpush.bf16.msrb.mxu1 %v9891_v11 }
 0x1ac   : > { %vm782_vm0 = vcmp.ge.f32.partialorder %v749_v30, 0.0  ;;  %v814_v26 = vmul.f32 0.01, %v749_v30  ;;  %v11331_v46 = vpack.c.bf16 %v1602_v12, %v1602_v12  ;;  %v11333_v27 = vpack.c.bf16 %v1603_v41, %v1603_v41 }
 0x1ad   : > { %v1371_v48 = vrot.slane %v1370_v20, 2  ;;  %v1377_v42 = vmax.f32 %v1375_v28, %v1376_v10  ;;  %v1384_v56 = vmax.f32 %v1382_v39, %v1383_v2  ;;  %v1391_v49 = vmax.f32 %v1389_v43, %v1390_v4  ;;  %v9905_v4 = vld [vmem:[#allocation4 + $0x140] sm:$0xff] }
 0x1ae   : > { %v846_v58 = vsel %vm782_vm0, %v749_v30, %v814_v26  ;;  %v12925_v29 = vunpack.c.l.b16 %v11331_v46  ;;  %v7564_v63 = vrot.slane %v11331_v46, 9  ;;  %v2011_v24 = vrot.slane %v11333_v27, 5 }
 0x1af   : > { %v1372_v57 = vmax.f32 %v1370_v20, %v1371_v48  ;;  %v1378_v16 = vrot.slane %v1377_v42, 2  ;;  %v1385_v0 = vrot.slane %v1384_v56, 2  ;;  %v1392_v18 = vrot.slane %v1391_v49, 2  ;;  %2454 = vmatpush.bf16.msrb.mxu3 %v9905_v4  ;;  %v9890_v48 = vld [vmem:[#allocation4 + $0xc8] sm:$0xff] }
 0x1b0   : > { %v862_v36 = vmax.f32 %v844_v61, %v846_v58  ;;  %v11342_v28 = vpack.c.b16 %v12925_v29, %v1883_v14  ;;  %v11346_v30 = vsel %vm10983_vm14, %v7564_v63, %v2011_v24  ;;  %v1746_v39 = vshrl.u32 %v11331_v46, 16  ;;  %2212 = vmatpush.bf16.msrb.mxu1 %v9890_v48 }
 0x1b1   : > { %v1373_v43 = vrot.slane %v1372_v57, 1  ;;  %v1379_v20 = vmax.f32 %v1377_v42, %v1378_v16  ;;  %v1386_v10 = vmax.f32 %v1384_v56, %v1385_v0  ;;  %v1393_v2 = vmax.f32 %v1391_v49, %v1392_v18 }
 0x1b2   : > { %v924_v12 = vrot.slane %v862_v36, 2  ;;  %v925_v61 = vrot.slane %v862_v36, 4  ;;  %v926_v41 = vrot.slane %v862_v36, 6  ;;  %v1396_v60 = vsel %vm975_vm3, %v862_v36, -inf  ;;  %1964 = vmatmul.bf16.gmra.mxu2 %v11342_v28  ;;  %v9889_v36 = vld [vmem:[#allocation4 + $0xc0] sm:$0xff] }
 0x1b3   : > { %v1374_v14 = vmax.f32 %v1372_v57, %v1373_v43  ;;  %v1380_v26 = vrot.slane %v1379_v20, 1  ;;  %v1387_v54 = vrot.slane %v1386_v10, 1  ;;  %v1394_v8 = vrot.slane %v1393_v2, 1 }
 0x1b4   : > { %v1397_v53 = vrot.slane %v1396_v60, 4  ;;  %v1403_v42 = vsel %vm975_vm3, %v924_v12, -inf  ;;  %v1410_v56 = vsel %vm975_vm3, %v925_v61, -inf  ;;  %v1417_v49 = vsel %vm975_vm3, %v926_v41, -inf  ;;  %2213 = vmatpush.bf16.msrb.mxu1 %v9889_v36 }
 0x1b5   : > { %v1381_v58 = vmax.f32 %v1379_v20, %v1380_v26  ;;  %v1388_v63 = vmax.f32 %v1386_v10, %v1387_v54  ;;  %v1404_v24 = vrot.slane %v1403_v42, 4  ;;  %v1739_v16 = vrot.slane %v1738_v47, 4 }
 0x1b6   : > { %v1398_v0 = vmax.f32 %v1396_v60, %v1397_v53  ;;  %v1411_v18 = vrot.slane %v1410_v56, 4  ;;  %v1418_v11 = vrot.slane %v1417_v49, 4  ;;  %v2037_v57 = vunpack.c.l.b16 %v11346_v30 }
 0x1b7   : > { %v1564_v43 = vsel %vm1508_vm6, %v1381_v58, %v1374_v14  ;;  %v1405_v4 = vmax.f32 %v1403_v42, %v1404_v24  ;;  %v1748_v29 = vrot.slane %v1746_v39, 4  ;;  %v1749_v12 = vshll.u32 %v11331_v46, 16 }
 0x1b8   : > { %v1395_v61 = vmax.f32 %v1393_v2, %v1394_v8  ;;  %v1399_v38 = vrot.slane %v1398_v0, 2  ;;  %v1412_v41 = vmax.f32 %v1410_v56, %v1411_v18  ;;  %v1419_v20 = vmax.f32 %v1417_v49, %v1418_v11 }
 0x1b9   : > { %v1565_v10 = vsel %vm1510_vm8, %v1388_v63, %v1564_v43  ;;  %v1406_v47 = vrot.slane %v1405_v4, 2  ;;  %v11362_v60 = vpack.c.b16 %v2037_v57, %v2036_v62  ;;  %v1751_v26 = vrot.slane %v1749_v12, 5  ;;  %v11374_v43 = vpop.f32.mrf.mxu1 }
 0x1ba   : > { %v1400_v54 = vmax.f32 %v1398_v0, %v1399_v38  ;;  %v1413_v14 = vrot.slane %v1412_v41, 2  ;;  %v1420_v48 = vrot.slane %v1419_v20, 2  ;;  %v1755_v39 = vshll.u32 %v11333_v27, 16 }
 0x1bb   : > { %v1407_v2 = vmax.f32 %v1405_v4, %v1406_v47  ;;  %2117 = vmatmul.bf16.gmra.mxu3 %v11362_v60  ;;  %v1752_v8 = vor.u32 %v1751_v26, %v1748_v29  ;;  %v1744_v49 = vsel %vm11026_vm7, %v1739_v16, %v11324_v3  ;;  %v1566_v58 = vsel %vm1512_vm1, %v1395_v61, %v1565_v10  ;;  %v11372_v29 = vpop.f32.mrf.mxu2 }
 0x1bc   : > { %v1401_v53 = vrot.slane %v1400_v54, 1  ;;  %v1414_v42 = vmax.f32 %v1412_v41, %v1413_v14  ;;  %v1421_v56 = vmax.f32 %v1419_v20, %v1420_v48  ;;  %v1757_v24 = vrot.slane %v1755_v39, 5  ;;  %v11380_v20 = vpop.f32.mrf.mxu3 }
 0x1bd   : > { %v1408_v63 = vrot.slane %v1407_v2, 1  ;;  %v1753_v38 = vrot.slane %v1752_v8, 4  ;;  %v1782_v3 = vunpack.c.l.b16 %v1744_v49  ;;  %v9934_v49 = vld [vmem:[#allocation4 + $0x228] sm:$0xff] }
 0x1be   : > { %v1402_v0 = vmax.f32 %v1400_v54, %v1401_v53  ;;  %v1415_v18 = vrot.slane %v1414_v42, 1  ;;  %v1422_v27 = vrot.slane %v1421_v56, 1  ;;  %v9928_v54 = vld [vmem:[#allocation4 + $0x1f8] sm:$0xff] }
 0x1bf   : > { %v1409_v11 = vmax.f32 %v1407_v2, %v1408_v63  ;;  %v1758_v36 = vsel %vm11026_vm7, %v1753_v38, %v1757_v24  ;;  %2672 = vmatpush.bf16.msra.mxu2 %v9928_v54  ;;  %v9936_v53 = vld [vmem:[#allocation4 + $0x238] sm:$0xff]  ;;  %v9919_v63 = vld [vmem:[#allocation4 + $0x1b0] sm:$0xff]  ;;  %v9933_v38 = vld [vmem:[#allocation4 + $0x220] sm:$0xff] }
 0x1c0   : > { %v1416_v4 = vmax.f32 %v1414_v42, %v1415_v18  ;;  %v1567_v12 = vsel %vm1514_vm11, %v1402_v0, %v1566_v58  ;;  %v11377_v16 = vunpack.c.l.b16 %v1758_v36  ;;  %v1423_v61 = vmax.f32 %v1421_v56, %v1422_v27  ;;  %v9927_v42 = vld [vmem:[#allocation4 + $0x1f0] sm:$0xff]  ;;  %2782 = vmatpush.bf16.msra.mxu3 %v9936_v53  ;;  %v9920_v56 = vld [vmem:[#allocation4 + $0x1b8] sm:$0xff]  ;;  %v9922_v54 = vld [vmem:[#allocation4 + $0x1c8] sm:$0xff] }
 0x1c1   : > { %v1568_v41 = vsel %vm1516_vm12, %v1409_v11, %v1567_v12  ;;  %2553 = vmatpush.bf16.msra.mxu1 %v9920_v56  ;;  %v9923_v36 = vld [vmem:[#allocation4 + $0x1d0] sm:$0xff]  ;;  %v9913_v56 = vld [vmem:[#allocation4 + $0x180] sm:$0xff] }
 0x1c2   : > { %v1569_v10 = vsel %vm12963_vm5, %v1416_v4, %v1568_v41  ;;  %v11384_v47 = vpack.c.b16 %v11377_v16, %v1782_v3  ;;  %2339 = vmatmul.bf16.vlgmr.msrb.gmra.mxu2 %v2275_v55  ;;  %v1854_v48 = vpop.f32.mrf.mxu1  ;;  %v9926_v55 = vld [vmem:[#allocation4 + $0x1e8] sm:$0xff]  ;;  %v2277_v4 = vpack.c.b16 %v1782_v3, %v11267_v22  ;;  %v9916_v3 = vld [vmem:[#allocation4 + $0x198] sm:$0xff] }
 0x1c3   : > { %v1570_v26 = vsel %vm1520_vm4, %v1423_v61, %v1569_v10  ;;  %v1955_v14 = vpop.f32.mrf.mxu2  ;;  %2673 = vmatpush.bf16.msra.mxu2 %v9927_v42  ;;  %v9917_v10 = vld [vmem:[#allocation4 + $0x1a0] sm:$0xff] }
 0x1c4   : > { %1587 = vst [vmem:[#allocation2 + $0x81] sm:$0xff] %v1570_v26  ;;  %1863 = vmatmul.bf16.gmra.mxu1 %v11384_v47  ;;  %v1956_v39 = vadd.f32 %v1955_v14, %v1854_v48  ;;  %v2108_v2 = vpop.f32.mrf.mxu3  ;;  %2783 = vmatpush.bf16.msra.mxu3 %v9935_v52  ;;  %v9931_v26 = vld [vmem:[#allocation4 + $0x210] sm:$0xff]  ;;  %v12964_v14 = vunpack.c.l.b16 %v11240_v31  ;;  %v9914_v52 = vld [vmem:[#allocation4 + $0x188] sm:$0xff] }
 0x1c5   : > { %2554 = vmatpush.bf16.msra.mxu1 %v9919_v63  ;;  %v9915_v31 = vld [vmem:[#allocation4 + $0x190] sm:$0xff] }
 0x1c6   : > { %v11391_v8 = vadd.f32 %v2108_v2, %v1956_v39  ;;  %v2393_v48 = vpack.c.b16 %v2036_v62, %v12964_v14  ;;  %v9930_v39 = vld [vmem:[#allocation4 + $0x208] sm:$0xff]  ;;  %v9921_v2 = vld [vmem:[#allocation4 + $0x1c0] sm:$0xff] }
 0x1c7   : > { %2674 = vmatpush.bf16.msra.mxu2 %v9926_v55  ;;  %v9929_v62 = vld [vmem:[#allocation4 + $0x200] sm:$0xff] }
 0x1c8   : > { %2784 = vmatpush.bf16.msra.mxu3 %v9934_v49 }
 0x1c9   : > { %2555 = vmatpush.bf16.msra.mxu1 %v9918_v34 }
 0x1cb   : > { %2455 = vmatmul.bf16.vlgmr.msrb.gmra.mxu3 %v11079_v40  ;;  %v1604_v50 = vld [vmem:[#allocation2 + $0x80] sm:$0xff]  ;;  %v9925_v40 = vld [vmem:[#allocation4 + $0x1e0] sm:$0xff] }
 0x1cc   : > { %v11398_v58 = vpack.c.bf16 %v1604_v50, %v1604_v50  ;;  %2675 = vmatpush.bf16.msra.mxu2 %v9925_v40  ;;  %2785 = vmatpush.bf16.msra.mxu3 %v9933_v38  ;;  %v11418_v40 = vpop.f32.mrf.mxu2  ;;  %v11423_v38 = vpop.f32.mrf.mxu3 }
 0x1cd   : > { %2556 = vmatpush.bf16.msra.mxu1 %v9917_v10 }
 0x1ce   : > { %v2244_v24 = vshrl.u32 %v11398_v58, 16  ;;  %v2247_v0 = vshll.u32 %v11398_v58, 16  ;;  %v7661_v53 = vrot.slane %v11398_v58, 9  ;;  %v2149_v63 = vunpack.c.l.b16 %v11398_v58  ;;  %v10501_v58 = vld [vmem:[#allocation2] sm:$0xff] }
 0x1d0   : > { %v2246_v18 = vrot.slane %v2244_v24, 4  ;;  %v2249_v27 = vrot.slane %v2247_v0, 5  ;;  %2676 = vmatpush.bf16.msra.mxu2 %v9924_v15  ;;  %v12965_v24 = vunpack.c.l.b16 %v11331_v46 }
 0x1d1   : > { %2557 = vmatpush.bf16.msra.mxu1 %v9916_v3 }
 0x1d2   : > { %2344 = vmatmul.bf16.gmra.mxu2 %v2276_v37  ;;  %v9932_v37 = vld [vmem:[#allocation4 + $0x218] sm:$0xff]  ;;  %v2250_v12 = vor.u32 %v2249_v27, %v2246_v18  ;;  %v2153_v0 = vpack.c.b16 %v2149_v63, %v12965_v24 }
 0x1d3   : > { %2786 = vmatpush.bf16.msra.mxu3 %v9932_v37 }
 0x1d4   : > { %2214 = vmatmul.bf16.vlgmr.msrb.gmra.mxu1 %v11087_v32  ;;  %v1605_v32 = vld [vmem:[#allocation2 + $0x88] sm:$0x3]  ;;  %2677 = vmatpush.bf16.msra.mxu2 %v9923_v36  ;;  %v2251_v41 = vrot.slane %v2250_v12, 4 }
 0x1d5   : > { %v1625_v11 = vpack.c.bf16 %v1605_v32, %v1605_v32  ;;  %2558 = vmatpush.bf16.msra.mxu1 %v9915_v31  ;;  %v1626_v32 = vpack.c.bf16 %v10501_v58, %v10501_v58 }
 0x1d7   : > { %v2253_v61 = vshll.u32 %v1625_v11, 16  ;;  %2787 = vmatpush.bf16.msra.mxu3 %v9931_v26  ;;  %v2371_v42 = vrot.slane %v1625_v11, 5  ;;  %v2591_v37 = vshrl.u32 %v1626_v32, 16  ;;  %v2594_v46 = vshll.u32 %v1626_v32, 16 }
 0x1d8   : > { %2678 = vmatpush.bf16.msra.mxu2 %v9922_v54 }
 0x1d9   : > { %v2372_v50 = vsel %vm10983_vm14, %v7661_v53, %v2371_v42  ;;  %2559 = vmatpush.bf16.msra.mxu1 %v9914_v52  ;;  %v2593_v18 = vrot.slane %v2591_v37, 4  ;;  %v2596_v27 = vrot.slane %v2594_v46, 5 }
 0x1da   : > { %v2390_v55 = vunpack.c.l.b16 %v2372_v50 }
 0x1db   : > { %2460 = vmatmul.bf16.gmra.mxu3 %v11197_v7  ;;  %v2255_v7 = vrot.slane %v2253_v61, 5  ;;  %v2597_v36 = vor.u32 %v2596_v27, %v2593_v18 }
 0x1dc   : > { %2788 = vmatpush.bf16.msra.mxu3 %v9930_v39  ;;  %2679 = vmatpush.bf16.msra.mxu2 %v9921_v2  ;;  %v2394_v49 = vpack.c.b16 %v2390_v55, %v2037_v57 }
 0x1dd   : > { %v2256_v22 = vsel %vm11026_vm7, %v2251_v41, %v2255_v7  ;;  %2560 = vmatpush.bf16.msra.mxu1 %v9913_v56 }
 0x1e0   : > { %2789 = vmatpush.bf16.msra.mxu3 %v9929_v62 }
 0x1e2   : > { %2349 = vmatmul.bf16.gmra.mxu2 %v2277_v4 }
 0x1e4   : > { %2219 = vmatmul.bf16.gmra.mxu1 %v11203_v59  ;;  %v2274_v59 = vunpack.c.l.b16 %v2256_v22 }
 0x1e6   : > { %v2278_v23 = vpack.c.b16 %v2274_v59, %v11377_v16  ;;  %v11420_v16 = vpop.f32.mrf.mxu1 }
 0x1eb   : > { %2465 = vmatmul.bf16.gmra.mxu3 %v2393_v48  ;;  %v2502_v48 = vunpack.c.l.b16 %v1626_v32 }
 0x1ed   : > { %v2503_v39 = vpack.c.b16 %v2502_v48, %v2149_v63  ;;  %v8093_v63 = vld [vmem:[%s12904_s5 + $0x1f0] sm:$0xf] }
 0x1f2   : > { %2354 = vmatmul.bf16.gmra.mxu2 %v2278_v23 }
 0x1f4   : > { %2224 = vmatmul.bf16.gmra.mxu1 %v11303_v19 }
 0x1f5   : > { %v1960_v19 = vpop.f32.mrf.mxu2 }
 0x1fb   : > { %2470 = vmatmul.bf16.gmra.mxu3 %v2394_v49 }
 0x1fd   : > { %v2113_v57 = vpop.f32.mrf.mxu3  ;;  %v11439_v61 = vpop.f32.mrf.mxu2 }
 0x202   : > { %2680 = vmatmul.bf16.vlgmr.msra.gmra.mxu2 %v11162_v25  ;;  %v1607_v25 = vld [vmem:[#allocation2 + $0x98] sm:$0x3] }
 0x203   : > { %v1627_v11 = vpack.c.bf16 %v1607_v25, %v1607_v25 }
 0x204   : > { %2229 = vmatmul.bf16.gmra.mxu1 %v2153_v0  ;;  %v1859_v15 = vpop.f32.mrf.mxu1  ;;  %v10000_v0 = vld [vmem:[%s12904_s5 + $0x1f4] sm:$0xf0] }
 0x205   : > { %v1961_v30 = vadd.f32 %v1960_v19, %v1859_v15  ;;  %v2600_v4 = vshll.u32 %v1627_v11, 16  ;;  %v2712_v41 = vrot.slane %v1627_v11, 5  ;;  %v11444_v26 = vpop.f32.mrf.mxu3  ;;  %v8094_v19 = vor.u32 %v10000_v0, %v8093_v63 }
 0x207   : > { %v11428_v34 = vadd.f32 %v2113_v57, %v1961_v30  ;;  %3693 = vmatpush.bf16.msrb.mxu0 %v8094_v19 }
 0x20b   : > { %2790 = vmatmul.bf16.vlgmr.msra.gmra.mxu3 %v11137_v33  ;;  %v2598_v33 = vrot.slane %v2597_v36, 4 }
 0x20c   : > { %v11446_v6 = vpop.f32.mrf.mxu1 }
 0x212   : > { %2685 = vmatmul.bf16.gmra.mxu2 %v11272_v21  ;;  %v2602_v21 = vrot.slane %v2600_v4, 5 }
 0x214   : > { %2561 = vmatmul.bf16.vlgmr.msra.gmra.mxu1 %v11122_v13  ;;  %v2603_v13 = vsel %vm11026_vm7, %v2598_v33, %v2602_v21 }
 0x215   : > { %v2621_v12 = vunpack.c.l.b16 %v2603_v13 }
 0x217   : > { %v2622_v7 = vpack.c.b16 %v2621_v12, %v2274_v59 }
 0x21b   : > { %2795 = vmatmul.bf16.gmra.mxu3 %v11253_v35  ;;  %v7758_v35 = vrot.slane %v1626_v32, 9 }
 0x21d   : > { %v2713_v10 = vsel %vm10983_vm14, %v7758_v35, %v2712_v41 }
 0x222   : > { %2690 = vmatmul.bf16.gmra.mxu2 %v11384_v47  ;;  %v2731_v47 = vunpack.c.l.b16 %v2713_v10 }
 0x224   : > { %2566 = vmatmul.bf16.gmra.mxu1 %v11234_v45  ;;  %v2732_v54 = vpack.c.b16 %v2731_v47, %v2390_v55  ;;  %v1953_v47 = vadd.f32 %v11372_v29, %v11374_v43  ;;  %v1958_v29 = vadd.f32 %v11418_v40, %v11420_v16 }
 0x22b   : > { %2800 = vmatmul.bf16.gmra.mxu3 %v11362_v60 }
 0x232   : > { %2695 = vmatmul.bf16.gmra.mxu2 %v2622_v7 }
 0x234   : > { %2571 = vmatmul.bf16.gmra.mxu1 %v11342_v28 }
 0x235   : > { %v1965_v45 = vpop.f32.mrf.mxu2 }
 0x23b   : > { %2805 = vmatmul.bf16.gmra.mxu3 %v2732_v54  ;;  %v2124_v54 = vadd.f32 %v11380_v20, %v1953_v47 }
 0x23d   : > { %v11448_v60 = vpop.f32.mrf.mxu2 }
 0x23e   : > { %v2118_v14 = vpop.f32.mrf.mxu3 }
 0x241   : > { %v1864_v22 = vpop.f32.mrf.mxu1 }
 0x242   : > { %v1966_v3 = vadd.f32 %v1965_v45, %v1864_v22 }
 0x244   : > { %v2129_v2 = vadd.f32 %v2118_v14, %v1966_v3  ;;  %2576 = vmatmul.bf16.gmra.mxu1 %v2503_v39 }
 0x245   : > { %v2340_v44 = vpop.f32.mrf.mxu2 }
 0x246   : > { %v11450_v59 = vpop.f32.mrf.mxu3 }
 0x249   : > { %v11452_v28 = vpop.f32.mrf.mxu1 }
 0x24d   : > { %v2342_v53 = vpop.f32.mrf.mxu2 }
 0x24e   : > { %v2456_v42 = vpop.f32.mrf.mxu3 }
 0x251   : > { %v2215_v31 = vpop.f32.mrf.mxu1 }
 0x252   : > { %v2235_v23 = vadd.f32 %v2215_v31, %v11277_v1 }
 0x254   : > { %v2360_v62 = vadd.f32 %v2340_v44, %v2235_v23 }
 0x255   : > { %v2345_v52 = vpop.f32.mrf.mxu2 }
 0x256   : > { %v2476_v50 = vadd.f32 %v2456_v42, %v2360_v62  ;;  %v2458_v55 = vpop.f32.mrf.mxu3  ;;  %v11487_v62 = vld [vmem:[%s12903_s4] ss:$0 sm:$0xff] }
 0x259   : > { %v2217_v56 = vpop.f32.mrf.mxu1 }
 0x25a   : > { %v2236_v48 = vadd.f32 %v2217_v56, %v2124_v54 }
 0x25c   : > { %v2361_v44 = vadd.f32 %v2342_v53, %v2236_v48  ;;  %v2126_v53 = vadd.f32 %v11423_v38, %v1958_v29  ;;  %v1963_v38 = vadd.f32 %v11439_v61, %v11446_v6  ;;  %v9968_v61 = vld [vmem:[%s12904_s5 + $0xf4] sm:$0xf0]  ;;  %v9967_v6 = vld [vmem:[%s12904_s5 + $0xf4] sm:$0xf] }
 0x25d   : > { %v2347_v49 = vpop.f32.mrf.mxu2 }
 0x25e   : > { %v2461_v24 = vpop.f32.mrf.mxu3  ;;  %v2477_v31 = vadd.f32 %v2458_v55, %v2361_v44 }
 0x261   : > { %v2220_v15 = vpop.f32.mrf.mxu1 }
 0x262   : > { %v2237_v1 = vadd.f32 %v2220_v15, %v11391_v8 }
 0x264   : > { %v2362_v30 = vadd.f32 %v2345_v52, %v2237_v1 }
 0x265   : > { %v2350_v57 = vpop.f32.mrf.mxu2 }
 0x266   : > { %v2478_v58 = vadd.f32 %v2461_v24, %v2362_v30  ;;  %v11462_v32 = vpop.f32.mrf.mxu3 }
 0x269   : > { %v2222_v37 = vpop.f32.mrf.mxu1 }
 0x26a   : > { %v2238_v55 = vadd.f32 %v2222_v37, %v2126_v53  ;;  %v9965_v53 = vld [vmem:[%s12904_s5 + $0xe4] sm:$0xf] }
 0x26d   : > { %v11464_v46 = vpop.f32.mrf.mxu2 }
 0x26e   : > { %v2466_v25 = vpop.f32.mrf.mxu3 }
 0x271   : > { %v2225_v18 = vpop.f32.mrf.mxu1 }
 0x272   : > { %v2239_v27 = vadd.f32 %v2225_v18, %v11428_v34 }
 0x274   : > { %v2364_v11 = vadd.f32 %v2350_v57, %v2239_v27  ;;  %v2363_v57 = vadd.f32 %v2347_v49, %v2238_v55 }
 0x275   : > { %v2355_v36 = vpop.f32.mrf.mxu2 }
 0x276   : > { %v11467_v4 = vadd.f32 %v2466_v25, %v2364_v11  ;;  %v11469_v33 = vpop.f32.mrf.mxu3  ;;  %v2479_v49 = vadd.f32 %v11462_v32, %v2363_v57  ;;  %v8085_v57 = vld [vmem:[%s12904_s5 + $0x1e0] sm:$0xf] }
 0x279   : > { %v11471_v21 = vpop.f32.mrf.mxu1 }
 0x27d   : > { %v11473_v8 = vpop.f32.mrf.mxu2 }
 0x27e   : > { %v2471_v13 = vpop.f32.mrf.mxu3 }
 0x281   : > { %v2230_v12 = vpop.f32.mrf.mxu1 }
 0x282   : > { %v2241_v35 = vadd.f32 %v2230_v12, %v2129_v2 }
 0x284   : > { %v2366_v41 = vadd.f32 %v2355_v36, %v2241_v35  ;;  %v7865_v35 = vld [vmem:[%s12904_s5 + $0xf0] sm:$0xf] }
 0x285   : > { %v2681_v45 = vpop.f32.mrf.mxu2  ;;  %v7866_v48 = vor.u32 %v9968_v61, %v7865_v35  ;;  %v7851_v61 = vld [vmem:[%s12904_s5 + $0xd8] sm:$0xf0] }
 0x286   : > { %v11475_v7 = vadd.f32 %v2471_v13, %v2366_v41  ;;  %v11477_v10 = vpop.f32.mrf.mxu3 }
 0x287   : > { %3272 = vmatpush.bf16.msrb.mxu1 %v7866_v48 }
 0x289   : > { %v11479_v34 = vpop.f32.mrf.mxu1 }
 0x28d   : > { %v2683_v3 = vpop.f32.mrf.mxu2 }
 0x28e   : > { %v2791_v14 = vpop.f32.mrf.mxu3 }
 0x291   : > { %v2562_v22 = vpop.f32.mrf.mxu1 }
 0x292   : > { %v2582_v39 = vadd.f32 %v2562_v22, %v2476_v50  ;;  %v7867_v22 = vld [vmem:[%s12904_s5 + $0xf8] sm:$0xf0] }
 0x294   : > { %v2701_v2 = vadd.f32 %v2681_v45, %v2582_v39 }
 0x295   : > { %v2686_v20 = vpop.f32.mrf.mxu2 }
 0x296   : > { %v2793_v42 = vpop.f32.mrf.mxu3  ;;  %v2811_v23 = vadd.f32 %v2791_v14, %v2701_v2 }
 0x298   : > { %v2823_v56 = vadd.f32 %v11487_v62, %v2811_v23  ;;  %v7870_v23 = vor.u32 %v9967_v6, %v7867_v22  ;;  %v7929_v6 = vld [vmem:[%s12904_s5 + $0x70] sm:$0xf] }
 0x299   : > { %v2564_v52 = vpop.f32.mrf.mxu1 }
 0x29a   : > { %v2583_v43 = vadd.f32 %v2564_v52, %v2477_v31  ;;  %v2839_v0 = vmul.f32 0.01, %v2823_v56  ;;  %vm2831_vm11 = vcmp.ge.f32.partialorder %v2823_v56, 0.0  ;;  %v7857_v52 = vld [vmem:[%s12904_s5 + $0xe0] sm:$0xf]  ;;  %3286 = vmatpush.bf16.msrb.mxu2 %v7870_v23 }
 0x29c   : > { %v2702_v24 = vadd.f32 %v2683_v3, %v2583_v43  ;;  %v2847_v40 = vsel %vm2831_vm11, %v2823_v56, %v2839_v0  ;;  %v7859_v0 = vld [vmem:[%s12904_s5 + $0xe8] sm:$0xf0]  ;;  %vm12968_vm11 = vmmov %vm12967_vm9 }
 0x29d   : > { %v2688_v27 = vpop.f32.mrf.mxu2 }
 0x29e   : > { %v2812_v50 = vadd.f32 %v2793_v42, %v2702_v24  ;;  %v2796_v63 = vpop.f32.mrf.mxu3  ;;  %v2128_v42 = vadd.f32 %v11444_v26, %v1963_v38  ;;  %v9966_v24 = vld [vmem:[%s12904_s5 + $0xe4] sm:$0xf0] }
 0x29f   : > { %v7858_v55 = vor.u32 %v9966_v24, %v7857_v52 }
 0x2a0   : > { %v2824_v19 = vadd.f32 %v11487_v62, %v2812_v50  ;;  %v2240_v26 = vadd.f32 %v11471_v21, %v2128_v42  ;;  %v9998_v21 = vld [vmem:[%s12904_s5 + $0x1e4] sm:$0xf0] }
 0x2a1   : > { %v2567_v15 = vpop.f32.mrf.mxu1  ;;  %3273 = vmatpush.bf16.msrb.mxu1 %v7858_v55  ;;  %v8086_v35 = vor.u32 %v9998_v21, %v8085_v57  ;;  %v7843_v55 = vld [vmem:[%s12904_s5 + $0xc8] sm:$0xf0]  ;;  %v7921_v21 = vld [vmem:[%s12904_s5 + $0x60] sm:$0xf] }
 0x2a2   : > { %vm2832_vm14 = vcmp.ge.f32.partialorder %v2824_v19, 0.0  ;;  %v2840_v1 = vmul.f32 0.01, %v2824_v19  ;;  %v2584_v30 = vadd.f32 %v2567_v15, %v2478_v58 }
 0x2a3   : > { %3694 = vmatpush.bf16.msrb.mxu0 %v8086_v35 }
 0x2a4   : > { %v2848_v16 = vsel %vm2832_vm14, %v2824_v19, %v2840_v1  ;;  %v2703_v25 = vadd.f32 %v2686_v20, %v2584_v30 }
 0x2a5   : > { %v2855_v18 = vmax.f32 %v2847_v40, %v2848_v16  ;;  %v2691_v16 = vpop.f32.mrf.mxu2 }
 0x2a6   : > { %v2813_v11 = vadd.f32 %v2796_v63, %v2703_v25  ;;  %v2798_v45 = vpop.f32.mrf.mxu3  ;;  %v7862_v25 = vor.u32 %v9965_v53, %v7859_v0 }
 0x2a7   : > { %v2863_v36 = vrot.slane %v2855_v18, 2  ;;  %v2864_v37 = vrot.slane %v2855_v18, 4  ;;  %v2865_v13 = vrot.slane %v2855_v18, 6  ;;  %v2887_v12 = vsel %vm975_vm3, %v2855_v18, -inf  ;;  %v7849_v18 = vld [vmem:[%s12904_s5 + $0xd0] sm:$0xf] }
 0x2a8   : > { %v2888_v58 = vrot.slane %v2887_v12, 4  ;;  %v11502_v41 = vadd.f32 %v11487_v62, %v2813_v11  ;;  %3287 = vmatpush.bf16.msrb.mxu2 %v7862_v25 }
 0x2a9   : > { %v2894_v47 = vsel %vm975_vm3, %v2863_v36, -inf  ;;  %v2901_v54 = vsel %vm975_vm3, %v2864_v37, -inf  ;;  %v2908_v14 = vsel %vm975_vm3, %v2865_v13, -inf  ;;  %v2569_v32 = vpop.f32.mrf.mxu1  ;;  %v9964_v37 = vld [vmem:[%s12904_s5 + $0xd4] sm:$0xf0] }
 0x2aa   : > { %v2889_v3 = vmax.f32 %v2887_v12, %v2888_v58  ;;  %v2895_v39 = vrot.slane %v2894_v47, 4  ;;  %v2902_v44 = vrot.slane %v2901_v54, 4  ;;  %v2909_v2 = vrot.slane %v2908_v14, 4  ;;  %v9963_v13 = vld [vmem:[%s12904_s5 + $0xd4] sm:$0xf] }
 0x2ab   : > { %v2585_v31 = vadd.f32 %v2569_v32, %v2479_v49  ;;  %v2841_v50 = vmul.f32 0.01, %v11502_v41  ;;  %v2365_v12 = vadd.f32 %v11464_v46, %v2240_v26  ;;  %vm2833_vm12 = vcmp.ge.f32.partialorder %v11502_v41, 0.0  ;;  %v9962_v26 = vld [vmem:[%s12904_s5 + $0xc4] sm:$0xf0] }
 0x2ac   : > { %v2890_v29 = vrot.slane %v2889_v3, 2  ;;  %v2896_v43 = vmax.f32 %v2894_v47, %v2895_v39  ;;  %v2903_v20 = vmax.f32 %v2901_v54, %v2902_v44  ;;  %v2910_v56 = vmax.f32 %v2908_v14, %v2909_v2  ;;  %v9952_v47 = vld [vmem:[%s12904_s5 + $0x74] sm:$0xf0] }
 0x2ad   : > { %v2704_v63 = vadd.f32 %v2688_v27, %v2585_v31  ;;  %v7930_v42 = vor.u32 %v9952_v47, %v7929_v6  ;;  %v2849_v31 = vsel %vm2833_vm12, %v11502_v41, %v2841_v50  ;;  %v7841_v41 = vld [vmem:[%s12904_s5 + $0xc0] sm:$0xf]  ;;  %v9961_v50 = vld [vmem:[%s12904_s5 + $0xc4] sm:$0xf] }
 0x2ae   : > { %v2891_v19 = vmax.f32 %v2889_v3, %v2890_v29  ;;  %v2897_v15 = vrot.slane %v2896_v43, 2  ;;  %v2904_v1 = vrot.slane %v2903_v20, 2  ;;  %v2911_v30 = vrot.slane %v2910_v56, 2  ;;  %v2801_v32 = vpop.f32.mrf.mxu3 }
 0x2af   : > { %v2814_v40 = vadd.f32 %v2798_v45, %v2704_v63  ;;  %v7850_v45 = vor.u32 %v9964_v37, %v7849_v18  ;;  %v7854_v3 = vor.u32 %v9963_v13, %v7851_v61  ;;  %3389 = vmatpush.bf16.msrb.mxu3 %v7930_v42  ;;  %v7846_v57 = vor.u32 %v9961_v50, %v7843_v55  ;;  %v7833_v37 = vld [vmem:[%s12904_s5 + $0xb0] sm:$0xf]  ;;  %v9959_v61 = vld [vmem:[%s12904_s5 + $0xb4] sm:$0xf] }
 0x2b0   : > { %v2892_v27 = vrot.slane %v2891_v19, 1  ;;  %v2898_v38 = vmax.f32 %v2896_v43, %v2897_v15  ;;  %v2905_v11 = vmax.f32 %v2903_v20, %v2904_v1  ;;  %v2912_v36 = vmax.f32 %v2910_v56, %v2911_v30  ;;  %v2693_v15 = vpop.f32.mrf.mxu2 }
 0x2b1   : > { %v2826_v49 = vadd.f32 %v11487_v62, %v2814_v40  ;;  %v2572_v58 = vpop.f32.mrf.mxu1  ;;  %3274 = vmatpush.bf16.msrb.mxu1 %v7850_v45  ;;  %3288 = vmatpush.bf16.msrb.mxu2 %v7854_v3  ;;  %v1968_v56 = vadd.f32 %v11448_v60, %v11452_v28  ;;  %v7842_v30 = vor.u32 %v9962_v26, %v7841_v41  ;;  %v9960_v45 = vld [vmem:[%s12904_s5 + $0xb4] sm:$0xf0] }
 0x2b2   : > { %v2899_v54 = vrot.slane %v2898_v38, 1  ;;  %v2906_v46 = vrot.slane %v2905_v11, 1  ;;  %v2913_v14 = vrot.slane %v2912_v36, 1  ;;  %v2586_v22 = vadd.f32 %v2572_v58, %v11467_v4 }
 0x2b3   : > { %vm2834_vm4 = vcmp.ge.f32.partialorder %v2826_v49, 0.0  ;;  %v2842_v48 = vmul.f32 0.01, %v2826_v49  ;;  %v2893_v39 = vmax.f32 %v2891_v19, %v2892_v27  ;;  %v2481_v4 = vadd.f32 %v11469_v33, %v2365_v12  ;;  %v9950_v27 = vld [vmem:[%s12904_s5 + $0x64] sm:$0xf0] }
 0x2b4   : > { %v2900_v44 = vmax.f32 %v2898_v38, %v2899_v54  ;;  %v2907_v2 = vmax.f32 %v2905_v11, %v2906_v46  ;;  %v2705_v52 = vadd.f32 %v2691_v16, %v2586_v22  ;;  %v2914_v29 = vmax.f32 %v2912_v36, %v2913_v14  ;;  %v7913_v14 = vld [vmem:[%s12904_s5 + $0x50] sm:$0xf] }
 0x2b5   : > { %v2850_v23 = vsel %vm2834_vm4, %v2826_v49, %v2842_v48  ;;  %3275 = vmatpush.bf16.msrb.mxu1 %v7842_v30  ;;  %3289 = vmatpush.bf16.msrb.mxu2 %v7846_v57  ;;  %v2130_v13 = vadd.f32 %v11450_v59, %v1968_v56  ;;  %v7922_v58 = vor.u32 %v9950_v27, %v7921_v21  ;;  %v7835_v59 = vld [vmem:[%s12904_s5 + $0xb8] sm:$0xf0]  ;;  %v9958_v56 = vld [vmem:[%s12904_s5 + $0xa4] sm:$0xf0] }
 0x2b6   : > { %v3021_v43 = vsel %vm1508_vm6, %v2900_v44, %v2893_v39  ;;  %v2856_v20 = vmax.f32 %v2849_v31, %v2850_v23  ;;  %v2815_v53 = vadd.f32 %v2801_v32, %v2705_v52  ;;  %v2803_v49 = vpop.f32.mrf.mxu3  ;;  %v7834_v46 = vor.u32 %v9960_v45, %v7833_v37  ;;  %v9948_v32 = vld [vmem:[%s12904_s5 + $0x54] sm:$0xf0]  ;;  %v7825_v31 = vld [vmem:[%s12904_s5 + $0xa0] sm:$0xf] }
 0x2b7   : > { %v3022_v24 = vsel %vm1510_vm8, %v2907_v2, %v3021_v43  ;;  %3390 = vmatpush.bf16.msrb.mxu3 %v7922_v58  ;;  %v7838_v3 = vor.u32 %v9959_v61, %v7835_v59  ;;  %v7914_v42 = vor.u32 %v9948_v32, %v7913_v14  ;;  %v2242_v23 = vadd.f32 %v11479_v34, %v2130_v13 }
 0x2b8   : > { %v3023_v63 = vsel %vm1512_vm1, %v2914_v29, %v3022_v24  ;;  %v2866_v60 = vrot.slane %v2856_v20, 2  ;;  %v2867_v28 = vrot.slane %v2856_v20, 4  ;;  %v2868_v33 = vrot.slane %v2856_v20, 6 }
 0x2b9   : > { %3038 = vst [vmem:[#allocation3 + $0x9] sm:$0xf] %v3023_v63  ;;  %v2915_v0 = vsel %vm975_vm3, %v2856_v20, -inf  ;;  %v11580_v19 = vadd.f32 %v11487_v62, %v2815_v53  ;;  %v2574_v1 = vpop.f32.mrf.mxu1  ;;  %3276 = vmatpush.bf16.msrb.mxu1 %v7834_v46  ;;  %3290 = vmatpush.bf16.msrb.mxu2 %v7838_v3  ;;  %v8077_v46 = vld [vmem:[%s12904_s5 + $0x1d0] sm:$0xf] }
 0x2ba   : > { %v2916_v40 = vrot.slane %v2915_v0, 4  ;;  %v2922_v16 = vsel %vm975_vm3, %v2866_v60, -inf  ;;  %v2929_v25 = vsel %vm975_vm3, %v2867_v28, -inf  ;;  %v2936_v18 = vsel %vm975_vm3, %v2868_v33, -inf }
 0x2bb   : > { %v2923_v38 = vrot.slane %v2922_v16, 4  ;;  %v2930_v11 = vrot.slane %v2929_v25, 4  ;;  %v2937_v36 = vrot.slane %v2936_v18, 4  ;;  %v2587_v35 = vadd.f32 %v2574_v1, %v2481_v4  ;;  %3391 = vmatpush.bf16.msrb.mxu3 %v7914_v42  ;;  %v7817_v42 = vld [vmem:[%s12904_s5 + $0x90] sm:$0xf] }
 0x2bc   : > { %v2917_v12 = vmax.f32 %v2915_v0, %v2916_v40  ;;  %vm2835_vm7 = vcmp.ge.f32.partialorder %v11580_v19, 0.0  ;;  %v2843_v43 = vmul.f32 0.01, %v11580_v19  ;;  %v7826_v60 = vor.u32 %v9958_v56, %v7825_v31  ;;  %v9956_v31 = vld [vmem:[%s12904_s5 + $0x94] sm:$0xf0] }
 0x2bd   : > { %v2924_v6 = vmax.f32 %v2922_v16, %v2923_v38  ;;  %v2931_v47 = vmax.f32 %v2929_v25, %v2930_v11  ;;  %v2938_v54 = vmax.f32 %v2936_v18, %v2937_v36  ;;  %v2706_v22 = vadd.f32 %v2693_v15, %v2587_v35  ;;  %v2696_v15 = vpop.f32.mrf.mxu2  ;;  %v9957_v25 = vld [vmem:[%s12904_s5 + $0xa4] sm:$0xf]  ;;  %v7827_v36 = vld [vmem:[%s12904_s5 + $0xa8] sm:$0xf0]  ;;  %v9955_v56 = vld [vmem:[%s12904_s5 + $0x94] sm:$0xf] }
 0x2be   : > { %v2918_v48 = vrot.slane %v2917_v12, 2  ;;  %3277 = vmatpush.bf16.msrb.mxu1 %v7826_v60  ;;  %v2806_v11 = vpop.f32.mrf.mxu3  ;;  %v2851_v13 = vsel %vm2835_vm7, %v11580_v19, %v2843_v43  ;;  %v9996_v19 = vld [vmem:[%s12904_s5 + $0x1d4] sm:$0xf0]  ;;  %v7830_v59 = vor.u32 %v9957_v25, %v7827_v36  ;;  %v7811_v36 = vld [vmem:[%s12904_s5 + $0x88] sm:$0xf0] }
 0x2bf   : > { %v2925_v39 = vrot.slane %v2924_v6, 2  ;;  %v2932_v44 = vrot.slane %v2931_v47, 2  ;;  %v2939_v2 = vrot.slane %v2938_v54, 2  ;;  %v2816_v20 = vadd.f32 %v2803_v49, %v2706_v22  ;;  %v9946_v22 = vld [vmem:[%s12904_s5 + $0x44] sm:$0xf0] }
 0x2c0   : > { %v3043_v52 = vld [vmem:[#allocation3 + $0x8] sm:$0x3f]  ;;  %v2919_v29 = vmax.f32 %v2917_v12, %v2918_v48  ;;  %3291 = vmatpush.bf16.msrb.mxu2 %v7830_v59  ;;  %v8078_v43 = vor.u32 %v9996_v19, %v8077_v46  ;;  %v7931_v59 = vld [vmem:[%s12904_s5 + $0x78] sm:$0xf0] }
 0x2c1   : > { %v11619_v4 = vpack.c.bf16 %v3043_v52, %v3043_v52  ;;  %v2926_v24 = vmax.f32 %v2924_v6, %v2925_v39  ;;  %v2933_v53 = vmax.f32 %v2931_v47, %v2932_v44  ;;  %v2940_v41 = vmax.f32 %v2938_v54, %v2939_v2  ;;  %v2577_v26 = vpop.f32.mrf.mxu1 }
 0x2c2   : > { %v2920_v50 = vrot.slane %v2919_v29, 1  ;;  %v2828_v63 = vadd.f32 %v11487_v62, %v2816_v20  ;;  %v2588_v34 = vadd.f32 %v2577_v26, %v11475_v7  ;;  %v2367_v6 = vadd.f32 %v11473_v8, %v2242_v23  ;;  %v7905_v8 = vld [vmem:[%s12904_s5 + $0x40] sm:$0xf]  ;;  %3695 = vmatpush.bf16.msrb.mxu0 %v8078_v43 }
 0x2c3   : > { %v3075_v28 = vrot.slane %v11619_v4, 2  ;;  %v2927_v33 = vrot.slane %v2926_v24, 1  ;;  %v2934_v55 = vrot.slane %v2933_v53, 1  ;;  %v2941_v0 = vrot.slane %v2940_v41, 1 }
 0x2c4   : > { %v2921_v1 = vmax.f32 %v2919_v29, %v2920_v50  ;;  %vm2836_vm13 = vcmp.ge.f32.partialorder %v2828_v63, 0.0  ;;  %v2844_v30 = vmul.f32 0.01, %v2828_v63  ;;  %v2707_v57 = vadd.f32 %v2696_v15, %v2588_v34  ;;  %v9944_v34 = vld [vmem:[%s12904_s5 + $0x34] sm:$0xf0] }
 0x2c5   : > { %v11626_v21 = vsel %vm975_vm3, %v11619_v4, %v3075_v28  ;;  %v11630_v7 = vsel %vm12966_vm15, %v11619_v4, %v3075_v28  ;;  %v2928_v40 = vmax.f32 %v2926_v24, %v2927_v33  ;;  %v2935_v16 = vmax.f32 %v2933_v53, %v2934_v55  ;;  %v7819_v24 = vld [vmem:[%s12904_s5 + $0x98] sm:$0xf0]  ;;  %v7897_v53 = vld [vmem:[%s12904_s5 + $0x30] sm:$0xf] }
 0x2c6   : > { %v3090_v18 = vrot.slane %v11630_v7, 2  ;;  %v3123_v27 = vshrl.u32 %v11626_v21, 16  ;;  %v3126_v38 = vshll.u32 %v11626_v21, 16  ;;  %v2852_v12 = vsel %vm2836_vm13, %v2828_v63, %v2844_v30  ;;  %v2808_v46 = vpop.f32.mrf.mxu3  ;;  %v8071_v7 = vld [vmem:[%s12904_s5 + $0x1c8] sm:$0xf0] }
 0x2c7   : > { %v3024_v37 = vsel %vm1508_vm6, %v2928_v40, %v2921_v1  ;;  %v2817_v35 = vadd.f32 %v2806_v11, %v2707_v57  ;;  %v2942_v61 = vmax.f32 %v2940_v41, %v2941_v0  ;;  %v2857_v54 = vmax.f32 %v2851_v13, %v2852_v12  ;;  %v9954_v0 = vld [vmem:[%s12904_s5 + $0x84] sm:$0xf0]  ;;  %v9953_v11 = vld [vmem:[%s12904_s5 + $0x84] sm:$0xf] }
 0x2c8   : > { %v3125_v49 = vrot.slane %v3123_v27, 6  ;;  %v3128_v58 = vrot.slane %v3126_v38, 7  ;;  %v3132_v45 = vshll.u32 %v3090_v18, 16  ;;  %v3025_v47 = vsel %vm1510_vm8, %v2935_v16, %v3024_v37  ;;  %v2698_v27 = vpop.f32.mrf.mxu2 }
 0x2c9   : > { %v3026_v32 = vsel %vm1512_vm1, %v2942_v61, %v3025_v47  ;;  %v11658_v48 = vadd.f32 %v11487_v62, %v2817_v35  ;;  %v2869_v3 = vrot.slane %v2857_v54, 2  ;;  %v2870_v39 = vrot.slane %v2857_v54, 4  ;;  %v2579_v20 = vpop.f32.mrf.mxu1 }
 0x2ca   : > { %v3129_v14 = vor.u32 %v3128_v58, %v3125_v49  ;;  %3039 = vst [vmem:[#allocation3 + $0x11] sm:$0xf] %v3026_v32  ;;  %v2871_v44 = vrot.slane %v2857_v54, 6  ;;  %v2943_v2 = vsel %vm975_vm3, %v2857_v54, -inf  ;;  %v3134_v52 = vrot.slane %v3132_v45, 7 }
 0x2cb   : > { %v2944_v29 = vrot.slane %v2943_v2, 4  ;;  %v2483_v41 = vadd.f32 %v11477_v10, %v2367_v6  ;;  %v2950_v26 = vsel %vm975_vm3, %v2869_v3, -inf  ;;  %v2957_v50 = vsel %vm975_vm3, %v2870_v39, -inf  ;;  %v7809_v10 = vld [vmem:[%s12904_s5 + $0x80] sm:$0xf] }
 0x2cc   : > { %v3130_v23 = vrot.slane %v3129_v14, 2  ;;  %v2964_v63 = vsel %vm975_vm3, %v2871_v44, -inf  ;;  %v2951_v33 = vrot.slane %v2950_v26, 4  ;;  %v2958_v55 = vrot.slane %v2957_v50, 4  ;;  %v7889_v49 = vld [vmem:[%s12904_s5 + $0x20] sm:$0xf] }
 0x2cd   : > { %v2945_v28 = vmax.f32 %v2943_v2, %v2944_v29  ;;  %v2965_v15 = vrot.slane %v2964_v63, 4  ;;  %v11701_v1 = vmul.f32 0.01, %v11658_v48  ;;  %v2589_v30 = vadd.f32 %v2579_v20, %v2483_v41  ;;  %v9942_v58 = vld [vmem:[%s12904_s5 + $0x24] sm:$0xf0] }
 0x2ce   : > { %v11691_v60 = vsel %vm10965_vm2, %v3130_v23, %v3134_v52  ;;  %v7906_v57 = vor.u32 %v9946_v22, %v7905_v8  ;;  %v2952_v16 = vmax.f32 %v2950_v26, %v2951_v33  ;;  %v2959_v25 = vmax.f32 %v2957_v50, %v2958_v55  ;;  %v9951_v45 = vld [vmem:[%s12904_s5 + $0x74] sm:$0xf]  ;;  %v8013_v3 = vld [vmem:[%s12904_s5 + $0x170] sm:$0xf]  ;;  %v9984_v39 = vld [vmem:[%s12904_s5 + $0x174] sm:$0xf0] }
 0x2cf   : > { %3183 = vst [vmem:[#allocation1 + $0x1] ss:$4 sm:$0xff] %v11691_v60  ;;  %v2946_v40 = vrot.slane %v2945_v28, 2  ;;  %v7818_v38 = vor.u32 %v9956_v31, %v7817_v42  ;;  %v2966_v37 = vmax.f32 %v2964_v63, %v2965_v15  ;;  %v2708_v13 = vadd.f32 %v2698_v27, %v2589_v30  ;;  %v9940_v41 = vld [vmem:[%s12904_s5 + $0x14] sm:$0xf0] }
 0x2d0   : > { %3392 = vmatpush.bf16.msrb.mxu3 %v7906_v57  ;;  %v7822_v12 = vor.u32 %v9955_v56, %v7819_v24  ;;  %v7898_v35 = vor.u32 %v9944_v34, %v7897_v53  ;;  %v2953_v47 = vrot.slane %v2952_v16, 2  ;;  %v2960_v54 = vrot.slane %v2959_v25, 2  ;;  %v7881_v53 = vld [vmem:[%s12904_s5 + $0x10] sm:$0xf]  ;;  %v9949_v63 = vld [vmem:[%s12904_s5 + $0x64] sm:$0xf] }
 0x2d1   : > { %v3044_v61 = vld [vmem:[#allocation3 + $0x10] sm:$0x3f]  ;;  %v2947_v6 = vmax.f32 %v2945_v28, %v2946_v40  ;;  %3278 = vmatpush.bf16.msrb.mxu1 %v7818_v38  ;;  %v7810_v19 = vor.u32 %v9954_v0, %v7809_v10  ;;  %v2967_v32 = vrot.slane %v2966_v37, 2  ;;  %v2818_v8 = vadd.f32 %v2808_v46, %v2708_v13  ;;  %v7923_v34 = vld [vmem:[%s12904_s5 + $0x68] sm:$0xf0] }
 0x2d2   : > { %v11721_v14 = vpack.c.bf16 %v3044_v61, %v3044_v61  ;;  %3292 = vmatpush.bf16.msrb.mxu2 %v7822_v12  ;;  %v7814_v22 = vor.u32 %v9953_v11, %v7811_v36  ;;  %v2954_v2 = vmax.f32 %v2952_v16, %v2953_v47  ;;  %v2961_v42 = vmax.f32 %v2959_v25, %v2960_v54  ;;  %v8005_v10 = vld [vmem:[%s12904_s5 + $0x160] sm:$0xf]  ;;  %v9982_v0 = vld [vmem:[%s12904_s5 + $0x164] sm:$0xf0]  ;;  %v7915_v61 = vld [vmem:[%s12904_s5 + $0x58] sm:$0xf0] }
 0x2d3   : > { %v2948_v44 = vrot.slane %v2947_v6, 1  ;;  %v7890_v31 = vor.u32 %v9942_v58, %v7889_v49  ;;  %v2968_v52 = vmax.f32 %v2966_v37, %v2967_v32  ;;  %v2830_v29 = vadd.f32 %v11487_v62, %v2818_v8  ;;  %v8069_v16 = vld [vmem:[%s12904_s5 + $0x1c0] sm:$0xf]  ;;  %v9994_v25 = vld [vmem:[%s12904_s5 + $0x1c4] sm:$0xf0] }
 0x2d4   : > { %v3076_v23 = vrot.slane %v11721_v14, 2  ;;  %3393 = vmatpush.bf16.msrb.mxu3 %v7898_v35  ;;  %v7934_v43 = vor.u32 %v9951_v45, %v7931_v59  ;;  %v2955_v20 = vrot.slane %v2954_v2, 1  ;;  %v2962_v56 = vrot.slane %v2961_v42, 1  ;;  %v7873_v27 = vld [vmem:[%s12904_s5] sm:$0xf] }
 0x2d5   : > { %3279 = vmatpush.bf16.msrb.mxu1 %v7810_v19  ;;  %v8014_v24 = vor.u32 %v9984_v39, %v8013_v3  ;;  %v2969_v50 = vrot.slane %v2968_v52, 1  ;;  %vm2837_vm0 = vcmp.ge.f32.partialorder %v11658_v48, 0.0  ;;  %vm2838_vm5 = vcmp.ge.f32.partialorder %v2830_v29, 0.0  ;;  %v9938_v13 = vld [vmem:[%s12904_s5 + $0x4] sm:$0xf0] }
 0x2d6   : > { %v11739_v26 = vsel %vm975_vm3, %v11721_v14, %v3076_v23  ;;  %v11743_v62 = vsel %vm12967_vm9, %v11721_v14, %v3076_v23  ;;  %3293 = vmatpush.bf16.msrb.mxu2 %v7814_v22  ;;  %v2949_v15 = vmax.f32 %v2947_v6, %v2948_v44  ;;  %v2956_v30 = vmax.f32 %v2954_v2, %v2955_v20  ;;  %v9947_v45 = vld [vmem:[%s12904_s5 + $0x54] sm:$0xf]  ;;  %v7997_v6 = vld [vmem:[%s12904_s5 + $0x150] sm:$0xf]  ;;  %v9980_v19 = vld [vmem:[%s12904_s5 + $0x154] sm:$0xf0] }
 0x2d7   : > { %v3096_v28 = vrot.slane %v11743_v62, 2  ;;  %v3136_v33 = vshrl.u32 %v11739_v26, 16  ;;  %v3139_v55 = vshll.u32 %v11739_v26, 16  ;;  %v2963_v57 = vmax.f32 %v2961_v42, %v2962_v56  ;;  %v9983_v59 = vld [vmem:[%s12904_s5 + $0x174] sm:$0xf] }
 0x2d8   : > { %v2846_v40 = vmul.f32 0.01, %v2830_v29  ;;  %3394 = vmatpush.bf16.msrb.mxu3 %v7890_v31  ;;  %v2970_v37 = vmax.f32 %v2968_v52, %v2969_v50  ;;  %v3027_v12 = vsel %vm1508_vm6, %v2956_v30, %v2949_v15  ;;  %v7882_v49 = vor.u32 %v9940_v41, %v7881_v53  ;;  %v8015_v32 = vld [vmem:[%s12904_s5 + $0x178] sm:$0xf0]  ;;  %v7989_v23 = vld [vmem:[%s12904_s5 + $0x140] sm:$0xf] }
 0x2d9   : > { %3403 = vmatpush.bf16.msra.mxu1 %v7934_v43  ;;  %v3138_v38 = vrot.slane %v3136_v33, 6  ;;  %v3141_v11 = vrot.slane %v3139_v55, 7  ;;  %v3145_v36 = vshll.u32 %v3096_v28, 16  ;;  %v7926_v58 = vor.u32 %v9949_v63, %v7923_v34  ;;  %v9978_v52 = vld [vmem:[%s12904_s5 + $0x144] sm:$0xf0] }
 0x2da   : > { %3554 = vmatpush.bf16.msra.mxu2 %v8014_v24  ;;  %v2854_v35 = vsel %vm2838_vm5, %v2830_v29, %v2846_v40  ;;  %v3028_v54 = vsel %vm1510_vm8, %v2963_v57, %v3027_v12  ;;  %v2853_v46 = vsel %vm2837_vm0, %v11658_v48, %v11701_v1  ;;  %v8006_v39 = vor.u32 %v9982_v0, %v8005_v10  ;;  %v9945_v48 = vld [vmem:[%s12904_s5 + $0x44] sm:$0xf]  ;;  %v7907_v1 = vld [vmem:[%s12904_s5 + $0x48] sm:$0xf0]  ;;  %v8061_v20 = vld [vmem:[%s12904_s5 + $0x1b0] sm:$0xf] }
 0x2db   : > { %v3142_v47 = vor.u32 %v3141_v11, %v3138_v38  ;;  %v3147_v8 = vrot.slane %v3145_v36, 7  ;;  %v3029_v22 = vsel %vm1512_vm1, %v2970_v37, %v3028_v54  ;;  %v2858_v3 = vmax.f32 %v2853_v46, %v2854_v35  ;;  %v9981_v29 = vld [vmem:[%s12904_s5 + $0x164] sm:$0xf]  ;;  %v8007_v43 = vld [vmem:[%s12904_s5 + $0x168] sm:$0xf0] }
 0x2dc   : > { %3395 = vmatpush.bf16.msrb.mxu3 %v7882_v49  ;;  %3040 = vst [vmem:[#allocation3 + $0x19] sm:$0xf] %v3029_v22  ;;  %v8070_v2 = vor.u32 %v9994_v25, %v8069_v16  ;;  %v7874_v42 = vor.u32 %v9938_v13, %v7873_v27  ;;  %v7918_v31 = vor.u32 %v9947_v45, %v7915_v61  ;;  %v9992_v50 = vld [vmem:[%s12904_s5 + $0x1b4] sm:$0xf0]  ;;  %v9943_v10 = vld [vmem:[%s12904_s5 + $0x34] sm:$0xf] }
 0x2dd   : > { %3404 = vmatpush.bf16.msra.mxu1 %v7926_v58  ;;  %v3143_v44 = vrot.slane %v3142_v47, 2  ;;  %v2872_v56 = vrot.slane %v2858_v3, 2  ;;  %v2873_v24 = vrot.slane %v2858_v3, 4  ;;  %v2874_v53 = vrot.slane %v2858_v3, 6  ;;  %v7899_v0 = vld [vmem:[%s12904_s5 + $0x38] sm:$0xf0] }
 0x2de   : > { %v2971_v41 = vsel %vm975_vm3, %v2858_v3, -inf  ;;  %3555 = vmatpush.bf16.msra.mxu2 %v8006_v39  ;;  %3696 = vmatpush.bf16.msrb.mxu0 %v8070_v2  ;;  %v7998_v33 = vor.u32 %v9980_v19, %v7997_v6  ;;  %v8018_v55 = vor.u32 %v9983_v59, %v8015_v32  ;;  %v9979_v15 = vld [vmem:[%s12904_s5 + $0x154] sm:$0xf]  ;;  %v7999_v30 = vld [vmem:[%s12904_s5 + $0x158] sm:$0xf0]  ;;  %v7910_v27 = vor.u32 %v9945_v48, %v7907_v1 }
 0x2df   : > { %v11828_v63 = vsel %vm10965_vm2, %v3143_v44, %v3147_v8  ;;  %v2972_v34 = vrot.slane %v2971_v41, 4  ;;  %v8053_v57 = vld [vmem:[%s12904_s5 + $0x1a0] sm:$0xf]  ;;  %v2978_v40 = vsel %vm975_vm3, %v2872_v56, -inf  ;;  %v2985_v16 = vsel %vm975_vm3, %v2873_v24, -inf }
 0x2e0   : > { %3186 = vst [vmem:[#allocation1 + $0x2] ss:$4 sm:$0xff] %v11828_v63  ;;  %v2992_v25 = vsel %vm975_vm3, %v2874_v53, -inf  ;;  %3396 = vmatpush.bf16.msrb.mxu3 %v7874_v42  ;;  %v2979_v11 = vrot.slane %v2978_v40, 4  ;;  %v2986_v36 = vrot.slane %v2985_v16, 4  ;;  %v7990_v12 = vor.u32 %v9978_v52, %v7989_v23 }
 0x2e1   : > { %3405 = vmatpush.bf16.msra.mxu1 %v7918_v31  ;;  %v2973_v38 = vmax.f32 %v2971_v41, %v2972_v34  ;;  %v2993_v37 = vrot.slane %v2992_v25, 4  ;;  %v9990_v13 = vld [vmem:[%s12904_s5 + $0x1a4] sm:$0xf0]  ;;  %v8010_v35 = vor.u32 %v9981_v29, %v8007_v43  ;;  %v8062_v49 = vor.u32 %v9992_v50, %v8061_v20  ;;  %v7981_v47 = vld [vmem:[%s12904_s5 + $0x130] sm:$0xf] }
 0x2e2   : > { %3556 = vmatpush.bf16.msra.mxu2 %v7998_v33  ;;  %v2980_v45 = vmax.f32 %v2978_v40, %v2979_v11  ;;  %v2987_v61 = vmax.f32 %v2985_v16, %v2986_v36  ;;  %v9976_v54 = vld [vmem:[%s12904_s5 + $0x134] sm:$0xf0]  ;;  %v7902_v19 = vor.u32 %v9943_v10, %v7899_v0  ;;  %v8002_v59 = vor.u32 %v9979_v15, %v7999_v30  ;;  %v9941_v8 = vld [vmem:[%s12904_s5 + $0x24] sm:$0xf]  ;;  %v7891_v22 = vld [vmem:[%s12904_s5 + $0x28] sm:$0xf0] }
 0x2e3   : > { %v2974_v58 = vrot.slane %v2973_v38, 2  ;;  %v2994_v6 = vmax.f32 %v2992_v25, %v2993_v37  ;;  %v3045_v46 = vld [vmem:[#allocation3 + $0x18] sm:$0x3f]  ;;  %3697 = vmatpush.bf16.msrb.mxu0 %v8062_v49  ;;  %v8054_v32 = vor.u32 %v9990_v13, %v8053_v57  ;;  %v8045_v44 = vld [vmem:[%s12904_s5 + $0x190] sm:$0xf]  ;;  %v7982_v31 = vor.u32 %v9976_v54, %v7981_v47 }
 0x2e4   : > { %3568 = vmatpush.bf16.msra.mxu3 %v8018_v55  ;;  %v11864_v3 = vpack.c.bf16 %v3045_v46, %v3045_v46  ;;  %v2981_v48 = vrot.slane %v2980_v45, 2  ;;  %v2988_v1 = vrot.slane %v2987_v61, 2  ;;  %v9988_v2 = vld [vmem:[%s12904_s5 + $0x194] sm:$0xf0]  ;;  %v9977_v23 = vld [vmem:[%s12904_s5 + $0x144] sm:$0xf]  ;;  %v7894_v50 = vor.u32 %v9941_v8, %v7891_v22 }
 0x2e5   : > { %3406 = vmatpush.bf16.msra.mxu1 %v7910_v27  ;;  %v2975_v39 = vmax.f32 %v2973_v38, %v2974_v58  ;;  %v2995_v42 = vrot.slane %v2994_v6, 2  ;;  %v7991_v52 = vld [vmem:[%s12904_s5 + $0x148] sm:$0xf0]  ;;  %v7973_v24 = vld [vmem:[%s12904_s5 + $0x120] sm:$0xf]  ;;  %v8046_v34 = vor.u32 %v9988_v2, %v8045_v44 }
 0x2e6   : > { %3557 = vmatpush.bf16.msra.mxu2 %v7990_v12  ;;  %v3077_v29 = vrot.slane %v11864_v3, 2  ;;  %v2982_v20 = vmax.f32 %v2980_v45, %v2981_v48  ;;  %v2989_v56 = vmax.f32 %v2987_v61, %v2988_v1  ;;  %v9974_v53 = vld [vmem:[%s12904_s5 + $0x124] sm:$0xf0]  ;;  %v9939_v33 = vld [vmem:[%s12904_s5 + $0x14] sm:$0xf]  ;;  %v7994_v30 = vor.u32 %v9977_v23, %v7991_v52 }
 0x2e7   : > { %v2976_v43 = vrot.slane %v2975_v39, 1  ;;  %v2996_v41 = vmax.f32 %v2994_v6, %v2995_v42  ;;  %3698 = vmatpush.bf16.msrb.mxu0 %v8054_v32  ;;  %v7883_v55 = vld [vmem:[%s12904_s5 + $0x18] sm:$0xf0]  ;;  %v7965_v57 = vld [vmem:[%s12904_s5 + $0x110] sm:$0xf]  ;;  %v7974_v36 = vor.u32 %v9974_v53, %v7973_v24 }
 0x2e8   : > { %3569 = vmatpush.bf16.msra.mxu3 %v8010_v35  ;;  %v11893_v10 = vsel %vm975_vm3, %v11864_v3, %v3077_v29  ;;  %v11897_v0 = vsel %vm12968_vm11, %v11864_v3, %v3077_v29  ;;  %v2983_v15 = vrot.slane %v2982_v20, 1  ;;  %v9972_v40 = vld [vmem:[%s12904_s5 + $0x114] sm:$0xf0]  ;;  %v9975_v16 = vld [vmem:[%s12904_s5 + $0x134] sm:$0xf]  ;;  %v2990_v35 = vrot.slane %v2989_v56, 1 }
 0x2e9   : > { %3407 = vmatpush.bf16.msra.mxu1 %v7902_v19  ;;  %v7983_v25 = vld [vmem:[%s12904_s5 + $0x138] sm:$0xf0]  ;;  %v3102_v27 = vrot.slane %v11897_v0, 2  ;;  %v3149_v38 = vshrl.u32 %v11893_v10, 16  ;;  %v3152_v11 = vshll.u32 %v11893_v10, 16  ;;  %v2977_v13 = vmax.f32 %v2975_v39, %v2976_v43 }
 0x2ea   : > { %3558 = vmatpush.bf16.msra.mxu2 %v7982_v31  ;;  %v8037_v37 = vld [vmem:[%s12904_s5 + $0x180] sm:$0xf]  ;;  %v2984_v12 = vmax.f32 %v2982_v20, %v2983_v15  ;;  %v2997_v49 = vrot.slane %v2996_v41, 1  ;;  %v9986_v58 = vld [vmem:[%s12904_s5 + $0x184] sm:$0xf0]  ;;  %v7886_v54 = vor.u32 %v9939_v33, %v7883_v55  ;;  %v2991_v19 = vmax.f32 %v2989_v56, %v2990_v35 }
 0x2eb   : > { %v8254_v45 = vld [vmem:[%s12904_s5 + $0x2f0] sm:$0xf]  ;;  %v3151_v61 = vrot.slane %v3149_v38, 6  ;;  %v3154_v6 = vrot.slane %v3152_v11, 7  ;;  %v3158_v47 = vshll.u32 %v3102_v27, 16  ;;  %3699 = vmatpush.bf16.msrb.mxu0 %v8046_v34  ;;  %v7986_v32 = vor.u32 %v9975_v16, %v7983_v25 }
 0x2ec   : > { %3570 = vmatpush.bf16.msra.mxu3 %v8002_v59  ;;  %v10032_v46 = vld [vmem:[%s12904_s5 + $0x2f4] sm:$0xf0]  ;;  %v3030_v59 = vsel %vm1508_vm6, %v2984_v12, %v2977_v13  ;;  %v9937_v8 = vld [vmem:[%s12904_s5 + $0x4] sm:$0xf]  ;;  %v7875_v22 = vld [vmem:[%s12904_s5 + $0x8] sm:$0xf0]  ;;  %v2998_v48 = vmax.f32 %v2996_v41, %v2997_v49  ;;  %v7966_v1 = vor.u32 %v9972_v40, %v7965_v57  ;;  %v8038_v44 = vor.u32 %v9986_v58, %v8037_v37 }
 0x2ed   : > { %3408 = vmatpush.bf16.msra.mxu1 %v7894_v50  ;;  %v3155_v39 = vor.u32 %v3154_v6, %v3151_v61  ;;  %v9973_v2 = vld [vmem:[%s12904_s5 + $0x124] sm:$0xf]  ;;  %v7975_v42 = vld [vmem:[%s12904_s5 + $0x128] sm:$0xf0]  ;;  %v8246_v31 = vld [vmem:[%s12904_s5 + $0x2e0] sm:$0xf]  ;;  %v3031_v23 = vsel %vm1510_vm8, %v2991_v19, %v3030_v59  ;;  %v8255_v52 = vor.u32 %v10032_v46, %v8254_v45  ;;  %v7878_v41 = vor.u32 %v9937_v8, %v7875_v22 }
 0x2ee   : > { %3559 = vmatpush.bf16.msra.mxu2 %v7974_v36  ;;  %v7957_v29 = vld [vmem:[%s12904_s5 + $0x100] sm:$0xf]  ;;  %v9970_v43 = vld [vmem:[%s12904_s5 + $0x104] sm:$0xf0]  ;;  %v3160_v24 = vrot.slane %v3158_v47, 7  ;;  %v3032_v53 = vsel %vm1512_vm1, %v2998_v48, %v3031_v23  ;;  %v7978_v50 = vor.u32 %v9973_v2, %v7975_v42  ;;  %vm12969_vm6 = vmmov %vm12967_vm9  ;;  %vm4498_vm1 = vcmask 1043456  }
 0x2ef   : > { %v10030_v20 = vld [vmem:[%s12904_s5 + $0x2e4] sm:$0xf0]  ;;  %v3156_v56 = vrot.slane %v3155_v39, 2  ;;  %3700 = vmatpush.bf16.msrb.mxu0 %v8038_v44  ;;  %3041 = vst [vmem:[#allocation3 + $0x21] sm:$0xf] %v3032_v53  ;;  %v7958_v15 = vor.u32 %v9970_v43, %v7957_v29  ;;  %v3434_v29 = vrot.slane %v3090_v18, 7  ;;  %vm12970_vm8 = vmmov %vm12969_vm6 }
 0x2f0   : > { %3571 = vmatpush.bf16.msra.mxu3 %v7994_v30  ;;  %v8247_v34 = vor.u32 %v10030_v20, %v8246_v31  ;;  %v9971_v33 = vld [vmem:[%s12904_s5 + $0x114] sm:$0xf]  ;;  %v7967_v30 = vld [vmem:[%s12904_s5 + $0x118] sm:$0xf0]  ;;  %v8238_v57 = vld [vmem:[%s12904_s5 + $0x2d0] sm:$0xf] }
 0x2f1   : > { %3409 = vmatpush.bf16.msra.mxu1 %v7886_v54  ;;  %v11960_v55 = vsel %vm10965_vm2, %v3156_v56, %v3160_v24  ;;  %v10028_v40 = vld [vmem:[%s12904_s5 + $0x2d4] sm:$0xf0]  ;;  %v9999_v16 = vld [vmem:[%s12904_s5 + $0x1f4] sm:$0xf]  ;;  %v8095_v25 = vld [vmem:[%s12904_s5 + $0x1f8] sm:$0xf0]  ;;  %v7970_v36 = vor.u32 %v9971_v33, %v7967_v30 }
 0x2f2   : > { %3560 = vmatpush.bf16.msra.mxu2 %v7966_v1  ;;  %3189 = vst [vmem:[#allocation1 + $0x3] ss:$4 sm:$0xff] %v11960_v55  ;;  %v8173_v38 = vld [vmem:[%s12904_s5 + $0x270] sm:$0xf]  ;;  %v10016_v11 = vld [vmem:[%s12904_s5 + $0x274] sm:$0xf0]  ;;  %v8239_v37 = vor.u32 %v10028_v40, %v8238_v57  ;;  %v8098_v58 = vor.u32 %v9999_v16, %v8095_v25  ;;  %vm12971_vm4 = vmmov %vm12969_vm6 }
 0x2f3   : > { %3996 = vmatpush.bf16.msra.mxu0 %v8255_v52  ;;  %v9969_v13 = vld [vmem:[%s12904_s5 + $0x104] sm:$0xf]  ;;  %v7959_v12 = vld [vmem:[%s12904_s5 + $0x108] sm:$0xf0]  ;;  %v8230_v35 = vld [vmem:[%s12904_s5 + $0x2c0] sm:$0xf]  ;;  %v8174_v45 = vor.u32 %v10016_v11, %v8173_v38 }
 0x2f4   : > { %3572 = vmatpush.bf16.msra.mxu3 %v7986_v32  ;;  %v10026_v49 = vld [vmem:[%s12904_s5 + $0x2c4] sm:$0xf0]  ;;  %v9997_v61 = vld [vmem:[%s12904_s5 + $0x1e4] sm:$0xf]  ;;  %v8087_v6 = vld [vmem:[%s12904_s5 + $0x1e8] sm:$0xf0]  ;;  %v7962_v46 = vor.u32 %v9969_v13, %v7959_v12 }
 0x2f5   : > { %3410 = vmatpush.bf16.msra.mxu1 %v7878_v41  ;;  %v8165_v47 = vld [vmem:[%s12904_s5 + $0x260] sm:$0xf]  ;;  %v10014_v54 = vld [vmem:[%s12904_s5 + $0x264] sm:$0xf0]  ;;  %v8231_v19 = vor.u32 %v10026_v49, %v8230_v35  ;;  %v8222_v59 = vld [vmem:[%s12904_s5 + $0x2b0] sm:$0xf]  ;;  %v8090_v48 = vor.u32 %v9997_v61, %v8087_v6 }
 0x2f6   : > { %3561 = vmatpush.bf16.msra.mxu2 %v7958_v15  ;;  %v10024_v8 = vld [vmem:[%s12904_s5 + $0x2b4] sm:$0xf0]  ;;  %v9995_v22 = vld [vmem:[%s12904_s5 + $0x1d4] sm:$0xf]  ;;  %v3046_v39 = vld [vmem:[#allocation3 + $0x20] sm:$0x3f]  ;;  %v8166_v1 = vor.u32 %v10014_v54, %v8165_v47 }
 0x2f7   : > { %3997 = vmatpush.bf16.msra.mxu0 %v8247_v34  ;;  %v8079_v44 = vld [vmem:[%s12904_s5 + $0x1d8] sm:$0xf0]  ;;  %v10012_v2 = vld [vmem:[%s12904_s5 + $0x254] sm:$0xf0]  ;;  %v8223_v42 = vor.u32 %v10024_v8, %v8222_v59  ;;  %v8214_v31 = vld [vmem:[%s12904_s5 + $0x2a0] sm:$0xf]  ;;  %v12039_v43 = vpack.c.bf16 %v3046_v39, %v3046_v39 }
 0x2f8   : > { %3573 = vmatpush.bf16.msra.mxu3 %v7978_v50  ;;  %v10022_v23 = vld [vmem:[%s12904_s5 + $0x2a4] sm:$0xf0]  ;;  %v7936_v52 = vrot.slane %v11626_v21, 9  ;;  %v8082_v20 = vor.u32 %v9995_v22, %v8079_v44  ;;  %v10015_v24 = vld [vmem:[%s12904_s5 + $0x274] sm:$0xf]  ;;  %v7937_v34 = vrot.slane %v11739_v26, 9  ;;  %vm12972_vm7 = vmmov %vm12971_vm4 }
 0x2f9   : > { %v3190_v32 = vld.sshfl [vmem:[#allocation1] sm:$0xff pattern:$0x73625140]  ;;  %v8175_v53 = vld [vmem:[%s12904_s5 + $0x278] sm:$0xf0]  ;;  %v8215_v50 = vor.u32 %v10022_v23, %v8214_v31  ;;  %v3438_v33 = vrot.slane %v3096_v28, 7 }
 0x2fa   : > { %3300 = vst [vmem:[#allocation1] ss:$4 sm:$0xff] %v10885_v51  ;;  %3280 = vmatmul.bf16.vlgmr.msrb.gmra.mxu1 %v3190_v32  ;;  %3294 = vmatmul.bf16.vlgmr.msrb.gmra.mxu2 %v3190_v32  ;;  %v8157_v51 = vld [vmem:[%s12904_s5 + $0x250] sm:$0xf]  ;;  %v9993_v21 = vld [vmem:[%s12904_s5 + $0x1c4] sm:$0xf]  ;;  %v8178_v16 = vor.u32 %v10015_v24, %v8175_v53  ;;  %v12092_v12 = vsel %vm10952_vm10, %v7936_v52, %v3434_v29 }
 0x2fb   : > { %3998 = vmatpush.bf16.msra.mxu0 %v8239_v37  ;;  %3302 = vst [vmem:[#allocation1 + $0x1] ss:$4 sm:$0xff] %v11619_v4  ;;  %3707 = vmatpush.bf16.msrb.mxu1 %v8098_v58  ;;  %v8158_v56 = vor.u32 %v10012_v2, %v8157_v51  ;;  %v8149_v18 = vld [vmem:[%s12904_s5 + $0x240] sm:$0xf]  ;;  %v10010_v41 = vld [vmem:[%s12904_s5 + $0x244] sm:$0xf0]  ;;  %v8074_v28 = vor.u32 %v9993_v21, %v8071_v7 }
 0x2fc   : > { %3574 = vmatpush.bf16.msra.mxu3 %v7970_v36  ;;  %3852 = vmatpush.bf16.msrb.mxu2 %v8174_v45  ;;  %3304 = vst [vmem:[#allocation1 + $0x2] ss:$4 sm:$0xff] %v11721_v14  ;;  %v8206_v15 = vld [vmem:[%s12904_s5 + $0x290] sm:$0xf]  ;;  %v10020_v30 = vld [vmem:[%s12904_s5 + $0x294] sm:$0xf0]  ;;  %v8150_v25 = vor.u32 %v10010_v41, %v8149_v18  ;;  %v12103_v49 = vsel %vm10952_vm10, %v7937_v34, %v3438_v33 }
 0x2fd   : > { %3306 = vst [vmem:[#allocation1 + $0x3] ss:$4 sm:$0xff] %v11864_v3  ;;  %v3442_v57 = vrot.slane %v3102_v27, 7  ;;  %v3726_v40 = vrot.slane %v12039_v43, 2  ;;  %v10013_v26 = vld [vmem:[%s12904_s5 + $0x264] sm:$0xf]  ;;  %v8207_v13 = vor.u32 %v10020_v30, %v8206_v15 }
 0x2fe   : > { %v8167_v62 = vld [vmem:[%s12904_s5 + $0x268] sm:$0xf0]  ;;  %v9991_v0 = vld [vmem:[%s12904_s5 + $0x1b4] sm:$0xf]  ;;  %v8063_v27 = vld [vmem:[%s12904_s5 + $0x1b8] sm:$0xf0] }
 0x2ff   : > { %3999 = vmatpush.bf16.msra.mxu0 %v8231_v19  ;;  %3708 = vmatpush.bf16.msrb.mxu1 %v8090_v48  ;;  %v8141_v38 = vld [vmem:[%s12904_s5 + $0x230] sm:$0xf]  ;;  %v7938_v36 = vrot.slane %v11893_v10, 9  ;;  %v10008_v37 = vld [vmem:[%s12904_s5 + $0x234] sm:$0xf0]  ;;  %v12108_v58 = vsel %vm975_vm3, %v12039_v43, %v3726_v40  ;;  %v8066_v47 = vor.u32 %v9991_v0, %v8063_v27  ;;  %v12147_v31 = vsel %vm12969_vm6, %v12039_v43, %v3726_v40 }
 0x300   : > { %3575 = vmatpush.bf16.msra.mxu3 %v7962_v46  ;;  %3853 = vmatpush.bf16.msrb.mxu2 %v8166_v1  ;;  %v8198_v35 = vld [vmem:[%s12904_s5 + $0x280] sm:$0xf]  ;;  %v10018_v10 = vld [vmem:[%s12904_s5 + $0x284] sm:$0xf0]  ;;  %v10011_v45 = vld [vmem:[%s12904_s5 + $0x254] sm:$0xf]  ;;  %v8142_v54 = vor.u32 %v10008_v37, %v8141_v38 }
 0x301   : > { %v8159_v61 = vld [vmem:[%s12904_s5 + $0x258] sm:$0xf0]  ;;  %v12118_v6 = vsel %vm10952_vm10, %v7938_v36, %v3442_v57  ;;  %v9989_v46 = vld [vmem:[%s12904_s5 + $0x1a4] sm:$0xf]  ;;  %v8055_v19 = vld [vmem:[%s12904_s5 + $0x1a8] sm:$0xf0]  ;;  %v8199_v8 = vor.u32 %v10018_v10, %v8198_v35 }
 0x302   : > { %v8133_v59 = vld [vmem:[%s12904_s5 + $0x220] sm:$0xf]  ;;  %v10006_v32 = vld [vmem:[%s12904_s5 + $0x224] sm:$0xf0]  ;;  %v3732_v22 = vshrl.u32 %v12108_v58, 16  ;;  %v3735_v39 = vshll.u32 %v12108_v58, 16  ;;  %v8162_v48 = vor.u32 %v10011_v45, %v8159_v61  ;;  %v8058_v1 = vor.u32 %v9989_v46, %v8055_v19 }
 0x303   : > { %4000 = vmatpush.bf16.msra.mxu0 %v8223_v42  ;;  %3709 = vmatpush.bf16.msrb.mxu1 %v8082_v20  ;;  %v8134_v44 = vor.u32 %v10006_v32, %v8133_v59  ;;  %v10009_v51 = vld [vmem:[%s12904_s5 + $0x244] sm:$0xf]  ;;  %v8151_v2 = vld [vmem:[%s12904_s5 + $0x248] sm:$0xf0]  ;;  %v9987_v42 = vld [vmem:[%s12904_s5 + $0x194] sm:$0xf] }
 0x304   : > { %3854 = vmatpush.bf16.msrb.mxu2 %v8158_v56  ;;  %v3307_v11 = vld.sshfl [vmem:[#allocation1] sm:$0xff pattern:$0x73625140]  ;;  %v8047_v23 = vld [vmem:[%s12904_s5 + $0x198] sm:$0xf0]  ;;  %v3734_v20 = vrot.slane %v3732_v22, 6  ;;  %v8154_v21 = vor.u32 %v10009_v51, %v8151_v2 }
 0x305   : > { %3462 = vst [vmem:[#allocation1] ss:$4 sm:$0xff] %v10958_v5  ;;  %3397 = vmatmul.bf16.vlgmr.msrb.gmra.mxu3 %v3307_v11  ;;  %v8170_v5 = vor.u32 %v10013_v26, %v8167_v62  ;;  %v8125_v52 = vld [vmem:[%s12904_s5 + $0x210] sm:$0xf]  ;;  %v10004_v29 = vld [vmem:[%s12904_s5 + $0x214] sm:$0xf0]  ;;  %v8050_v33 = vor.u32 %v9987_v42, %v8047_v23 }
 0x306   : > { %3465 = vst [vmem:[#allocation1 + $0x1] ss:$4 sm:$0xff] %v12092_v12  ;;  %3866 = vmatpush.bf16.msrb.mxu3 %v8178_v16  ;;  %v3737_v56 = vrot.slane %v3735_v39, 7  ;;  %v10007_v24 = vld [vmem:[%s12904_s5 + $0x234] sm:$0xf]  ;;  %v3731_v34 = vrot.slane %v12147_v31, 2  ;;  %v8126_v15 = vor.u32 %v10004_v29, %v8125_v52 }
 0x307   : > { %4001 = vmatpush.bf16.msra.mxu0 %v8215_v50  ;;  %3468 = vst [vmem:[#allocation1 + $0x2] ss:$4 sm:$0xff] %v12103_v49  ;;  %3710 = vmatpush.bf16.msrb.mxu1 %v8074_v28  ;;  %v8143_v53 = vld [vmem:[%s12904_s5 + $0x238] sm:$0xf0]  ;;  %v9985_v7 = vld [vmem:[%s12904_s5 + $0x184] sm:$0xf] }
 0x308   : > { %3855 = vmatpush.bf16.msrb.mxu2 %v8150_v25  ;;  %3471 = vst [vmem:[#allocation1 + $0x3] ss:$4 sm:$0xff] %v12118_v6  ;;  %v8039_v18 = vld [vmem:[%s12904_s5 + $0x188] sm:$0xf0]  ;;  %v8117_v41 = vld [vmem:[%s12904_s5 + $0x200] sm:$0xf]  ;;  %v3738_v62 = vor.u32 %v3737_v56, %v3734_v20  ;;  %v8146_v28 = vor.u32 %v10007_v24, %v8143_v53 }
 0x309   : > { %v10002_v30 = vld [vmem:[%s12904_s5 + $0x204] sm:$0xf0]  ;;  %v10031_v57 = vld [vmem:[%s12904_s5 + $0x2f4] sm:$0xf]  ;;  %v8256_v40 = vld [vmem:[%s12904_s5 + $0x2f8] sm:$0xf0]  ;;  %v8042_v25 = vor.u32 %v9985_v7, %v8039_v18 }
 0x30a   : > { %3867 = vmatpush.bf16.msrb.mxu3 %v8170_v5  ;;  %3411 = vmatmul.bf16.vlgmr.msra.gmra.mxu1 %v3307_v11  ;;  %v8334_v16 = vld [vmem:[%s12904_s5 + $0x370] sm:$0xf]  ;;  %v10048_v26 = vld [vmem:[%s12904_s5 + $0x374] sm:$0xf0]  ;;  %v8118_v0 = vor.u32 %v10002_v30, %v8117_v41  ;;  %v8135_v27 = vld [vmem:[%s12904_s5 + $0x228] sm:$0xf0]  ;;  %v8259_v36 = vor.u32 %v10031_v57, %v8256_v40 }
 0x30b   : > { %4002 = vmatpush.bf16.msra.mxu0 %v8207_v13  ;;  %3711 = vmatpush.bf16.msrb.mxu1 %v8066_v47  ;;  %v3741_v38 = vshll.u32 %v3731_v34, 16  ;;  %v8414_v11 = vld [vmem:[%s12904_s5 + $0x3f0] sm:$0xf]  ;;  %v8335_v37 = vor.u32 %v10048_v26, %v8334_v16  ;;  %v10064_v13 = vld [vmem:[%s12904_s5 + $0x3f4] sm:$0xf0]  ;;  %v3739_v5 = vrot.slane %v3738_v62, 2 }
 0x30c   : > { %3856 = vmatpush.bf16.msrb.mxu2 %v8142_v54  ;;  %v10029_v35 = vld [vmem:[%s12904_s5 + $0x2e4] sm:$0xf]  ;;  %v8248_v10 = vld [vmem:[%s12904_s5 + $0x2e8] sm:$0xf0]  ;;  %v8326_v61 = vld [vmem:[%s12904_s5 + $0x360] sm:$0xf]  ;;  %v8415_v59 = vor.u32 %v10064_v13, %v8414_v11 }
 0x30d   : > { %v10046_v47 = vld [vmem:[%s12904_s5 + $0x364] sm:$0xf0]  ;;  %v10003_v54 = vld [vmem:[%s12904_s5 + $0x214] sm:$0xf]  ;;  %v8127_v46 = vld [vmem:[%s12904_s5 + $0x218] sm:$0xf0]  ;;  %v8251_v22 = vor.u32 %v10029_v35, %v8248_v10 }
 0x30e   : > { %3868 = vmatpush.bf16.msrb.mxu3 %v8162_v48  ;;  %v3743_v19 = vrot.slane %v3741_v38, 7  ;;  %v8406_v32 = vld [vmem:[%s12904_s5 + $0x3e0] sm:$0xf]  ;;  %v8327_v39 = vor.u32 %v10046_v47, %v8326_v61  ;;  %v10027_v48 = vld [vmem:[%s12904_s5 + $0x2d4] sm:$0xf]  ;;  %v8130_v42 = vor.u32 %v10003_v54, %v8127_v46  ;;  %v8179_v54 = vrot.slane %v12108_v58, 9 }
 0x30f   : > { %4003 = vmatpush.bf16.msra.mxu0 %v8199_v8  ;;  %v3472_v50 = vld.sshfl [vmem:[#allocation1] sm:$0xff pattern:$0x73625140]  ;;  %3712 = vmatpush.bf16.msrb.mxu1 %v8058_v1  ;;  %v10062_v8 = vld [vmem:[%s12904_s5 + $0x3e4] sm:$0xf0]  ;;  %vm12973_vm11 = vcmask 1040384  }
 0x310   : > { %3857 = vmatpush.bf16.msrb.mxu2 %v8134_v44  ;;  %3607 = vst [vmem:[#allocation1 + $0x2] ss:$4 sm:$0xff] %v11864_v3  ;;  %v8240_v1 = vld [vmem:[%s12904_s5 + $0x2d8] sm:$0xf0]  ;;  %v8318_v44 = vld [vmem:[%s12904_s5 + $0x350] sm:$0xf]  ;;  %v12242_v2 = vsel %vm10965_vm2, %v3739_v5, %v3743_v19  ;;  %v8407_v24 = vor.u32 %v10062_v8, %v8406_v32  ;;  %vm12974_vm6 = vmmov %vm12973_vm11 }
 0x311   : > { %3562 = vmatmul.bf16.vlgmr.msra.gmra.mxu2 %v3472_v50  ;;  %3603 = vst [vmem:[#allocation1] ss:$4 sm:$0xff] %v11619_v4  ;;  %v10005_v4 = vld [vmem:[%s12904_s5 + $0x224] sm:$0xf]  ;;  %v10044_v23 = vld [vmem:[%s12904_s5 + $0x354] sm:$0xf0]  ;;  %v8243_v53 = vor.u32 %v10027_v48, %v8240_v1 }
 0x312   : > { %3605 = vst [vmem:[#allocation1 + $0x1] ss:$4 sm:$0xff] %v11721_v14  ;;  %3869 = vmatpush.bf16.msrb.mxu3 %v8154_v21  ;;  %v8138_v45 = vor.u32 %v10005_v4, %v8135_v27  ;;  %v8398_v52 = vld [vmem:[%s12904_s5 + $0x3d0] sm:$0xf]  ;;  %v10060_v29 = vld [vmem:[%s12904_s5 + $0x3d4] sm:$0xf0]  ;;  %v8319_v18 = vor.u32 %v10044_v23, %v8318_v44 }
 0x313   : > { %3610 = vst [vmem:[#allocation1 + $0x3] ss:$4 sm:$0xff] %v12039_v43  ;;  %3713 = vmatpush.bf16.msrb.mxu1 %v8050_v33  ;;  %v10001_v20 = vld [vmem:[%s12904_s5 + $0x204] sm:$0xf]  ;;  %v8119_v56 = vld [vmem:[%s12904_s5 + $0x208] sm:$0xf0]  ;;  %v8399_v40 = vor.u32 %v10060_v29, %v8398_v52 }
 0x314   : > { %3858 = vmatpush.bf16.msrb.mxu2 %v8126_v15  ;;  %v10047_v21 = vld [vmem:[%s12904_s5 + $0x374] sm:$0xf]  ;;  %v8336_v7 = vld [vmem:[%s12904_s5 + $0x378] sm:$0xf0]  ;;  %v8232_v41 = vld [vmem:[%s12904_s5 + $0x2c8] sm:$0xf0] }
 0x315   : > { %3576 = vmatmul.bf16.vlgmr.msra.gmra.mxu3 %v3472_v50  ;;  %v8122_v50 = vor.u32 %v10001_v20, %v8119_v56  ;;  %v8310_v33 = vld [vmem:[%s12904_s5 + $0x340] sm:$0xf]  ;;  %v10042_v15 = vld [vmem:[%s12904_s5 + $0x344] sm:$0xf0]  ;;  %v8339_v30 = vor.u32 %v10047_v21, %v8336_v7  ;;  %v10045_v26 = vld [vmem:[%s12904_s5 + $0x364] sm:$0xf] }
 0x316   : > { %3870 = vmatpush.bf16.msrb.mxu3 %v8146_v28  ;;  %v8390_v57 = vld [vmem:[%s12904_s5 + $0x3c0] sm:$0xf]  ;;  %v8328_v62 = vld [vmem:[%s12904_s5 + $0x368] sm:$0xf0]  ;;  %v3047_v28 = vld [vmem:[#allocation3 + $0x28] sm:$0x3f] }
 0x317   : > { %3714 = vmatpush.bf16.msrb.mxu1 %v8042_v25  ;;  %v10058_v25 = vld [vmem:[%s12904_s5 + $0x3c4] sm:$0xf0]  ;;  %v10023_v4 = vld [vmem:[%s12904_s5 + $0x2b4] sm:$0xf]  ;;  %v8224_v27 = vld [vmem:[%s12904_s5 + $0x2b8] sm:$0xf0]  ;;  %v12299_v38 = vpack.c.bf16 %v3047_v28, %v3047_v28  ;;  %v8331_v13 = vor.u32 %v10045_v26, %v8328_v62 }
 0x318   : > { %3859 = vmatpush.bf16.msrb.mxu2 %v8118_v0  ;;  %v8311_v0 = vor.u32 %v10042_v15, %v8310_v33  ;;  %v8302_v11 = vld [vmem:[%s12904_s5 + $0x330] sm:$0xf]  ;;  %v10056_v10 = vld [vmem:[%s12904_s5 + $0x3b4] sm:$0xf0]  ;;  %v8227_v61 = vor.u32 %v10023_v4, %v8224_v27  ;;  %v10043_v31 = vld [vmem:[%s12904_s5 + $0x354] sm:$0xf] }
 0x319   : > { %v8382_v35 = vld [vmem:[%s12904_s5 + $0x3b0] sm:$0xf]  ;;  %v4168_v5 = vrot.slane %v12299_v38, 2  ;;  %v10021_v47 = vld [vmem:[%s12904_s5 + $0x2a4] sm:$0xf] }
 0x31a   : > { %v3611_v51 = vld.sshfl [vmem:[#allocation1] sm:$0xff pattern:$0x73625140]  ;;  %3871 = vmatpush.bf16.msrb.mxu3 %v8138_v45  ;;  %v8391_v45 = vor.u32 %v10058_v25, %v8390_v57  ;;  %v10038_v8 = vld [vmem:[%s12904_s5 + $0x324] sm:$0xf0]  ;;  %v8383_v44 = vor.u32 %v10056_v10, %v8382_v35 }
 0x31b   : > { %4010 = vmatpush.bf16.msra.mxu1 %v8259_v36  ;;  %3769 = vst [vmem:[#allocation1 + $0x3] ss:$4 sm:$0xff] %v12242_v2  ;;  %3701 = vmatmul.bf16.vlgmr.msrb.gmra.mxu0 %v3611_v51  ;;  %v10040_v36 = vld [vmem:[%s12904_s5 + $0x334] sm:$0xf0]  ;;  %v8294_v32 = vld [vmem:[%s12904_s5 + $0x320] sm:$0xf]  ;;  %v12338_v58 = vsel %vm975_vm3, %v12299_v38, %v4168_v5 }
 0x31c   : > { %4135 = vmatpush.bf16.msra.mxu2 %v8335_v37  ;;  %3715 = vmatmul.bf16.vlgmr.msrb.gmra.mxu1 %v3611_v51  ;;  %3762 = vst [vmem:[#allocation1] ss:$4 sm:$0xff] %v11691_v60  ;;  %v10025_v60 = vld [vmem:[%s12904_s5 + $0x2c4] sm:$0xf]  ;;  %v3887_v37 = vrot.slane %v3731_v34, 7  ;;  %v8303_v19 = vor.u32 %v10040_v36, %v8302_v11  ;;  %v8295_v52 = vor.u32 %v10038_v8, %v8294_v32  ;;  %v4174_v20 = vshrl.u32 %v12338_v58, 16 }
 0x31d   : > { %4294 = vmatpush.bf16.msrb.mxu0 %v8415_v59  ;;  %3764 = vst [vmem:[#allocation1 + $0x1] ss:$4 sm:$0xff] %v11828_v63  ;;  %v8235_v16 = vor.u32 %v10025_v60, %v8232_v41  ;;  %v8320_v34 = vld [vmem:[%s12904_s5 + $0x358] sm:$0xf0]  ;;  %v8216_v59 = vld [vmem:[%s12904_s5 + $0x2a8] sm:$0xf0] }
 0x31e   : > { %3766 = vst [vmem:[#allocation1 + $0x2] ss:$4 sm:$0xff] %v11960_v55  ;;  %3872 = vmatpush.bf16.msrb.mxu3 %v8130_v42  ;;  %v10041_v48 = vld [vmem:[%s12904_s5 + $0x344] sm:$0xf]  ;;  %v12352_v1 = vsel %vm10952_vm10, %v8179_v54, %v3887_v37  ;;  %v8219_v51 = vor.u32 %v10021_v47, %v8216_v59  ;;  %v8312_v42 = vld [vmem:[%s12904_s5 + $0x348] sm:$0xf0] }
 0x31f   : > { %4011 = vmatpush.bf16.msra.mxu1 %v8251_v22  ;;  %v8323_v22 = vor.u32 %v10043_v31, %v8320_v34  ;;  %v10019_v23 = vld [vmem:[%s12904_s5 + $0x294] sm:$0xf]  ;;  %v8208_v29 = vld [vmem:[%s12904_s5 + $0x298] sm:$0xf0]  ;;  %v8286_v56 = vld [vmem:[%s12904_s5 + $0x310] sm:$0xf]  ;;  %v8315_v21 = vor.u32 %v10041_v48, %v8312_v42 }
 0x320   : > { %4136 = vmatpush.bf16.msra.mxu2 %v8327_v39  ;;  %v10054_v39 = vld [vmem:[%s12904_s5 + $0x3a4] sm:$0xf0]  ;;  %v8366_v7 = vld [vmem:[%s12904_s5 + $0x390] sm:$0xf]  ;;  %v10039_v60 = vld [vmem:[%s12904_s5 + $0x334] sm:$0xf] }
 0x321   : > { %4295 = vmatpush.bf16.msrb.mxu0 %v8407_v24  ;;  %v10036_v24 = vld [vmem:[%s12904_s5 + $0x314] sm:$0xf0]  ;;  %v8304_v33 = vld [vmem:[%s12904_s5 + $0x338] sm:$0xf0]  ;;  %v4177_v15 = vshll.u32 %v12338_v58, 16 }
 0x322   : > { %3873 = vmatpush.bf16.msrb.mxu3 %v8122_v50  ;;  %v8211_v50 = vor.u32 %v10019_v23, %v8208_v29  ;;  %v8287_v57 = vor.u32 %v10036_v24, %v8286_v56  ;;  %v8200_v26 = vld [vmem:[%s12904_s5 + $0x288] sm:$0xf0]  ;;  %v8278_v62 = vld [vmem:[%s12904_s5 + $0x300] sm:$0xf]  ;;  %v10034_v28 = vld [vmem:[%s12904_s5 + $0x304] sm:$0xf0]  ;;  %v8307_v4 = vor.u32 %v10039_v60, %v8304_v33 }
 0x323   : > { %4012 = vmatpush.bf16.msra.mxu1 %v8243_v53  ;;  %v12374_v53 = vsel %vm12970_vm8, %v12299_v38, %v4168_v5  ;;  %v10063_v25 = vld [vmem:[%s12904_s5 + $0x3f4] sm:$0xf]  ;;  %v8358_v27 = vld [vmem:[%s12904_s5 + $0x380] sm:$0xf]  ;;  %v10037_v11 = vld [vmem:[%s12904_s5 + $0x324] sm:$0xf]  ;;  %v8279_v34 = vor.u32 %v10034_v28, %v8278_v62 }
 0x324   : > { %4137 = vmatpush.bf16.msra.mxu2 %v8319_v18  ;;  %v10052_v18 = vld [vmem:[%s12904_s5 + $0x394] sm:$0xf0]  ;;  %v8495_v36 = vld [vmem:[%s12904_s5 + $0x470] sm:$0xf]  ;;  %v4179_v10 = vrot.slane %v4177_v15, 7 }
 0x325   : > { %4296 = vmatpush.bf16.msrb.mxu0 %v8399_v40  ;;  %v3770_v46 = vld.sshfl [vmem:[#allocation1] sm:$0xff pattern:$0x73625140]  ;;  %v4173_v40 = vrot.slane %v12374_v53, 2  ;;  %v10080_v37 = vld [vmem:[%s12904_s5 + $0x474] sm:$0xf0]  ;;  %v8367_v35 = vor.u32 %v10052_v18, %v8366_v7 }
 0x326   : > { %4149 = vmatpush.bf16.msra.mxu3 %v8339_v30  ;;  %3860 = vmatmul.bf16.vlgmr.msrb.gmra.mxu2 %v3770_v46  ;;  %3906 = vst [vmem:[#allocation1] ss:$4 sm:$0xff] %v12092_v12  ;;  %v8374_v12 = vld [vmem:[%s12904_s5 + $0x3a0] sm:$0xf]  ;;  %v10017_v30 = vld [vmem:[%s12904_s5 + $0x284] sm:$0xf]  ;;  %v8496_v54 = vor.u32 %v10080_v37, %v8495_v36 }
 0x327   : > { %4013 = vmatpush.bf16.msra.mxu1 %v8235_v16  ;;  %3874 = vmatmul.bf16.vlgmr.msrb.gmra.mxu3 %v3770_v46  ;;  %3908 = vst [vmem:[#allocation1 + $0x1] ss:$4 sm:$0xff] %v12103_v49  ;;  %v8375_v41 = vor.u32 %v10054_v39, %v8374_v12  ;;  %v4176_v16 = vrot.slane %v4174_v20, 6  ;;  %v8203_v5 = vor.u32 %v10017_v30, %v8200_v26  ;;  %v4183_v31 = vshll.u32 %v4173_v40, 16  ;;  %v10061_v46 = vld [vmem:[%s12904_s5 + $0x3e4] sm:$0xf] }
 0x328   : > { %4138 = vmatpush.bf16.msra.mxu2 %v8311_v0  ;;  %3910 = vst [vmem:[#allocation1 + $0x2] ss:$4 sm:$0xff] %v12118_v6  ;;  %v8416_v0 = vld [vmem:[%s12904_s5 + $0x3f8] sm:$0xf0]  ;;  %v8487_v59 = vld [vmem:[%s12904_s5 + $0x460] sm:$0xf] }
 0x329   : > { %4297 = vmatpush.bf16.msrb.mxu0 %v8391_v45  ;;  %3913 = vst [vmem:[#allocation1 + $0x3] ss:$4 sm:$0xff] %v12352_v1  ;;  %v8296_v45 = vld [vmem:[%s12904_s5 + $0x328] sm:$0xf0]  ;;  %v8419_v47 = vor.u32 %v10063_v25, %v8416_v0  ;;  %v4180_v8 = vor.u32 %v4179_v10, %v4176_v16  ;;  %v10059_v48 = vld [vmem:[%s12904_s5 + $0x3d4] sm:$0xf] }
 0x32a   : > { %4150 = vmatpush.bf16.msra.mxu3 %v8331_v13  ;;  %v10076_v42 = vld [vmem:[%s12904_s5 + $0x454] sm:$0xf0]  ;;  %v10033_v29 = vld [vmem:[%s12904_s5 + $0x304] sm:$0xf]  ;;  %v8280_v20 = vld [vmem:[%s12904_s5 + $0x308] sm:$0xf0] }
 0x32b   : > { %4014 = vmatpush.bf16.msra.mxu1 %v8227_v61  ;;  %v10050_v61 = vld [vmem:[%s12904_s5 + $0x384] sm:$0xf0]  ;;  %v4181_v23 = vrot.slane %v4180_v8, 2  ;;  %v10079_v24 = vld [vmem:[%s12904_s5 + $0x474] sm:$0xf]  ;;  %v8283_v33 = vor.u32 %v10033_v29, %v8280_v20  ;;  %v8420_v10 = vrot.slane %v12338_v58, 9 }
 0x32c   : > { %4139 = vmatpush.bf16.msra.mxu2 %v8303_v19  ;;  %v8299_v19 = vor.u32 %v10037_v11, %v8296_v45  ;;  %v8359_v32 = vor.u32 %v10050_v61, %v8358_v27  ;;  %v10057_v18 = vld [vmem:[%s12904_s5 + $0x3c4] sm:$0xf]  ;;  %v8392_v60 = vld [vmem:[%s12904_s5 + $0x3c8] sm:$0xf0]  ;;  %v10074_v15 = vld [vmem:[%s12904_s5 + $0x444] sm:$0xf0] }
 0x32d   : > { %4298 = vmatpush.bf16.msrb.mxu0 %v8383_v44  ;;  %v8395_v16 = vor.u32 %v10057_v18, %v8392_v60  ;;  %v10077_v26 = vld [vmem:[%s12904_s5 + $0x464] sm:$0xf]  ;;  %v8489_v62 = vld [vmem:[%s12904_s5 + $0x468] sm:$0xf0]  ;;  %v8463_v28 = vld [vmem:[%s12904_s5 + $0x430] sm:$0xf] }
 0x32e   : > { %4151 = vmatpush.bf16.msra.mxu3 %v8323_v22  ;;  %v8288_v22 = vld [vmem:[%s12904_s5 + $0x318] sm:$0xf0]  ;;  %v8492_v25 = vor.u32 %v10077_v26, %v8489_v62  ;;  %v10053_v36 = vld [vmem:[%s12904_s5 + $0x3a4] sm:$0xf]  ;;  %v8376_v37 = vld [vmem:[%s12904_s5 + $0x3a8] sm:$0xf0] }
 0x32f   : > { %4015 = vmatpush.bf16.msra.mxu1 %v8219_v51  ;;  %v8479_v51 = vld [vmem:[%s12904_s5 + $0x450] sm:$0xf]  ;;  %v8481_v27 = vld [vmem:[%s12904_s5 + $0x458] sm:$0xf0]  ;;  %v8379_v61 = vor.u32 %v10053_v36, %v8376_v37  ;;  %v10066_v8 = vld [vmem:[%s12904_s5 + $0x404] sm:$0xf0] }
 0x330   : > { %4140 = vmatpush.bf16.msra.mxu2 %v8295_v52  ;;  %v3914_v13 = vld.sshfl [vmem:[#allocation1] sm:$0xff pattern:$0x73625140]  ;;  %v4185_v52 = vrot.slane %v4183_v31, 7  ;;  %v8480_v7 = vor.u32 %v10076_v42, %v8479_v51  ;;  %v8449_v51 = vld [vmem:[%s12904_s5 + $0x418] sm:$0xf0] }
 0x331   : > { %4299 = vmatpush.bf16.msrb.mxu0 %v8375_v41  ;;  %4045 = vst [vmem:[#allocation1] ss:$4 sm:$0xff] %v11721_v14  ;;  %v8408_v14 = vld [vmem:[%s12904_s5 + $0x3e8] sm:$0xf0]  ;;  %v8471_v41 = vld [vmem:[%s12904_s5 + $0x440] sm:$0xf] }
 0x332   : > { %4152 = vmatpush.bf16.msra.mxu3 %v8315_v21  ;;  %4004 = vmatmul.bf16.vlgmr.msra.gmra.mxu0 %v3914_v13  ;;  %4047 = vst [vmem:[#allocation1 + $0x1] ss:$4 sm:$0xff] %v11864_v3  ;;  %v10078_v3 = vld [vmem:[%s12904_s5 + $0x464] sm:$0xf0]  ;;  %v8411_v12 = vor.u32 %v10061_v46, %v8408_v14  ;;  %v8497_v21 = vld [vmem:[%s12904_s5 + $0x478] sm:$0xf0]  ;;  %v4186_v30 = vsel %vm10965_vm2, %v4181_v23, %v4185_v52 }
 0x333   : > { %4016 = vmatpush.bf16.msra.mxu1 %v8211_v50  ;;  %4049 = vst [vmem:[#allocation1 + $0x2] ss:$4 sm:$0xff] %v12039_v43  ;;  %v10035_v43 = vld [vmem:[%s12904_s5 + $0x314] sm:$0xf]  ;;  %v8488_v39 = vor.u32 %v10078_v3, %v8487_v59  ;;  %v8472_v17 = vor.u32 %v10074_v15, %v8471_v41  ;;  %v10073_v31 = vld [vmem:[%s12904_s5 + $0x444] sm:$0xf] }
 0x334   : > { %4141 = vmatpush.bf16.msra.mxu2 %v8287_v57  ;;  %4052 = vst [vmem:[#allocation1 + $0x3] ss:$4 sm:$0xff] %v12299_v38  ;;  %v8400_v38 = vld [vmem:[%s12904_s5 + $0x3d8] sm:$0xf0]  ;;  %v8291_v44 = vor.u32 %v10035_v43, %v8288_v22  ;;  %v8500_v57 = vor.u32 %v10079_v24, %v8497_v21  ;;  %v10068_v46 = vld [vmem:[%s12904_s5 + $0x414] sm:$0xf0] }
 0x335   : > { %4300 = vmatpush.bf16.msrb.mxu0 %v8367_v35  ;;  %v8403_v56 = vor.u32 %v10059_v48, %v8400_v38  ;;  %v10070_v35 = vld [vmem:[%s12904_s5 + $0x424] sm:$0xf0]  ;;  %v8465_v3 = vld [vmem:[%s12904_s5 + $0x438] sm:$0xf0]  ;;  %v10065_v52 = vld [vmem:[%s12904_s5 + $0x404] sm:$0xf] }
 0x336   : > { %4153 = vmatpush.bf16.msra.mxu3 %v8307_v4  ;;  %v10075_v4 = vld [vmem:[%s12904_s5 + $0x454] sm:$0xf]  ;;  %v8441_v29 = vld [vmem:[%s12904_s5 + $0x408] sm:$0xf0]  ;;  %v10175_v26 = vld [vmem:[#allocation7 + $0x2ec] sm:$0xf0] }
 0x337   : > { %4017 = vmatpush.bf16.msra.mxu1 %v8203_v5  ;;  %v4329_v5 = vrot.slane %v4173_v40, 7  ;;  %v8484_v45 = vor.u32 %v10075_v4, %v8481_v27  ;;  %v8368_v40 = vld [vmem:[%s12904_s5 + $0x398] sm:$0xf0]  ;;  %v8444_v20 = vor.u32 %v10065_v52, %v8441_v29  ;;  %v8743_v62 = vld [vmem:[#allocation7 + $0x3e0] sm:$0xf] }
 0x338   : > { %4142 = vmatpush.bf16.msra.mxu2 %v8279_v34  ;;  %v8473_v34 = vld [vmem:[%s12904_s5 + $0x448] sm:$0xf0]  ;;  %v10205_v27 = vld [vmem:[#allocation7 + $0x3e4] sm:$0xf]  ;;  %v8599_v36 = vld [vmem:[#allocation7 + $0x2c0] sm:$0xf] }
 0x339   : > { %4301 = vmatpush.bf16.msrb.mxu0 %v8359_v32  ;;  %v4330_v14 = vsel %vm10952_vm10, %v8420_v10, %v4329_v5  ;;  %v10203_v10 = vld [vmem:[#allocation7 + $0x3cc] sm:$0xf0]  ;;  %v10161_v29 = vld [vmem:[#allocation7 + $0x284] sm:$0xf] }
 0x33a   : > { %4154 = vmatpush.bf16.msra.mxu3 %v8299_v19  ;;  %4018 = vmatmul.bf16.vlgmr.msra.gmra.mxu1 %v3914_v13  ;;  %v8455_v13 = vld [vmem:[%s12904_s5 + $0x420] sm:$0xf]  ;;  %v8476_v19 = vor.u32 %v10073_v31, %v8473_v34  ;;  %v8601_v31 = vld [vmem:[#allocation7 + $0x2d0] sm:$0xf0]  ;;  %v10201_v34 = vld [vmem:[#allocation7 + $0x3c4] sm:$0xf] }
 0x33b   : > { %4308 = vmatpush.bf16.msrb.mxu1 %v8419_v47  ;;  %v4053_v50 = vld.sshfl [vmem:[#allocation1] sm:$0xff pattern:$0x73625140]  ;;  %v10051_v47 = vld [vmem:[%s12904_s5 + $0x394] sm:$0xf]  ;;  %v8456_v53 = vor.u32 %v10070_v35, %v8455_v13 }
 0x33c   : > { %4438 = vmatpush.bf16.msrb.mxu2 %v8496_v54  ;;  %4204 = vst [vmem:[#allocation1] ss:$4 sm:$0xff] %v11828_v63  ;;  %v10055_v63 = vld [vmem:[%s12904_s5 + $0x3b4] sm:$0xf]  ;;  %v8447_v54 = vld [vmem:[%s12904_s5 + $0x410] sm:$0xf]  ;;  %v8371_v59 = vor.u32 %v10051_v47, %v8368_v40 }
 0x33d   : > { %4143 = vmatmul.bf16.vlgmr.msra.gmra.mxu2 %v4053_v50  ;;  %4206 = vst [vmem:[#allocation1 + $0x1] ss:$4 sm:$0xff] %v11960_v55  ;;  %v8384_v55 = vld [vmem:[%s12904_s5 + $0x3b8] sm:$0xf0]  ;;  %v8448_v32 = vor.u32 %v10068_v46, %v8447_v54  ;;  %v10171_v13 = vld [vmem:[#allocation7 + $0x2cc] sm:$0xf0] }
 0x33e   : > { %4155 = vmatpush.bf16.msra.mxu3 %v8291_v44  ;;  %4208 = vst [vmem:[#allocation1 + $0x2] ss:$4 sm:$0xff] %v12242_v2  ;;  %v10072_v2 = vld [vmem:[%s12904_s5 + $0x434] sm:$0xf0]  ;;  %v8387_v0 = vor.u32 %v10055_v63, %v8384_v55  ;;  %v10067_v44 = vld [vmem:[%s12904_s5 + $0x414] sm:$0xf]  ;;  %v8600_v5 = vor.u32 %v10171_v13, %v8599_v36 }
 0x33f   : > { %4309 = vmatpush.bf16.msrb.mxu1 %v8411_v12  ;;  %4211 = vst [vmem:[#allocation1 + $0x3] ss:$4 sm:$0xff] %v4186_v30  ;;  %v8464_v11 = vor.u32 %v10072_v2, %v8463_v28  ;;  %v10069_v12 = vld [vmem:[%s12904_s5 + $0x424] sm:$0xf]  ;;  %v8452_v23 = vor.u32 %v10067_v44, %v8449_v51  ;;  %v10207_v63 = vld [vmem:[#allocation7 + $0x3ec] sm:$0xf0] }
 0x340   : > { %4439 = vmatpush.bf16.msrb.mxu2 %v8488_v39  ;;  %v8457_v39 = vld [vmem:[%s12904_s5 + $0x428] sm:$0xf0]  ;;  %v10173_v55 = vld [vmem:[#allocation7 + $0x2e4] sm:$0xf]  ;;  %v8727_v35 = vld [vmem:[#allocation7 + $0x3c0] sm:$0xf] }
 0x341   : > { %v8460_v38 = vor.u32 %v10069_v12, %v8457_v39  ;;  %v8617_v28 = vld [vmem:[#allocation7 + $0x2f0] sm:$0xf0]  ;;  %v8567_v12 = vld [vmem:[#allocation7 + $0x280] sm:$0xf]  ;;  %v10195_v51 = vld [vmem:[#allocation7 + $0x38c] sm:$0xf0] }
 0x342   : > { %4156 = vmatpush.bf16.msra.mxu3 %v8283_v33  ;;  %v8620_v4 = vor.u32 %v10173_v55, %v8617_v28  ;;  %v8695_v44 = vld [vmem:[#allocation7 + $0x380] sm:$0xf] }
 0x343   : > { %4310 = vmatpush.bf16.msrb.mxu1 %v8403_v56  ;;  %v8696_v52 = vor.u32 %v10195_v51, %v8695_v44 }
 0x344   : > { %4440 = vmatpush.bf16.msrb.mxu2 %v8480_v7 }
 0x345   : > { %4157 = vmatmul.bf16.vlgmr.msra.gmra.mxu3 %v4053_v50 }
 0x346   : > { %4452 = vmatpush.bf16.msrb.mxu3 %v8500_v57  ;;  %v4212_v58 = vld.sshfl [vmem:[#allocation1] sm:$0xff pattern:$0x73625140] }
 0x347   : > { %4311 = vmatpush.bf16.msrb.mxu1 %v8395_v16  ;;  %4302 = vmatmul.bf16.vlgmr.msrb.gmra.mxu0 %v4212_v58  ;;  %4348 = vst [vmem:[#allocation1] ss:$4 sm:$0xff] %v12103_v49  ;;  %v10071_v49 = vld [vmem:[%s12904_s5 + $0x434] sm:$0xf]  ;;  %v8615_v16 = vld [vmem:[#allocation7 + $0x2e0] sm:$0xf] }
 0x348   : > { %4441 = vmatpush.bf16.msrb.mxu2 %v8472_v17  ;;  %4350 = vst [vmem:[#allocation1 + $0x1] ss:$4 sm:$0xff] %v12118_v6  ;;  %v8360_v6 = vld [vmem:[%s12904_s5 + $0x388] sm:$0xf0]  ;;  %v8468_v43 = vor.u32 %v10071_v49, %v8465_v3  ;;  %v8616_v17 = vor.u32 %v10175_v26, %v8615_v16  ;;  %v8711_v49 = vld [vmem:[#allocation7 + $0x3a0] sm:$0xf] }
 0x349   : > { %4352 = vst [vmem:[#allocation1 + $0x2] ss:$4 sm:$0xff] %v12352_v1  ;;  %v8439_v1 = vld [vmem:[%s12904_s5 + $0x400] sm:$0xf]  ;;  %v8363_v22 = vor.u32 %v10049_v9, %v8360_v6  ;;  %v10165_v9 = vld [vmem:[#allocation7 + $0x2a4] sm:$0xf] }
 0x34a   : > { %4453 = vmatpush.bf16.msrb.mxu3 %v8492_v25  ;;  %4355 = vst [vmem:[#allocation1 + $0x3] ss:$4 sm:$0xff] %v4330_v14  ;;  %v8440_v48 = vor.u32 %v10066_v8, %v8439_v1  ;;  %5056 = vmatpush.bf16.msra.mxu0 %v8616_v17  ;;  %v8585_v6 = vld [vmem:[#allocation7 + $0x2b0] sm:$0xf0]  ;;  %v10193_v16 = vld [vmem:[#allocation7 + $0x384] sm:$0xf] }
 0x34b   : > { %4312 = vmatpush.bf16.msrb.mxu1 %v8387_v0  ;;  %v8744_v0 = vor.u32 %v10207_v63, %v8743_v62  ;;  %v8588_v8 = vor.u32 %v10165_v9, %v8585_v6  ;;  %v8697_v62 = vld [vmem:[#allocation7 + $0x390] sm:$0xf0]  ;;  %v10155_v9 = vld [vmem:[#allocation7 + $0x24c] sm:$0xf0] }
 0x34c   : > { %4442 = vmatpush.bf16.msrb.mxu2 %v8464_v11  ;;  %v8745_v11 = vld [vmem:[#allocation7 + $0x3f0] sm:$0xf0]  ;;  %v8700_v17 = vor.u32 %v10193_v16, %v8697_v62  ;;  %v10187_v6 = vld [vmem:[#allocation7 + $0x34c] sm:$0xf0] }
 0x34d   : > { %v8748_v37 = vor.u32 %v10205_v27, %v8745_v11 }
 0x34e   : > { %4454 = vmatpush.bf16.msrb.mxu3 %v8484_v45  ;;  %v8728_v45 = vor.u32 %v10203_v10, %v8727_v35  ;;  %5057 = vmatpush.bf16.msra.mxu0 %v8600_v5 }
 0x34f   : > { %4313 = vmatpush.bf16.msrb.mxu1 %v8379_v61  ;;  %v10169_v61 = vld [vmem:[#allocation7 + $0x2c4] sm:$0xf] }
 0x350   : > { %4443 = vmatpush.bf16.msrb.mxu2 %v8456_v53  ;;  %v8604_v47 = vor.u32 %v10169_v61, %v8601_v31  ;;  %v10159_v61 = vld [vmem:[#allocation7 + $0x26c] sm:$0xf0] }
 0x351   : > { %v4356_v42 = vld.sshfl [vmem:[#allocation1] sm:$0xff pattern:$0x73625140] }
 0x352   : > { %4455 = vmatpush.bf16.msrb.mxu3 %v8476_v19  ;;  %v8583_v19 = vld [vmem:[#allocation7 + $0x2a0] sm:$0xf] }
 0x353   : > { %4314 = vmatpush.bf16.msrb.mxu1 %v8371_v59  ;;  %v10167_v59 = vld [vmem:[#allocation7 + $0x2ac] sm:$0xf0] }
 0x354   : > { %4444 = vmatpush.bf16.msrb.mxu2 %v8448_v32  ;;  %v8584_v3 = vor.u32 %v10167_v59, %v8583_v19  ;;  %v10199_v32 = vld [vmem:[#allocation7 + $0x3ac] sm:$0xf0]  ;;  %v10189_v19 = vld [vmem:[#allocation7 + $0x364] sm:$0xf]  ;;  %v8681_v59 = vld [vmem:[#allocation7 + $0x370] sm:$0xf0] }
 0x355   : > { %v8712_v1 = vor.u32 %v10199_v32, %v8711_v49  ;;  %v8535_v49 = vld [vmem:[#allocation7 + $0x240] sm:$0xf]  ;;  %v8684_v32 = vor.u32 %v10189_v19, %v8681_v59 }
 0x356   : > { %4456 = vmatpush.bf16.msrb.mxu3 %v8468_v43  ;;  %v10197_v43 = vld [vmem:[#allocation7 + $0x3a4] sm:$0xf]  ;;  %5058 = vmatpush.bf16.msra.mxu0 %v8584_v3 }
 0x357   : > { %4315 = vmatpush.bf16.msrb.mxu1 %v8363_v22  ;;  %v8713_v22 = vld [vmem:[#allocation7 + $0x3b0] sm:$0xf0] }
 0x358   : > { %4445 = vmatpush.bf16.msrb.mxu2 %v8440_v48  ;;  %v8716_v48 = vor.u32 %v10197_v43, %v8713_v22  ;;  %v10153_v22 = vld [vmem:[#allocation7 + $0x244] sm:$0xf] }
 0x35a   : > { %4457 = vmatpush.bf16.msrb.mxu3 %v8460_v38  ;;  %4316 = vmatmul.bf16.vlgmr.msrb.gmra.mxu1 %v4212_v58  ;;  %v8729_v58 = vld [vmem:[#allocation7 + $0x3d0] sm:$0xf0]  ;;  %v10163_v38 = vld [vmem:[#allocation7 + $0x28c] sm:$0xf0] }
 0x35b   : > { %4446 = vmatmul.bf16.vlgmr.msrb.gmra.mxu2 %v4356_v42  ;;  %5069 = vmatpush.bf16.msra.mxu1 %v8744_v0  ;;  %v8732_v40 = vor.u32 %v10201_v34, %v8729_v58  ;;  %v10157_v58 = vld [vmem:[#allocation7 + $0x264] sm:$0xf] }
 0x35c   : > { %5082 = vmatpush.bf16.msra.mxu2 %v8620_v4 }
 0x35e   : > { %4458 = vmatpush.bf16.msrb.mxu3 %v8452_v23  ;;  %v8568_v23 = vor.u32 %v10163_v38, %v8567_v12  ;;  %v8537_v12 = vld [vmem:[#allocation7 + $0x250] sm:$0xf0] }
 0x35f   : > { %5070 = vmatpush.bf16.msra.mxu1 %v8728_v45  ;;  %v8551_v45 = vld [vmem:[#allocation7 + $0x260] sm:$0xf]  ;;  %v8540_v44 = vor.u32 %v10153_v22, %v8537_v12  ;;  %v8607_v22 = vld [vmem:[#allocation7 + $0x2c8] sm:$0xf] }
 0x360   : > { %5083 = vmatpush.bf16.msra.mxu2 %v8604_v47  ;;  %5059 = vmatpush.bf16.msra.mxu0 %v8568_v23  ;;  %v8552_v34 = vor.u32 %v10159_v61, %v8551_v45  ;;  %v10191_v47 = vld [vmem:[#allocation7 + $0x36c] sm:$0xf0]  ;;  %v10145_v61 = vld [vmem:[#allocation7 + $0x204] sm:$0xf] }
 0x361   : > { %v10179_v45 = vld [vmem:[#allocation7 + $0x30c] sm:$0xf0] }
 0x362   : > { %4459 = vmatpush.bf16.msrb.mxu3 %v8444_v20  ;;  %v8569_v20 = vld [vmem:[#allocation7 + $0x290] sm:$0xf0] }
 0x363   : > { %5071 = vmatpush.bf16.msra.mxu1 %v8712_v1  ;;  %v8572_v26 = vor.u32 %v10161_v29, %v8569_v20  ;;  %v10151_v29 = vld [vmem:[#allocation7 + $0x22c] sm:$0xf0]  ;;  %v8647_v20 = vld [vmem:[#allocation7 + $0x320] sm:$0xf] }
 0x364   : > { %5084 = vmatpush.bf16.msra.mxu2 %v8588_v8  ;;  %5060 = vmatpush.bf16.msra.mxu0 %v8552_v34  ;;  %v8536_v8 = vor.u32 %v10155_v9, %v8535_v49  ;;  %v10177_v34 = vld [vmem:[#allocation7 + $0x304] sm:$0xf]  ;;  %v10174_v9 = vld [vmem:[#allocation7 + $0x2ec] sm:$0xf] }
 0x365   : > { %4460 = vmatmul.bf16.vlgmr.msrb.gmra.mxu3 %v4356_v42 }
 0x366   : > { %5095 = vmatpush.bf16.msra.mxu3 %v8748_v37 }
 0x367   : > { %5072 = vmatpush.bf16.msra.mxu1 %v8696_v52 }
 0x368   : > { %5085 = vmatpush.bf16.msra.mxu2 %v8572_v26  ;;  %5061 = vmatpush.bf16.msra.mxu0 %v8536_v8  ;;  %v10206_v8 = vld [vmem:[#allocation7 + $0x3ec] sm:$0xf] }
 0x36a   : > { %5096 = vmatpush.bf16.msra.mxu3 %v8732_v40 }
 0x36e   : > { %5097 = vmatpush.bf16.msra.mxu3 %v8716_v48  ;;  %v10185_v48 = vld [vmem:[#allocation7 + $0x344] sm:$0xf] }
 0x372   : > { %5098 = vmatpush.bf16.msra.mxu3 %v8700_v17 }
 0x376   : > { %5099 = vmatpush.bf16.msra.mxu3 %v8684_v32  ;;  %v10208_v32 = vld [vmem:[#allocation7 + $0x3f4] sm:$0xf0] }
 0x377   : > { %v12591_v24 = vpop.f32.mrf.mxu1 }
 0x37d   : > { %v12589_v56 = vpop.f32.mrf.mxu2 }
 0x37f   : > { %v12597_v18 = vpop.f32.mrf.mxu1 }
 0x385   : > { %v12593_v21 = vpop.f32.mrf.mxu2 }
 0x387   : > { %v12603_v50 = vpop.f32.mrf.mxu1 }
 0x388   : > { %v12595_v7 = vpop.f32.mrf.mxu3  ;;  %v3413_v10 = vadd.f32 %v12603_v50, %v12589_v56 }
 0x389   : > { %v3399_v28 = vadd.f32 %v12595_v7, %v12591_v24 }
 0x38f   : > { %v12609_v30 = vpop.f32.mrf.mxu1 }
 0x390   : > { %v12599_v60 = vpop.f32.mrf.mxu3  ;;  %v3415_v3 = vadd.f32 %v12609_v30, %v12593_v21  ;;  %v8665_v21 = vld [vmem:[#allocation7 + $0x350] sm:$0xf0] }
 0x391   : > { %v3401_v36 = vadd.f32 %v12599_v60, %v12597_v18  ;;  %v8679_v18 = vld [vmem:[#allocation7 + $0x360] sm:$0xf]  ;;  %v8668_v52 = vor.u32 %v10185_v48, %v8665_v21  ;;  %v10172_v21 = vld [vmem:[#allocation7 + $0x2d4] sm:$0xf0] }
 0x393   : > { %5100 = vmatpush.bf16.msra.mxu3 %v8668_v52 }
 0x394   : > { %v12601_v41 = vpop.f32.mrf.mxu2 }
 0x395   : > { %v3582_v4 = vadd.f32 %v12601_v41, %v3399_v28 }
 0x398   : > { %v12607_v15 = vpop.f32.mrf.mxu3  ;;  %v12611_v57 = vpop.f32.mrf.mxu0 }
 0x399   : > { %v12617_v53 = vpop.f32.mrf.mxu1  ;;  %v3721_v11 = vadd.f32 %v12611_v57, %v3582_v4  ;;  %v3583_v7 = vadd.f32 %v12607_v15, %v3413_v10  ;;  %v8680_v15 = vor.u32 %v10191_v47, %v8679_v18  ;;  %v10149_v4 = vld [vmem:[#allocation7 + $0x224] sm:$0xf]  ;;  %v8503_v10 = vld [vmem:[#allocation7 + $0x200] sm:$0xf]  ;;  %v8633_v47 = vld [vmem:[#allocation7 + $0x310] sm:$0xf0] }
 0x39a   : > { %v8636_v49 = vor.u32 %v10177_v34, %v8633_v47  ;;  %v10164_v34 = vld [vmem:[#allocation7 + $0x294] sm:$0xf0]  ;;  %v8703_v47 = vld [vmem:[#allocation7 + $0x388] sm:$0xf] }
 0x39b   : > { %v3722_v40 = vadd.f32 %v12617_v53, %v3583_v7  ;;  %v8663_v53 = vld [vmem:[#allocation7 + $0x340] sm:$0xf]  ;;  %5073 = vmatpush.bf16.msra.mxu1 %v8680_v15  ;;  %v10176_v15 = vld [vmem:[#allocation7 + $0x2f4] sm:$0xf0] }
 0x39c   : > { %v12605_v33 = vpop.f32.mrf.mxu2  ;;  %v8664_v43 = vor.u32 %v10187_v6, %v8663_v53  ;;  %v8625_v53 = vld [vmem:[#allocation7 + $0x2f8] sm:$0xf0] }
 0x39d   : > { %v3584_v24 = vadd.f32 %v12605_v33, %v3401_v36  ;;  %v12649_v33 = vld [vmem:[%s12905_s6] sm:$0x3] }
 0x39e   : > { %v4472_v26 = vperm.slane %v12649_v33, 0  ;;  %v4473_v62 = vperm.slane %v12649_v33, 1 }
 0x39f   : > { %5074 = vmatpush.bf16.msra.mxu1 %v8664_v43  ;;  %v8753_v43 = vld [vmem:[#allocation7 + $0x3f8] sm:$0xf0] }
 0x3a0   : > { %v12613_v2 = vpop.f32.mrf.mxu3  ;;  %v3704_v54 = vpop.f32.mrf.mxu0 }
 0x3a1   : > { %v12623_v39 = vpop.f32.mrf.mxu1  ;;  %v3723_v57 = vadd.f32 %v3704_v54, %v3584_v24  ;;  %v3585_v30 = vadd.f32 %v12613_v2, %v3415_v3  ;;  %v8521_v2 = vld [vmem:[#allocation7 + $0x230] sm:$0xf0]  ;;  %v10147_v24 = vld [vmem:[#allocation7 + $0x20c] sm:$0xf0] }
 0x3a2   : > { %v8524_v36 = vor.u32 %v10149_v4, %v8521_v2 }
 0x3a3   : > { %v3724_v7 = vadd.f32 %v12623_v39, %v3585_v30 }
 0x3a9   : > { %v12615_v25 = vpop.f32.mrf.mxu2 }
 0x3aa   : > { %v12621_v14 = vpop.f32.mrf.mxu3  ;;  %v3880_v35 = vadd.f32 %v12615_v25, %v3721_v11  ;;  %v8553_v25 = vld [vmem:[#allocation7 + $0x270] sm:$0xf0] }
 0x3ab   : > { %v8556_v54 = vor.u32 %v10157_v58, %v8553_v25 }
 0x3ad   : > { %5086 = vmatpush.bf16.msra.mxu2 %v8556_v54  ;;  %v8751_v54 = vld [vmem:[#allocation7 + $0x3e8] sm:$0xf] }
 0x3af   : > { %v4005_v42 = vpop.f32.mrf.mxu0 }
 0x3b0   : > { %v4024_v5 = vadd.f32 %v4005_v42, %v3880_v35  ;;  %v8649_v35 = vld [vmem:[#allocation7 + $0x330] sm:$0xf0] }
 0x3b1   : > { %v12619_v46 = vpop.f32.mrf.mxu2  ;;  %5087 = vmatpush.bf16.msra.mxu2 %v8540_v44  ;;  %v8756_v44 = vor.u32 %v10206_v8, %v8753_v43  ;;  %v10158_v43 = vld [vmem:[#allocation7 + $0x26c] sm:$0xf] }
 0x3b2   : > { %v12625_v55 = vpop.f32.mrf.mxu3  ;;  %v3882_v56 = vadd.f32 %v12619_v46, %v3723_v57  ;;  %v3881_v46 = vadd.f32 %v12621_v14, %v3722_v40  ;;  %v8519_v14 = vld [vmem:[#allocation7 + $0x220] sm:$0xf] }
 0x3b3   : > { %v8520_v17 = vor.u32 %v10151_v29, %v8519_v14  ;;  %v8631_v57 = vld [vmem:[#allocation7 + $0x300] sm:$0xf]  ;;  %v3883_v58 = vadd.f32 %v12625_v55, %v3724_v7  ;;  %v8752_v55 = vor.u32 %v10208_v32, %v8751_v54  ;;  %v8608_v14 = vor.u32 %v10172_v21, %v8607_v22  ;;  %v8609_v29 = vld [vmem:[#allocation7 + $0x2d8] sm:$0xf0]  ;;  %v10194_v54 = vld [vmem:[#allocation7 + $0x38c] sm:$0xf] }
 0x3b4   : > { %v8632_v40 = vor.u32 %v10179_v45, %v8631_v57  ;;  %v8593_v7 = vld [vmem:[#allocation7 + $0x2b8] sm:$0xf0]  ;;  %v8559_v32 = vld [vmem:[#allocation7 + $0x268] sm:$0xf] }
 0x3b5   : > { %5062 = vmatpush.bf16.msra.mxu0 %v8520_v17  ;;  %5088 = vmatpush.bf16.msra.mxu2 %v8524_v36  ;;  %v10202_v17 = vld [vmem:[#allocation7 + $0x3cc] sm:$0xf]  ;;  %v10200_v36 = vld [vmem:[#allocation7 + $0x3b4] sm:$0xf0]  ;;  %v8561_v22 = vld [vmem:[#allocation7 + $0x278] sm:$0xf0] }
 0x3b7   : > { %v4019_v0 = vpop.f32.mrf.mxu1  ;;  %v4007_v27 = vpop.f32.mrf.mxu0 }
 0x3b8   : > { %v4026_v51 = vadd.f32 %v4007_v27, %v3882_v56  ;;  %v4025_v42 = vadd.f32 %v4019_v0, %v3881_v46  ;;  %v10181_v27 = vld [vmem:[#allocation7 + $0x324] sm:$0xf]  ;;  %v8628_v46 = vor.u32 %v10174_v9, %v8625_v53  ;;  %v8687_v53 = vld [vmem:[#allocation7 + $0x368] sm:$0xf] }
 0x3bf   : > { %v12642_v41 = vpop.f32.mrf.mxu1 }
 0x3c0   : > { %v4144_v63 = vpop.f32.mrf.mxu2  ;;  %v4027_v6 = vadd.f32 %v12642_v41, %v3883_v58  ;;  %v8735_v41 = vld [vmem:[#allocation7 + $0x3c8] sm:$0xf]  ;;  %v10196_v58 = vld [vmem:[#allocation7 + $0x394] sm:$0xf0] }
 0x3c1   : > { %v4163_v31 = vadd.f32 %v4144_v63, %v4024_v5  ;;  %v10183_v63 = vld [vmem:[#allocation7 + $0x32c] sm:$0xf0]  ;;  %v8652_v5 = vor.u32 %v10181_v27, %v8649_v35  ;;  %v8704_v9 = vor.u32 %v10196_v58, %v8703_v47  ;;  %v8639_v58 = vld [vmem:[#allocation7 + $0x308] sm:$0xf] }
 0x3c2   : > { %v8648_v28 = vor.u32 %v10183_v63, %v8647_v20  ;;  %v8591_v63 = vld [vmem:[#allocation7 + $0x2a8] sm:$0xf] }
 0x3c3   : > { %5101 = vmatpush.bf16.msra.mxu3 %v8652_v5 }
 0x3c4   : > { %v4303_v60 = vpop.f32.mrf.mxu0  ;;  %5075 = vmatpush.bf16.msra.mxu1 %v8648_v28 }
 0x3c5   : > { %v4322_v38 = vadd.f32 %v4303_v60, %v4163_v31 }
 0x3c7   : > { %5102 = vmatpush.bf16.msra.mxu3 %v8636_v49 }
 0x3c8   : > { %v12633_v37 = vpop.f32.mrf.mxu2  ;;  %v12635_v13 = vpop.f32.mrf.mxu3  ;;  %5076 = vmatpush.bf16.msra.mxu1 %v8632_v40  ;;  %v10162_v40 = vld [vmem:[#allocation7 + $0x28c] sm:$0xf] }
 0x3c9   : > { %v4165_v0 = vadd.f32 %v12633_v37, %v4026_v51  ;;  %v4164_v11 = vadd.f32 %v12635_v13, %v4025_v42  ;;  %v8504_v37 = vor.u32 %v10147_v24, %v8503_v10  ;;  %v8505_v13 = vld [vmem:[#allocation7 + $0x210] sm:$0xf0]  ;;  %v10204_v42 = vld [vmem:[#allocation7 + $0x3d4] sm:$0xf0]  ;;  %v10166_v24 = vld [vmem:[#allocation7 + $0x2ac] sm:$0xf] }
 0x3ca   : > { %v8508_v56 = vor.u32 %v10145_v61, %v8505_v13  ;;  %v8736_v20 = vor.u32 %v10204_v42, %v8735_v41  ;;  %v10198_v61 = vld [vmem:[#allocation7 + $0x3ac] sm:$0xf]  ;;  %v8596_v13 = vor.u32 %v10166_v24, %v8593_v7  ;;  %v8543_v42 = vld [vmem:[#allocation7 + $0x248] sm:$0xf] }
 0x3cb   : > { %5063 = vmatpush.bf16.msra.mxu0 %v8504_v37  ;;  %5147 = vmatpush.bf16.msrb.mxu3 %v8756_v44  ;;  %v8689_v44 = vld [vmem:[#allocation7 + $0x378] sm:$0xf0]  ;;  %v8655_v7 = vld [vmem:[#allocation7 + $0x328] sm:$0xf] }
 0x3cc   : > { %v4305_v18 = vpop.f32.mrf.mxu0  ;;  %5089 = vmatpush.bf16.msra.mxu2 %v8508_v56  ;;  %5121 = vmatpush.bf16.msrb.mxu1 %v8752_v55  ;;  %v8577_v56 = vld [vmem:[#allocation7 + $0x298] sm:$0xf0] }
 0x3cd   : > { %v4324_v19 = vadd.f32 %v4305_v18, %v4165_v0  ;;  %v10168_v0 = vld [vmem:[#allocation7 + $0x2b4] sm:$0xf0]  ;;  %v8721_v18 = vld [vmem:[#allocation7 + $0x3b8] sm:$0xf0]  ;;  %v8580_v33 = vor.u32 %v10162_v40, %v8577_v56 }
 0x3ce   : > { %v8592_v45 = vor.u32 %v10168_v0, %v8591_v63  ;;  %v10154_v63 = vld [vmem:[#allocation7 + $0x24c] sm:$0xf] }
 0x3d0   : > { %v12654_v1 = vpop.f32.mrf.mxu3  ;;  %5134 = vmatpush.bf16.msrb.mxu2 %v8628_v46  ;;  %5122 = vmatpush.bf16.msrb.mxu1 %v8736_v20  ;;  %v8564_v20 = vor.u32 %v10158_v43, %v8561_v22 }
 0x3d1   : > { %v4166_v30 = vadd.f32 %v12654_v1, %v4027_v6  ;;  %v8737_v1 = vld [vmem:[#allocation7 + $0x3d8] sm:$0xf0]  ;;  %v10192_v6 = vld [vmem:[#allocation7 + $0x374] sm:$0xf0] }
 0x3d2   : > { %v8740_v27 = vor.u32 %v10202_v17, %v8737_v1  ;;  %v8688_v41 = vor.u32 %v10192_v6, %v8687_v53 }
 0x3d4   : > { %5148 = vmatpush.bf16.msrb.mxu3 %v8740_v27  ;;  %v8673_v27 = vld [vmem:[#allocation7 + $0x358] sm:$0xf0] }
 0x3d7   : > { %v4317_v23 = vpop.f32.mrf.mxu1 }
 0x3d8   : > { %v4323_v60 = vadd.f32 %v4317_v23, %v4164_v11  ;;  %v10170_v23 = vld [vmem:[#allocation7 + $0x2cc] sm:$0xf]  ;;  %v8719_v11 = vld [vmem:[#allocation7 + $0x3a8] sm:$0xf] }
 0x3d9   : > { %v8720_v37 = vor.u32 %v10200_v36, %v8719_v11  ;;  %v8527_v36 = vld [vmem:[#allocation7 + $0x228] sm:$0xf] }
 0x3db   : > { %5123 = vmatpush.bf16.msrb.mxu1 %v8720_v37  ;;  %v8511_v37 = vld [vmem:[#allocation7 + $0x208] sm:$0xf] }
 0x3de   : > { %v4447_v50 = vpop.f32.mrf.mxu2 }
 0x3df   : > { %v4466_v16 = vadd.f32 %v4447_v50, %v4322_v38  ;;  %v8623_v50 = vld [vmem:[#allocation7 + $0x2e8] sm:$0xf]  ;;  %v4319_v51 = vpop.f32.mrf.mxu1  ;;  %5124 = vmatpush.bf16.msrb.mxu1 %v8704_v9 }
 0x3e0   : > { %v8624_v3 = vor.u32 %v10176_v15, %v8623_v50  ;;  %v4325_v28 = vadd.f32 %v4319_v51, %v4166_v30 }
 0x3e1   : > { %v12664_v31 = vadd.f32 %v4472_v26, %v4466_v16  ;;  %v8612_v16 = vor.u32 %v10170_v23, %v8609_v29  ;;  %v10156_v23 = vld [vmem:[#allocation7 + $0x254] sm:$0xf0] }
 0x3e2   : > { %5108 = vmatpush.bf16.msrb.mxu0 %v8624_v3  ;;  %v8544_v11 = vor.u32 %v10156_v23, %v8543_v42  ;;  %v8999_v42 = vld [vmem:[#allocation7 + $0x1e0] sm:$0xf]  ;;  %v10143_v23 = vld [vmem:[#allocation7 + $0x1ec] sm:$0xf0] }
 0x3e3   : > { %v4484_v12 = vmul.f32 0.01, %v12664_v31  ;;  %vm4480_vm10 = vcmp.ge.f32.partialorder %v12664_v31, 0.0  ;;  %5135 = vmatpush.bf16.msrb.mxu2 %v8612_v16  ;;  %v10188_v16 = vld [vmem:[#allocation7 + $0x354] sm:$0xf0]  ;;  %5125 = vmatpush.bf16.msrb.mxu1 %v8688_v41 }
 0x3e4   : > { %v10111_v41 = vld [vmem:[#allocation7 + $0xec] sm:$0xf0] }
 0x3e5   : > { %v4488_v5 = vsel %vm4480_vm10, %v12664_v31, %v4484_v12 }
 0x3e6   : > { %v4449_v25 = vpop.f32.mrf.mxu2  ;;  %5109 = vmatpush.bf16.msrb.mxu0 %v8608_v14 }
 0x3e7   : > { %v4468_v48 = vadd.f32 %v4449_v25, %v4324_v19  ;;  %v8705_v19 = vld [vmem:[#allocation7 + $0x398] sm:$0xf0]  ;;  %5136 = vmatpush.bf16.msrb.mxu2 %v8596_v13  ;;  %v10148_v13 = vld [vmem:[#allocation7 + $0x214] sm:$0xf0] }
 0x3e8   : > { %v4461_v39 = vpop.f32.mrf.mxu3  ;;  %v8708_v8 = vor.u32 %v10194_v54, %v8705_v19  ;;  %v8512_v9 = vor.u32 %v10148_v13, %v8511_v37  ;;  %v8967_v13 = vld [vmem:[#allocation7 + $0x1a0] sm:$0xf] }
 0x3e9   : > { %v4467_v59 = vadd.f32 %v4461_v39, %v4323_v60  ;;  %v4478_v4 = vadd.f32 %v4472_v26, %v4468_v48  ;;  %v8575_v26 = vld [vmem:[#allocation7 + $0x288] sm:$0xf]  ;;  %v8724_v39 = vor.u32 %v10198_v61, %v8721_v18  ;;  %v8529_v18 = vld [vmem:[#allocation7 + $0x238] sm:$0xf0] }
 0x3ea   : > { %5110 = vmatpush.bf16.msrb.mxu0 %v8592_v45  ;;  %v8576_v3 = vor.u32 %v10164_v34, %v8575_v26  ;;  %v10182_v26 = vld [vmem:[#allocation7 + $0x32c] sm:$0xf] }
 0x3eb   : > { %v4477_v38 = vadd.f32 %v4473_v62, %v4467_v59  ;;  %vm4482_vm14 = vcmp.ge.f32.partialorder %v4478_v4, 0.0  ;;  %v4486_v50 = vmul.f32 0.01, %v4478_v4  ;;  %5149 = vmatpush.bf16.msrb.mxu3 %v8724_v39  ;;  %5137 = vmatpush.bf16.msrb.mxu2 %v8580_v33 }
 0x3ed   : > { %vm4481_vm2 = vcmp.ge.f32.partialorder %v4477_v38, 0.0  ;;  %v4485_v52 = vmul.f32 0.01, %v4477_v38  ;;  %v4490_v12 = vsel %vm4482_vm14, %v4478_v4, %v4486_v50  ;;  %v8513_v50 = vld [vmem:[#allocation7 + $0x218] sm:$0xf0] }
 0x3ee   : > { %5111 = vmatpush.bf16.msrb.mxu0 %v8576_v3 }
 0x3ef   : > { %v4489_v2 = vsel %vm4481_vm2, %v4477_v38, %v4485_v52  ;;  %v10190_v38 = vld [vmem:[#allocation7 + $0x36c] sm:$0xf]  ;;  %v8671_v52 = vld [vmem:[#allocation7 + $0x348] sm:$0xf]  ;;  %5150 = vmatpush.bf16.msrb.mxu3 %v8708_v8  ;;  %5138 = vmatpush.bf16.msrb.mxu2 %v8564_v20  ;;  %v10141_v20 = vld [vmem:[#allocation7 + $0x1e4] sm:$0xf] }
 0x3f0   : > { %v4496_v35 = vrot.slane %v4489_v2, 4  ;;  %v4463_v10 = vpop.f32.mrf.mxu3  ;;  %v8692_v1 = vor.u32 %v10190_v38, %v8689_v44  ;;  %v10186_v2 = vld [vmem:[#allocation7 + $0x34c] sm:$0xf] }
 0x3f1   : > { %v4469_v57 = vadd.f32 %v4463_v10, %v4325_v28  ;;  %v8545_v28 = vld [vmem:[#allocation7 + $0x258] sm:$0xf0]  ;;  %v8672_v10 = vor.u32 %v10188_v16, %v8671_v52  ;;  %v8676_v61 = vor.u32 %v10186_v2, %v8673_v27  ;;  %v10109_v52 = vld [vmem:[#allocation7 + $0xe4] sm:$0xf]  ;;  %v9001_v16 = vld [vmem:[#allocation7 + $0x1f0] sm:$0xf0] }
 0x3f2   : > { %v4500_v60 = vsel %vm4498_vm1, %v4496_v35, %v4488_v5  ;;  %v4499_v15 = vsel %vm4498_vm1, %v4488_v5, %v4496_v35  ;;  %v10152_v35 = vld [vmem:[#allocation7 + $0x234] sm:$0xf0]  ;;  %v8548_v24 = vor.u32 %v10154_v63, %v8545_v28  ;;  %v9000_v28 = vor.u32 %v10143_v23, %v8999_v42  ;;  %v10107_v2 = vld [vmem:[#allocation7 + $0xcc] sm:$0xf0] }
 0x3f3   : > { %v4501_v25 = vrot.slane %v4500_v60, 4  ;;  %v4479_v31 = vadd.f32 %v4473_v62, %v4469_v57  ;;  %v10160_v62 = vld [vmem:[#allocation7 + $0x274] sm:$0xf0]  ;;  %v10150_v57 = vld [vmem:[#allocation7 + $0x22c] sm:$0xf]  ;;  %5151 = vmatpush.bf16.msrb.mxu3 %v8692_v1  ;;  %v8528_v47 = vor.u32 %v10152_v35, %v8527_v36  ;;  %5126 = vmatpush.bf16.msrb.mxu1 %v8672_v10 }
 0x3f4   : > { %v8560_v51 = vor.u32 %v10160_v62, %v8559_v32  ;;  %v10184_v5 = vld [vmem:[#allocation7 + $0x334] sm:$0xf0]  ;;  %v8657_v60 = vld [vmem:[#allocation7 + $0x338] sm:$0xf0]  ;;  %5139 = vmatpush.bf16.msrb.mxu2 %v8548_v24  ;;  %v8532_v56 = vor.u32 %v10150_v57, %v8529_v18  ;;  %v8983_v36 = vld [vmem:[#allocation7 + $0x1c0] sm:$0xf] }
 0x3f5   : > { %v4509_v59 = vmax.f32 %v4499_v15, %v4501_v25  ;;  %vm4483_vm12 = vcmp.ge.f32.partialorder %v4479_v31, 0.0  ;;  %v4487_v49 = vmul.f32 0.01, %v4479_v31  ;;  %v10180_v25 = vld [vmem:[#allocation7 + $0x314] sm:$0xf0]  ;;  %v8656_v40 = vor.u32 %v10184_v5, %v8655_v7 }
 0x3f6   : > { %5112 = vmatpush.bf16.msrb.mxu0 %v8560_v51  ;;  %v10178_v15 = vld [vmem:[#allocation7 + $0x30c] sm:$0xf]  ;;  %v8660_v54 = vor.u32 %v10182_v26, %v8657_v60  ;;  %v8640_v53 = vor.u32 %v10180_v25, %v8639_v58  ;;  %v8871_v51 = vld [vmem:[#allocation7 + $0xe0] sm:$0xf]  ;;  %v10139_v35 = vld [vmem:[#allocation7 + $0x1cc] sm:$0xf0] }
 0x3f7   : > { %v4513_v55 = vrot.slane %v4509_v59, 2  ;;  %v4491_v46 = vsel %vm4483_vm12, %v4479_v31, %v4487_v49  ;;  %v10146_v31 = vld [vmem:[#allocation7 + $0x20c] sm:$0xf]  ;;  %5152 = vmatpush.bf16.msrb.mxu3 %v8676_v61  ;;  %v8641_v49 = vld [vmem:[#allocation7 + $0x318] sm:$0xf0]  ;;  %5127 = vmatpush.bf16.msrb.mxu1 %v8656_v40  ;;  %v8872_v63 = vor.u32 %v10111_v41, %v8871_v51  ;;  %v8984_v61 = vor.u32 %v10139_v35, %v8983_v36 }
 0x3f8   : > { %v4497_v48 = vrot.slane %v4491_v46, 4  ;;  %5140 = vmatpush.bf16.msrb.mxu2 %v8532_v56  ;;  %v8516_v6 = vor.u32 %v10146_v31, %v8513_v50  ;;  %v10105_v10 = vld [vmem:[#allocation7 + $0xc4] sm:$0xf]  ;;  %v8857_v24 = vld [vmem:[#allocation7 + $0xd0] sm:$0xf0] }
 0x3f9   : > { %v4515_v21 = vsel %vm975_vm3, %v4509_v59, %v4513_v55  ;;  %v4516_v30 = vsel %vm12971_vm4, %v4509_v59, %v4513_v55  ;;  %v8644_v55 = vor.u32 %v10178_v15, %v8641_v49  ;;  %v10137_v7 = vld [vmem:[#allocation7 + $0x1c4] sm:$0xf]  ;;  %v8985_v5 = vld [vmem:[#allocation7 + $0x1d0] sm:$0xf0]  ;;  %v8839_v18 = vld [vmem:[#allocation7 + $0xa0] sm:$0xf]  ;;  %v8860_v60 = vor.u32 %v10105_v10, %v8857_v24 }
 0x3fa   : > { %v4517_v14 = vrot.slane %v4516_v30, 2  ;;  %4521 = vst [vmem:[#allocation1] ss:$4 sm:$0xff] %v4515_v21  ;;  %v4503_v29 = vsel %vm4498_vm1, %v4497_v48, %v4490_v12  ;;  %v4502_v4 = vsel %vm4498_vm1, %v4490_v12, %v4497_v48  ;;  %5113 = vmatpush.bf16.msrb.mxu0 %v8544_v11  ;;  %v9004_v11 = vor.u32 %v10141_v20, %v9001_v16  ;;  %v10103_v26 = vld [vmem:[#allocation7 + $0xac] sm:$0xf0] }
 0x3fb   : > { %v4504_v17 = vrot.slane %v4503_v29, 4  ;;  %5153 = vmatpush.bf16.msrb.mxu3 %v8660_v54  ;;  %5128 = vmatpush.bf16.msrb.mxu1 %v8640_v53  ;;  %v8873_v29 = vld [vmem:[#allocation7 + $0xf0] sm:$0xf0]  ;;  %v8988_v37 = vor.u32 %v10137_v7, %v8985_v5  ;;  %v10133_v25 = vld [vmem:[#allocation7 + $0x1a4] sm:$0xf] }
 0x3fc   : > { %4525 = vst [vmem:[#allocation1 + $0x20] ss:$4 sm:$0xff] %v4517_v14  ;;  %5141 = vmatpush.bf16.msrb.mxu2 %v8516_v6  ;;  %v8876_v27 = vor.u32 %v10109_v52, %v8873_v29  ;;  %v8841_v58 = vld [vmem:[#allocation7 + $0xb0] sm:$0xf0]  ;;  %v8823_v56 = vld [vmem:[#allocation7 + $0x80] sm:$0xf] }
 0x3fd   : > { %v12687_v0 = vmax.f32 %v4502_v4, %v4504_v17  ;;  %v8855_v4 = vld [vmem:[#allocation7 + $0xc0] sm:$0xf]  ;;  %v8969_v31 = vld [vmem:[#allocation7 + $0x1b0] sm:$0xf0]  ;;  %v10099_v50 = vld [vmem:[#allocation7 + $0x8c] sm:$0xf0] }
 0x3fe   : > { %5114 = vmatpush.bf16.msrb.mxu0 %v8528_v47  ;;  %v8856_v57 = vor.u32 %v10107_v2, %v8855_v4  ;;  %v10101_v47 = vld [vmem:[#allocation7 + $0xa4] sm:$0xf]  ;;  %v10131_v49 = vld [vmem:[#allocation7 + $0x18c] sm:$0xf0]  ;;  %v8937_v41 = vld [vmem:[#allocation7 + $0x170] sm:$0xf0] }
 0x3ff   : > { %v4514_v45 = vrot.slane %v12687_v0, 2  ;;  %5154 = vmatpush.bf16.msrb.mxu3 %v8644_v55  ;;  %v8844_v54 = vor.u32 %v10101_v47, %v8841_v58  ;;  %v10095_v53 = vld [vmem:[#allocation7 + $0x6c] sm:$0xf0]  ;;  %v10125_v51 = vld [vmem:[#allocation7 + $0x164] sm:$0xf] }
 0x400   : > { %v8791_v29 = vld [vmem:[#allocation7 + $0x40] sm:$0xf]  ;;  %v10091_v20 = vld [vmem:[#allocation7 + $0x4c] sm:$0xf0]  ;;  %v10089_v2 = vld [vmem:[#allocation7 + $0x44] sm:$0xf] }
 0x401   : > { %v4519_v34 = vsel %vm12972_vm7, %v12687_v0, %v4514_v45  ;;  %v4518_v15 = vsel %vm975_vm3, %v12687_v0, %v4514_v45  ;;  %v4522_v6 = vld.sshfl [vmem:[#allocation1] sm:$0xff pattern:$0x73625140]  ;;  %v4523_v55 = vld.sshfl [vmem:[#allocation1 + $0x8] sm:$0xff pattern:$0x73625140]  ;;  %v8792_v5 = vor.u32 %v10091_v20, %v8791_v29 }
 0x402   : > { %v4520_v39 = vrot.slane %v4519_v34, 2  ;;  %5115 = vmatpush.bf16.msrb.mxu0 %v8512_v9  ;;  %v10135_v34 = vld [vmem:[#allocation7 + $0x1ac] sm:$0xf0]  ;;  %v10129_v9 = vld [vmem:[#allocation7 + $0x184] sm:$0xf]  ;;  %v4542_v0 = vsel %vm975_vm3, %v4522_v6, -inf }
 0x403   : > { %v4526_v19 = vld.sshfl [vmem:[#allocation1 + $0x20] sm:$0xff pattern:$0x73625140]  ;;  %v4527_v59 = vld.sshfl [vmem:[#allocation1 + $0x28] sm:$0xff pattern:$0x73625140]  ;;  %v8968_v40 = vor.u32 %v10135_v34, %v8967_v13 }
 0x404   : > { %4531 = vst [vmem:[#allocation1 + $0x20] ss:$4 sm:$0xff] %v4520_v39  ;;  %v4556_v3 = vsel %vm975_vm3, %v4526_v19, -inf  ;;  %v4563_v32 = vsel %vm975_vm3, %v4527_v59, -inf  ;;  %v8840_v39 = vor.u32 %v10103_v26, %v8839_v18  ;;  %v8972_v19 = vor.u32 %v10133_v25, %v8969_v31  ;;  %v8951_v59 = vld [vmem:[#allocation7 + $0x180] sm:$0xf] }
 0x405   : > { %v4557_v33 = vrot.slane %v4556_v3, 4  ;;  %v4564_v62 = vrot.slane %v4563_v32, 4  ;;  %v4549_v45 = vsel %vm975_vm3, %v4523_v55, -inf  ;;  %4528 = vst [vmem:[#allocation1] ss:$4 sm:$0xff] %v4518_v15 }
 0x406   : > { %v8919_v16 = vld [vmem:[#allocation7 + $0x140] sm:$0xf]  ;;  %v10123_v4 = vld [vmem:[#allocation7 + $0x14c] sm:$0xf0]  ;;  %v8793_v36 = vld [vmem:[#allocation7 + $0x50] sm:$0xf0] }
 0x407   : > { %v4558_v46 = vmax.f32 %v4556_v3, %v4557_v33  ;;  %v4565_v8 = vmax.f32 %v4563_v32, %v4564_v62  ;;  %v10097_v3 = vld [vmem:[#allocation7 + $0x84] sm:$0xf]  ;;  %v8825_v32 = vld [vmem:[#allocation7 + $0x90] sm:$0xf0]  ;;  %v8807_v62 = vld [vmem:[#allocation7 + $0x60] sm:$0xf] }
 0x408   : > { %v8953_v33 = vld [vmem:[#allocation7 + $0x190] sm:$0xf0]  ;;  %v8808_v52 = vor.u32 %v10095_v53, %v8807_v62  ;;  %v10121_v35 = vld [vmem:[#allocation7 + $0x144] sm:$0xf]  ;;  %v10087_v18 = vld [vmem:[#allocation7 + $0x2c] sm:$0xf0] }
 0x409   : > { %v4559_v43 = vrot.slane %v4558_v46, 2  ;;  %v4566_v22 = vrot.slane %v4565_v8, 2  ;;  %v8921_v10 = vld [vmem:[#allocation7 + $0x150] sm:$0xf0]  ;;  %v8903_v26 = vld [vmem:[#allocation7 + $0x120] sm:$0xf] }
 0x40a   : > { %v10119_v13 = vld [vmem:[#allocation7 + $0x12c] sm:$0xf0]  ;;  %v10085_v34 = vld [vmem:[#allocation7 + $0x24] sm:$0xf]  ;;  %v8777_v47 = vld [vmem:[#allocation7 + $0x30] sm:$0xf0] }
 0x40b   : > { %v4560_v12 = vmax.f32 %v4558_v46, %v4559_v43  ;;  %v4567_v48 = vmax.f32 %v4565_v8, %v4566_v22  ;;  %v8824_v46 = vor.u32 %v10099_v50, %v8823_v56  ;;  %v8952_v8 = vor.u32 %v10131_v49, %v8951_v59  ;;  %v8935_v43 = vld [vmem:[#allocation7 + $0x160] sm:$0xf]  ;;  %v10117_v58 = vld [vmem:[#allocation7 + $0x124] sm:$0xf]  ;;  %v10083_v56 = vld [vmem:[#allocation7 + $0xc] sm:$0xf0] }
 0x40c   : > { %v8828_v22 = vor.u32 %v10097_v3, %v8825_v32  ;;  %v8759_v31 = vld [vmem:[#allocation7] sm:$0xf]  ;;  %v10115_v15 = vld [vmem:[#allocation7 + $0x10c] sm:$0xf0]  ;;  %v10081_v59 = vld [vmem:[#allocation7 + $0x4] sm:$0xf] }
 0x40d   : > { %v4561_v38 = vrot.slane %v4560_v12, 1  ;;  %v4568_v44 = vrot.slane %v4567_v48, 1  ;;  %v8887_v50 = vld [vmem:[#allocation7 + $0x100] sm:$0xf]  ;;  %v8761_v49 = vld [vmem:[#allocation7 + $0x10] sm:$0xf0] }
 0x40e   : > { %v10113_v3 = vld [vmem:[#allocation7 + $0x104] sm:$0xf]  ;;  %v8889_v32 = vld [vmem:[#allocation7 + $0x110] sm:$0xf0]  ;;  %v9007_v6 = vld [vmem:[#allocation7 + $0x1e8] sm:$0xf] }
 0x40f   : > { %v4562_v21 = vmax.f32 %v4560_v12, %v4561_v38  ;;  %v4569_v30 = vmax.f32 %v4567_v48, %v4568_v44  ;;  %v8956_v12 = vor.u32 %v10129_v9, %v8953_v33  ;;  %v10127_v48 = vld [vmem:[#allocation7 + $0x16c] sm:$0xf0]  ;;  %v10093_v38 = vld [vmem:[#allocation7 + $0x64] sm:$0xf]  ;;  %v4543_v44 = vrot.slane %v4542_v0, 4 }
 0x410   : > { %v8879_v9 = vld [vmem:[#allocation7 + $0xe8] sm:$0xf]  ;;  %v10112_v33 = vld [vmem:[#allocation7 + $0xf4] sm:$0xf0]  ;;  %v8865_v29 = vld [vmem:[#allocation7 + $0xd8] sm:$0xf0] }
 0x411   : > { %v4599_v14 = vpack.c.bf16 %v4569_v30, %v4562_v21  ;;  %v4550_v21 = vrot.slane %v4549_v45, 4  ;;  %v8809_v30 = vld [vmem:[#allocation7 + $0x70] sm:$0xf0]  ;;  %v4544_v42 = vmax.f32 %v4542_v0, %v4543_v44  ;;  %v10144_v55 = vld [vmem:[#allocation7 + $0x1f4] sm:$0xf0] }
 0x412   : > { %v8881_v0 = vld [vmem:[#allocation7 + $0xf8] sm:$0xf0]  ;;  %v9008_v44 = vor.u32 %v10144_v55, %v9007_v6  ;;  %v10138_v20 = vld [vmem:[#allocation7 + $0x1cc] sm:$0xf]  ;;  %v10092_v6 = vld [vmem:[#allocation7 + $0x54] sm:$0xf0] }
 0x413   : > { %v12696_v17 = vperm.slane %v4599_v14, 0  ;;  %v12698_v1 = vperm.slane %v4599_v14, 4  ;;  %v4551_v23 = vmax.f32 %v4549_v45, %v4550_v21  ;;  %v8936_v14 = vor.u32 %v10127_v48, %v8935_v43  ;;  %v10142_v45 = vld [vmem:[#allocation7 + $0x1ec] sm:$0xf] }
 0x414   : > { %v8888_v43 = vor.u32 %v10115_v15, %v8887_v50  ;;  %v8892_v48 = vor.u32 %v10113_v3, %v8889_v32  ;;  %v10096_v50 = vld [vmem:[#allocation7 + $0x74] sm:$0xf0]  ;;  %v8817_v3 = vld [vmem:[#allocation7 + $0x78] sm:$0xf0]  ;;  %v10126_v32 = vld [vmem:[#allocation7 + $0x16c] sm:$0xf] }
 0x415   : > { %5064 = vmatmul.bf16.vlgmr.msra.gmra.mxu0 %v12696_v17  ;;  %5077 = vmatmul.bf16.vlgmr.msra.gmra.mxu1 %v12698_v1 }
 0x416   : > { %5090 = vmatmul.bf16.vlgmr.msra.gmra.mxu2 %v12696_v17  ;;  %5103 = vmatmul.bf16.vlgmr.msra.gmra.mxu3 %v12698_v1 }
 0x417   : > { %5485 = vmatpush.bf16.msra.mxu0 %v8872_v63  ;;  %5498 = vmatpush.bf16.msra.mxu1 %v9000_v28  ;;  %v8812_v63 = vor.u32 %v10093_v38, %v8809_v30  ;;  %v8940_v28 = vor.u32 %v10125_v51, %v8937_v41  ;;  %v8880_v38 = vor.u32 %v10112_v33, %v8879_v9  ;;  %v8863_v30 = vld [vmem:[#allocation7 + $0xc8] sm:$0xf]  ;;  %v10108_v51 = vld [vmem:[#allocation7 + $0xd4] sm:$0xf0]  ;;  %v8945_v9 = vld [vmem:[#allocation7 + $0x178] sm:$0xf0] }
 0x418   : > { %5511 = vmatpush.bf16.msra.mxu2 %v8876_v27  ;;  %5524 = vmatpush.bf16.msra.mxu3 %v9004_v11  ;;  %v4545_v27 = vrot.slane %v4544_v42, 2  ;;  %v4552_v11 = vrot.slane %v4551_v23, 2 }
 0x41a   : > { %v4546_v24 = vmax.f32 %v4544_v42, %v4545_v27  ;;  %v4553_v7 = vmax.f32 %v4551_v23, %v4552_v11  ;;  %v8991_v23 = vld [vmem:[#allocation7 + $0x1c8] sm:$0xf]  ;;  %v10104_v11 = vld [vmem:[#allocation7 + $0xb4] sm:$0xf0] }
 0x41b   : > { %5486 = vmatpush.bf16.msra.mxu0 %v8856_v57  ;;  %5499 = vmatpush.bf16.msra.mxu1 %v8984_v61  ;;  %v8920_v57 = vor.u32 %v10123_v4, %v8919_v16  ;;  %v8775_v61 = vld [vmem:[#allocation7 + $0x20] sm:$0xf]  ;;  %v8993_v16 = vld [vmem:[#allocation7 + $0x1d8] sm:$0xf0]  ;;  %v8864_v4 = vor.u32 %v10108_v51, %v8863_v30  ;;  %v8847_v27 = vld [vmem:[#allocation7 + $0xa8] sm:$0xf] }
 0x41c   : > { %5512 = vmatpush.bf16.msra.mxu2 %v8860_v60  ;;  %5525 = vmatpush.bf16.msra.mxu3 %v8988_v37  ;;  %v8796_v60 = vor.u32 %v10089_v2, %v8793_v36  ;;  %v8924_v37 = vor.u32 %v10121_v35, %v8921_v10  ;;  %v4547_v25 = vrot.slane %v4546_v24, 1  ;;  %v8996_v35 = vor.u32 %v10138_v20, %v8993_v16  ;;  %v8975_v10 = vld [vmem:[#allocation7 + $0x1a8] sm:$0xf]  ;;  %v10084_v16 = vld [vmem:[#allocation7 + $0x14] sm:$0xf0] }
 0x41d   : > { %v8767_v20 = vld [vmem:[#allocation7 + $0x8] sm:$0xf] }
 0x41e   : > { %v4548_v62 = vmax.f32 %v4546_v24, %v4547_v25  ;;  %v10136_v24 = vld [vmem:[#allocation7 + $0x1b4] sm:$0xf0]  ;;  %v8833_v25 = vld [vmem:[#allocation7 + $0x98] sm:$0xf0] }
 0x41f   : > { %5487 = vmatpush.bf16.msra.mxu0 %v8840_v39  ;;  %5500 = vmatpush.bf16.msra.mxu1 %v8968_v40  ;;  %v8776_v39 = vor.u32 %v10087_v18, %v8775_v61  ;;  %v8904_v40 = vor.u32 %v10119_v13, %v8903_v26  ;;  %v8977_v61 = vld [vmem:[#allocation7 + $0x1b8] sm:$0xf0]  ;;  %v8848_v18 = vor.u32 %v10104_v11, %v8847_v27 }
 0x420   : > { %5513 = vmatpush.bf16.msra.mxu2 %v8844_v54  ;;  %5526 = vmatpush.bf16.msra.mxu3 %v8972_v19  ;;  %v8780_v54 = vor.u32 %v10085_v34, %v8777_v47  ;;  %v8976_v26 = vor.u32 %v10136_v24, %v8975_v10  ;;  %v8959_v47 = vld [vmem:[#allocation7 + $0x188] sm:$0xf]  ;;  %v10114_v10 = vld [vmem:[#allocation7 + $0x10c] sm:$0xf] }
 0x423   : > { %5488 = vmatpush.bf16.msra.mxu0 %v8824_v46  ;;  %5501 = vmatpush.bf16.msra.mxu1 %v8952_v8  ;;  %v10110_v46 = vld [vmem:[#allocation7 + $0xec] sm:$0xf]  ;;  %v8760_v8 = vor.u32 %v10083_v56, %v8759_v31  ;;  %v8961_v31 = vld [vmem:[#allocation7 + $0x198] sm:$0xf0]  ;;  %v8815_v56 = vld [vmem:[#allocation7 + $0x68] sm:$0xf] }
 0x424   : > { %5514 = vmatpush.bf16.msra.mxu2 %v8828_v22  ;;  %5527 = vmatpush.bf16.msra.mxu3 %v8956_v12  ;;  %v9009_v22 = vld [vmem:[#allocation7 + $0x1f8] sm:$0xf0]  ;;  %v8764_v12 = vor.u32 %v10081_v59, %v8761_v49  ;;  %v8884_v41 = vor.u32 %v10110_v46, %v8881_v0  ;;  %v10128_v59 = vld [vmem:[#allocation7 + $0x174] sm:$0xf0]  ;;  %v10094_v49 = vld [vmem:[#allocation7 + $0x6c] sm:$0xf]  ;;  %v8816_v33 = vor.u32 %v10096_v50, %v8815_v56 }
 0x425   : > { %5116 = vmatmul.bf16.vlgmr.msrb.gmra.mxu0 %v12696_v17  ;;  %5129 = vmatmul.bf16.vlgmr.msrb.gmra.mxu1 %v12698_v1  ;;  %v9012_v42 = vor.u32 %v10142_v45, %v9009_v22  ;;  %v8820_v55 = vor.u32 %v10094_v49, %v8817_v3  ;;  %v8948_v46 = vor.u32 %v10126_v32, %v8945_v9  ;;  %v10090_v0 = vld [vmem:[#allocation7 + $0x4c] sm:$0xf]  ;;  %v8801_v45 = vld [vmem:[#allocation7 + $0x58] sm:$0xf0]  ;;  %v9111_v56 = vld [vmem:[#allocation7 + $0x4c0] sm:$0xf] }
 0x426   : > { %5142 = vmatmul.bf16.vlgmr.msrb.gmra.mxu2 %v12696_v17  ;;  %5155 = vmatmul.bf16.vlgmr.msrb.gmra.mxu3 %v12698_v1  ;;  %v8905_v17 = vld [vmem:[#allocation7 + $0x130] sm:$0xf0]  ;;  %v4554_v1 = vrot.slane %v4553_v7, 1  ;;  %v10122_v22 = vld [vmem:[#allocation7 + $0x14c] sm:$0xf]  ;;  %v8804_v30 = vor.u32 %v10090_v0, %v8801_v45 }
 0x427   : > { %5489 = vmatpush.bf16.msra.mxu0 %v8808_v52  ;;  %5502 = vmatpush.bf16.msra.mxu1 %v8936_v14  ;;  %v8908_v19 = vor.u32 %v10117_v58, %v8905_v17  ;;  %v10140_v52 = vld [vmem:[#allocation7 + $0x1d4] sm:$0xf0]  ;;  %v10106_v14 = vld [vmem:[#allocation7 + $0xcc] sm:$0xf]  ;;  %v10235_v50 = vld [vmem:[#allocation7 + $0x4cc] sm:$0xf0] }
 0x428   : > { %5515 = vmatpush.bf16.msra.mxu2 %v8812_v63  ;;  %5528 = vmatpush.bf16.msra.mxu3 %v8940_v28  ;;  %v4555_v53 = vmax.f32 %v4553_v7, %v4554_v1  ;;  %v8992_v2 = vor.u32 %v10140_v52, %v8991_v23  ;;  %v8868_v36 = vor.u32 %v10106_v14, %v8865_v29  ;;  %v10102_v7 = vld [vmem:[#allocation7 + $0xac] sm:$0xf]  ;;  %v10132_v58 = vld [vmem:[#allocation7 + $0x194] sm:$0xf0]  ;;  %v8785_v52 = vld [vmem:[#allocation7 + $0x38] sm:$0xf0] }
 0x429   : > { %v10098_v17 = vld [vmem:[#allocation7 + $0x8c] sm:$0xf]  ;;  %v8913_v29 = vld [vmem:[#allocation7 + $0x138] sm:$0xf0]  ;;  %v10233_v49 = vld [vmem:[#allocation7 + $0x4c4] sm:$0xf] }
 0x42a   : > { %v4598_v21 = vpack.c.bf16 %v4555_v53, %v4548_v62  ;;  %v10130_v1 = vld [vmem:[#allocation7 + $0x18c] sm:$0xf]  ;;  %v8836_v15 = vor.u32 %v10098_v17, %v8833_v25  ;;  %v8799_v53 = vld [vmem:[#allocation7 + $0x48] sm:$0xf]  ;;  %v9113_v9 = vld [vmem:[#allocation7 + $0x4d0] sm:$0xf0] }
 0x42b   : > { %5490 = vmatpush.bf16.msra.mxu0 %v8792_v5  ;;  %5503 = vmatpush.bf16.msra.mxu1 %v8920_v57  ;;  %v8849_v5 = vld [vmem:[#allocation7 + $0xb8] sm:$0xf0]  ;;  %v10134_v57 = vld [vmem:[#allocation7 + $0x1ac] sm:$0xf]  ;;  %v9116_v0 = vor.u32 %v10233_v49, %v9113_v9  ;;  %v9031_v49 = vld [vmem:[#allocation7 + $0x420] sm:$0xf] }
 0x42c   : > { %5516 = vmatpush.bf16.msra.mxu2 %v8796_v60  ;;  %5529 = vmatpush.bf16.msra.mxu3 %v8924_v37  ;;  %v12714_v63 = vperm.slane %v4598_v21, 0  ;;  %v12716_v28 = vperm.slane %v4598_v21, 4  ;;  %v8831_v60 = vld [vmem:[#allocation7 + $0x88] sm:$0xf]  ;;  %v10100_v37 = vld [vmem:[#allocation7 + $0x94] sm:$0xf0]  ;;  %v8852_v13 = vor.u32 %v10102_v7, %v8849_v5  ;;  %v8980_v34 = vor.u32 %v10134_v57, %v8977_v61 }
 0x42d   : > { %v10088_v21 = vld [vmem:[#allocation7 + $0x34] sm:$0xf0]  ;;  %v10086_v23 = vld [vmem:[#allocation7 + $0x2c] sm:$0xf]  ;;  %v8897_v5 = vld [vmem:[#allocation7 + $0x118] sm:$0xf0] }
 0x42e   : > { %v10118_v14 = vld [vmem:[#allocation7 + $0x12c] sm:$0xf]  ;;  %v8788_v24 = vor.u32 %v10086_v23, %v8785_v52  ;;  %v9127_v57 = vld [vmem:[#allocation7 + $0x4e0] sm:$0xf]  ;;  %v10239_v61 = vld [vmem:[#allocation7 + $0x4ec] sm:$0xf0] }
 0x42f   : > { %5491 = vmatpush.bf16.msra.mxu0 %v8776_v39  ;;  %5504 = vmatpush.bf16.msra.mxu1 %v8904_v40  ;;  %v8832_v39 = vor.u32 %v10100_v37, %v8831_v60  ;;  %v8960_v40 = vor.u32 %v10132_v58, %v8959_v47  ;;  %v8916_v7 = vor.u32 %v10118_v14, %v8913_v29  ;;  %v10237_v60 = vld [vmem:[#allocation7 + $0x4e4] sm:$0xf]  ;;  %v9129_v37 = vld [vmem:[#allocation7 + $0x4f0] sm:$0xf0] }
 0x430   : > { %5517 = vmatpush.bf16.msra.mxu2 %v8780_v54  ;;  %5530 = vmatpush.bf16.msra.mxu3 %v8908_v19  ;;  %v8964_v54 = vor.u32 %v10130_v1, %v8961_v31  ;;  %v8943_v19 = vld [vmem:[#allocation7 + $0x168] sm:$0xf]  ;;  %v8768_v47 = vor.u32 %v10084_v16, %v8767_v20  ;;  %v4530_v25 = vld.sshfl [vmem:[#allocation1 + $0x8] sm:$0xff pattern:$0x73625140]  ;;  %v8900_v31 = vor.u32 %v10114_v10, %v8897_v5 }
 0x431   : > { %v8944_v62 = vor.u32 %v10128_v59, %v8943_v19  ;;  %v4529_v17 = vld.sshfl [vmem:[#allocation1] sm:$0xff pattern:$0x73625140]  ;;  %v10267_v59 = vld [vmem:[#allocation7 + $0x5cc] sm:$0xf0]  ;;  %v4577_v32 = vsel %vm975_vm3, %v4530_v25, -inf }
 0x432   : > { %v4570_v3 = vsel %vm975_vm3, %v4529_v17, -inf  ;;  %v9207_v20 = vld [vmem:[#allocation7 + $0x580] sm:$0xf]  ;;  %v10259_v16 = vld [vmem:[#allocation7 + $0x58c] sm:$0xf0] }
 0x433   : > { %5492 = vmatpush.bf16.msra.mxu0 %v8760_v8  ;;  %5505 = vmatpush.bf16.msra.mxu1 %v8888_v43  ;;  %v8927_v8 = vld [vmem:[#allocation7 + $0x148] sm:$0xf]  ;;  %v10124_v43 = vld [vmem:[#allocation7 + $0x154] sm:$0xf0] }
 0x434   : > { %5518 = vmatpush.bf16.msra.mxu2 %v8764_v12  ;;  %5531 = vmatpush.bf16.msra.mxu3 %v8892_v48  ;;  %v8929_v12 = vld [vmem:[#allocation7 + $0x158] sm:$0xf0]  ;;  %v8800_v48 = vor.u32 %v10092_v6, %v8799_v53  ;;  %v9112_v53 = vor.u32 %v10235_v50, %v9111_v56  ;;  %v10217_v56 = vld [vmem:[#allocation7 + $0x444] sm:$0xf]  ;;  %v9049_v50 = vld [vmem:[#allocation7 + $0x450] sm:$0xf0] }
 0x435   : > { %v8932_v51 = vor.u32 %v10122_v22, %v8929_v12  ;;  %v9223_v22 = vld [vmem:[#allocation7 + $0x5a0] sm:$0xf]  ;;  %v10263_v12 = vld [vmem:[#allocation7 + $0x5ac] sm:$0xf0] }
 0x436   : > { %5493 = vmatmul.bf16.vlgmr.msra.gmra.mxu0 %v12714_v63  ;;  %5506 = vmatmul.bf16.vlgmr.msra.gmra.mxu1 %v12716_v28 }
 0x437   : > { %5537 = vmatpush.bf16.msrb.mxu0 %v8880_v38  ;;  %5550 = vmatpush.bf16.msrb.mxu1 %v9008_v44  ;;  %v8928_v38 = vor.u32 %v10124_v43, %v8927_v8  ;;  %v8783_v44 = vld [vmem:[#allocation7 + $0x28] sm:$0xf]  ;;  %v4571_v8 = vrot.slane %v4570_v3, 4  ;;  %v4578_v43 = vrot.slane %v4577_v32, 4 }
 0x438   : > { %5563 = vmatpush.bf16.msrb.mxu2 %v8884_v41  ;;  %5576 = vmatpush.bf16.msrb.mxu3 %v9012_v42  ;;  %v8911_v41 = vld [vmem:[#allocation7 + $0x128] sm:$0xf]  ;;  %v10120_v42 = vld [vmem:[#allocation7 + $0x134] sm:$0xf0]  ;;  %v8784_v27 = vor.u32 %v10088_v21, %v8783_v44  ;;  %v10261_v44 = vld [vmem:[#allocation7 + $0x5a4] sm:$0xf] }
 0x439   : > { %5519 = vmatmul.bf16.vlgmr.msra.gmra.mxu2 %v12714_v63  ;;  %5532 = vmatmul.bf16.vlgmr.msra.gmra.mxu3 %v12716_v28  ;;  %v8912_v11 = vor.u32 %v10120_v42, %v8911_v41  ;;  %v9225_v21 = vld [vmem:[#allocation7 + $0x5b0] sm:$0xf0]  ;;  %v9079_v41 = vld [vmem:[#allocation7 + $0x480] sm:$0xf]  ;;  %v10227_v42 = vld [vmem:[#allocation7 + $0x48c] sm:$0xf0]  ;;  %v4572_v23 = vmax.f32 %v4570_v3, %v4571_v8  ;;  %v4579_v52 = vmax.f32 %v4577_v32, %v4578_v43 }
 0x43a   : > { %v9228_v29 = vor.u32 %v10261_v44, %v9225_v21  ;;  %v10215_v3 = vld [vmem:[#allocation7 + $0x42c] sm:$0xf0]  ;;  %v10245_v8 = vld [vmem:[#allocation7 + $0x524] sm:$0xf]  ;;  %v9161_v43 = vld [vmem:[#allocation7 + $0x530] sm:$0xf0] }
 0x43b   : > { %5538 = vmatpush.bf16.msrb.mxu0 %v8864_v4  ;;  %5551 = vmatpush.bf16.msrb.mxu1 %v8992_v2  ;;  %v8895_v4 = vld [vmem:[#allocation7 + $0x108] sm:$0xf]  ;;  %v10116_v2 = vld [vmem:[#allocation7 + $0x114] sm:$0xf0]  ;;  %v4573_v10 = vrot.slane %v4572_v23, 2  ;;  %v9164_v21 = vor.u32 %v10245_v8, %v9161_v43 }
 0x43c   : > { %5564 = vmatpush.bf16.msrb.mxu2 %v8868_v36  ;;  %5577 = vmatpush.bf16.msrb.mxu3 %v8996_v35  ;;  %v10082_v36 = vld [vmem:[#allocation7 + $0xc] sm:$0xf]  ;;  %v8769_v35 = vld [vmem:[#allocation7 + $0x18] sm:$0xf0]  ;;  %v8896_v58 = vor.u32 %v10116_v2, %v8895_v4  ;;  %v10225_v4 = vld [vmem:[#allocation7 + $0x484] sm:$0xf] }
 0x43d   : > { %v8772_v1 = vor.u32 %v10082_v36, %v8769_v35  ;;  %v9081_v2 = vld [vmem:[#allocation7 + $0x490] sm:$0xf0]  ;;  %v9063_v36 = vld [vmem:[#allocation7 + $0x460] sm:$0xf]  ;;  %v10223_v35 = vld [vmem:[#allocation7 + $0x46c] sm:$0xf0]  ;;  %v4574_v17 = vmax.f32 %v4572_v23, %v4573_v10 }
 0x43e   : > { %v9135_v23 = vld [vmem:[#allocation7 + $0x4e8] sm:$0xf]  ;;  %v9089_v8 = vld [vmem:[#allocation7 + $0x498] sm:$0xf0]  ;;  %v10258_v43 = vld [vmem:[#allocation7 + $0x58c] sm:$0xf] }
 0x43f   : > { %5539 = vmatpush.bf16.msrb.mxu0 %v8848_v18  ;;  %5552 = vmatpush.bf16.msrb.mxu1 %v8976_v26  ;;  %v9255_v18 = vld [vmem:[#allocation7 + $0x5e0] sm:$0xf]  ;;  %v10271_v26 = vld [vmem:[#allocation7 + $0x5ec] sm:$0xf0]  ;;  %v4575_v32 = vrot.slane %v4574_v17, 1 }
 0x440   : > { %5565 = vmatpush.bf16.msrb.mxu2 %v8852_v13  ;;  %5578 = vmatpush.bf16.msrb.mxu3 %v8980_v34  ;;  %v10269_v13 = vld [vmem:[#allocation7 + $0x5e4] sm:$0xf]  ;;  %v9257_v34 = vld [vmem:[#allocation7 + $0x5f0] sm:$0xf0] }
 0x441   : > { %v9260_v19 = vor.u32 %v10269_v13, %v9257_v34  ;;  %v9064_v13 = vor.u32 %v10223_v35, %v9063_v36 }
 0x443   : > { %5540 = vmatpush.bf16.msrb.mxu0 %v8832_v39  ;;  %5553 = vmatpush.bf16.msrb.mxu1 %v8960_v40  ;;  %v9128_v39 = vor.u32 %v10239_v61, %v9127_v57  ;;  %v9256_v40 = vor.u32 %v10271_v26, %v9255_v18  ;;  %v9191_v57 = vld [vmem:[#allocation7 + $0x560] sm:$0xf]  ;;  %v10255_v61 = vld [vmem:[#allocation7 + $0x56c] sm:$0xf0]  ;;  %v10221_v18 = vld [vmem:[#allocation7 + $0x464] sm:$0xf] }
 0x444   : > { %5566 = vmatpush.bf16.msrb.mxu2 %v8836_v15  ;;  %5579 = vmatpush.bf16.msrb.mxu3 %v8964_v54  ;;  %v9239_v15 = vld [vmem:[#allocation7 + $0x5c0] sm:$0xf]  ;;  %v9132_v54 = vor.u32 %v10237_v60, %v9129_v37  ;;  %v9065_v26 = vld [vmem:[#allocation7 + $0x470] sm:$0xf0]  ;;  %v10253_v60 = vld [vmem:[#allocation7 + $0x564] sm:$0xf]  ;;  %v9192_v34 = vor.u32 %v10255_v61, %v9191_v57 }
 0x445   : > { %v9240_v6 = vor.u32 %v10267_v59, %v9239_v15  ;;  %v9193_v37 = vld [vmem:[#allocation7 + $0x570] sm:$0xf0]  ;;  %v10249_v15 = vld [vmem:[#allocation7 + $0x544] sm:$0xf]  ;;  %v10236_v57 = vld [vmem:[#allocation7 + $0x4d4] sm:$0xf0] }
 0x447   : > { %5541 = vmatpush.bf16.msrb.mxu0 %v8816_v33  ;;  %5554 = vmatpush.bf16.msrb.mxu1 %v8944_v62  ;;  %v10265_v33 = vld [vmem:[#allocation7 + $0x5c4] sm:$0xf]  ;;  %v9241_v62 = vld [vmem:[#allocation7 + $0x5d0] sm:$0xf0] }
 0x448   : > { %5567 = vmatpush.bf16.msrb.mxu2 %v8820_v55  ;;  %5580 = vmatpush.bf16.msrb.mxu3 %v8948_v46  ;;  %v9095_v55 = vld [vmem:[#allocation7 + $0x4a0] sm:$0xf]  ;;  %v10231_v46 = vld [vmem:[#allocation7 + $0x4ac] sm:$0xf0]  ;;  %v9244_v45 = vor.u32 %v10265_v33, %v9241_v62  ;;  %v9052_v33 = vor.u32 %v10217_v56, %v9049_v50  ;;  %v9231_v50 = vld [vmem:[#allocation7 + $0x5a8] sm:$0xf] }
 0x44b   : > { %5542 = vmatpush.bf16.msrb.mxu0 %v8800_v48  ;;  %5555 = vmatpush.bf16.msrb.mxu1 %v8928_v38  ;;  %v10229_v48 = vld [vmem:[#allocation7 + $0x4a4] sm:$0xf]  ;;  %v9097_v38 = vld [vmem:[#allocation7 + $0x4b0] sm:$0xf0] }
 0x44c   : > { %5568 = vmatpush.bf16.msrb.mxu2 %v8804_v30  ;;  %5581 = vmatpush.bf16.msrb.mxu3 %v8932_v51  ;;  %v9096_v30 = vor.u32 %v10231_v46, %v9095_v55  ;;  %v9224_v51 = vor.u32 %v10263_v12, %v9223_v22  ;;  %v9100_v14 = vor.u32 %v10229_v48, %v9097_v38  ;;  %v10213_v55 = vld [vmem:[#allocation7 + $0x424] sm:$0xf]  ;;  %v9033_v46 = vld [vmem:[#allocation7 + $0x430] sm:$0xf0]  ;;  %v10211_v12 = vld [vmem:[#allocation7 + $0x40c] sm:$0xf0] }
 0x44d   : > { %v9143_v48 = vld [vmem:[#allocation7 + $0x500] sm:$0xf]  ;;  %v10243_v38 = vld [vmem:[#allocation7 + $0x50c] sm:$0xf0]  ;;  %v9036_v44 = vor.u32 %v10213_v55, %v9033_v46  ;;  %v10260_v55 = vld [vmem:[#allocation7 + $0x594] sm:$0xf0] }
 0x44e   : > { %v10226_v46 = vld [vmem:[#allocation7 + $0x48c] sm:$0xf] }
 0x44f   : > { %5543 = vmatpush.bf16.msrb.mxu0 %v8784_v27  ;;  %5556 = vmatpush.bf16.msrb.mxu1 %v8912_v11  ;;  %v10257_v27 = vld [vmem:[#allocation7 + $0x584] sm:$0xf]  ;;  %v9208_v11 = vor.u32 %v10259_v16, %v9207_v20  ;;  %v9263_v20 = vld [vmem:[#allocation7 + $0x5e8] sm:$0xf]  ;;  %v10272_v16 = vld [vmem:[#allocation7 + $0x5f4] sm:$0xf0] }
 0x450   : > { %5569 = vmatpush.bf16.msrb.mxu2 %v8788_v24  ;;  %5582 = vmatpush.bf16.msrb.mxu3 %v8916_v7  ;;  %v4580_v24 = vrot.slane %v4579_v52, 2  ;;  %v9084_v7 = vor.u32 %v10225_v4, %v9081_v2  ;;  %v10238_v4 = vld [vmem:[#allocation7 + $0x4ec] sm:$0xf] }
 0x452   : > { %v4581_v25 = vmax.f32 %v4579_v52, %v4580_v24  ;;  %v10240_v52 = vld [vmem:[#allocation7 + $0x4f4] sm:$0xf0]  ;;  %v9264_v24 = vor.u32 %v10272_v16, %v9263_v20 }
 0x453   : > { %5544 = vmatpush.bf16.msrb.mxu0 %v8768_v47  ;;  %5557 = vmatpush.bf16.msrb.mxu1 %v8896_v58  ;;  %v9047_v47 = vld [vmem:[#allocation7 + $0x440] sm:$0xf]  ;;  %v10219_v58 = vld [vmem:[#allocation7 + $0x44c] sm:$0xf0]  ;;  %v9136_v10 = vor.u32 %v10240_v52, %v9135_v23  ;;  %v9201_v23 = vld [vmem:[#allocation7 + $0x578] sm:$0xf0] }
 0x454   : > { %5570 = vmatpush.bf16.msrb.mxu2 %v8772_v1  ;;  %5583 = vmatpush.bf16.msrb.mxu3 %v8900_v31  ;;  %v9068_v1 = vor.u32 %v10221_v18, %v9065_v26  ;;  %v9196_v31 = vor.u32 %v10253_v60, %v9193_v37  ;;  %v4582_v9 = vrot.slane %v4581_v25, 1  ;;  %v9247_v26 = vld [vmem:[#allocation7 + $0x5c8] sm:$0xf]  ;;  %v10268_v60 = vld [vmem:[#allocation7 + $0x5d4] sm:$0xf0] }
 0x455   : > { %v10234_v37 = vld [vmem:[#allocation7 + $0x4cc] sm:$0xf]  ;;  %v10220_v20 = vld [vmem:[#allocation7 + $0x454] sm:$0xf0] }
 0x456   : > { %5545 = vmatmul.bf16.vlgmr.msrb.gmra.mxu0 %v12714_v63  ;;  %5558 = vmatmul.bf16.vlgmr.msrb.gmra.mxu1 %v12716_v28 }
 0x457   : > { %5979 = vmatpush.bf16.msra.mxu0 %v9128_v39  ;;  %5992 = vmatpush.bf16.msra.mxu1 %v9256_v40  ;;  %v9175_v39 = vld [vmem:[#allocation7 + $0x540] sm:$0xf]  ;;  %v10251_v40 = vld [vmem:[#allocation7 + $0x54c] sm:$0xf0] }
 0x458   : > { %6005 = vmatpush.bf16.msra.mxu2 %v9132_v54  ;;  %6018 = vmatpush.bf16.msra.mxu3 %v9260_v19  ;;  %v9177_v54 = vld [vmem:[#allocation7 + $0x550] sm:$0xf0]  ;;  %v9048_v19 = vor.u32 %v10219_v58, %v9047_v47  ;;  %v9176_v59 = vor.u32 %v10251_v40, %v9175_v39  ;;  %v9249_v47 = vld [vmem:[#allocation7 + $0x5d8] sm:$0xf0]  ;;  %v10232_v39 = vld [vmem:[#allocation7 + $0x4b4] sm:$0xf0] }
 0x459   : > { %5571 = vmatmul.bf16.vlgmr.msrb.gmra.mxu2 %v12714_v63  ;;  %5584 = vmatmul.bf16.vlgmr.msrb.gmra.mxu3 %v12716_v28  ;;  %v9209_v63 = vld [vmem:[#allocation7 + $0x590] sm:$0xf0]  ;;  %v9080_v28 = vor.u32 %v10227_v42, %v9079_v41  ;;  %v9180_v62 = vor.u32 %v10249_v15, %v9177_v54  ;;  %v10241_v41 = vld [vmem:[#allocation7 + $0x504] sm:$0xf]  ;;  %v10264_v15 = vld [vmem:[#allocation7 + $0x5b4] sm:$0xf0] }
 0x45a   : > { %v9212_v5 = vor.u32 %v10257_v27, %v9209_v63  ;;  %v9145_v42 = vld [vmem:[#allocation7 + $0x510] sm:$0xf0]  ;;  %v9144_v27 = vor.u32 %v10243_v38, %v9143_v48  ;;  %v9137_v63 = vld [vmem:[#allocation7 + $0x4f8] sm:$0xf0]  ;;  %v10230_v54 = vld [vmem:[#allocation7 + $0x4ac] sm:$0xf]  ;;  %v9092_v38 = vor.u32 %v10226_v46, %v9089_v8 }
 0x45b   : > { %5980 = vmatpush.bf16.msra.mxu0 %v9112_v53  ;;  %5993 = vmatpush.bf16.msra.mxu1 %v9240_v6  ;;  %v9159_v53 = vld [vmem:[#allocation7 + $0x520] sm:$0xf]  ;;  %v10247_v6 = vld [vmem:[#allocation7 + $0x52c] sm:$0xf0]  ;;  %v9148_v35 = vor.u32 %v10241_v41, %v9145_v42  ;;  %v9140_v61 = vor.u32 %v10238_v4, %v9137_v63  ;;  %v10224_v48 = vld [vmem:[#allocation7 + $0x474] sm:$0xf0] }
 0x45c   : > { %6006 = vmatpush.bf16.msra.mxu2 %v9116_v0  ;;  %6019 = vmatpush.bf16.msra.mxu3 %v9244_v45  ;;  %v9015_v0 = vld [vmem:[#allocation7 + $0x400] sm:$0xf]  ;;  %v9032_v45 = vor.u32 %v10215_v3, %v9031_v49  ;;  %v9160_v22 = vor.u32 %v10247_v6, %v9159_v53  ;;  %v9233_v49 = vld [vmem:[#allocation7 + $0x5b8] sm:$0xf0]  ;;  %v9215_v6 = vld [vmem:[#allocation7 + $0x588] sm:$0xf] }
 0x45d   : > { %v9016_v2 = vor.u32 %v10211_v12, %v9015_v0  ;;  %v9217_v0 = vld [vmem:[#allocation7 + $0x598] sm:$0xf0]  ;;  %v9071_v12 = vld [vmem:[#allocation7 + $0x468] sm:$0xf]  ;;  %v10254_v42 = vld [vmem:[#allocation7 + $0x56c] sm:$0xf] }
 0x45e   : > { %v9073_v41 = vld [vmem:[#allocation7 + $0x478] sm:$0xf0]  ;;  %v9072_v52 = vor.u32 %v10224_v48, %v9071_v12  ;;  %v9204_v4 = vor.u32 %v10254_v42, %v9201_v23  ;;  %v10218_v63 = vld [vmem:[#allocation7 + $0x44c] sm:$0xf]  ;;  %v10333_v46 = vld [vmem:[#allocation7 + $0x7e4] sm:$0xf] }
 0x45f   : > { %5981 = vmatpush.bf16.msra.mxu0 %v9096_v30  ;;  %5994 = vmatpush.bf16.msra.mxu1 %v9224_v51  ;;  %v10209_v30 = vld [vmem:[#allocation7 + $0x404] sm:$0xf]  ;;  %v9017_v51 = vld [vmem:[#allocation7 + $0x410] sm:$0xf0]  ;;  %v9367_v12 = vld [vmem:[#allocation7 + $0x6c0] sm:$0xf] }
 0x460   : > { %6007 = vmatpush.bf16.msra.mxu2 %v9100_v14  ;;  %6020 = vmatpush.bf16.msra.mxu3 %v9228_v29  ;;  %v4576_v14 = vmax.f32 %v4574_v17, %v4575_v32  ;;  %v4583_v29 = vmax.f32 %v4581_v25, %v4582_v9  ;;  %v9020_v36 = vor.u32 %v10209_v30, %v9017_v51  ;;  %v9087_v9 = vld [vmem:[#allocation7 + $0x488] sm:$0xf]  ;;  %v10256_v30 = vld [vmem:[#allocation7 + $0x574] sm:$0xf0]  ;;  %v10222_v51 = vld [vmem:[#allocation7 + $0x46c] sm:$0xf] }
 0x461   : > { %v9232_v32 = vor.u32 %v10264_v15, %v9231_v50  ;;  %v9076_v16 = vor.u32 %v10222_v51, %v9073_v41  ;;  %v10210_v50 = vld [vmem:[#allocation7 + $0x40c] sm:$0xf]  ;;  %v9025_v15 = vld [vmem:[#allocation7 + $0x418] sm:$0xf0]  ;;  %v9513_v8 = vld [vmem:[#allocation7 + $0x7f0] sm:$0xf0] }
 0x462   : > { %v10299_v48 = vld [vmem:[#allocation7 + $0x6cc] sm:$0xf0]  ;;  %v9495_v51 = vld [vmem:[#allocation7 + $0x7c0] sm:$0xf]  ;;  %v10297_v42 = vld [vmem:[#allocation7 + $0x6c4] sm:$0xf] }
 0x463   : > { %5982 = vmatpush.bf16.msra.mxu0 %v9080_v28  ;;  %5995 = vmatpush.bf16.msra.mxu1 %v9208_v11  ;;  %v10270_v28 = vld [vmem:[#allocation7 + $0x5ec] sm:$0xf]  ;;  %v9265_v11 = vld [vmem:[#allocation7 + $0x5f8] sm:$0xf0]  ;;  %v10331_v41 = vld [vmem:[#allocation7 + $0x7cc] sm:$0xf0] }
 0x464   : > { %6008 = vmatpush.bf16.msra.mxu2 %v9084_v7  ;;  %6021 = vmatpush.bf16.msra.mxu3 %v9212_v5  ;;  %v4600_v7 = vpack.c.bf16 %v4583_v29, %v4576_v14  ;;  %v9119_v5 = vld [vmem:[#allocation7 + $0x4c8] sm:$0xf]  ;;  %v9268_v18 = vor.u32 %v10270_v28, %v9265_v11  ;;  %v9057_v28 = vld [vmem:[#allocation7 + $0x458] sm:$0xf0]  ;;  %v10250_v11 = vld [vmem:[#allocation7 + $0x54c] sm:$0xf] }
 0x465   : > { %v9120_v25 = vor.u32 %v10236_v57, %v9119_v5  ;;  %v9055_v29 = vld [vmem:[#allocation7 + $0x448] sm:$0xf]  ;;  %v9060_v5 = vor.u32 %v10218_v63, %v9057_v28  ;;  %v9369_v23 = vld [vmem:[#allocation7 + $0x6d0] sm:$0xf0] }
 0x466   : > { %v12728_v58 = vperm.slane %v4600_v7, 0  ;;  %v12730_v17 = vperm.slane %v4600_v7, 4  ;;  %v10216_v7 = vld [vmem:[#allocation7 + $0x434] sm:$0xf0]  ;;  %v9372_v63 = vor.u32 %v10297_v42, %v9369_v23  ;;  %v10281_v42 = vld [vmem:[#allocation7 + $0x644] sm:$0xf] }
 0x467   : > { %5983 = vmatpush.bf16.msra.mxu0 %v9064_v13  ;;  %5996 = vmatpush.bf16.msra.mxu1 %v9192_v34  ;;  %v9121_v13 = vld [vmem:[#allocation7 + $0x4d8] sm:$0xf0]  ;;  %v10266_v34 = vld [vmem:[#allocation7 + $0x5cc] sm:$0xf]  ;;  %v9305_v23 = vld [vmem:[#allocation7 + $0x650] sm:$0xf0] }
 0x468   : > { %6009 = vmatpush.bf16.msra.mxu2 %v9068_v1  ;;  %6022 = vmatpush.bf16.msra.mxu3 %v9196_v31  ;;  %v9248_v1 = vor.u32 %v10268_v60, %v9247_v26  ;;  %v9103_v31 = vld [vmem:[#allocation7 + $0x4a8] sm:$0xf]  ;;  %v9124_v40 = vor.u32 %v10234_v37, %v9121_v13  ;;  %v9252_v56 = vor.u32 %v10266_v34, %v9249_v47  ;;  %v10214_v26 = vld [vmem:[#allocation7 + $0x42c] sm:$0xf]  ;;  %v9041_v60 = vld [vmem:[#allocation7 + $0x438] sm:$0xf0] }
 0x469   : > { %v9104_v3 = vor.u32 %v10232_v39, %v9103_v31  ;;  %v10246_v37 = vld [vmem:[#allocation7 + $0x52c] sm:$0xf]  ;;  %v9169_v13 = vld [vmem:[#allocation7 + $0x538] sm:$0xf0]  ;;  %v9023_v34 = vld [vmem:[#allocation7 + $0x408] sm:$0xf] }
 0x46a   : > { %v9151_v31 = vld [vmem:[#allocation7 + $0x508] sm:$0xf]  ;;  %v10244_v39 = vld [vmem:[#allocation7 + $0x514] sm:$0xf0] }
 0x46b   : > { %5984 = vmatpush.bf16.msra.mxu0 %v9048_v19  ;;  %5997 = vmatpush.bf16.msra.mxu1 %v9176_v59  ;;  %v9105_v19 = vld [vmem:[#allocation7 + $0x4b8] sm:$0xf0]  ;;  %v10262_v59 = vld [vmem:[#allocation7 + $0x5ac] sm:$0xf] }
 0x46c   : > { %6010 = vmatpush.bf16.msra.mxu2 %v9052_v33  ;;  %6023 = vmatpush.bf16.msra.mxu3 %v9180_v62  ;;  %v10228_v33 = vld [vmem:[#allocation7 + $0x494] sm:$0xf0]  ;;  %v9108_v62 = vor.u32 %v10230_v54, %v9105_v19  ;;  %v9236_v53 = vor.u32 %v10262_v59, %v9233_v49  ;;  %v10242_v54 = vld [vmem:[#allocation7 + $0x50c] sm:$0xf]  ;;  %v9153_v49 = vld [vmem:[#allocation7 + $0x518] sm:$0xf0] }
 0x46d   : > { %v4532_v19 = vld.sshfl [vmem:[#allocation1 + $0x20] sm:$0xff pattern:$0x73625140]  ;;  %v4533_v59 = vld.sshfl [vmem:[#allocation1 + $0x28] sm:$0xff pattern:$0x73625140] }
 0x46f   : > { %5985 = vmatpush.bf16.msra.mxu0 %v9032_v45  ;;  %5998 = vmatpush.bf16.msra.mxu1 %v9160_v22  ;;  %v9088_v45 = vor.u32 %v10228_v33, %v9087_v9  ;;  %v9216_v22 = vor.u32 %v10260_v55, %v9215_v6  ;;  %v9511_v9 = vld [vmem:[#allocation7 + $0x7e0] sm:$0xf]  ;;  %v10335_v33 = vld [vmem:[#allocation7 + $0x7ec] sm:$0xf0]  ;;  %v9152_v6 = vor.u32 %v10244_v39, %v9151_v31  ;;  %v9385_v55 = vld [vmem:[#allocation7 + $0x6f0] sm:$0xf0] }
 0x470   : > { %6011 = vmatpush.bf16.msra.mxu2 %v9036_v44  ;;  %6024 = vmatpush.bf16.msra.mxu3 %v9164_v21  ;;  %v9220_v44 = vor.u32 %v10258_v43, %v9217_v0  ;;  %v9199_v21 = vld [vmem:[#allocation7 + $0x568] sm:$0xf]  ;;  %v9028_v43 = vor.u32 %v10210_v50, %v9025_v15  ;;  %v9156_v0 = vor.u32 %v10242_v54, %v9153_v49  ;;  %v10289_v31 = vld [vmem:[#allocation7 + $0x684] sm:$0xf]  ;;  %v9319_v54 = vld [vmem:[#allocation7 + $0x660] sm:$0xf] }
 0x471   : > { %v9200_v14 = vor.u32 %v10256_v30, %v9199_v21  ;;  %v9516_v30 = vor.u32 %v10333_v46, %v9513_v8  ;;  %v10321_v39 = vld [vmem:[#allocation7 + $0x784] sm:$0xf]  ;;  %v9449_v46 = vld [vmem:[#allocation7 + $0x770] sm:$0xf0] }
 0x473   : > { %5986 = vmatpush.bf16.msra.mxu0 %v9016_v2  ;;  %5999 = vmatpush.bf16.msra.mxu1 %v9144_v27  ;;  %v9183_v2 = vld [vmem:[#allocation7 + $0x548] sm:$0xf]  ;;  %v10252_v27 = vld [vmem:[#allocation7 + $0x554] sm:$0xf0] }
 0x474   : > { %6012 = vmatpush.bf16.msra.mxu2 %v9020_v36  ;;  %6025 = vmatpush.bf16.msra.mxu3 %v9148_v35  ;;  %v9185_v36 = vld [vmem:[#allocation7 + $0x558] sm:$0xf0]  ;;  %v9056_v35 = vor.u32 %v10220_v20, %v9055_v29 }
 0x475   : > { %v9188_v57 = vor.u32 %v10250_v11, %v9185_v36  ;;  %v9479_v11 = vld [vmem:[#allocation7 + $0x7a0] sm:$0xf]  ;;  %v10327_v36 = vld [vmem:[#allocation7 + $0x7ac] sm:$0xf0] }
 0x476   : > { %5987 = vmatmul.bf16.vlgmr.msra.gmra.mxu0 %v12728_v58  ;;  %6000 = vmatmul.bf16.vlgmr.msra.gmra.mxu1 %v12730_v17 }
 0x477   : > { %6031 = vmatpush.bf16.msrb.mxu0 %v9136_v10  ;;  %6044 = vmatpush.bf16.msrb.mxu1 %v9264_v24  ;;  %v9184_v10 = vor.u32 %v10252_v27, %v9183_v2  ;;  %v9039_v24 = vld [vmem:[#allocation7 + $0x428] sm:$0xf]  ;;  %v9351_v2 = vld [vmem:[#allocation7 + $0x6a0] sm:$0xf]  ;;  %v10295_v27 = vld [vmem:[#allocation7 + $0x6ac] sm:$0xf0] }
 0x478   : > { %6057 = vmatpush.bf16.msrb.mxu2 %v9140_v61  ;;  %6070 = vmatpush.bf16.msrb.mxu3 %v9268_v18  ;;  %v9167_v61 = vld [vmem:[#allocation7 + $0x528] sm:$0xf]  ;;  %v10248_v18 = vld [vmem:[#allocation7 + $0x534] sm:$0xf0]  ;;  %v9040_v47 = vor.u32 %v10216_v7, %v9039_v24  ;;  %v10325_v24 = vld [vmem:[#allocation7 + $0x7a4] sm:$0xf] }
 0x479   : > { %6013 = vmatmul.bf16.vlgmr.msra.gmra.mxu2 %v12728_v58  ;;  %6026 = vmatmul.bf16.vlgmr.msra.gmra.mxu3 %v12730_v17  ;;  %v9481_v7 = vld [vmem:[#allocation7 + $0x7b0] sm:$0xf0] }
 0x47b   : > { %6032 = vmatpush.bf16.msrb.mxu0 %v9120_v25  ;;  %6045 = vmatpush.bf16.msrb.mxu1 %v9248_v1  ;;  %v9168_v25 = vor.u32 %v10248_v18, %v9167_v61  ;;  %v10212_v1 = vld [vmem:[#allocation7 + $0x414] sm:$0xf0] }
 0x47c   : > { %6058 = vmatpush.bf16.msrb.mxu2 %v9124_v40  ;;  %6071 = vmatpush.bf16.msrb.mxu3 %v9252_v56  ;;  %v9044_v40 = vor.u32 %v10214_v26, %v9041_v60  ;;  %v9172_v56 = vor.u32 %v10246_v37, %v9169_v13  ;;  %v9352_v26 = vor.u32 %v10295_v27, %v9351_v2  ;;  %v9335_v13 = vld [vmem:[#allocation7 + $0x680] sm:$0xf] }
 0x47d   : > { %v9480_v60 = vor.u32 %v10327_v36, %v9479_v11  ;;  %v9415_v11 = vld [vmem:[#allocation7 + $0x720] sm:$0xf]  ;;  %v10311_v36 = vld [vmem:[#allocation7 + $0x72c] sm:$0xf0] }
 0x47f   : > { %6033 = vmatpush.bf16.msrb.mxu0 %v9104_v3  ;;  %6046 = vmatpush.bf16.msrb.mxu1 %v9232_v32  ;;  %v9383_v3 = vld [vmem:[#allocation7 + $0x6e0] sm:$0xf]  ;;  %v10303_v32 = vld [vmem:[#allocation7 + $0x6ec] sm:$0xf0] }
 0x480   : > { %6059 = vmatpush.bf16.msrb.mxu2 %v9108_v62  ;;  %6072 = vmatpush.bf16.msrb.mxu3 %v9236_v53  ;;  %v10301_v62 = vld [vmem:[#allocation7 + $0x6e4] sm:$0xf]  ;;  %v9024_v53 = vor.u32 %v10212_v1, %v9023_v34  ;;  %v10291_v34 = vld [vmem:[#allocation7 + $0x68c] sm:$0xf0]  ;;  %v9463_v1 = vld [vmem:[#allocation7 + $0x780] sm:$0xf] }
 0x481   : > { %v9388_v21 = vor.u32 %v10301_v62, %v9385_v55  ;;  %v9336_v50 = vor.u32 %v10291_v34, %v9335_v13  ;;  %v10317_v55 = vld [vmem:[#allocation7 + $0x764] sm:$0xf]  ;;  %v9416_v13 = vor.u32 %v10311_v36, %v9415_v11  ;;  %v9487_v36 = vld [vmem:[#allocation7 + $0x7a8] sm:$0xf] }
 0x483   : > { %6034 = vmatpush.bf16.msrb.mxu0 %v9088_v45  ;;  %6047 = vmatpush.bf16.msrb.mxu1 %v9216_v22  ;;  %v9384_v45 = vor.u32 %v10303_v32, %v9383_v3  ;;  %v9512_v22 = vor.u32 %v10335_v33, %v9511_v9  ;;  %v9447_v32 = vld [vmem:[#allocation7 + $0x760] sm:$0xf]  ;;  %v10319_v9 = vld [vmem:[#allocation7 + $0x76c] sm:$0xf0]  ;;  %v10285_v33 = vld [vmem:[#allocation7 + $0x664] sm:$0xf] }
 0x484   : > { %6060 = vmatpush.bf16.msrb.mxu2 %v9092_v38  ;;  %6073 = vmatpush.bf16.msrb.mxu3 %v9220_v44  ;;  %v4584_v38 = vsel %vm975_vm3, %v4532_v19, -inf  ;;  %v4591_v44 = vsel %vm975_vm3, %v4533_v59, -inf  ;;  %v10287_v19 = vld [vmem:[#allocation7 + $0x66c] sm:$0xf0] }
 0x485   : > { %v4585_v29 = vrot.slane %v4584_v38, 4  ;;  %v4592_v20 = vrot.slane %v4591_v44, 4 }
 0x487   : > { %6035 = vmatpush.bf16.msrb.mxu0 %v9072_v52  ;;  %6048 = vmatpush.bf16.msrb.mxu1 %v9200_v14  ;;  %v10329_v52 = vld [vmem:[#allocation7 + $0x7c4] sm:$0xf]  ;;  %v9497_v14 = vld [vmem:[#allocation7 + $0x7d0] sm:$0xf0]  ;;  %v4586_v61 = vmax.f32 %v4584_v38, %v4585_v29  ;;  %v4593_v18 = vmax.f32 %v4591_v44, %v4592_v20  ;;  %v10283_v38 = vld [vmem:[#allocation7 + $0x64c] sm:$0xf0] }
 0x488   : > { %6061 = vmatpush.bf16.msrb.mxu2 %v9076_v16  ;;  %6074 = vmatpush.bf16.msrb.mxu3 %v9204_v4  ;;  %v9368_v16 = vor.u32 %v10299_v48, %v9367_v12  ;;  %v9496_v4 = vor.u32 %v10331_v41, %v9495_v51  ;;  %v9500_v28 = vor.u32 %v10329_v52, %v9497_v14  ;;  %v9303_v48 = vld [vmem:[#allocation7 + $0x640] sm:$0xf]  ;;  %v10315_v41 = vld [vmem:[#allocation7 + $0x74c] sm:$0xf0]  ;;  %v10313_v52 = vld [vmem:[#allocation7 + $0x744] sm:$0xf] }
 0x489   : > { %v4594_v59 = vrot.slane %v4593_v18, 2  ;;  %v9448_v12 = vor.u32 %v10319_v9, %v9447_v32  ;;  %v9431_v51 = vld [vmem:[#allocation7 + $0x740] sm:$0xf]  ;;  %v9433_v14 = vld [vmem:[#allocation7 + $0x750] sm:$0xf0]  ;;  %v9304_v29 = vor.u32 %v10283_v38, %v9303_v48 }
 0x48a   : > { %v9432_v20 = vor.u32 %v10315_v41, %v9431_v51  ;;  %v10300_v48 = vld [vmem:[#allocation7 + $0x6d4] sm:$0xf0]  ;;  %v9503_v41 = vld [vmem:[#allocation7 + $0x7c8] sm:$0xf] }
 0x48b   : > { %6036 = vmatpush.bf16.msrb.mxu0 %v9056_v35  ;;  %6049 = vmatpush.bf16.msrb.mxu1 %v9184_v10  ;;  %v10293_v35 = vld [vmem:[#allocation7 + $0x6a4] sm:$0xf]  ;;  %v9353_v10 = vld [vmem:[#allocation7 + $0x6b0] sm:$0xf0]  ;;  %v4595_v44 = vmax.f32 %v4593_v18, %v4594_v59  ;;  %v9519_v59 = vld [vmem:[#allocation7 + $0x7e8] sm:$0xf] }
 0x48c   : > { %6062 = vmatpush.bf16.msrb.mxu2 %v9060_v5  ;;  %6075 = vmatpush.bf16.msrb.mxu3 %v9188_v57 }
 0x48d   : > { %v4596_v27 = vrot.slane %v4595_v44, 1 }
 0x48f   : > { %6037 = vmatpush.bf16.msrb.mxu0 %v9040_v47  ;;  %6050 = vmatpush.bf16.msrb.mxu1 %v9168_v25  ;;  %v9356_v47 = vor.u32 %v10293_v35, %v9353_v10  ;;  %v9484_v25 = vor.u32 %v10325_v24, %v9481_v7  ;;  %v10277_v35 = vld [vmem:[#allocation7 + $0x624] sm:$0xf]  ;;  %v9289_v7 = vld [vmem:[#allocation7 + $0x630] sm:$0xf0] }
 0x490   : > { %6063 = vmatpush.bf16.msrb.mxu2 %v9044_v40  ;;  %6076 = vmatpush.bf16.msrb.mxu3 %v9172_v56  ;;  %v9465_v40 = vld [vmem:[#allocation7 + $0x790] sm:$0xf0]  ;;  %v4587_v56 = vrot.slane %v4586_v61, 2 }
 0x491   : > { %v9468_v3 = vor.u32 %v10321_v39, %v9465_v40  ;;  %v9273_v39 = vld [vmem:[#allocation7 + $0x610] sm:$0xf0]  ;;  %v10305_v40 = vld [vmem:[#allocation7 + $0x704] sm:$0xf] }
 0x492   : > { %v5065_v5 = vpop.f32.mrf.mxu0  ;;  %v5078_v57 = vpop.f32.mrf.mxu1 }
 0x493   : > { %6038 = vmatpush.bf16.msrb.mxu0 %v9024_v53  ;;  %6051 = vmatpush.bf16.msrb.mxu1 %v9152_v6  ;;  %v12742_v37 = vadd.f32 %v5078_v57, %v5065_v5  ;;  %v9321_v6 = vld [vmem:[#allocation7 + $0x670] sm:$0xf0]  ;;  %v10309_v5 = vld [vmem:[#allocation7 + $0x724] sm:$0xf] }
 0x494   : > { %6064 = vmatpush.bf16.msrb.mxu2 %v9028_v43  ;;  %6077 = vmatpush.bf16.msrb.mxu3 %v9156_v0  ;;  %v9417_v57 = vld [vmem:[#allocation7 + $0x730] sm:$0xf0] }
 0x496   : > { %6039 = vmatmul.bf16.vlgmr.msrb.gmra.mxu0 %v12728_v58  ;;  %6052 = vmatmul.bf16.vlgmr.msrb.gmra.mxu1 %v12730_v17 }
 0x497   : > { %6477 = vmatpush.bf16.msra.mxu0 %v9384_v45  ;;  %6490 = vmatpush.bf16.msra.mxu1 %v9512_v22  ;;  %v4588_v45 = vmax.f32 %v4586_v61, %v4587_v56  ;;  %v9320_v22 = vor.u32 %v10287_v19, %v9319_v54  ;;  %v9401_v56 = vld [vmem:[#allocation7 + $0x710] sm:$0xf0]  ;;  %v4597_v19 = vmax.f32 %v4595_v44, %v4596_v27  ;;  %v9359_v27 = vld [vmem:[#allocation7 + $0x6a8] sm:$0xf] }
 0x498   : > { %6503 = vmatpush.bf16.msra.mxu2 %v9388_v21  ;;  %6516 = vmatpush.bf16.msra.mxu3 %v9516_v30  ;;  %v9324_v21 = vor.u32 %v10285_v33, %v9321_v6  ;;  %v9452_v30 = vor.u32 %v10317_v55, %v9449_v46  ;;  %v9393_v33 = vld [vmem:[#allocation7 + $0x6f8] sm:$0xf0]  ;;  %v9404_v55 = vor.u32 %v10305_v40, %v9401_v56 }
 0x499   : > { %6065 = vmatmul.bf16.vlgmr.msrb.gmra.mxu2 %v12728_v58  ;;  %6078 = vmatmul.bf16.vlgmr.msrb.gmra.mxu3 %v12730_v17  ;;  %v10323_v58 = vld [vmem:[#allocation7 + $0x78c] sm:$0xf0]  ;;  %v9337_v17 = vld [vmem:[#allocation7 + $0x690] sm:$0xf0]  ;;  %v5091_v62 = vpop.f32.mrf.mxu2  ;;  %v5104_v53 = vpop.f32.mrf.mxu3  ;;  %v4589_v2 = vrot.slane %v4588_v45, 1 }
 0x49a   : > { %v9464_v15 = vor.u32 %v10323_v58, %v9463_v1  ;;  %v9340_v49 = vor.u32 %v10289_v31, %v9337_v17  ;;  %v12744_v8 = vadd.f32 %v5104_v53, %v5091_v62  ;;  %v5067_v43 = vpop.f32.mrf.mxu0  ;;  %v5080_v0 = vpop.f32.mrf.mxu1  ;;  %v10307_v1 = vld [vmem:[#allocation7 + $0x70c] sm:$0xf0]  ;;  %v9292_v58 = vor.u32 %v10277_v35, %v9289_v7  ;;  %v10273_v17 = vld [vmem:[#allocation7 + $0x604] sm:$0xf]  ;;  %v10334_v62 = vld [vmem:[#allocation7 + $0x7ec] sm:$0xf] }
 0x49b   : > { %6478 = vmatpush.bf16.msra.mxu0 %v9368_v16  ;;  %6491 = vmatpush.bf16.msra.mxu1 %v9496_v4  ;;  %v9287_v16 = vld [vmem:[#allocation7 + $0x620] sm:$0xf]  ;;  %v10279_v4 = vld [vmem:[#allocation7 + $0x62c] sm:$0xf0]  ;;  %v9420_v31 = vor.u32 %v10309_v5, %v9417_v57  ;;  %v4590_v54 = vmax.f32 %v4588_v45, %v4589_v2  ;;  %v9521_v53 = vld [vmem:[#allocation7 + $0x7f8] sm:$0xf0]  ;;  %v9276_v6 = vor.u32 %v10273_v17, %v9273_v39 }
 0x49c   : > { %6504 = vmatpush.bf16.msra.mxu2 %v9372_v63  ;;  %6517 = vmatpush.bf16.msra.mxu3 %v9500_v28  ;;  %v9308_v63 = vor.u32 %v10281_v42, %v9305_v23  ;;  %v9436_v28 = vor.u32 %v10313_v52, %v9433_v14  ;;  %v9524_v44 = vor.u32 %v10334_v62, %v9521_v53  ;;  %v10332_v42 = vld [vmem:[#allocation7 + $0x7d4] sm:$0xf0]  ;;  %v10298_v23 = vld [vmem:[#allocation7 + $0x6cc] sm:$0xf]  ;;  %v9377_v52 = vld [vmem:[#allocation7 + $0x6d8] sm:$0xf0] }
 0x49d   : > { %v4601_v45 = vpack.c.bf16 %v4597_v19, %v4590_v54  ;;  %v10330_v14 = vld [vmem:[#allocation7 + $0x7cc] sm:$0xf]  ;;  %v9504_v2 = vor.u32 %v10332_v42, %v9503_v41  ;;  %v10328_v35 = vld [vmem:[#allocation7 + $0x7b4] sm:$0xf0]  ;;  %v9489_v5 = vld [vmem:[#allocation7 + $0x7b8] sm:$0xf0] }
 0x49e   : > { %v10326_v7 = vld [vmem:[#allocation7 + $0x7ac] sm:$0xf]  ;;  %v9345_v17 = vld [vmem:[#allocation7 + $0x698] sm:$0xf0] }
 0x49f   : > { %6479 = vmatpush.bf16.msra.mxu0 %v9352_v26  ;;  %6492 = vmatpush.bf16.msra.mxu1 %v9480_v60  ;;  %v9271_v26 = vld [vmem:[#allocation7 + $0x600] sm:$0xf]  ;;  %v9288_v60 = vor.u32 %v10279_v4, %v9287_v16  ;;  %v12752_v16 = vperm.slane %v4601_v45, 4  ;;  %v10322_v39 = vld [vmem:[#allocation7 + $0x78c] sm:$0xf] }
 0x4a0   : > { %6505 = vmatpush.bf16.msra.mxu2 %v9356_v47  ;;  %6518 = vmatpush.bf16.msra.mxu3 %v9484_v25  ;;  %v10275_v47 = vld [vmem:[#allocation7 + $0x60c] sm:$0xf0]  ;;  %v9399_v25 = vld [vmem:[#allocation7 + $0x700] sm:$0xf]  ;;  %v9473_v40 = vld [vmem:[#allocation7 + $0x798] sm:$0xf0] }
 0x4a1   : > { %v5093_v10 = vpop.f32.mrf.mxu2  ;;  %v5106_v24 = vpop.f32.mrf.mxu3  ;;  %v9272_v32 = vor.u32 %v10275_v47, %v9271_v26  ;;  %v9400_v9 = vor.u32 %v10307_v1, %v9399_v25  ;;  %v9492_v25 = vor.u32 %v10326_v7, %v9489_v5  ;;  %v9471_v1 = vld [vmem:[#allocation7 + $0x788] sm:$0xf]  ;;  %v10286_v62 = vld [vmem:[#allocation7 + $0x66c] sm:$0xf]  ;;  %v9313_v41 = vld [vmem:[#allocation7 + $0x658] sm:$0xf0] }
 0x4a2   : > { %v5117_v61 = vpop.f32.mrf.mxu0  ;;  %v5130_v18 = vpop.f32.mrf.mxu1  ;;  %v10294_v10 = vld [vmem:[#allocation7 + $0x6ac] sm:$0xf]  ;;  %v9361_v24 = vld [vmem:[#allocation7 + $0x6b8] sm:$0xf0] }
 0x4a3   : > { %6480 = vmatpush.bf16.msra.mxu0 %v9336_v50  ;;  %6493 = vmatpush.bf16.msra.mxu1 %v9464_v15  ;;  %v12746_v34 = vadd.f32 %v5130_v18, %v5117_v61  ;;  %v9391_v50 = vld [vmem:[#allocation7 + $0x6e8] sm:$0xf]  ;;  %v10304_v15 = vld [vmem:[#allocation7 + $0x6f4] sm:$0xf0]  ;;  %v9488_v61 = vor.u32 %v10328_v35, %v9487_v36  ;;  %v9364_v47 = vor.u32 %v10294_v10, %v9361_v24  ;;  %v10314_v42 = vld [vmem:[#allocation7 + $0x74c] sm:$0xf] }
 0x4a4   : > { %6506 = vmatpush.bf16.msra.mxu2 %v9340_v49  ;;  %6519 = vmatpush.bf16.msra.mxu3 %v9468_v3  ;;  %v10336_v49 = vld [vmem:[#allocation7 + $0x7f4] sm:$0xf0]  ;;  %v10302_v3 = vld [vmem:[#allocation7 + $0x6ec] sm:$0xf]  ;;  %v9392_v46 = vor.u32 %v10304_v15, %v9391_v50  ;;  %v9423_v35 = vld [vmem:[#allocation7 + $0x728] sm:$0xf] }
 0x4a5   : > { %v9520_v43 = vor.u32 %v10336_v49, %v9519_v59  ;;  %v9396_v38 = vor.u32 %v10302_v3, %v9393_v33  ;;  %v9327_v59 = vld [vmem:[#allocation7 + $0x668] sm:$0xf]  ;;  %v10288_v49 = vld [vmem:[#allocation7 + $0x674] sm:$0xf0]  ;;  %v10278_v24 = vld [vmem:[#allocation7 + $0x62c] sm:$0xf] }
 0x4a6   : > { %v10320_v33 = vld [vmem:[#allocation7 + $0x774] sm:$0xf0]  ;;  %v9297_v7 = vld [vmem:[#allocation7 + $0x638] sm:$0xf0]  ;;  %v10310_v5 = vld [vmem:[#allocation7 + $0x72c] sm:$0xf] }
 0x4a7   : > { %6481 = vmatpush.bf16.msra.mxu0 %v9320_v22  ;;  %6494 = vmatpush.bf16.msra.mxu1 %v9448_v12  ;;  %v9375_v12 = vld [vmem:[#allocation7 + $0x6c8] sm:$0xf]  ;;  %v10312_v10 = vld [vmem:[#allocation7 + $0x734] sm:$0xf0] }
 0x4a8   : > { %6507 = vmatpush.bf16.msra.mxu2 %v9324_v21  ;;  %6520 = vmatpush.bf16.msra.mxu3 %v9452_v30  ;;  %v9376_v4 = vor.u32 %v10300_v48, %v9375_v12  ;;  %v9439_v48 = vld [vmem:[#allocation7 + $0x748] sm:$0xf] }
 0x4a9   : > { %v5143_v0 = vpop.f32.mrf.mxu2  ;;  %v5156_v22 = vpop.f32.mrf.mxu3 }
 0x4aa   : > { %v12748_v21 = vadd.f32 %v5156_v22, %v5143_v0  ;;  %v5119_v30 = vpop.f32.mrf.mxu0  ;;  %v5132_v51 = vpop.f32.mrf.mxu1  ;;  %v9311_v0 = vld [vmem:[#allocation7 + $0x648] sm:$0xf]  ;;  %v10284_v22 = vld [vmem:[#allocation7 + $0x654] sm:$0xf0] }
 0x4ab   : > { %6482 = vmatpush.bf16.msra.mxu0 %v9304_v29  ;;  %6495 = vmatpush.bf16.msra.mxu1 %v9432_v20  ;;  %v9505_v29 = vld [vmem:[#allocation7 + $0x7d8] sm:$0xf0]  ;;  %v12750_v20 = vperm.slane %v4601_v45, 0 }
 0x4ac   : > { %6508 = vmatpush.bf16.msra.mxu2 %v9308_v63  ;;  %6521 = vmatpush.bf16.msra.mxu3 %v9436_v28  ;;  %v10296_v63 = vld [vmem:[#allocation7 + $0x6b4] sm:$0xf0]  ;;  %v9380_v28 = vor.u32 %v10298_v23, %v9377_v52  ;;  %v9508_v11 = vor.u32 %v10330_v14, %v9505_v29  ;;  %v9441_v23 = vld [vmem:[#allocation7 + $0x758] sm:$0xf0] }
 0x4ad   : > { %v9360_v57 = vor.u32 %v10296_v63, %v9359_v27  ;;  %v9295_v27 = vld [vmem:[#allocation7 + $0x628] sm:$0xf]  ;;  %v10280_v63 = vld [vmem:[#allocation7 + $0x634] sm:$0xf0]  ;;  %v9444_v36 = vor.u32 %v10314_v42, %v9441_v23 }
 0x4af   : > { %6483 = vmatpush.bf16.msra.mxu0 %v9288_v60  ;;  %6496 = vmatpush.bf16.msra.mxu1 %v9416_v13  ;;  %v9343_v60 = vld [vmem:[#allocation7 + $0x688] sm:$0xf]  ;;  %v10292_v13 = vld [vmem:[#allocation7 + $0x694] sm:$0xf0] }
 0x4b0   : > { %6509 = vmatpush.bf16.msra.mxu2 %v9292_v58  ;;  %6522 = vmatpush.bf16.msra.mxu3 %v9420_v31  ;;  %v10324_v58 = vld [vmem:[#allocation7 + $0x794] sm:$0xf0]  ;;  %v10290_v31 = vld [vmem:[#allocation7 + $0x68c] sm:$0xf]  ;;  %v9344_v54 = vor.u32 %v10292_v13, %v9343_v60  ;;  %v9300_v60 = vor.u32 %v10278_v24, %v9297_v7 }
 0x4b1   : > { %v5145_v18 = vpop.f32.mrf.mxu2  ;;  %v5158_v26 = vpop.f32.mrf.mxu3  ;;  %v9472_v19 = vor.u32 %v10324_v58, %v9471_v1  ;;  %v9348_v3 = vor.u32 %v10290_v31, %v9345_v17  ;;  %v10274_v1 = vld [vmem:[#allocation7 + $0x60c] sm:$0xf]  ;;  %v9281_v17 = vld [vmem:[#allocation7 + $0x618] sm:$0xf0] }
 0x4b2   : > { %v9279_v18 = vld [vmem:[#allocation7 + $0x608] sm:$0xf]  ;;  %v10276_v26 = vld [vmem:[#allocation7 + $0x614] sm:$0xf0] }
 0x4b3   : > { %6484 = vmatpush.bf16.msra.mxu0 %v9272_v32  ;;  %6497 = vmatpush.bf16.msra.mxu1 %v9400_v9  ;;  %v5494_v56 = vpop.f32.mrf.mxu0  ;;  %v5507_v50 = vpop.f32.mrf.mxu1  ;;  %v9476_v32 = vor.u32 %v10322_v39, %v9473_v40  ;;  %v9455_v9 = vld [vmem:[#allocation7 + $0x768] sm:$0xf]  ;;  %v10306_v39 = vld [vmem:[#allocation7 + $0x70c] sm:$0xf]  ;;  %v9409_v40 = vld [vmem:[#allocation7 + $0x718] sm:$0xf0] }
 0x4b4   : > { %6510 = vmatpush.bf16.msra.mxu2 %v9276_v6  ;;  %6523 = vmatpush.bf16.msra.mxu3 %v9404_v55  ;;  %v5495_v15 = vadd.f32 %v5494_v56, %v12742_v37  ;;  %v9329_v6 = vld [vmem:[#allocation7 + $0x678] sm:$0xf0]  ;;  %v10318_v55 = vld [vmem:[#allocation7 + $0x76c] sm:$0xf]  ;;  %v9456_v37 = vor.u32 %v10320_v33, %v9455_v9  ;;  %v9280_v56 = vor.u32 %v10276_v26, %v9279_v18 }
 0x4b5   : > { %v9332_v45 = vor.u32 %v10286_v62, %v9329_v6 }
 0x4b6   : > { %6485 = vmatmul.bf16.vlgmr.msra.gmra.mxu0 %v12750_v20  ;;  %6498 = vmatmul.bf16.vlgmr.msra.gmra.mxu1 %v12752_v16  ;;  %v12759_v53 = vadd.f32 %v5507_v50, %v5495_v15  ;;  %v9284_v15 = vor.u32 %v10274_v1, %v9281_v17  ;;  %v9535_v1 = vld [vmem:[#allocation9 + $0x10] sm:$0xf]  ;;  %v10384_v17 = vld [vmem:[#allocation9 + $0x174] sm:$0xf0] }
 0x4b7   : > { %6529 = vmatpush.bf16.msrb.mxu0 %v9392_v46  ;;  %6542 = vmatpush.bf16.msrb.mxu1 %v9520_v43  ;;  %v9457_v46 = vld [vmem:[#allocation7 + $0x778] sm:$0xf0]  ;;  %v9328_v43 = vor.u32 %v10288_v49, %v9327_v59 }
 0x4b8   : > { %6555 = vmatpush.bf16.msrb.mxu2 %v9396_v38  ;;  %6568 = vmatpush.bf16.msrb.mxu3 %v9524_v44  ;;  %v9460_v12 = vor.u32 %v10318_v55, %v9457_v46  ;;  %v10316_v38 = vld [vmem:[#allocation7 + $0x754] sm:$0xf0]  ;;  %v10282_v44 = vld [vmem:[#allocation7 + $0x64c] sm:$0xf]  ;;  %v9583_v46 = vld [vmem:[#allocation9 + $0x70] sm:$0xf] }
 0x4b9   : > { %6511 = vmatmul.bf16.vlgmr.msra.gmra.mxu2 %v12750_v20  ;;  %6524 = vmatmul.bf16.vlgmr.msra.gmra.mxu3 %v12752_v16 }
 0x4bb   : > { %6530 = vmatpush.bf16.msrb.mxu0 %v9376_v4  ;;  %6543 = vmatpush.bf16.msrb.mxu1 %v9504_v2  ;;  %v5496_v14 = vpop.f32.mrf.mxu0  ;;  %v5509_v29 = vpop.f32.mrf.mxu1  ;;  %v9312_v4 = vor.u32 %v10284_v22, %v9311_v0  ;;  %v9440_v2 = vor.u32 %v10316_v38, %v9439_v48  ;;  %v10368_v38 = vld [vmem:[#allocation9 + $0xf4] sm:$0xf0] }
 0x4bc   : > { %6556 = vmatpush.bf16.msrb.mxu2 %v9380_v28  ;;  %6569 = vmatpush.bf16.msrb.mxu3 %v9508_v11  ;;  %v5520_v30 = vpop.f32.mrf.mxu2  ;;  %v5533_v51 = vpop.f32.mrf.mxu3  ;;  %v9316_v11 = vor.u32 %v10282_v44, %v9313_v41  ;;  %v10348_v44 = vld [vmem:[#allocation9 + $0x54] sm:$0xf0]  ;;  %v9639_v14 = vld [vmem:[#allocation9 + $0xe0] sm:$0xf]  ;;  %v10366_v29 = vld [vmem:[#allocation9 + $0xe4] sm:$0xf0] }
 0x4bd   : > { %v5521_v52 = vadd.f32 %v5520_v30, %v12744_v8  ;;  %v9425_v8 = vld [vmem:[#allocation7 + $0x738] sm:$0xf0] }
 0x4be   : > { %v9428_v13 = vor.u32 %v10310_v5, %v9425_v8  ;;  %v9623_v5 = vld [vmem:[#allocation9 + $0xc0] sm:$0xf]  ;;  %v10362_v8 = vld [vmem:[#allocation9 + $0xc4] sm:$0xf0] }
 0x4bf   : > { %6531 = vmatpush.bf16.msrb.mxu0 %v9360_v57  ;;  %6544 = vmatpush.bf16.msrb.mxu1 %v9488_v61  ;;  %v12762_v28 = vadd.f32 %v5533_v51, %v5521_v52  ;;  %v9296_v57 = vor.u32 %v10280_v63, %v9295_v27  ;;  %v9424_v61 = vor.u32 %v10312_v10, %v9423_v35  ;;  %v10346_v27 = vld [vmem:[#allocation9 + $0x44] sm:$0xf0]  ;;  %v9631_v63 = vld [vmem:[#allocation9 + $0xd0] sm:$0xf]  ;;  %v10344_v10 = vld [vmem:[#allocation9 + $0x34] sm:$0xf0] }
 0x4c0   : > { %6557 = vmatpush.bf16.msrb.mxu2 %v9364_v47  ;;  %6570 = vmatpush.bf16.msrb.mxu3 %v9492_v25  ;;  %v9407_v47 = vld [vmem:[#allocation7 + $0x708] sm:$0xf]  ;;  %v10308_v25 = vld [vmem:[#allocation7 + $0x714] sm:$0xf0]  ;;  %v9551_v35 = vld [vmem:[#allocation9 + $0x30] sm:$0xf] }
 0x4c1   : > { %v9408_v50 = vor.u32 %v10308_v25, %v9407_v47  ;;  %v9552_v7 = vor.u32 %v10344_v10, %v9551_v35  ;;  %v9615_v47 = vld [vmem:[#allocation9 + $0xb0] sm:$0xf]  ;;  %v10360_v25 = vld [vmem:[#allocation9 + $0xb4] sm:$0xf0]  ;;  %v10347_v10 = vld [vmem:[#allocation9 + $0x54] sm:$0xf] }
 0x4c3   : > { %6532 = vmatpush.bf16.msrb.mxu0 %v9344_v54  ;;  %6545 = vmatpush.bf16.msrb.mxu1 %v9472_v19  ;;  %v9412_v54 = vor.u32 %v10306_v39, %v9409_v40  ;;  %v9616_v40 = vor.u32 %v10360_v25, %v9615_v47  ;;  %v10378_v47 = vld [vmem:[#allocation9 + $0x144] sm:$0xf0] }
 0x4c4   : > { %6558 = vmatpush.bf16.msrb.mxu2 %v9348_v3  ;;  %6571 = vmatpush.bf16.msrb.mxu3 %v9476_v32  ;;  %v5522_v58 = vpop.f32.mrf.mxu2  ;;  %v5535_v31 = vpop.f32.mrf.mxu3 }
 0x4c5   : > { %v10340_v58 = vld [vmem:[#allocation9 + $0x14] sm:$0xf0]  ;;  %v9711_v31 = vld [vmem:[#allocation9 + $0x170] sm:$0xf] }
 0x4c6   : > { %v9712_v39 = vor.u32 %v10384_v17, %v9711_v31  ;;  %v9561_v31 = vld [vmem:[#allocation9 + $0x48] sm:$0xf0]  ;;  %v9759_v17 = vld [vmem:[#allocation9 + $0x1d0] sm:$0xf] }
 0x4c7   : > { %6533 = vmatpush.bf16.msrb.mxu0 %v9328_v43  ;;  %6546 = vmatpush.bf16.msrb.mxu1 %v9456_v37  ;;  %v10352_v43 = vld [vmem:[#allocation9 + $0x74] sm:$0xf0] }
 0x4c8   : > { %6559 = vmatpush.bf16.msrb.mxu2 %v9332_v45  ;;  %6572 = vmatpush.bf16.msrb.mxu3 %v9460_v12  ;;  %v9584_v37 = vor.u32 %v10352_v43, %v9583_v46  ;;  %v10350_v45 = vld [vmem:[#allocation9 + $0x64] sm:$0xf0]  ;;  %v9647_v12 = vld [vmem:[#allocation9 + $0xf0] sm:$0xf] }
 0x4c9   : > { %v9648_v30 = vor.u32 %v10368_v38, %v9647_v12  ;;  %v9703_v12 = vld [vmem:[#allocation9 + $0x160] sm:$0xf]  ;;  %v10349_v38 = vld [vmem:[#allocation9 + $0x64] sm:$0xf] }
 0x4cb   : > { %6534 = vmatpush.bf16.msrb.mxu0 %v9312_v4  ;;  %6547 = vmatpush.bf16.msrb.mxu1 %v9440_v2  ;;  %v9559_v4 = vld [vmem:[#allocation9 + $0x40] sm:$0xf]  ;;  %v9640_v2 = vor.u32 %v10366_v29, %v9639_v14  ;;  %v9775_v14 = vld [vmem:[#allocation9 + $0x1f0] sm:$0xf]  ;;  %v10400_v29 = vld [vmem:[#allocation9 + $0x1f4] sm:$0xf0] }
 0x4cc   : > { %6560 = vmatpush.bf16.msrb.mxu2 %v9316_v11  ;;  %6573 = vmatpush.bf16.msrb.mxu3 %v9444_v36  ;;  %v10364_v11 = vld [vmem:[#allocation9 + $0xd4] sm:$0xf0]  ;;  %v9560_v36 = vor.u32 %v10346_v27, %v9559_v4  ;;  %v10367_v4 = vld [vmem:[#allocation9 + $0xf4] sm:$0xf]  ;;  %v9649_v27 = vld [vmem:[#allocation9 + $0xf8] sm:$0xf0] }
 0x4cd   : > { %v9632_v24 = vor.u32 %v10364_v11, %v9631_v63  ;;  %v9695_v63 = vld [vmem:[#allocation9 + $0x150] sm:$0xf]  ;;  %v10380_v11 = vld [vmem:[#allocation9 + $0x154] sm:$0xf0] }
 0x4ce   : > { %v9696_v35 = vor.u32 %v10380_v11, %v9695_v63  ;;  %v9537_v63 = vld [vmem:[#allocation9 + $0x18] sm:$0xf0] }
 0x4cf   : > { %6535 = vmatpush.bf16.msrb.mxu0 %v9296_v57  ;;  %6548 = vmatpush.bf16.msrb.mxu1 %v9424_v61  ;;  %v9543_v57 = vld [vmem:[#allocation9 + $0x20] sm:$0xf]  ;;  %v10342_v61 = vld [vmem:[#allocation9 + $0x24] sm:$0xf0] }
 0x4d0   : > { %6561 = vmatpush.bf16.msrb.mxu2 %v9300_v60  ;;  %6574 = vmatpush.bf16.msrb.mxu3 %v9428_v13  ;;  %v9624_v60 = vor.u32 %v10362_v8, %v9623_v5  ;;  %v9544_v13 = vor.u32 %v10342_v61, %v9543_v57  ;;  %v9767_v57 = vld [vmem:[#allocation9 + $0x1e0] sm:$0xf]  ;;  %v10398_v61 = vld [vmem:[#allocation9 + $0x1e4] sm:$0xf0] }
 0x4d3   : > { %6536 = vmatpush.bf16.msrb.mxu0 %v9280_v56  ;;  %6549 = vmatpush.bf16.msrb.mxu1 %v9408_v50  ;;  %v5546_v19 = vpop.f32.mrf.mxu0  ;;  %v5559_v59 = vpop.f32.mrf.mxu1  ;;  %v9536_v56 = vor.u32 %v10340_v58, %v9535_v1  ;;  %v9607_v50 = vld [vmem:[#allocation9 + $0xa0] sm:$0xf]  ;;  %v10345_v58 = vld [vmem:[#allocation9 + $0x44] sm:$0xf] }
 0x4d4   : > { %6562 = vmatpush.bf16.msrb.mxu2 %v9284_v15  ;;  %6575 = vmatpush.bf16.msrb.mxu3 %v9412_v54  ;;  %v5547_v49 = vadd.f32 %v5546_v19, %v12746_v34  ;;  %v9575_v34 = vld [vmem:[#allocation9 + $0x60] sm:$0xf]  ;;  %v10358_v15 = vld [vmem:[#allocation9 + $0xa4] sm:$0xf0] }
 0x4d5   : > { %v9576_v48 = vor.u32 %v10350_v45, %v9575_v34  ;;  %v9527_v54 = vld [vmem:[#allocation9] sm:$0xf]  ;;  %v10338_v19 = vld [vmem:[#allocation9 + $0x4] sm:$0xf0] }
 0x4d6   : > { %6537 = vmatmul.bf16.vlgmr.msrb.gmra.mxu0 %v12750_v20  ;;  %6550 = vmatmul.bf16.vlgmr.msrb.gmra.mxu1 %v12752_v16  ;;  %v12769_v3 = vadd.f32 %v5559_v59, %v5547_v49  ;;  %v10351_v59 = vld [vmem:[#allocation9 + $0x74] sm:$0xf]  ;;  %v9585_v49 = vld [vmem:[#allocation9 + $0x78] sm:$0xf0] }
 0x4d7   : > { %6563 = vmatmul.bf16.vlgmr.msrb.gmra.mxu2 %v12750_v20  ;;  %6576 = vmatmul.bf16.vlgmr.msrb.gmra.mxu3 %v12752_v16 }
 0x4d8   : > { %7005 = vmatpush.bf16.msra.mxu0 %v9584_v37  ;;  %7018 = vmatpush.bf16.msra.mxu1 %v9648_v30  ;;  %v9591_v30 = vld [vmem:[#allocation9 + $0x80] sm:$0xf] }
 0x4d9   : > { %7031 = vmatpush.bf16.msra.mxu2 %v9712_v39  ;;  %v9564_v39 = vor.u32 %v10345_v58, %v9561_v31 }
 0x4db   : > { %v5548_v62 = vpop.f32.mrf.mxu0  ;;  %v5561_v6 = vpop.f32.mrf.mxu1 }
 0x4dc   : > { %v5572_v32 = vpop.f32.mrf.mxu2  ;;  %v5585_v9 = vpop.f32.mrf.mxu3  ;;  %7006 = vmatpush.bf16.msra.mxu0 %v9576_v48  ;;  %7019 = vmatpush.bf16.msra.mxu1 %v9640_v2  ;;  %v10356_v62 = vld [vmem:[#allocation9 + $0x94] sm:$0xf0]  ;;  %v9588_v6 = vor.u32 %v10351_v59, %v9585_v49  ;;  %v10382_v48 = vld [vmem:[#allocation9 + $0x164] sm:$0xf0]  ;;  %v9776_v2 = vor.u32 %v10400_v29, %v9775_v14  ;;  %v10343_v49 = vld [vmem:[#allocation9 + $0x34] sm:$0xf] }
 0x4dd   : > { %v5573_v33 = vadd.f32 %v5572_v32, %v12748_v21  ;;  %v9567_v21 = vld [vmem:[#allocation9 + $0x50] sm:$0xf]  ;;  %v9608_v32 = vor.u32 %v10358_v15, %v9607_v50  ;;  %v9633_v50 = vld [vmem:[#allocation9 + $0xd8] sm:$0xf0]  ;;  %v10376_v59 = vld [vmem:[#allocation9 + $0x134] sm:$0xf0] }
 0x4de   : > { %v9568_v51 = vor.u32 %v10348_v44, %v9567_v21  ;;  %v9704_v21 = vor.u32 %v10382_v48, %v9703_v12  ;;  %v9577_v44 = vld [vmem:[#allocation9 + $0x68] sm:$0xf0]  ;;  %7044 = vmatpush.bf16.msra.mxu3 %v9776_v2  ;;  %v10374_v48 = vld [vmem:[#allocation9 + $0x124] sm:$0xf0]  ;;  %v9617_v29 = vld [vmem:[#allocation9 + $0xb8] sm:$0xf0] }
 0x4df   : > { %v12772_v55 = vadd.f32 %v5585_v9, %v5573_v33  ;;  %v9528_v9 = vor.u32 %v10338_v19, %v9527_v54  ;;  %v9599_v33 = vld [vmem:[#allocation9 + $0x90] sm:$0xf]  ;;  %v10372_v2 = vld [vmem:[#allocation9 + $0x114] sm:$0xf0] }
 0x4e0   : > { %7007 = vmatpush.bf16.msra.mxu0 %v9568_v51  ;;  %7020 = vmatpush.bf16.msra.mxu1 %v9632_v24  ;;  %v9600_v46 = vor.u32 %v10356_v62, %v9599_v33  ;;  %v10354_v51 = vld [vmem:[#allocation9 + $0x84] sm:$0xf0]  ;;  %v9569_v24 = vld [vmem:[#allocation9 + $0x58] sm:$0xf0]  ;;  %v9679_v19 = vld [vmem:[#allocation9 + $0x130] sm:$0xf] }
 0x4e1   : > { %7032 = vmatpush.bf16.msra.mxu2 %v9704_v21  ;;  %v9751_v33 = vld [vmem:[#allocation9 + $0x1c0] sm:$0xf]  ;;  %v10394_v62 = vld [vmem:[#allocation9 + $0x1c4] sm:$0xf0]  ;;  %v9545_v21 = vld [vmem:[#allocation9 + $0x28] sm:$0xf0] }
 0x4e2   : > { %v9752_v12 = vor.u32 %v10394_v62, %v9751_v33 }
 0x4e4   : > { %v5574_v20 = vpop.f32.mrf.mxu2  ;;  %v5587_v0 = vpop.f32.mrf.mxu3  ;;  %7008 = vmatpush.bf16.msra.mxu0 %v9560_v36  ;;  %7021 = vmatpush.bf16.msra.mxu1 %v9624_v60  ;;  %v9652_v36 = vor.u32 %v10367_v4, %v9649_v27  ;;  %v9641_v60 = vld [vmem:[#allocation9 + $0xe8] sm:$0xf0]  ;;  %v9663_v4 = vld [vmem:[#allocation9 + $0x110] sm:$0xf]  ;;  %v10339_v27 = vld [vmem:[#allocation9 + $0x14] sm:$0xf] }
 0x4e5   : > { %7033 = vmatpush.bf16.msra.mxu2 %v9696_v35 }
 0x4e8   : > { %7009 = vmatpush.bf16.msra.mxu0 %v9552_v7  ;;  %7022 = vmatpush.bf16.msra.mxu1 %v9616_v40  ;;  %v9572_v7 = vor.u32 %v10347_v10, %v9569_v24  ;;  %v10396_v40 = vld [vmem:[#allocation9 + $0x1d4] sm:$0xf0]  ;;  %v9735_v10 = vld [vmem:[#allocation9 + $0x1a0] sm:$0xf] }
 0x4e9   : > { %v9760_v15 = vor.u32 %v10396_v40, %v9759_v17 }
 0x4ec   : > { %7010 = vmatpush.bf16.msra.mxu0 %v9544_v13  ;;  %7023 = vmatpush.bf16.msra.mxu1 %v9608_v32  ;;  %v9687_v13 = vld [vmem:[#allocation9 + $0x140] sm:$0xf]  ;;  %v9680_v32 = vor.u32 %v10376_v59, %v9679_v19  ;;  %v10355_v19 = vld [vmem:[#allocation9 + $0x94] sm:$0xf]  ;;  %v9601_v59 = vld [vmem:[#allocation9 + $0x98] sm:$0xf0] }
 0x4ed   : > { %v9688_v1 = vor.u32 %v10378_v47, %v9687_v13  ;;  %v9713_v13 = vld [vmem:[#allocation9 + $0x178] sm:$0xf0]  ;;  %v9604_v33 = vor.u32 %v10355_v19, %v9601_v59  ;;  %v10391_v19 = vld [vmem:[#allocation9 + $0x1b4] sm:$0xf] }
 0x4ee   : > { %v9745_v59 = vld [vmem:[#allocation9 + $0x1b8] sm:$0xf0] }
 0x4ef   : > { %7034 = vmatpush.bf16.msra.mxu2 %v9688_v1 }
 0x4f0   : > { %7011 = vmatpush.bf16.msra.mxu0 %v9536_v56  ;;  %7024 = vmatpush.bf16.msra.mxu1 %v9600_v46  ;;  %v10363_v56 = vld [vmem:[#allocation9 + $0xd4] sm:$0xf]  ;;  %v10361_v46 = vld [vmem:[#allocation9 + $0xc4] sm:$0xf] }
 0x4f1   : > { %v9636_v54 = vor.u32 %v10363_v56, %v9633_v50  ;;  %v9727_v56 = vld [vmem:[#allocation9 + $0x190] sm:$0xf]  ;;  %v10388_v50 = vld [vmem:[#allocation9 + $0x194] sm:$0xf0] }
 0x4f3   : > { %v12774_v16 = vpop.f32.mrf.mxu0  ;;  %v12776_v22 = vpop.f32.mrf.mxu1  ;;  %7035 = vmatpush.bf16.msra.mxu2 %v9680_v32  ;;  %v9728_v32 = vor.u32 %v10388_v50, %v9727_v56  ;;  %v10373_v56 = vld [vmem:[#allocation9 + $0x124] sm:$0xf]  ;;  %v9673_v50 = vld [vmem:[#allocation9 + $0x128] sm:$0xf0] }
 0x4f4   : > { %7012 = vmatpush.bf16.msra.mxu0 %v9528_v9  ;;  %v9553_v9 = vld [vmem:[#allocation9 + $0x38] sm:$0xf0]  ;;  %v6002_v11 = vadd.f32 %v12776_v22, %v12774_v16  ;;  %v10337_v16 = vld [vmem:[#allocation9 + $0x4] sm:$0xf]  ;;  %v9529_v22 = vld [vmem:[#allocation9 + $0x8] sm:$0xf0] }
 0x4f6   : > { %v6083_v47 = vadd.f32 %v6002_v11, %v12759_v53  ;;  %v10379_v11 = vld [vmem:[#allocation9 + $0x154] sm:$0xf] }
 0x4f8   : > { %7057 = vmatpush.bf16.msrb.mxu0 %v9588_v6  ;;  %v9556_v6 = vor.u32 %v10343_v49, %v9553_v9 }
 0x4fb   : > { %v5990_v23 = vpop.f32.mrf.mxu0  ;;  %v6003_v52 = vpop.f32.mrf.mxu1 }
 0x4fc   : > { %v12778_v41 = vpop.f32.mrf.mxu2  ;;  %v12780_v42 = vpop.f32.mrf.mxu3  ;;  %v9580_v23 = vor.u32 %v10349_v38, %v9577_v44  ;;  %v9592_v52 = vor.u32 %v10354_v51, %v9591_v30  ;;  %v10341_v38 = vld [vmem:[#allocation9 + $0x24] sm:$0xf]  ;;  %v9743_v51 = vld [vmem:[#allocation9 + $0x1b0] sm:$0xf] }
 0x4fd   : > { %v9548_v14 = vor.u32 %v10341_v38, %v9545_v21  ;;  %v6028_v53 = vadd.f32 %v12780_v42, %v12778_v41  ;;  %v9705_v42 = vld [vmem:[#allocation9 + $0x168] sm:$0xf0]  ;;  %v9719_v21 = vld [vmem:[#allocation9 + $0x180] sm:$0xf] }
 0x4fe   : > { %7058 = vmatpush.bf16.msrb.mxu0 %v9580_v23  ;;  %7025 = vmatpush.bf16.msra.mxu1 %v9592_v52  ;;  %v10392_v23 = vld [vmem:[#allocation9 + $0x1b4] sm:$0xf0]  ;;  %v10359_v52 = vld [vmem:[#allocation9 + $0xb4] sm:$0xf] }
 0x4ff   : > { %v9744_v35 = vor.u32 %v10392_v23, %v9743_v51  ;;  %v9620_v24 = vor.u32 %v10359_v52, %v9617_v29  ;;  %v10353_v52 = vld [vmem:[#allocation9 + $0x84] sm:$0xf]  ;;  %v10399_v29 = vld [vmem:[#allocation9 + $0x1f4] sm:$0xf] }
 0x502   : > { %7070 = vmatpush.bf16.msrb.mxu1 %v9652_v36  ;;  %7059 = vmatpush.bf16.msrb.mxu0 %v9572_v7  ;;  %v12795_v36 = vld [vmem:[%s12907_s8] sm:$0xf]  ;;  %v9664_v7 = vor.u32 %v10372_v2, %v9663_v4 }
 0x503   : > { %v6587_v17 = vperm.slane %v12795_v36, 0 }
 0x504   : > { %v6016_v18 = vpop.f32.mrf.mxu2  ;;  %v6029_v26 = vpop.f32.mrf.mxu3 }
 0x505   : > { %v10365_v18 = vld [vmem:[#allocation9 + $0xe4] sm:$0xf]  ;;  %v9768_v26 = vor.u32 %v10398_v61, %v9767_v57  ;;  %v9609_v57 = vld [vmem:[#allocation9 + $0xa8] sm:$0xf0]  ;;  %v9540_v61 = vor.u32 %v10339_v27, %v9537_v63  ;;  %v9777_v63 = vld [vmem:[#allocation9 + $0x1f8] sm:$0xf0] }
 0x506   : > { %v9644_v25 = vor.u32 %v10365_v18, %v9641_v60  ;;  %7060 = vmatpush.bf16.msrb.mxu0 %v9564_v39  ;;  %v9655_v18 = vld [vmem:[#allocation9 + $0x100] sm:$0xf]  ;;  %v10383_v60 = vld [vmem:[#allocation9 + $0x174] sm:$0xf] }
 0x507   : > { %7045 = vmatpush.bf16.msra.mxu3 %v9768_v26  ;;  %v10370_v26 = vld [vmem:[#allocation9 + $0x104] sm:$0xf0] }
 0x508   : > { %7071 = vmatpush.bf16.msrb.mxu1 %v9644_v25  ;;  %v9656_v40 = vor.u32 %v10370_v26, %v9655_v18  ;;  %v10377_v18 = vld [vmem:[#allocation9 + $0x144] sm:$0xf]  ;;  %v9689_v26 = vld [vmem:[#allocation9 + $0x148] sm:$0xf0] }
 0x50a   : > { %7061 = vmatpush.bf16.msrb.mxu0 %v9556_v6 }
 0x50b   : > { %7046 = vmatpush.bf16.msra.mxu3 %v9760_v15  ;;  %v9532_v15 = vor.u32 %v10337_v16, %v9529_v22 }
 0x50c   : > { %7072 = vmatpush.bf16.msrb.mxu1 %v9636_v54  ;;  %v9716_v54 = vor.u32 %v10383_v60, %v9713_v13  ;;  %v9692_v60 = vor.u32 %v10377_v18, %v9689_v26  ;;  %v10395_v13 = vld [vmem:[#allocation9 + $0x1d4] sm:$0xf]  ;;  %v10405_v26 = vld [vmem:[%s12910_s11 + $0x20] sm:$0xff] }
 0x50d   : > { %v10406_v18 = vld [vmem:[%s12910_s11 + $0x28] sm:$0xff] }
 0x50e   : > { %7062 = vmatpush.bf16.msrb.mxu0 %v9548_v14  ;;  %v9593_v14 = vld [vmem:[#allocation9 + $0x88] sm:$0xf0] }
 0x50f   : > { %7047 = vmatpush.bf16.msra.mxu3 %v9752_v12  ;;  %v6084_v12 = vadd.f32 %v6028_v53, %v12762_v28  ;;  %v9596_v27 = vor.u32 %v10353_v52, %v9593_v14  ;;  %v9697_v28 = vld [vmem:[#allocation9 + $0x158] sm:$0xf0]  ;;  %v10385_v52 = vld [vmem:[#allocation9 + $0x184] sm:$0xf] }
 0x510   : > { %v9665_v53 = vld [vmem:[#allocation9 + $0x118] sm:$0xf0] }
 0x512   : > { %7063 = vmatpush.bf16.msrb.mxu0 %v9540_v61  ;;  %v9769_v61 = vld [vmem:[#allocation9 + $0x1e8] sm:$0xf0] }
 0x513   : > { %v12782_v43 = vpop.f32.mrf.mxu0  ;;  %v12784_v37 = vpop.f32.mrf.mxu1  ;;  %7048 = vmatpush.bf16.msra.mxu3 %v9744_v35  ;;  %v9780_v35 = vor.u32 %v10399_v29, %v9777_v63  ;;  %v6590_v63 = vperm.slane %v12795_v36, 3 }
 0x516   : > { %7064 = vmatpush.bf16.msrb.mxu0 %v9532_v15 }
 0x51b   : > { %v6042_v34 = vpop.f32.mrf.mxu0  ;;  %v6055_v45 = vpop.f32.mrf.mxu1 }
 0x51c   : > { %v12786_v20 = vpop.f32.mrf.mxu2  ;;  %v12788_v0 = vpop.f32.mrf.mxu3  ;;  %v9625_v34 = vld [vmem:[#allocation9 + $0xc8] sm:$0xf0]  ;;  %v9671_v45 = vld [vmem:[#allocation9 + $0x120] sm:$0xf] }
 0x51d   : > { %v9628_v44 = vor.u32 %v10361_v46, %v9625_v34  ;;  %v9672_v30 = vor.u32 %v10374_v48, %v9671_v45  ;;  %v6588_v34 = vperm.slane %v12795_v36, 1  ;;  %v10381_v45 = vld [vmem:[#allocation9 + $0x164] sm:$0xf] }
 0x51e   : > { %v9708_v51 = vor.u32 %v10381_v45, %v9705_v42 }
 0x51f   : > { %7073 = vmatpush.bf16.msrb.mxu1 %v9628_v44  ;;  %7036 = vmatpush.bf16.msra.mxu2 %v9672_v30  ;;  %v10386_v44 = vld [vmem:[#allocation9 + $0x184] sm:$0xf0] }
 0x520   : > { %v9720_v23 = vor.u32 %v10386_v44, %v9719_v21  ;;  %v9729_v21 = vld [vmem:[#allocation9 + $0x198] sm:$0xf0] }
 0x523   : > { %7074 = vmatpush.bf16.msrb.mxu1 %v9620_v24  ;;  %7037 = vmatpush.bf16.msra.mxu2 %v9664_v7 }
 0x524   : > { %v6068_v5 = vpop.f32.mrf.mxu2  ;;  %v6081_v8 = vpop.f32.mrf.mxu3 }
 0x525   : > { %v10390_v5 = vld [vmem:[#allocation9 + $0x1a4] sm:$0xf0]  ;;  %v10357_v8 = vld [vmem:[#allocation9 + $0xa4] sm:$0xf] }
 0x526   : > { %v9736_v58 = vor.u32 %v10390_v5, %v9735_v10  ;;  %v9612_v39 = vor.u32 %v10357_v8, %v9609_v57  ;;  %v9700_v10 = vor.u32 %v10379_v11, %v9697_v28  ;;  %v10397_v5 = vld [vmem:[#allocation9 + $0x1e4] sm:$0xf] }
 0x527   : > { %7038 = vmatpush.bf16.msra.mxu2 %v9656_v40  ;;  %v9772_v22 = vor.u32 %v10397_v5, %v9769_v61  ;;  %v9753_v40 = vld [vmem:[#allocation9 + $0x1c8] sm:$0xf0] }
 0x528   : > { %7049 = vmatpush.bf16.msra.mxu3 %v9736_v58  ;;  %7075 = vmatpush.bf16.msrb.mxu1 %v9612_v39  ;;  %v9681_v58 = vld [vmem:[#allocation9 + $0x138] sm:$0xf0]  ;;  %v10393_v39 = vld [vmem:[#allocation9 + $0x1c4] sm:$0xf] }
 0x529   : > { %v9756_v15 = vor.u32 %v10393_v39, %v9753_v40  ;;  %v10414_v39 = vld [vmem:[%s12910_s11 + $0x68] sm:$0xff]  ;;  %v10401_v40 = vld [vmem:[%s12910_s11] sm:$0xff] }
 0x52b   : > { %7083 = vmatpush.bf16.msrb.mxu2 %v9716_v54  ;;  %v9676_v54 = vor.u32 %v10373_v56, %v9673_v50  ;;  %v10413_v56 = vld [vmem:[%s12910_s11 + $0x60] sm:$0xff]  ;;  %v10412_v50 = vld [vmem:[%s12910_s11 + $0x58] sm:$0xff] }
 0x52c   : > { %7050 = vmatpush.bf16.msra.mxu3 %v9728_v32  ;;  %7076 = vmatpush.bf16.msrb.mxu1 %v9604_v33  ;;  %v6054_v32 = vadd.f32 %v12784_v37, %v12782_v43  ;;  %v10387_v37 = vld [vmem:[#allocation9 + $0x194] sm:$0xf] }
 0x52f   : > { %7084 = vmatpush.bf16.msrb.mxu2 %v9708_v51 }
 0x530   : > { %7051 = vmatpush.bf16.msra.mxu3 %v9720_v23  ;;  %7077 = vmatpush.bf16.msrb.mxu1 %v9596_v27  ;;  %v9732_v23 = vor.u32 %v10387_v37, %v9729_v21 }
 0x533   : > { %v6486_v25 = vpop.f32.mrf.mxu0  ;;  %v6499_v1 = vpop.f32.mrf.mxu1  ;;  %7085 = vmatpush.bf16.msrb.mxu2 %v9700_v10 }
 0x534   : > { %v6500_v31 = vadd.f32 %v6499_v1, %v6486_v25  ;;  %7096 = vmatpush.bf16.msrb.mxu3 %v9780_v35  ;;  %v10375_v25 = vld [vmem:[#allocation9 + $0x134] sm:$0xf] }
 0x536   : > { %v6581_v49 = vadd.f32 %v6500_v31, %v6083_v47  ;;  %v9761_v47 = vld [vmem:[#allocation9 + $0x1d8] sm:$0xf0] }
 0x537   : > { %v9764_v31 = vor.u32 %v10395_v13, %v9761_v47  ;;  %7086 = vmatpush.bf16.msrb.mxu2 %v9692_v60  ;;  %v10404_v60 = vld [vmem:[%s12910_s11 + $0x18] sm:$0xff]  ;;  %v10415_v13 = vld [vmem:[%s12910_s11 + $0x70] sm:$0xff] }
 0x538   : > { %v6595_v9 = vadd.f32 %v6587_v17, %v6581_v49  ;;  %7097 = vmatpush.bf16.msrb.mxu3 %v9772_v22  ;;  %v9684_v17 = vor.u32 %v10375_v25, %v9681_v58  ;;  %v10371_v49 = vld [vmem:[#allocation9 + $0x114] sm:$0xf]  ;;  %v10403_v47 = vld [vmem:[%s12910_s11 + $0x10] sm:$0xff] }
 0x539   : > { %v9668_v33 = vor.u32 %v10371_v49, %v9665_v53  ;;  %v10410_v53 = vld [vmem:[%s12910_s11 + $0x48] sm:$0xff] }
 0x53a   : > { %vm6599_vm3 = vcmp.ge.f32.partialorder %v6595_v9, 0.0  ;;  %v6603_v62 = vmul.f32 0.01, %v6595_v9 }
 0x53b   : > { %v6488_v38 = vpop.f32.mrf.mxu0  ;;  %v6501_v41 = vpop.f32.mrf.mxu1  ;;  %7087 = vmatpush.bf16.msrb.mxu2 %v9684_v17  ;;  %v10402_v17 = vld [vmem:[%s12910_s11 + $0x8] sm:$0xff] }
 0x53c   : > { %v6512_v6 = vpop.f32.mrf.mxu2  ;;  %v6525_v46 = vpop.f32.mrf.mxu3  ;;  %v6607_v30 = vsel %vm6599_vm3, %v6595_v9, %v6603_v62  ;;  %7098 = vmatpush.bf16.msrb.mxu3 %v9764_v31  ;;  %v9748_v9 = vor.u32 %v10391_v19, %v9745_v59  ;;  %v10389_v62 = vld [vmem:[#allocation9 + $0x1a4] sm:$0xf]  ;;  %v6589_v41 = vperm.slane %v12795_v36, 2  ;;  %v10407_v36 = vld [vmem:[%s12910_s11 + $0x30] sm:$0xff]  ;;  %v6679_v59 = vld [vmem:[%s12909_s10] sm:$0x3] }
 0x53d   : > { %v6526_v48 = vadd.f32 %v6525_v46, %v6512_v6  ;;  %v6611_v4 = vpack.c.bf16 %v6607_v30, %v6607_v30  ;;  %v9737_v6 = vld [vmem:[#allocation9 + $0x1a8] sm:$0xf0]  ;;  %v10369_v46 = vld [vmem:[#allocation9 + $0x104] sm:$0xf]  ;;  %v6080_v30 = vadd.f32 %v12788_v0, %v12786_v20  ;;  %v10411_v19 = vld [vmem:[%s12910_s11 + $0x50] sm:$0xff] }
 0x53e   : > { %v9740_v42 = vor.u32 %v10389_v62, %v9737_v6 }
 0x53f   : > { %v6582_v2 = vadd.f32 %v6526_v48, %v6084_v12  ;;  %7013 = vmatmul.bf16.vlgmr.msra.gmra.mxu0 %v6611_v4  ;;  %7088 = vmatpush.bf16.msrb.mxu2 %v9676_v54  ;;  %v6085_v48 = vadd.f32 %v6054_v32, %v12769_v3  ;;  %v9721_v3 = vld [vmem:[#allocation9 + $0x188] sm:$0xf0]  ;;  %v7001_v32 = vperm.slane %v6679_v59, 0 }
 0x540   : > { %7099 = vmatpush.bf16.msrb.mxu3 %v9756_v15  ;;  %v9724_v20 = vor.u32 %v10385_v52, %v9721_v3 }
 0x541   : > { %v6596_v24 = vadd.f32 %v6588_v34, %v6582_v2  ;;  %v9657_v34 = vld [vmem:[#allocation9 + $0x108] sm:$0xf0]  ;;  %v6086_v2 = vadd.f32 %v6080_v30, %v12772_v55  ;;  %v10408_v55 = vld [vmem:[%s12910_s11 + $0x38] sm:$0xff] }
 0x542   : > { %v9660_v43 = vor.u32 %v10369_v46, %v9657_v34  ;;  %7246 = vmatpush.bf16.msra.mxu0 %v10408_v55 }
 0x543   : > { %vm6600_vm13 = vcmp.ge.f32.partialorder %v6596_v24, 0.0  ;;  %v6604_v7 = vmul.f32 0.01, %v6596_v24  ;;  %7089 = vmatpush.bf16.msrb.mxu2 %v9668_v33 }
 0x544   : > { %v6514_v8 = vpop.f32.mrf.mxu2  ;;  %v6527_v57 = vpop.f32.mrf.mxu3  ;;  %7100 = vmatpush.bf16.msrb.mxu3 %v9748_v9  ;;  %v10409_v9 = vld [vmem:[%s12910_s11 + $0x40] sm:$0xff] }
 0x545   : > { %v6608_v16 = vsel %vm6600_vm13, %v6596_v24, %v6604_v7 }
 0x546   : > { %v6612_v1 = vpack.c.bf16 %v6608_v16, %v6608_v16  ;;  %7247 = vmatpush.bf16.msra.mxu0 %v10407_v36  ;;  %v10416_v16 = vld [vmem:[%s12910_s11 + $0x78] sm:$0xff] }
 0x547   : > { %7090 = vmatpush.bf16.msrb.mxu2 %v9660_v43 }
 0x548   : > { %7026 = vmatmul.bf16.vlgmr.msra.gmra.mxu1 %v6612_v1  ;;  %7101 = vmatpush.bf16.msrb.mxu3 %v9740_v42  ;;  %v7002_v42 = vperm.slane %v6679_v59, 1 }
 0x549   : > { %7259 = vmatpush.bf16.msra.mxu1 %v10416_v16 }
 0x54a   : > { %7248 = vmatpush.bf16.msra.mxu0 %v10406_v18 }
 0x54c   : > { %7102 = vmatpush.bf16.msrb.mxu3 %v9732_v23 }
 0x54d   : > { %7260 = vmatpush.bf16.msra.mxu1 %v10415_v13 }
 0x54e   : > { %7249 = vmatpush.bf16.msra.mxu0 %v10405_v26 }
 0x54f   : > { %7065 = vmatmul.bf16.vlgmr.msrb.gmra.mxu0 %v6611_v4 }
 0x550   : > { %7103 = vmatpush.bf16.msrb.mxu3 %v9724_v20 }
 0x551   : > { %7261 = vmatpush.bf16.msra.mxu1 %v10414_v39 }
 0x552   : > { %7250 = vmatpush.bf16.msra.mxu0 %v10404_v60 }
 0x553   : > { %v6538_v45 = vpop.f32.mrf.mxu0  ;;  %v6551_v12 = vpop.f32.mrf.mxu1 }
 0x554   : > { %v6552_v38 = vadd.f32 %v6551_v12, %v6538_v45 }
 0x555   : > { %7262 = vmatpush.bf16.msra.mxu1 %v10413_v56 }
 0x556   : > { %v6583_v44 = vadd.f32 %v6552_v38, %v6085_v48  ;;  %7251 = vmatpush.bf16.msra.mxu0 %v10403_v47 }
 0x558   : > { %v6597_v51 = vadd.f32 %v6589_v41, %v6583_v44  ;;  %7078 = vmatmul.bf16.vlgmr.msrb.gmra.mxu1 %v6612_v1 }
 0x559   : > { %7263 = vmatpush.bf16.msra.mxu1 %v10412_v50 }
 0x55a   : > { %vm6601_vm15 = vcmp.ge.f32.partialorder %v6597_v51, 0.0  ;;  %v6605_v14 = vmul.f32 0.01, %v6597_v51  ;;  %v6564_v29 = vpop.f32.mrf.mxu2  ;;  %v6577_v4 = vpop.f32.mrf.mxu3  ;;  %7252 = vmatpush.bf16.msra.mxu0 %v10402_v17 }
 0x55b   : > { %v6578_v27 = vadd.f32 %v6577_v4, %v6564_v29  ;;  %v6540_v11 = vpop.f32.mrf.mxu0  ;;  %v6553_v28 = vpop.f32.mrf.mxu1 }
 0x55c   : > { %v6609_v35 = vsel %vm6601_vm15, %v6597_v51, %v6605_v14 }
 0x55d   : > { %v6613_v0 = vpack.c.bf16 %v6609_v35, %v6609_v35  ;;  %v6584_v10 = vadd.f32 %v6578_v27, %v6086_v2  ;;  %7264 = vmatpush.bf16.msra.mxu1 %v10411_v19 }
 0x55e   : > { %7253 = vmatpush.bf16.msra.mxu0 %v10401_v40 }
 0x55f   : > { %v6598_v24 = vadd.f32 %v6590_v63, %v6584_v10  ;;  %7039 = vmatmul.bf16.vlgmr.msra.gmra.mxu2 %v6613_v0  ;;  %v7149_v63 = vld [vmem:[%s12911_s12] sm:$0x1] }
 0x561   : > { %vm6602_vm9 = vcmp.ge.f32.partialorder %v6598_v24, 0.0  ;;  %v6606_v7 = vmul.f32 0.01, %v6598_v24  ;;  %7265 = vmatpush.bf16.msra.mxu1 %v10410_v53 }
 0x562   : > { %v6566_v5 = vpop.f32.mrf.mxu2  ;;  %v6579_v8 = vpop.f32.mrf.mxu3 }
 0x563   : > { %v6610_v57 = vsel %vm6602_vm9, %v6598_v24, %v6606_v7 }
 0x564   : > { %v6614_v61 = vpack.c.bf16 %v6610_v57, %v6610_v57 }
 0x565   : > { %7266 = vmatpush.bf16.msra.mxu1 %v10409_v9 }
 0x566   : > { %7052 = vmatmul.bf16.vlgmr.msra.gmra.mxu3 %v6614_v61 }
 0x56f   : > { %7091 = vmatmul.bf16.vlgmr.msrb.gmra.mxu2 %v6613_v0 }
 0x576   : > { %7104 = vmatmul.bf16.vlgmr.msrb.gmra.mxu3 %v6614_v61 }
 0x5bc   : > { %v7014_v22 = vpop.f32.mrf.mxu0 }
 0x5bd   : > { %v7015_v62 = vadd.f32 %v7014_v22, %v7001_v32 }
 0x5c4   : > { %v7016_v1 = vpop.f32.mrf.mxu0 }
 0x5c5   : > { %v7027_v25 = vpop.f32.mrf.mxu1 }
 0x5c6   : > { %v7028_v6 = vadd.f32 %v7027_v25, %v7015_v62 }
 0x5cc   : > { %v7066_v31 = vpop.f32.mrf.mxu0 }
 0x5cd   : > { %v7029_v58 = vpop.f32.mrf.mxu1  ;;  %v7067_v21 = vadd.f32 %v7066_v31, %v7002_v42 }
 0x5d4   : > { %v7068_v54 = vpop.f32.mrf.mxu0 }
 0x5d5   : > { %v7079_v15 = vpop.f32.mrf.mxu1 }
 0x5d6   : > { %v7080_v44 = vadd.f32 %v7079_v15, %v7067_v21 }
 0x5dd   : > { %v7081_v49 = vpop.f32.mrf.mxu1 }
 0x5e2   : > { %v7040_v33 = vpop.f32.mrf.mxu2 }
 0x5e3   : > { %v7041_v46 = vadd.f32 %v7040_v33, %v7028_v6 }
 0x5e9   : > { %v7053_v34 = vpop.f32.mrf.mxu3 }
 0x5ea   : > { %v7054_v45 = vadd.f32 %v7053_v34, %v7041_v46  ;;  %v7042_v12 = vpop.f32.mrf.mxu2 }
 0x5ec   : > { %vm7109_vm0 = vcmp.ge.f32.partialorder %v7054_v45, 0.0  ;;  %v7111_v48 = vmul.f32 0.01, %v7054_v45 }
 0x5ee   : > { %v7113_v38 = vsel %vm7109_vm0, %v7054_v45, %v7111_v48 }
 0x5ef   : > { %v7115_v41 = vpack.c.bf16 %v7113_v38, %v7113_v38 }
 0x5f1   : > { %v7055_v43 = vpop.f32.mrf.mxu3  ;;  %7254 = vmatmul.bf16.vlgmr.msra.gmra.mxu0 %v7115_v41 }
 0x5f2   : > { %v7092_v37 = vpop.f32.mrf.mxu2 }
 0x5f3   : > { %v7093_v30 = vadd.f32 %v7092_v37, %v7080_v44 }
 0x5f9   : > { %v7105_v51 = vpop.f32.mrf.mxu3 }
 0x5fa   : > { %v7106_v23 = vadd.f32 %v7105_v51, %v7093_v30  ;;  %v7094_v52 = vpop.f32.mrf.mxu2 }
 0x5fc   : > { %vm7110_vm5 = vcmp.ge.f32.partialorder %v7106_v23, 0.0  ;;  %v7112_v3 = vmul.f32 0.01, %v7106_v23 }
 0x5fe   : > { %v7114_v14 = vsel %vm7110_vm5, %v7106_v23, %v7112_v3 }
 0x5ff   : > { %v7116_v29 = vpack.c.bf16 %v7114_v14, %v7114_v14 }
 0x601   : > { %v7107_v4 = vpop.f32.mrf.mxu3  ;;  %7267 = vmatmul.bf16.vlgmr.msra.gmra.mxu1 %v7116_v29 }
 0x66e   : > { %v7255_v2 = vpop.f32.mrf.mxu0 }
 0x66f   : > { %v7256_v11 = vadd.f32 %v7255_v2, %v7149_v63 }
 0x676   : > { %v7257_v27 = vpop.f32.mrf.mxu0 }
 0x67e   : > { %v7268_v28 = vpop.f32.mrf.mxu1 }
 0x67f   : > { %v7269_v35 = vadd.f32 %v7268_v28, %v7256_v11 }
 0x681   : > { %v7273_v20 = vsel %vm12973_vm11, %v7269_v35, -inf }
 0x682   : > { %7274 = vmax.xlane.f32.xlu0 %v7273_v20 }
 0x686   : > { %v7270_v0 = vpop.f32.mrf.mxu1 }
 0x6f5   : > { %v7275_v10 = vpop.xlane.xlu0 %7274 }
 0x6f6   : > { %v7276_v24 = vsub.f32 %v7269_v35, %v7275_v10 }
 0x6f8   : > { %v7277_v7 = vmul.f32 1.442695, %v7276_v24 }
 0x6fa   : > { %10496 = vpow2.f32 %v7277_v7 }
 0x700   : > { %v10497_v5 = vpop.eup %10496 }
 0x701   : > { %v7279_v8 = vsel %vm12974_vm6, %v10497_v5, 0.0 }
 0x702   : > { %7280 = vadd.xlane.f32.xlu0 %v7279_v8 }
 0x775   : > { %v7281_v57 = vpop.xlane.xlu0 %7280 }
 0x776   : > { %10498 = vrcp.f32 %v7281_v57  ;;  %v7293_v18 = vand.u32 2147483648, %v7281_v57  ;;  %v7291_v16 = vand.u32 2147483647, %v7281_v57  ;;  %vm7287_vm1 = vweird.f32 %v7281_v57 }
 0x778   : > { %v7294_v60 = vor.u32 1.1754944e-38, %v7293_v18  ;;  %vm7292_vm2 = vcmp.eq.f32.partialorder %v7291_v16, 8.507059e+37 }
 0x77c   : > { %v10499_v61 = vpop.eup %10498 }
 0x77d   : > { %v7283_v55 = vmul.f32 %v10499_v61, %v7281_v57  ;;  %vm7288_vm8 = vweird.f32 %v10499_v61 }
 0x77e   : > { %vm7289_vm10 = vmor %vm7287_vm1, %vm7288_vm8 }
 0x77f   : > { %v7284_v36 = vsub.f32 1.0, %v7283_v55 }
 0x781   : > { %v7285_v26 = vmul.f32 %v10499_v61, %v7284_v36 }
 0x783   : > { %v7286_v22 = vadd.f32 %v10499_v61, %v7285_v26 }
 0x785   : > { %v7290_v13 = vsel %vm7289_vm10, %v10499_v61, %v7286_v22 }
 0x786   : > { %v7295_v47 = vsel %vm7292_vm2, %v7294_v60, %v7290_v13 }
 0x787   : > { %v7296_v25 = vmul.f32 %v10497_v5, %v7295_v47 }
 0x789   : > { %7297 = vst [vmem:[%s482_s28] sm:$0x1] %v7296_v25 }
 0x78a   : > { %10619 = shalt.err (!%p10616_p8)
}
 0x78b   : > { %10429 = dma.vmem_to_hbm [thread:$0]  (%p10784_p5), %s7310_s14, 16, %s7312_s18, %s7299_s19  }
 0x78c PF: > { %s12977_s24 = sld [smem:[#allocation16_spill]] }
 0x78d   : > { %s12978_s17 = sld [smem:[#allocation14_spill]] }
 0x792   : > { %p10451_p9 = scmp.ge.s32.totalorder %s12977_s24, 2 }
 0x793   : > { %s7323_s7 = sand.u32 1, %s12978_s17  }
 0x794   : > { %p10442_p10 = pnand %p10451_p9, %p10788_p6  ;;  %s7324_s3 = scalar_lea.sflag [#allocation6], %s7323_s7 }
 0x796   : > { %p10443_p11 = pneg %p10442_p10 }
 0x798   : > { %10645 = dma.done.wait (%p10443_p11), %s7324_s3, 16  }
 0x799   : > { %10647 = vsyncadd (%p10443_p11), %s7324_s3, 4294967280  ;;  %s12980_s28 = sld [smem:[#allocation17_spill]]  ;;  %s12983_s25 = smov %s10654_s26 }
 0x79a   : > { %s12981_s20 = sld [smem:[#allocation15_spill]] }
 0x79b   : > { %s12982_s27 = sld [smem:[#allocation18_spill]] }
 0x79f   : > { %p25_p12 = scmp.ge.s32.totalorder %s12980_s28, 4  }
 0x7a0   : > { %s12984_s26 = smov %s12981_s20 }
 0x7a1   :  { %27 = sbr.rel (!%p25_p12) target bundleno = 9 (0x9), region = 169 }
 0x7a6   :  { %7329 = vsyncpa [#allocation5], 1 }
 0x7a7   :  { %7331 = vsyncpa [#allocation5 + $0x1], 1 }
 0x7a8   :  { %7332 = vsyncpa [#allocation8], 1 }
 0x7a9   :  { %7333 = vsyncpa [#allocation6], 1 }
 0x7aa   :  { %7335 = vsyncpa [#allocation6 + $0x1], 1 }

</bundles_post_ra>
